<compile_context>
chip_gen: v7x
topology: tpu7x:2x2x1
jax: 0.10.0
libtpu: 0.0.40
codegen_flags: <defaults>
</compile_context>

<pallas_src>
import functools
import numpy as np

import jax
import jax.numpy as jnp
from jax.experimental import pallas as pl
from jax.experimental.pallas import tpu as pltpu

LN_EPS = 1e-5  # PyTorch nn.LayerNorm default


# ------------------------- small helpers -------------------------

def _full_spec(shape):
    """BlockSpec covering the whole array in one block (grid=(1,))."""
    nd = len(shape)
    return pl.BlockSpec(shape, lambda *_: (0,) * nd)


def _layernorm(y, gamma, beta):
    mu = jnp.mean(y, axis=-1, keepdims=True)
    var = jnp.mean(jnp.square(y - mu), axis=-1, keepdims=True)
    return (y - mu) * jax.lax.rsqrt(var + LN_EPS) * gamma + beta


# ------------------------- Pallas kernels -------------------------

def _mha_kernel(q_ref, kv_ref, wq_ref, bq_ref, wkv_ref, bkv_ref,
                wp_ref, bp_ref, g_ref, b_ref, o_ref, *, n_heads):
    """Fused MHA block: LN(proj(softmax(QK^T/s)V) + q_in)."""
    B, Lq, Dq = q_ref.shape
    _, Lk, Dk = kv_ref.shape
    U = wq_ref.shape[1]
    Dh = U // n_heads
    inv_scale = 1.0 / (float(Dh) ** 0.5)

    q_in = q_ref[...]                                   # (B, Lq, Dq)
    q2 = q_in.reshape(B * Lq, Dq)
    kv2 = kv_ref[...].reshape(B * Lk, Dk)

    # One matmul for Q, one for concatenated K|V (lane-denser than 2 separate).
    Q = jnp.dot(q2, wq_ref[...], preferred_element_type=jnp.float32) + bq_ref[...]
    KV = jnp.dot(kv2, wkv_ref[...], preferred_element_type=jnp.float32) + bkv_ref[...]
    Q = Q * inv_scale                                   # fold 1/sqrt(Dh) into Q
    Q3 = Q.reshape(B, Lq, U)
    KV3 = KV.reshape(B, Lk, 2 * U)

    # All batch elements and all heads handled in this single grid step.
    acc = None
    for h in range(n_heads):                            # static unroll (H <= 8)
        lo, hi = h * Dh, (h + 1) * Dh
        qh = Q3[:, :, lo:hi]                            # (B, Lq, Dh)
        kh = KV3[:, :, lo:hi]                           # (B, Lk, Dh)
        vh = KV3[:, :, U + lo:U + hi]                   # (B, Lk, Dh)
        s = jnp.einsum('bqd,bkd->bqk', qh, kh,
                       preferred_element_type=jnp.float32)
        s = s - jnp.max(s, axis=-1, keepdims=True)
        e = jnp.exp(s)
        p = e * pl.reciprocal(jnp.sum(e, axis=-1, keepdims=True), approx=True)
        oh = jnp.einsum('bqk,bkd->bqd', p, vh,
                        preferred_element_type=jnp.float32)
        # Per-head slice of the output projection (wp stored as (H, Dh, U)).
        contrib = jnp.dot(oh.reshape(B * Lq, Dh), wp_ref[h],
                          preferred_element_type=jnp.float32)
        acc = contrib if acc is None else acc + contrib

    y = acc + bp_ref[...] + q2                          # proj bias + residual
    y = _layernorm(y, g_ref[...], b_ref[...])
    o_ref[...] = y.reshape(B, Lq, U)


def _ffn_kernel(x_ref, w1_ref, b1_ref, w2_ref, b2_ref, g_ref, b_ref, o_ref):
    """Fused FFN block: LN(x + W2 relu(W1 x))."""
    B, L, D = x_ref.shape
    x2 = x_ref[...].reshape(B * L, D)
    h = jnp.dot(x2, w1_ref[...], preferred_element_type=jnp.float32) + b1_ref[...]
    h = jnp.maximum(h, 0.0)
    h = jnp.dot(h, w2_ref[...], preferred_element_type=jnp.float32) + b2_ref[...]
    y = _layernorm(x2 + h, g_ref[...], b_ref[...])
    o_ref[...] = y.reshape(B, L, D)


def _proj_relu_ln_kernel(x_ref, w_ref, b_ref, g_ref, be_ref, o_ref):
    """Segment-encoder tail: LN(relu(x @ W + b)) — no zeros residual."""
    h = jnp.dot(x_ref[...], w_ref[...], preferred_element_type=jnp.float32) + b_ref[...]
    h = jnp.maximum(h, 0.0)
    o_ref[...] = _layernorm(h, g_ref[...], be_ref[...])


def _encoder_head_kernel(lw_ref, x1_ref, x2_ref, w_ref, b_ref, xo_ref, cc_ref):
    """x = w0*x1 + w1*x2 ; chord_change_prob = sigmoid(x @ Wcc + bcc)."""
    x = lw_ref[0] * x1_ref[...] + lw_ref[1] * x2_ref[...]
    xo_ref[...] = x
    logit = jnp.dot(x, w_ref[...], preferred_element_type=jnp.float32) + b_ref[...]
    cc_ref[...] = 1.0 / (1.0 + jnp.exp(-logit))


def _decoder_head_kernel(lw_ref, x1_ref, x2_ref, w_ref, b_ref, o_ref):
    """logits = (w0*x1 + w1*x2) @ Wproj + bproj."""
    x = lw_ref[0] * x1_ref[...] + lw_ref[1] * x2_ref[...]
    o_ref[...] = jnp.dot(x, w_ref[...], preferred_element_type=jnp.float32) + b_ref[...]


# ------------------------- kernel wrappers -------------------------

def mha_block(p, q, kv, n_heads):
    B, Lq, Dq = q.shape
    _, Lk, Dk = kv.shape
    wq, bq = p['wq']
    wkv, bkv = p['wkv']
    wp, bp = p['proj']                                  # wp: (H, Dh, U)
    gamma, beta = p['ln']
    U = wq.shape[1]
    return pl.pallas_call(
        functools.partial(_mha_kernel, n_heads=n_heads),
        out_shape=jax.ShapeDtypeStruct((B, Lq, U), jnp.float32),
        grid=(1,),
        in_specs=[_full_spec((B, Lq, Dq)), _full_spec((B, Lk, Dk)),
                  _full_spec(wq.shape), _full_spec(bq.shape),
                  _full_spec(wkv.shape), _full_spec(bkv.shape),
                  _full_spec(wp.shape), _full_spec(bp.shape),
                  _full_spec(gamma.shape), _full_spec(beta.shape)],
        out_specs=_full_spec((B, Lq, U)),
    )(q, kv, wq, bq, wkv, bkv, wp, bp, gamma, beta)


def ffn_block(p, x):
    B, L, D = x.shape
    w1, b1 = p['l1']
    w2, b2 = p['l2']
    gamma, beta = p['ln']
    return pl.pallas_call(
        _ffn_kernel,
        out_shape=jax.ShapeDtypeStruct((B, L, D), jnp.float32),
        grid=(1,),
        in_specs=[_full_spec((B, L, D)),
                  _full_spec(w1.shape), _full_spec(b1.shape),
                  _full_spec(w2.shape), _full_spec(b2.shape),
                  _full_spec(gamma.shape), _full_spec(beta.shape)],
        out_specs=_full_spec((B, L, D)),
    )(x, w1, b1, w2, b2, gamma, beta)


def proj_relu_ln(x2d, proj, ln):
    M, D = x2d.shape
    w, b = proj
    gamma, beta = ln
    Dout = w.shape[1]
    return pl.pallas_call(
        _proj_relu_ln_kernel,
        out_shape=jax.ShapeDtypeStruct((M, Dout), jnp.float32),
        grid=(1,),
        in_specs=[_full_spec((M, D)),
                  _full_spec(w.shape), _full_spec(b.shape),
                  _full_spec(gamma.shape), _full_spec(beta.shape)],
        out_specs=_full_spec((M, Dout)),
    )(x2d, w, b, gamma, beta)


def encoder_head(layer_weight, x1, x2, cc_params):
    N, T, D = x1.shape
    M = N * T
    w, b = cc_params
    lw = jax.nn.softmax(layer_weight)                   # 2-element, plain JAX
    # TODO(synk): chord-change output is 1 lane wide (masked stores); could be
    # padded to 128 lanes and sliced here if this ever becomes hot.
    xc, cc = pl.pallas_call(
        _encoder_head_kernel,
        out_shape=(jax.ShapeDtypeStruct((M, D), jnp.float32),
                   jax.ShapeDtypeStruct((M, 1), jnp.float32)),
        grid=(1,),
        in_specs=[pl.BlockSpec(memory_space=pltpu.MemorySpace.SMEM),
                  _full_spec((M, D)), _full_spec((M, D)),
                  _full_spec(w.shape), _full_spec(b.shape)],
        out_specs=(_full_spec((M, D)), _full_spec((M, 1))),
    )(lw, x1.reshape(M, D), x2.reshape(M, D), w, b)
    return xc.reshape(N, T, D), cc.reshape(N, T)


def decoder_head(layer_weight, x1, x2, proj_params):
    N, T, D = x1.shape
    M = N * T
    w, b = proj_params
    C = w.shape[1]
    lw = jax.nn.softmax(layer_weight)
    out = pl.pallas_call(
        _decoder_head_kernel,
        out_shape=jax.ShapeDtypeStruct((M, C), jnp.float32),
        grid=(1,),
        in_specs=[pl.BlockSpec(memory_space=pltpu.MemorySpace.SMEM),
                  _full_spec((M, D)), _full_spec((M, D)),
                  _full_spec(w.shape), _full_spec(b.shape)],
        out_specs=_full_spec((M, C)),
    )(lw, x1.reshape(M, D), x2.reshape(M, D), w, b)
    return out.reshape(N, T, C)


# ------------------------- plain-JAX helpers -------------------------

def get_pos_enc(T, D):
    # Matches the PyTorch reference: base 1000 (not 10000).
    pos = np.arange(T, dtype=np.float32)[:, None]
    i = np.arange(D, dtype=np.float32)[None, :]
    angles = pos / np.power(1000.0, 2.0 * i / D)
    enc = np.zeros((T, D), dtype=np.float32)
    enc[:, 0::2] = np.sin(angles[:, 0::2])
    enc[:, 1::2] = np.cos(angles[:, 1::2])
    return jnp.asarray(enc)


def chord_block_compression(hidden, chord_changes):
    # hidden: (N, L, d), chord_changes: (N, L) bool.
    # Variable-length segment means, vectorized with a segment-id mask.
    # TODO(synk): O(L^2 * d); replace with a segment-sum if n_steps grows.
    cc = chord_changes.astype(jnp.float32)
    cc = cc.at[:, 0].set(0.0)            # loop starts at q=1 -> position 0 ignored
    seg_id = jnp.cumsum(cc, axis=1)      # (N, L)
    same = (seg_id[:, :, None] == seg_id[:, None, :]).astype(jnp.float32)
    counts = jnp.sum(same, axis=-1, keepdims=True)
    return jnp.einsum('nlq,nqd->nld', same, hidden) / counts


# ------------------------- parameter init -------------------------

def init_linear(key, in_dim, out_dim):
    kw, kb = jax.random.split(key)
    w = jax.random.normal(kw, (in_dim, out_dim), jnp.float32) * 0.05
    b = jax.random.normal(kb, (1, out_dim), jnp.float32) * 0.01
    return (w, b)


def init_mha(key, input_dim, n_units, n_heads):
    ks = jax.random.split(key, 4)
    wq, bq = init_linear(ks[0], input_dim, n_units)
    wk, bk = init_linear(ks[1], input_dim, n_units)
    wv, bv = init_linear(ks[2], input_dim, n_units)
    wp, bp = init_linear(ks[3], n_units, n_units)
    head_dim = n_units // n_heads
    return {
        'wq': (wq, bq),
        # K and V projections fused into one (D, 2U) matmul.
        'wkv': (jnp.concatenate([wk, wv], axis=1),
                jnp.concatenate([bk, bv], axis=1)),
        # Output projection split per head: (H, Dh, U) for leading-dim indexing.
        'proj': (wp.reshape(n_heads, head_dim, n_units), bp),
        'ln': (jnp.ones((1, n_units), jnp.float32),
               jnp.zeros((1, n_units), jnp.float32)),
    }


def init_ffn(key, d, h):
    k1, k2 = jax.random.split(key)
    return {
        'l1': init_linear(k1, d, h),
        'l2': init_linear(k2, h, d),
        'ln': (jnp.ones((1, d), jnp.float32), jnp.zeros((1, d), jnp.float32)),
    }


def init_encode_segment_time(key, F, W):
    embed = F * W
    k1, k2, k3 = jax.random.split(key, 3)
    return {
        'mhsa': init_mha(k1, F, F, n_heads=2),
        'ffn': init_ffn(k2, F, 4 * F),
        'proj': init_linear(k3, embed, embed),
        'ln': (jnp.ones((1, embed), jnp.float32), jnp.zeros((1, embed), jnp.float32)),
    }


def init_encode_segment_freq(key, F, W):
    embed = F * W
    k1, k2, k3 = jax.random.split(key, 3)
    return {
        'mhsa': init_mha(k1, W, W, n_heads=1),
        'ffn': init_ffn(k2, W, 4 * W),
        'proj': init_linear(k3, embed, embed),
        'ln': (jnp.ones((1, embed), jnp.float32), jnp.zeros((1, embed), jnp.float32)),
    }


def init_encoder(key, cfg):
    F, W = cfg['frequency_size'], cfg['segment_width']
    embed = F * W
    ks = jax.random.split(key, 6)
    return {
        'seg': init_encode_segment_time(ks[0], F, W),
        'layer_weight': jnp.ones((2,), jnp.float32),
        'mha1': init_mha(ks[1], embed, embed, n_heads=8),
        'ffn1': init_ffn(ks[2], embed, 4 * embed),
        'mha2': init_mha(ks[3], embed, embed, n_heads=8),
        'ffn2': init_ffn(ks[4], embed, 4 * embed),
        'chord_change': init_linear(ks[5], embed, 1),
    }


def init_decoder(key, cfg):
    F, W, C = cfg['frequency_size'], cfg['segment_width'], cfg['n_classes']
    embed = F * W
    ks = jax.random.split(key, 8)
    return {
        'seg': init_encode_segment_freq(ks[0], F, W),
        'layer_weight': jnp.ones((2,), jnp.float32),
        'mhsa1': init_mha(ks[1], embed, embed, n_heads=8),
        'mha1': init_mha(ks[2], embed, embed, n_heads=8),
        'ffn1': init_ffn(ks[3], embed, 4 * embed),
        'mhsa2': init_mha(ks[4], embed, embed, n_heads=8),
        'mha2': init_mha(ks[5], embed, embed, n_heads=8),
        'ffn2': init_ffn(ks[6], embed, 4 * embed),
        'proj': init_linear(ks[7], embed, C),
    }


def init_harmony_transformer(key, cfg):
    ke, kd = jax.random.split(key)
    return {'encoder': init_encoder(ke, cfg), 'decoder': init_decoder(kd, cfg)}


# ------------------------- forward (composing fused kernels) -------------------------

def encode_segment_time(p, x, F, W):
    N, T, _ = x.shape
    embed = F * W
    xs = jnp.transpose(x.reshape(-1, F, W), (0, 2, 1))        # (N*T, W, F)
    xs = xs + (get_pos_enc(W, F) * 0.01 + 0.01)[None]
    xs = mha_block(p['mhsa'], xs, xs, n_heads=2)
    xs = ffn_block(p['ffn'], xs)
    out = proj_relu_ln(xs.reshape(N * T, embed), p['proj'], p['ln'])
    return out.reshape(N, T, embed)


def encode_segment_freq(p, x, F, W):
    N, T, _ = x.shape
    embed = F * W
    xs = x.reshape(-1, F, W)                                  # (N*T, F, W)
    xs = xs + (get_pos_enc(F, W) * 0.01 + 0.01)[None]
    xs = mha_block(p['mhsa'], xs, xs, n_heads=1)
    xs = ffn_block(p['ffn'], xs)
    out = proj_relu_ln(xs.reshape(N * T, embed), p['proj'], p['ln'])
    return out.reshape(N, T, embed)


def encoder_forward(p, x, cfg):
    F, W, T = cfg['frequency_size'], cfg['segment_width'], cfg['n_steps']
    embed = F * W
    x = encode_segment_time(p['seg'], x, F, W)
    x = x + get_pos_enc(T, embed)[None]
    # dropout(drop=0.0) is identity
    x1 = ffn_block(p['ffn1'], mha_block(p['mha1'], x, x, n_heads=8))
    x2 = ffn_block(p['ffn2'], mha_block(p['mha2'], x1, x1, n_heads=8))
    return encoder_head(p['layer_weight'], x1, x2, p['chord_change'])


def decoder_forward(p, x, encoder_inputs_embedded, chord_change_prob, cfg):
    F, W, T = cfg['frequency_size'], cfg['segment_width'], cfg['n_steps']
    embed = F * W
    x = encode_segment_freq(p['seg'], x, F, W)
    blocked = chord_block_compression(x, chord_change_prob > 0.5)
    x = x + blocked + encoder_inputs_embedded
    x = x + get_pos_enc(T, embed)[None]
    x1 = mha_block(p['mhsa1'], x, x, n_heads=8)
    x1 = mha_block(p['mha1'], x1, encoder_inputs_embedded, n_heads=8)
    x1 = ffn_block(p['ffn1'], x1)
    x2 = mha_block(p['mhsa2'], x1, x1, n_heads=8)
    x2 = mha_block(p['mha2'], x2, encoder_inputs_embedded, n_heads=8)
    x2 = ffn_block(p['ffn2'], x2)
    return decoder_head(p['layer_weight'], x1, x2, p['proj'])


def harmony_transformer_forward(params, x, cfg):
    enc_embed, chord_change_prob = encoder_forward(params['encoder'], x, cfg)
    out = decoder_forward(params['decoder'], x, enc_embed, chord_change_prob, cfg)
    return chord_change_prob, out


# ------------------------- main -------------------------

if __name__ == "__main__":
    cfg = dict(n_steps=8, frequency_size=4, segment_width=8, n_classes=6)
    embed = cfg['frequency_size'] * cfg['segment_width']     # 32; 8 heads -> head_dim 4

    key = jax.random.PRNGKey(0)
    pkey, xkey = jax.random.split(key)
    params = init_harmony_transformer(pkey, cfg)

    x = jax.random.normal(xkey, (2, cfg['n_steps'], embed), jnp.float32)

    fwd = jax.jit(lambda p, xx: harmony_transformer_forward(p, xx, cfg))
    chord_change_prob, output = fwd(params, x)
    jax.block_until_ready((chord_change_prob, output))

    assert chord_change_prob.shape == (2, cfg['n_steps'])
    assert output.shape == (2, cfg['n_steps'], cfg['n_classes'])
    print("KERNEL_OK")
</pallas_src>

<mosaic_0001>
module attributes {stable_mosaic.version = 11 : i64} {
  func.func @_mha_kernel(%arg0: i32, %arg1: memref<16x8x4xf32, #tpu.memory_space<vmem>>, %arg2: memref<16x8x4xf32, #tpu.memory_space<vmem>>, %arg3: memref<4x4xf32, #tpu.memory_space<vmem>>, %arg4: memref<1x4xf32, #tpu.memory_space<vmem>>, %arg5: memref<4x8xf32, #tpu.memory_space<vmem>>, %arg6: memref<1x8xf32, #tpu.memory_space<vmem>>, %arg7: memref<2x2x4xf32, #tpu.memory_space<vmem>>, %arg8: memref<1x4xf32, #tpu.memory_space<vmem>>, %arg9: memref<1x4xf32, #tpu.memory_space<vmem>>, %arg10: memref<1x4xf32, #tpu.memory_space<vmem>>, %arg11: memref<16x8x4xf32, #tpu.memory_space<vmem>>) attributes {dimension_semantics = [#tpu.dimension_semantics<arbitrary>], iteration_bounds = array<i64: 1>, scalar_prefetch = 0 : i64, scratch_operands = 0 : i64, tpu.core_type = #tpu.core_type<tc>, window_params = [{pipeline_mode = #tpu.pipeline_mode<synchronous>, transform_indices = @transform_0, window_bounds = array<i64: 16, 8, 4>}, {pipeline_mode = #tpu.pipeline_mode<synchronous>, transform_indices = @transform_1, window_bounds = array<i64: 16, 8, 4>}, {pipeline_mode = #tpu.pipeline_mode<synchronous>, transform_indices = @transform_2, window_bounds = array<i64: 4, 4>}, {pipeline_mode = #tpu.pipeline_mode<synchronous>, transform_indices = @transform_3, window_bounds = array<i64: 1, 4>}, {pipeline_mode = #tpu.pipeline_mode<synchronous>, transform_indices = @transform_4, window_bounds = array<i64: 4, 8>}, {pipeline_mode = #tpu.pipeline_mode<synchronous>, transform_indices = @transform_5, window_bounds = array<i64: 1, 8>}, {pipeline_mode = #tpu.pipeline_mode<synchronous>, transform_indices = @transform_6, window_bounds = array<i64: 2, 2, 4>}, {pipeline_mode = #tpu.pipeline_mode<synchronous>, transform_indices = @transform_7, window_bounds = array<i64: 1, 4>}, {pipeline_mode = #tpu.pipeline_mode<synchronous>, transform_indices = @transform_8, window_bounds = array<i64: 1, 4>}, {pipeline_mode = #tpu.pipeline_mode<synchronous>, transform_indices = @transform_9, window_bounds = array<i64: 1, 4>}, {pipeline_mode = #tpu.pipeline_mode<synchronous>, transform_indices = @transform_10, window_bounds = array<i64: 16, 8, 4>}]} {
    %c0 = arith.constant 0 : index
    %c0_0 = arith.constant 0 : index
    %c0_1 = arith.constant 0 : index
    %0 = vector.load %arg1[%c0, %c0_0, %c0_1] : memref<16x8x4xf32, #tpu.memory_space<vmem>>, vector<16x8x4xf32>
    %1 = vector.shape_cast %0 : vector<16x8x4xf32> to vector<128x4xf32>
    %c0_2 = arith.constant 0 : index
    %c0_3 = arith.constant 0 : index
    %c0_4 = arith.constant 0 : index
    %2 = vector.load %arg2[%c0_2, %c0_3, %c0_4] : memref<16x8x4xf32, #tpu.memory_space<vmem>>, vector<16x8x4xf32>
    %3 = vector.shape_cast %2 : vector<16x8x4xf32> to vector<128x4xf32>
    %c0_5 = arith.constant 0 : index
    %c0_6 = arith.constant 0 : index
    %4 = vector.load %arg3[%c0_5, %c0_6] : memref<4x4xf32, #tpu.memory_space<vmem>>, vector<4x4xf32>
    %cst = arith.constant dense<0.000000e+00> : vector<128x4xf32>
    %5 = tpu.matmul %1, %4, %cst {dimension_numbers = #tpu.dot_dimension_numbers<[1], [0], [0], [1], [0, 0, 1, 1], [], []>} : vector<128x4xf32>, vector<4x4xf32>, vector<128x4xf32> -> vector<128x4xf32>
    %c0_7 = arith.constant 0 : index
    %c0_8 = arith.constant 0 : index
    %6 = vector.load %arg4[%c0_7, %c0_8] : memref<1x4xf32, #tpu.memory_space<vmem>>, vector<1x4xf32>
    %7 = vector.broadcast %6 : vector<1x4xf32> to vector<128x4xf32>
    %8 = arith.addf %5, %7 : vector<128x4xf32>
    %c0_9 = arith.constant 0 : index
    %c0_10 = arith.constant 0 : index
    %9 = vector.load %arg5[%c0_9, %c0_10] : memref<4x8xf32, #tpu.memory_space<vmem>>, vector<4x8xf32>
    %cst_11 = arith.constant dense<0.000000e+00> : vector<128x8xf32>
    %10 = tpu.matmul %3, %9, %cst_11 {dimension_numbers = #tpu.dot_dimension_numbers<[1], [0], [0], [1], [0, 0, 1, 1], [], []>} : vector<128x4xf32>, vector<4x8xf32>, vector<128x8xf32> -> vector<128x8xf32>
    %c0_12 = arith.constant 0 : index
    %c0_13 = arith.constant 0 : index
    %11 = vector.load %arg6[%c0_12, %c0_13] : memref<1x8xf32, #tpu.memory_space<vmem>>, vector<1x8xf32>
    %12 = vector.broadcast %11 : vector<1x8xf32> to vector<128x8xf32>
    %13 = arith.addf %10, %12 : vector<128x8xf32>
    %cst_14 = arith.constant 0.707106769 : f32
    %14 = vector.broadcast %cst_14 : f32 to vector<128x4xf32>
    %15 = arith.mulf %8, %14 : vector<128x4xf32>
    %16 = vector.shape_cast %15 : vector<128x4xf32> to vector<16x8x4xf32>
    %17 = vector.shape_cast %13 : vector<128x8xf32> to vector<16x8x8xf32>
    %18 = vector.extract_strided_slice %16 {offsets = [0, 0, 0], sizes = [16, 8, 2], strides = [1, 1, 1]} : vector<16x8x4xf32> to vector<16x8x2xf32>
    %19 = vector.extract_strided_slice %17 {offsets = [0, 0, 0], sizes = [16, 8, 2], strides = [1, 1, 1]} : vector<16x8x8xf32> to vector<16x8x2xf32>
    %20 = vector.extract_strided_slice %17 {offsets = [0, 0, 4], sizes = [16, 8, 2], strides = [1, 1, 1]} : vector<16x8x8xf32> to vector<16x8x2xf32>
    "tpu.trace_start"() <{level = 10 : i32, message = "bqd,bkd->bqk"}> : () -> ()
    %cst_15 = arith.constant dense<0.000000e+00> : vector<16x8x8xf32>
    %21 = tpu.matmul %18, %19, %cst_15 {dimension_numbers = #tpu.dot_dimension_numbers<[2], [2], [1], [1], [0, 0, 0, 1, 1, 1], [0], [0]>} : vector<16x8x2xf32>, vector<16x8x2xf32>, vector<16x8x8xf32> -> vector<16x8x8xf32>
    "tpu.trace_stop"() : () -> ()
    %cst_16 = arith.constant dense<0xFF800000> : vector<16x8xf32>
    %22 = vector.multi_reduction <maximumf>, %21, %cst_16 [2] : vector<16x8x8xf32> to vector<16x8xf32>
    %23 = vector.shape_cast %22 : vector<16x8xf32> to vector<16x8x1xf32>
    %24 = vector.broadcast %23 : vector<16x8x1xf32> to vector<16x8x8xf32>
    %25 = arith.subf %21, %24 : vector<16x8x8xf32>
    %26 = math.exp %25 : vector<16x8x8xf32>
    %cst_17 = arith.constant dense<0.000000e+00> : vector<16x8xf32>
    %27 = vector.multi_reduction <add>, %26, %cst_17 [2] : vector<16x8x8xf32> to vector<16x8xf32>
    %28 = vector.shape_cast %27 : vector<16x8xf32> to vector<16x8x1xf32>
    %29 = tpu.reciprocal %28 {approx = true} : vector<16x8x1xf32> -> vector<16x8x1xf32>
    %30 = vector.broadcast %29 : vector<16x8x1xf32> to vector<16x8x8xf32>
    %31 = arith.mulf %26, %30 : vector<16x8x8xf32>
    "tpu.trace_start"() <{level = 10 : i32, message = "bqk,bkd->bqd"}> : () -> ()
    %cst_18 = arith.constant dense<0.000000e+00> : vector<16x8x2xf32>
    %32 = tpu.matmul %31, %20, %cst_18 {dimension_numbers = #tpu.dot_dimension_numbers<[2], [1], [1], [2], [0, 0, 0, 1, 1, 2], [0], [0]>} : vector<16x8x8xf32>, vector<16x8x2xf32>, vector<16x8x2xf32> -> vector<16x8x2xf32>
    "tpu.trace_stop"() : () -> ()
    %33 = vector.shape_cast %32 : vector<16x8x2xf32> to vector<128x2xf32>
    %c0_19 = arith.constant 0 : index
    %c0_20 = arith.constant 0 : index
    %c0_21 = arith.constant 0 : index
    %34 = vector.load %arg7[%c0_19, %c0_20, %c0_21] : memref<2x2x4xf32, #tpu.memory_space<vmem>>, vector<1x2x4xf32>
    %35 = vector.shape_cast %34 : vector<1x2x4xf32> to vector<2x4xf32>
    %cst_22 = arith.constant dense<0.000000e+00> : vector<128x4xf32>
    %36 = tpu.matmul %33, %35, %cst_22 {dimension_numbers = #tpu.dot_dimension_numbers<[1], [0], [0], [1], [0, 0, 1, 1], [], []>} : vector<128x2xf32>, vector<2x4xf32>, vector<128x4xf32> -> vector<128x4xf32>
    %37 = vector.extract_strided_slice %16 {offsets = [0, 0, 2], sizes = [16, 8, 2], strides = [1, 1, 1]} : vector<16x8x4xf32> to vector<16x8x2xf32>
    %38 = vector.extract_strided_slice %17 {offsets = [0, 0, 2], sizes = [16, 8, 2], strides = [1, 1, 1]} : vector<16x8x8xf32> to vector<16x8x2xf32>
    %39 = vector.extract_strided_slice %17 {offsets = [0, 0, 6], sizes = [16, 8, 2], strides = [1, 1, 1]} : vector<16x8x8xf32> to vector<16x8x2xf32>
    "tpu.trace_start"() <{level = 10 : i32, message = "bqd,bkd->bqk"}> : () -> ()
    %cst_23 = arith.constant dense<0.000000e+00> : vector<16x8x8xf32>
    %40 = tpu.matmul %37, %38, %cst_23 {dimension_numbers = #tpu.dot_dimension_numbers<[2], [2], [1], [1], [0, 0, 0, 1, 1, 1], [0], [0]>} : vector<16x8x2xf32>, vector<16x8x2xf32>, vector<16x8x8xf32> -> vector<16x8x8xf32>
    "tpu.trace_stop"() : () -> ()
    %cst_24 = arith.constant dense<0xFF800000> : vector<16x8xf32>
    %41 = vector.multi_reduction <maximumf>, %40, %cst_24 [2] : vector<16x8x8xf32> to vector<16x8xf32>
    %42 = vector.shape_cast %41 : vector<16x8xf32> to vector<16x8x1xf32>
    %43 = vector.broadcast %42 : vector<16x8x1xf32> to vector<16x8x8xf32>
    %44 = arith.subf %40, %43 : vector<16x8x8xf32>
    %45 = math.exp %44 : vector<16x8x8xf32>
    %cst_25 = arith.constant dense<0.000000e+00> : vector<16x8xf32>
    %46 = vector.multi_reduction <add>, %45, %cst_25 [2] : vector<16x8x8xf32> to vector<16x8xf32>
    %47 = vector.shape_cast %46 : vector<16x8xf32> to vector<16x8x1xf32>
    %48 = tpu.reciprocal %47 {approx = true} : vector<16x8x1xf32> -> vector<16x8x1xf32>
    %49 = vector.broadcast %48 : vector<16x8x1xf32> to vector<16x8x8xf32>
    %50 = arith.mulf %45, %49 : vector<16x8x8xf32>
    "tpu.trace_start"() <{level = 10 : i32, message = "bqk,bkd->bqd"}> : () -> ()
    %cst_26 = arith.constant dense<0.000000e+00> : vector<16x8x2xf32>
    %51 = tpu.matmul %50, %39, %cst_26 {dimension_numbers = #tpu.dot_dimension_numbers<[2], [1], [1], [2], [0, 0, 0, 1, 1, 2], [0], [0]>} : vector<16x8x8xf32>, vector<16x8x2xf32>, vector<16x8x2xf32> -> vector<16x8x2xf32>
    "tpu.trace_stop"() : () -> ()
    %52 = vector.shape_cast %51 : vector<16x8x2xf32> to vector<128x2xf32>
    %c1 = arith.constant 1 : index
    %c0_27 = arith.constant 0 : index
    %c0_28 = arith.constant 0 : index
    %53 = vector.load %arg7[%c1, %c0_27, %c0_28] : memref<2x2x4xf32, #tpu.memory_space<vmem>>, vector<1x2x4xf32>
    %54 = vector.shape_cast %53 : vector<1x2x4xf32> to vector<2x4xf32>
    %cst_29 = arith.constant dense<0.000000e+00> : vector<128x4xf32>
    %55 = tpu.matmul %52, %54, %cst_29 {dimension_numbers = #tpu.dot_dimension_numbers<[1], [0], [0], [1], [0, 0, 1, 1], [], []>} : vector<128x2xf32>, vector<2x4xf32>, vector<128x4xf32> -> vector<128x4xf32>
    %56 = arith.addf %36, %55 : vector<128x4xf32>
    %c0_30 = arith.constant 0 : index
    %c0_31 = arith.constant 0 : index
    %57 = vector.load %arg8[%c0_30, %c0_31] : memref<1x4xf32, #tpu.memory_space<vmem>>, vector<1x4xf32>
    %58 = vector.broadcast %57 : vector<1x4xf32> to vector<128x4xf32>
    %59 = arith.addf %56, %58 : vector<128x4xf32>
    %60 = arith.addf %59, %1 : vector<128x4xf32>
    %c0_32 = arith.constant 0 : index
    %c0_33 = arith.constant 0 : index
    %61 = vector.load %arg9[%c0_32, %c0_33] : memref<1x4xf32, #tpu.memory_space<vmem>>, vector<1x4xf32>
    %c0_34 = arith.constant 0 : index
    %c0_35 = arith.constant 0 : index
    %62 = vector.load %arg10[%c0_34, %c0_35] : memref<1x4xf32, #tpu.memory_space<vmem>>, vector<1x4xf32>
    %cst_36 = arith.constant dense<0.000000e+00> : vector<128xf32>
    %63 = vector.multi_reduction <add>, %60, %cst_36 [1] : vector<128x4xf32> to vector<128xf32>
    %64 = vector.shape_cast %63 : vector<128xf32> to vector<128x1xf32>
    %cst_37 = arith.constant 4.000000e+00 : f32
    %65 = vector.broadcast %cst_37 : f32 to vector<128x1xf32>
    %66 = arith.divf %64, %65 : vector<128x1xf32>
    %67 = vector.broadcast %66 : vector<128x1xf32> to vector<128x4xf32>
    %68 = arith.subf %60, %67 : vector<128x4xf32>
    %69 = arith.mulf %68, %68 : vector<128x4xf32>
    %cst_38 = arith.constant dense<0.000000e+00> : vector<128xf32>
    %70 = vector.multi_reduction <add>, %69, %cst_38 [1] : vector<128x4xf32> to vector<128xf32>
    %71 = vector.shape_cast %70 : vector<128xf32> to vector<128x1xf32>
    %cst_39 = arith.constant 4.000000e+00 : f32
    %72 = vector.broadcast %cst_39 : f32 to vector<128x1xf32>
    %73 = arith.divf %71, %72 : vector<128x1xf32>
    %74 = vector.broadcast %66 : vector<128x1xf32> to vector<128x4xf32>
    %75 = arith.subf %60, %74 : vector<128x4xf32>
    %cst_40 = arith.constant 9.99999974E-6 : f32
    %76 = vector.broadcast %cst_40 : f32 to vector<128x1xf32>
    %77 = arith.addf %73, %76 : vector<128x1xf32>
    %78 = math.rsqrt %77 : vector<128x1xf32>
    %79 = vector.broadcast %78 : vector<128x1xf32> to vector<128x4xf32>
    %80 = arith.mulf %75, %79 : vector<128x4xf32>
    %81 = vector.broadcast %61 : vector<1x4xf32> to vector<128x4xf32>
    %82 = arith.mulf %80, %81 : vector<128x4xf32>
    %83 = vector.broadcast %62 : vector<1x4xf32> to vector<128x4xf32>
    %84 = arith.addf %82, %83 : vector<128x4xf32>
    %85 = vector.shape_cast %84 : vector<128x4xf32> to vector<16x8x4xf32>
    %c0_41 = arith.constant 0 : index
    %c0_42 = arith.constant 0 : index
    %c0_43 = arith.constant 0 : index
    %86 = vector.load %arg11[%c0_41, %c0_42, %c0_43] : memref<16x8x4xf32, #tpu.memory_space<vmem>>, vector<16x8x4xf32>
    tpu.vector_store %arg11[%c0_41, %c0_42, %c0_43], %85 {strides = array<i32>} : memref<16x8x4xf32, #tpu.memory_space<vmem>>, vector<16x8x4xf32>,
    return
  }
  func.func @transform_0(%arg0: i32) -> (i32, i32, i32) {
    %c0_i32 = arith.constant 0 : i32
    %c0_i32_0 = arith.constant 0 : i32
    %c0_i32_1 = arith.constant 0 : i32
    %c0_i32_2 = arith.constant 0 : i32
    return %c0_i32, %c0_i32_0, %c0_i32_1 : i32, i32, i32
  }
  func.func @transform_1(%arg0: i32) -> (i32, i32, i32) {
    %c0_i32 = arith.constant 0 : i32
    %c0_i32_0 = arith.constant 0 : i32
    %c0_i32_1 = arith.constant 0 : i32
    %c0_i32_2 = arith.constant 0 : i32
    return %c0_i32, %c0_i32_0, %c0_i32_1 : i32, i32, i32
  }
  func.func @transform_2(%arg0: i32) -> (i32, i32) {
    %c0_i32 = arith.constant 0 : i32
    %c0_i32_0 = arith.constant 0 : i32
    %c0_i32_1 = arith.constant 0 : i32
    return %c0_i32, %c0_i32_0 : i32, i32
  }
  func.func @transform_3(%arg0: i32) -> (i32, i32) {
    %c0_i32 = arith.constant 0 : i32
    %c0_i32_0 = arith.constant 0 : i32
    %c0_i32_1 = arith.constant 0 : i32
    return %c0_i32, %c0_i32_0 : i32, i32
  }
  func.func @transform_4(%arg0: i32) -> (i32, i32) {
    %c0_i32 = arith.constant 0 : i32
    %c0_i32_0 = arith.constant 0 : i32
    %c0_i32_1 = arith.constant 0 : i32
    return %c0_i32, %c0_i32_0 : i32, i32
  }
  func.func @transform_5(%arg0: i32) -> (i32, i32) {
    %c0_i32 = arith.constant 0 : i32
    %c0_i32_0 = arith.constant 0 : i32
    %c0_i32_1 = arith.constant 0 : i32
    return %c0_i32, %c0_i32_0 : i32, i32
  }
  func.func @transform_6(%arg0: i32) -> (i32, i32, i32) {
    %c0_i32 = arith.constant 0 : i32
    %c0_i32_0 = arith.constant 0 : i32
    %c0_i32_1 = arith.constant 0 : i32
    %c0_i32_2 = arith.constant 0 : i32
    return %c0_i32, %c0_i32_0, %c0_i32_1 : i32, i32, i32
  }
  func.func @transform_7(%arg0: i32) -> (i32, i32) {
    %c0_i32 = arith.constant 0 : i32
    %c0_i32_0 = arith.constant 0 : i32
    %c0_i32_1 = arith.constant 0 : i32
    return %c0_i32, %c0_i32_0 : i32, i32
  }
  func.func @transform_8(%arg0: i32) -> (i32, i32) {
    %c0_i32 = arith.constant 0 : i32
    %c0_i32_0 = arith.constant 0 : i32
    %c0_i32_1 = arith.constant 0 : i32
    return %c0_i32, %c0_i32_0 : i32, i32
  }
  func.func @transform_9(%arg0: i32) -> (i32, i32) {
    %c0_i32 = arith.constant 0 : i32
    %c0_i32_0 = arith.constant 0 : i32
    %c0_i32_1 = arith.constant 0 : i32
    return %c0_i32, %c0_i32_0 : i32, i32
  }
  func.func @transform_10(%arg0: i32) -> (i32, i32, i32) {
    %c0_i32 = arith.constant 0 : i32
    %c0_i32_0 = arith.constant 0 : i32
    %c0_i32_1 = arith.constant 0 : i32
    %c0_i32_2 = arith.constant 0 : i32
    return %c0_i32, %c0_i32_0, %c0_i32_1 : i32, i32, i32
  }
}

module attributes {stable_mosaic.version = 11 : i64} {
  func.func @_proj_relu_ln_kernel(%arg0: i32, %arg1: memref<16x32xf32, #tpu.memory_space<vmem>>, %arg2: memref<32x32xf32, #tpu.memory_space<vmem>>, %arg3: memref<1x32xf32, #tpu.memory_space<vmem>>, %arg4: memref<1x32xf32, #tpu.memory_space<vmem>>, %arg5: memref<1x32xf32, #tpu.memory_space<vmem>>, %arg6: memref<16x32xf32, #tpu.memory_space<vmem>>) attributes {dimension_semantics = [#tpu.dimension_semantics<arbitrary>], iteration_bounds = array<i64: 1>, scalar_prefetch = 0 : i64, scratch_operands = 0 : i64, tpu.core_type = #tpu.core_type<tc>, window_params = [{pipeline_mode = #tpu.pipeline_mode<synchronous>, transform_indices = @transform_0, window_bounds = array<i64: 16, 32>}, {pipeline_mode = #tpu.pipeline_mode<synchronous>, transform_indices = @transform_1, window_bounds = array<i64: 32, 32>}, {pipeline_mode = #tpu.pipeline_mode<synchronous>, transform_indices = @transform_2, window_bounds = array<i64: 1, 32>}, {pipeline_mode = #tpu.pipeline_mode<synchronous>, transform_indices = @transform_3, window_bounds = array<i64: 1, 32>}, {pipeline_mode = #tpu.pipeline_mode<synchronous>, transform_indices = @transform_4, window_bounds = array<i64: 1, 32>}, {pipeline_mode = #tpu.pipeline_mode<synchronous>, transform_indices = @transform_5, window_bounds = array<i64: 16, 32>}]} {
    %c0 = arith.constant 0 : index
    %c0_0 = arith.constant 0 : index
    %0 = vector.load %arg1[%c0, %c0_0] : memref<16x32xf32, #tpu.memory_space<vmem>>, vector<16x32xf32>
    %c0_1 = arith.constant 0 : index
    %c0_2 = arith.constant 0 : index
    %1 = vector.load %arg2[%c0_1, %c0_2] : memref<32x32xf32, #tpu.memory_space<vmem>>, vector<32x32xf32>
    %cst = arith.constant dense<0.000000e+00> : vector<16x32xf32>
    %2 = tpu.matmul %0, %1, %cst {dimension_numbers = #tpu.dot_dimension_numbers<[1], [0], [0], [1], [0, 0, 1, 1], [], []>} : vector<16x32xf32>, vector<32x32xf32>, vector<16x32xf32> -> vector<16x32xf32>
    %c0_3 = arith.constant 0 : index
    %c0_4 = arith.constant 0 : index
    %3 = vector.load %arg3[%c0_3, %c0_4] : memref<1x32xf32, #tpu.memory_space<vmem>>, vector<1x32xf32>
    %4 = vector.broadcast %3 : vector<1x32xf32> to vector<16x32xf32>
    %5 = arith.addf %2, %4 : vector<16x32xf32>
    %cst_5 = arith.constant 0.000000e+00 : f32
    %6 = vector.broadcast %cst_5 : f32 to vector<16x32xf32>
    %7 = arith.maximumf %5, %6 : vector<16x32xf32>
    %c0_6 = arith.constant 0 : index
    %c0_7 = arith.constant 0 : index
    %8 = vector.load %arg4[%c0_6, %c0_7] : memref<1x32xf32, #tpu.memory_space<vmem>>, vector<1x32xf32>
    %c0_8 = arith.constant 0 : index
    %c0_9 = arith.constant 0 : index
    %9 = vector.load %arg5[%c0_8, %c0_9] : memref<1x32xf32, #tpu.memory_space<vmem>>, vector<1x32xf32>
    %cst_10 = arith.constant dense<0.000000e+00> : vector<16xf32>
    %10 = vector.multi_reduction <add>, %7, %cst_10 [1] : vector<16x32xf32> to vector<16xf32>
    %11 = vector.shape_cast %10 : vector<16xf32> to vector<16x1xf32>
    %cst_11 = arith.constant 3.200000e+01 : f32
    %12 = vector.broadcast %cst_11 : f32 to vector<16x1xf32>
    %13 = arith.divf %11, %12 : vector<16x1xf32>
    %14 = vector.broadcast %13 : vector<16x1xf32> to vector<16x32xf32>
    %15 = arith.subf %7, %14 : vector<16x32xf32>
    %16 = arith.mulf %15, %15 : vector<16x32xf32>
    %cst_12 = arith.constant dense<0.000000e+00> : vector<16xf32>
    %17 = vector.multi_reduction <add>, %16, %cst_12 [1] : vector<16x32xf32> to vector<16xf32>
    %18 = vector.shape_cast %17 : vector<16xf32> to vector<16x1xf32>
    %cst_13 = arith.constant 3.200000e+01 : f32
    %19 = vector.broadcast %cst_13 : f32 to vector<16x1xf32>
    %20 = arith.divf %18, %19 : vector<16x1xf32>
    %21 = vector.broadcast %13 : vector<16x1xf32> to vector<16x32xf32>
    %22 = arith.subf %7, %21 : vector<16x32xf32>
    %cst_14 = arith.constant 9.99999974E-6 : f32
    %23 = vector.broadcast %cst_14 : f32 to vector<16x1xf32>
    %24 = arith.addf %20, %23 : vector<16x1xf32>
    %25 = math.rsqrt %24 : vector<16x1xf32>
    %26 = vector.broadcast %25 : vector<16x1xf32> to vector<16x32xf32>
    %27 = arith.mulf %22, %26 : vector<16x32xf32>
    %28 = vector.broadcast %8 : vector<1x32xf32> to vector<16x32xf32>
    %29 = arith.mulf %27, %28 : vector<16x32xf32>
    %30 = vector.broadcast %9 : vector<1x32xf32> to vector<16x32xf32>
    %31 = arith.addf %29, %30 : vector<16x32xf32>
    %c0_15 = arith.constant 0 : index
    %c0_16 = arith.constant 0 : index
    %32 = vector.load %arg6[%c0_15, %c0_16] : memref<16x32xf32, #tpu.memory_space<vmem>>, vector<16x32xf32>
    tpu.vector_store %arg6[%c0_15, %c0_16], %31 {strides = array<i32>} : memref<16x32xf32, #tpu.memory_space<vmem>>, vector<16x32xf32>,
    return
  }
  func.func @transform_0(%arg0: i32) -> (i32, i32) {
    %c0_i32 = arith.constant 0 : i32
    %c0_i32_0 = arith.constant 0 : i32
    %c0_i32_1 = arith.constant 0 : i32
    return %c0_i32, %c0_i32_0 : i32, i32
  }
  func.func @transform_1(%arg0: i32) -> (i32, i32) {
    %c0_i32 = arith.constant 0 : i32
    %c0_i32_0 = arith.constant 0 : i32
    %c0_i32_1 = arith.constant 0 : i32
    return %c0_i32, %c0_i32_0 : i32, i32
  }
  func.func @transform_2(%arg0: i32) -> (i32, i32) {
    %c0_i32 = arith.constant 0 : i32
    %c0_i32_0 = arith.constant 0 : i32
    %c0_i32_1 = arith.constant 0 : i32
    return %c0_i32, %c0_i32_0 : i32, i32
  }
  func.func @transform_3(%arg0: i32) -> (i32, i32) {
    %c0_i32 = arith.constant 0 : i32
    %c0_i32_0 = arith.constant 0 : i32
    %c0_i32_1 = arith.constant 0 : i32
    return %c0_i32, %c0_i32_0 : i32, i32
  }
  func.func @transform_4(%arg0: i32) -> (i32, i32) {
    %c0_i32 = arith.constant 0 : i32
    %c0_i32_0 = arith.constant 0 : i32
    %c0_i32_1 = arith.constant 0 : i32
    return %c0_i32, %c0_i32_0 : i32, i32
  }
  func.func @transform_5(%arg0: i32) -> (i32, i32) {
    %c0_i32 = arith.constant 0 : i32
    %c0_i32_0 = arith.constant 0 : i32
    %c0_i32_1 = arith.constant 0 : i32
    return %c0_i32, %c0_i32_0 : i32, i32
  }
}

module attributes {stable_mosaic.version = 11 : i64} {
  func.func @_ffn_kernel(%arg0: i32, %arg1: memref<16x8x4xf32, #tpu.memory_space<vmem>>, %arg2: memref<4x16xf32, #tpu.memory_space<vmem>>, %arg3: memref<1x16xf32, #tpu.memory_space<vmem>>, %arg4: memref<16x4xf32, #tpu.memory_space<vmem>>, %arg5: memref<1x4xf32, #tpu.memory_space<vmem>>, %arg6: memref<1x4xf32, #tpu.memory_space<vmem>>, %arg7: memref<1x4xf32, #tpu.memory_space<vmem>>, %arg8: memref<16x8x4xf32, #tpu.memory_space<vmem>>) attributes {dimension_semantics = [#tpu.dimension_semantics<arbitrary>], iteration_bounds = array<i64: 1>, scalar_prefetch = 0 : i64, scratch_operands = 0 : i64, tpu.core_type = #tpu.core_type<tc>, window_params = [{pipeline_mode = #tpu.pipeline_mode<synchronous>, transform_indices = @transform_0, window_bounds = array<i64: 16, 8, 4>}, {pipeline_mode = #tpu.pipeline_mode<synchronous>, transform_indices = @transform_1, window_bounds = array<i64: 4, 16>}, {pipeline_mode = #tpu.pipeline_mode<synchronous>, transform_indices = @transform_2, window_bounds = array<i64: 1, 16>}, {pipeline_mode = #tpu.pipeline_mode<synchronous>, transform_indices = @transform_3, window_bounds = array<i64: 16, 4>}, {pipeline_mode = #tpu.pipeline_mode<synchronous>, transform_indices = @transform_4, window_bounds = array<i64: 1, 4>}, {pipeline_mode = #tpu.pipeline_mode<synchronous>, transform_indices = @transform_5, window_bounds = array<i64: 1, 4>}, {pipeline_mode = #tpu.pipeline_mode<synchronous>, transform_indices = @transform_6, window_bounds = array<i64: 1, 4>}, {pipeline_mode = #tpu.pipeline_mode<synchronous>, transform_indices = @transform_7, window_bounds = array<i64: 16, 8, 4>}]} {
    %c0 = arith.constant 0 : index
    %c0_0 = arith.constant 0 : index
    %c0_1 = arith.constant 0 : index
    %0 = vector.load %arg1[%c0, %c0_0, %c0_1] : memref<16x8x4xf32, #tpu.memory_space<vmem>>, vector<16x8x4xf32>
    %1 = vector.shape_cast %0 : vector<16x8x4xf32> to vector<128x4xf32>
    %c0_2 = arith.constant 0 : index
    %c0_3 = arith.constant 0 : index
    %2 = vector.load %arg2[%c0_2, %c0_3] : memref<4x16xf32, #tpu.memory_space<vmem>>, vector<4x16xf32>
    %cst = arith.constant dense<0.000000e+00> : vector<128x16xf32>
    %3 = tpu.matmul %1, %2, %cst {dimension_numbers = #tpu.dot_dimension_numbers<[1], [0], [0], [1], [0, 0, 1, 1], [], []>} : vector<128x4xf32>, vector<4x16xf32>, vector<128x16xf32> -> vector<128x16xf32>
    %c0_4 = arith.constant 0 : index
    %c0_5 = arith.constant 0 : index
    %4 = vector.load %arg3[%c0_4, %c0_5] : memref<1x16xf32, #tpu.memory_space<vmem>>, vector<1x16xf32>
    %5 = vector.broadcast %4 : vector<1x16xf32> to vector<128x16xf32>
    %6 = arith.addf %3, %5 : vector<128x16xf32>
    %cst_6 = arith.constant 0.000000e+00 : f32
    %7 = vector.broadcast %cst_6 : f32 to vector<128x16xf32>
    %8 = arith.maximumf %6, %7 : vector<128x16xf32>
    %c0_7 = arith.constant 0 : index
    %c0_8 = arith.constant 0 : index
    %9 = vector.load %arg4[%c0_7, %c0_8] : memref<16x4xf32, #tpu.memory_space<vmem>>, vector<16x4xf32>
    %cst_9 = arith.constant dense<0.000000e+00> : vector<128x4xf32>
    %10 = tpu.matmul %8, %9, %cst_9 {dimension_numbers = #tpu.dot_dimension_numbers<[1], [0], [0], [1], [0, 0, 1, 1], [], []>} : vector<128x16xf32>, vector<16x4xf32>, vector<128x4xf32> -> vector<128x4xf32>
    %c0_10 = arith.constant 0 : index
    %c0_11 = arith.constant 0 : index
    %11 = vector.load %arg5[%c0_10, %c0_11] : memref<1x4xf32, #tpu.memory_space<vmem>>, vector<1x4xf32>
    %12 = vector.broadcast %11 : vector<1x4xf32> to vector<128x4xf32>
    %13 = arith.addf %10, %12 : vector<128x4xf32>
    %14 = arith.addf %1, %13 : vector<128x4xf32>
    %c0_12 = arith.constant 0 : index
    %c0_13 = arith.constant 0 : index
    %15 = vector.load %arg6[%c0_12, %c0_13] : memref<1x4xf32, #tpu.memory_space<vmem>>, vector<1x4xf32>
    %c0_14 = arith.constant 0 : index
    %c0_15 = arith.constant 0 : index
    %16 = vector.load %arg7[%c0_14, %c0_15] : memref<1x4xf32, #tpu.memory_space<vmem>>, vector<1x4xf32>
    %cst_16 = arith.constant dense<0.000000e+00> : vector<128xf32>
    %17 = vector.multi_reduction <add>, %14, %cst_16 [1] : vector<128x4xf32> to vector<128xf32>
    %18 = vector.shape_cast %17 : vector<128xf32> to vector<128x1xf32>
    %cst_17 = arith.constant 4.000000e+00 : f32
    %19 = vector.broadcast %cst_17 : f32 to vector<128x1xf32>
    %20 = arith.divf %18, %19 : vector<128x1xf32>
    %21 = vector.broadcast %20 : vector<128x1xf32> to vector<128x4xf32>
    %22 = arith.subf %14, %21 : vector<128x4xf32>
    %23 = arith.mulf %22, %22 : vector<128x4xf32>
    %cst_18 = arith.constant dense<0.000000e+00> : vector<128xf32>
    %24 = vector.multi_reduction <add>, %23, %cst_18 [1] : vector<128x4xf32> to vector<128xf32>
    %25 = vector.shape_cast %24 : vector<128xf32> to vector<128x1xf32>
    %cst_19 = arith.constant 4.000000e+00 : f32
    %26 = vector.broadcast %cst_19 : f32 to vector<128x1xf32>
    %27 = arith.divf %25, %26 : vector<128x1xf32>
    %28 = vector.broadcast %20 : vector<128x1xf32> to vector<128x4xf32>
    %29 = arith.subf %14, %28 : vector<128x4xf32>
    %cst_20 = arith.constant 9.99999974E-6 : f32
    %30 = vector.broadcast %cst_20 : f32 to vector<128x1xf32>
    %31 = arith.addf %27, %30 : vector<128x1xf32>
    %32 = math.rsqrt %31 : vector<128x1xf32>
    %33 = vector.broadcast %32 : vector<128x1xf32> to vector<128x4xf32>
    %34 = arith.mulf %29, %33 : vector<128x4xf32>
    %35 = vector.broadcast %15 : vector<1x4xf32> to vector<128x4xf32>
    %36 = arith.mulf %34, %35 : vector<128x4xf32>
    %37 = vector.broadcast %16 : vector<1x4xf32> to vector<128x4xf32>
    %38 = arith.addf %36, %37 : vector<128x4xf32>
    %39 = vector.shape_cast %38 : vector<128x4xf32> to vector<16x8x4xf32>
    %c0_21 = arith.constant 0 : index
    %c0_22 = arith.constant 0 : index
    %c0_23 = arith.constant 0 : index
    %40 = vector.load %arg8[%c0_21, %c0_22, %c0_23] : memref<16x8x4xf32, #tpu.memory_space<vmem>>, vector<16x8x4xf32>
    tpu.vector_store %arg8[%c0_21, %c0_22, %c0_23], %39 {strides = array<i32>} : memref<16x8x4xf32, #tpu.memory_space<vmem>>, vector<16x8x4xf32>,
    return
  }
  func.func @transform_0(%arg0: i32) -> (i32, i32, i32) {
    %c0_i32 = arith.constant 0 : i32
    %c0_i32_0 = arith.constant 0 : i32
    %c0_i32_1 = arith.constant 0 : i32
    %c0_i32_2 = arith.constant 0 : i32
    return %c0_i32, %c0_i32_0, %c0_i32_1 : i32, i32, i32
  }
  func.func @transform_1(%arg0: i32) -> (i32, i32) {
    %c0_i32 = arith.constant 0 : i32
    %c0_i32_0 = arith.constant 0 : i32
    %c0_i32_1 = arith.constant 0 : i32
    return %c0_i32, %c0_i32_0 : i32, i32
  }
  func.func @transform_2(%arg0: i32) -> (i32, i32) {
    %c0_i32 = arith.constant 0 : i32
    %c0_i32_0 = arith.constant 0 : i32
    %c0_i32_1 = arith.constant 0 : i32
    return %c0_i32, %c0_i32_0 : i32, i32
  }
  func.func @transform_3(%arg0: i32) -> (i32, i32) {
    %c0_i32 = arith.constant 0 : i32
    %c0_i32_0 = arith.constant 0 : i32
    %c0_i32_1 = arith.constant 0 : i32
    return %c0_i32, %c0_i32_0 : i32, i32
  }
  func.func @transform_4(%arg0: i32) -> (i32, i32) {
    %c0_i32 = arith.constant 0 : i32
    %c0_i32_0 = arith.constant 0 : i32
    %c0_i32_1 = arith.constant 0 : i32
    return %c0_i32, %c0_i32_0 : i32, i32
  }
  func.func @transform_5(%arg0: i32) -> (i32, i32) {
    %c0_i32 = arith.constant 0 : i32
    %c0_i32_0 = arith.constant 0 : i32
    %c0_i32_1 = arith.constant 0 : i32
    return %c0_i32, %c0_i32_0 : i32, i32
  }
  func.func @transform_6(%arg0: i32) -> (i32, i32) {
    %c0_i32 = arith.constant 0 : i32
    %c0_i32_0 = arith.constant 0 : i32
    %c0_i32_1 = arith.constant 0 : i32
    return %c0_i32, %c0_i32_0 : i32, i32
  }
  func.func @transform_7(%arg0: i32) -> (i32, i32, i32) {
    %c0_i32 = arith.constant 0 : i32
    %c0_i32_0 = arith.constant 0 : i32
    %c0_i32_1 = arith.constant 0 : i32
    %c0_i32_2 = arith.constant 0 : i32
    return %c0_i32, %c0_i32_0, %c0_i32_1 : i32, i32, i32
  }
}

module attributes {stable_mosaic.version = 11 : i64} {
  func.func @_mha_kernel(%arg0: i32, %arg1: memref<2x8x32xf32, #tpu.memory_space<vmem>>, %arg2: memref<2x8x32xf32, #tpu.memory_space<vmem>>, %arg3: memref<32x32xf32, #tpu.memory_space<vmem>>, %arg4: memref<1x32xf32, #tpu.memory_space<vmem>>, %arg5: memref<32x64xf32, #tpu.memory_space<vmem>>, %arg6: memref<1x64xf32, #tpu.memory_space<vmem>>, %arg7: memref<8x4x32xf32, #tpu.memory_space<vmem>>, %arg8: memref<1x32xf32, #tpu.memory_space<vmem>>, %arg9: memref<1x32xf32, #tpu.memory_space<vmem>>, %arg10: memref<1x32xf32, #tpu.memory_space<vmem>>, %arg11: memref<2x8x32xf32, #tpu.memory_space<vmem>>) attributes {dimension_semantics = [#tpu.dimension_semantics<arbitrary>], iteration_bounds = array<i64: 1>, scalar_prefetch = 0 : i64, scratch_operands = 0 : i64, tpu.core_type = #tpu.core_type<tc>, window_params = [{pipeline_mode = #tpu.pipeline_mode<synchronous>, transform_indices = @transform_0, window_bounds = array<i64: 2, 8, 32>}, {pipeline_mode = #tpu.pipeline_mode<synchronous>, transform_indices = @transform_1, window_bounds = array<i64: 2, 8, 32>}, {pipeline_mode = #tpu.pipeline_mode<synchronous>, transform_indices = @transform_2, window_bounds = array<i64: 32, 32>}, {pipeline_mode = #tpu.pipeline_mode<synchronous>, transform_indices = @transform_3, window_bounds = array<i64: 1, 32>}, {pipeline_mode = #tpu.pipeline_mode<synchronous>, transform_indices = @transform_4, window_bounds = array<i64: 32, 64>}, {pipeline_mode = #tpu.pipeline_mode<synchronous>, transform_indices = @transform_5, window_bounds = array<i64: 1, 64>}, {pipeline_mode = #tpu.pipeline_mode<synchronous>, transform_indices = @transform_6, window_bounds = array<i64: 8, 4, 32>}, {pipeline_mode = #tpu.pipeline_mode<synchronous>, transform_indices = @transform_7, window_bounds = array<i64: 1, 32>}, {pipeline_mode = #tpu.pipeline_mode<synchronous>, transform_indices = @transform_8, window_bounds = array<i64: 1, 32>}, {pipeline_mode = #tpu.pipeline_mode<synchronous>, transform_indices = @transform_9, window_bounds = array<i64: 1, 32>}, {pipeline_mode = #tpu.pipeline_mode<synchronous>, transform_indices = @transform_10, window_bounds = array<i64: 2, 8, 32>}]} {
    %c0 = arith.constant 0 : index
    %c0_0 = arith.constant 0 : index
    %c0_1 = arith.constant 0 : index
    %0 = vector.load %arg1[%c0, %c0_0, %c0_1] : memref<2x8x32xf32, #tpu.memory_space<vmem>>, vector<2x8x32xf32>
    %1 = vector.shape_cast %0 : vector<2x8x32xf32> to vector<16x32xf32>
    %c0_2 = arith.constant 0 : index
    %c0_3 = arith.constant 0 : index
    %c0_4 = arith.constant 0 : index
    %2 = vector.load %arg2[%c0_2, %c0_3, %c0_4] : memref<2x8x32xf32, #tpu.memory_space<vmem>>, vector<2x8x32xf32>
    %3 = vector.shape_cast %2 : vector<2x8x32xf32> to vector<16x32xf32>
    %c0_5 = arith.constant 0 : index
    %c0_6 = arith.constant 0 : index
    %4 = vector.load %arg3[%c0_5, %c0_6] : memref<32x32xf32, #tpu.memory_space<vmem>>, vector<32x32xf32>
    %cst = arith.constant dense<0.000000e+00> : vector<16x32xf32>
    %5 = tpu.matmul %1, %4, %cst {dimension_numbers = #tpu.dot_dimension_numbers<[1], [0], [0], [1], [0, 0, 1, 1], [], []>} : vector<16x32xf32>, vector<32x32xf32>, vector<16x32xf32> -> vector<16x32xf32>
    %c0_7 = arith.constant 0 : index
    %c0_8 = arith.constant 0 : index
    %6 = vector.load %arg4[%c0_7, %c0_8] : memref<1x32xf32, #tpu.memory_space<vmem>>, vector<1x32xf32>
    %7 = vector.broadcast %6 : vector<1x32xf32> to vector<16x32xf32>
    %8 = arith.addf %5, %7 : vector<16x32xf32>
    %c0_9 = arith.constant 0 : index
    %c0_10 = arith.constant 0 : index
    %9 = vector.load %arg5[%c0_9, %c0_10] : memref<32x64xf32, #tpu.memory_space<vmem>>, vector<32x64xf32>
    %cst_11 = arith.constant dense<0.000000e+00> : vector<16x64xf32>
    %10 = tpu.matmul %3, %9, %cst_11 {dimension_numbers = #tpu.dot_dimension_numbers<[1], [0], [0], [1], [0, 0, 1, 1], [], []>} : vector<16x32xf32>, vector<32x64xf32>, vector<16x64xf32> -> vector<16x64xf32>
    %c0_12 = arith.constant 0 : index
    %c0_13 = arith.constant 0 : index
    %11 = vector.load %arg6[%c0_12, %c0_13] : memref<1x64xf32, #tpu.memory_space<vmem>>, vector<1x64xf32>
    %12 = vector.broadcast %11 : vector<1x64xf32> to vector<16x64xf32>
    %13 = arith.addf %10, %12 : vector<16x64xf32>
    %cst_14 = arith.constant 5.000000e-01 : f32
    %14 = vector.broadcast %cst_14 : f32 to vector<16x32xf32>
    %15 = arith.mulf %8, %14 : vector<16x32xf32>
    %16 = vector.shape_cast %15 : vector<16x32xf32> to vector<2x8x32xf32>
    %17 = vector.shape_cast %13 : vector<16x64xf32> to vector<2x8x64xf32>
    %18 = vector.extract_strided_slice %16 {offsets = [0, 0, 0], sizes = [2, 8, 4], strides = [1, 1, 1]} : vector<2x8x32xf32> to vector<2x8x4xf32>
    %19 = vector.extract_strided_slice %17 {offsets = [0, 0, 0], sizes = [2, 8, 4], strides = [1, 1, 1]} : vector<2x8x64xf32> to vector<2x8x4xf32>
    %20 = vector.extract_strided_slice %17 {offsets = [0, 0, 32], sizes = [2, 8, 4], strides = [1, 1, 1]} : vector<2x8x64xf32> to vector<2x8x4xf32>
    "tpu.trace_start"() <{level = 10 : i32, message = "bqd,bkd->bqk"}> : () -> ()
    %cst_15 = arith.constant dense<0.000000e+00> : vector<2x8x8xf32>
    %21 = tpu.matmul %18, %19, %cst_15 {dimension_numbers = #tpu.dot_dimension_numbers<[2], [2], [1], [1], [0, 0, 0, 1, 1, 1], [0], [0]>} : vector<2x8x4xf32>, vector<2x8x4xf32>, vector<2x8x8xf32> -> vector<2x8x8xf32>
    "tpu.trace_stop"() : () -> ()
    %cst_16 = arith.constant dense<0xFF800000> : vector<2x8xf32>
    %22 = vector.multi_reduction <maximumf>, %21, %cst_16 [2] : vector<2x8x8xf32> to vector<2x8xf32>
    %23 = vector.shape_cast %22 : vector<2x8xf32> to vector<2x8x1xf32>
    %24 = vector.broadcast %23 : vector<2x8x1xf32> to vector<2x8x8xf32>
    %25 = arith.subf %21, %24 : vector<2x8x8xf32>
    %26 = math.exp %25 : vector<2x8x8xf32>
    %cst_17 = arith.constant dense<0.000000e+00> : vector<2x8xf32>
    %27 = vector.multi_reduction <add>, %26, %cst_17 [2] : vector<2x8x8xf32> to vector<2x8xf32>
    %28 = vector.shape_cast %27 : vector<2x8xf32> to vector<2x8x1xf32>
    %29 = tpu.reciprocal %28 {approx = true} : vector<2x8x1xf32> -> vector<2x8x1xf32>
    %30 = vector.broadcast %29 : vector<2x8x1xf32> to vector<2x8x8xf32>
    %31 = arith.mulf %26, %30 : vector<2x8x8xf32>
    "tpu.trace_start"() <{level = 10 : i32, message = "bqk,bkd->bqd"}> : () -> ()
    %cst_18 = arith.constant dense<0.000000e+00> : vector<2x8x4xf32>
    %32 = tpu.matmul %31, %20, %cst_18 {dimension_numbers = #tpu.dot_dimension_numbers<[2], [1], [1], [2], [0, 0, 0, 1, 1, 2], [0], [0]>} : vector<2x8x8xf32>, vector<2x8x4xf32>, vector<2x8x4xf32> -> vector<2x8x4xf32>
    "tpu.trace_stop"() : () -> ()
    %33 = vector.shape_cast %32 : vector<2x8x4xf32> to vector<16x4xf32>
    %c0_19 = arith.constant 0 : index
    %c0_20 = arith.constant 0 : index
    %c0_21 = arith.constant 0 : index
    %34 = vector.load %arg7[%c0_19, %c0_20, %c0_21] : memref<8x4x32xf32, #tpu.memory_space<vmem>>, vector<1x4x32xf32>
    %35 = vector.shape_cast %34 : vector<1x4x32xf32> to vector<4x32xf32>
    %cst_22 = arith.constant dense<0.000000e+00> : vector<16x32xf32>
    %36 = tpu.matmul %33, %35, %cst_22 {dimension_numbers = #tpu.dot_dimension_numbers<[1], [0], [0], [1], [0, 0, 1, 1], [], []>} : vector<16x4xf32>, vector<4x32xf32>, vector<16x32xf32> -> vector<16x32xf32>
    %37 = vector.extract_strided_slice %16 {offsets = [0, 0, 4], sizes = [2, 8, 4], strides = [1, 1, 1]} : vector<2x8x32xf32> to vector<2x8x4xf32>
    %38 = vector.extract_strided_slice %17 {offsets = [0, 0, 4], sizes = [2, 8, 4], strides = [1, 1, 1]} : vector<2x8x64xf32> to vector<2x8x4xf32>
    %39 = vector.extract_strided_slice %17 {offsets = [0, 0, 36], sizes = [2, 8, 4], strides = [1, 1, 1]} : vector<2x8x64xf32> to vector<2x8x4xf32>
    "tpu.trace_start"() <{level = 10 : i32, message = "bqd,bkd->bqk"}> : () -> ()
    %cst_23 = arith.constant dense<0.000000e+00> : vector<2x8x8xf32>
    %40 = tpu.matmul %37, %38, %cst_23 {dimension_numbers = #tpu.dot_dimension_numbers<[2], [2], [1], [1], [0, 0, 0, 1, 1, 1], [0], [0]>} : vector<2x8x4xf32>, vector<2x8x4xf32>, vector<2x8x8xf32> -> vector<2x8x8xf32>
    "tpu.trace_stop"() : () -> ()
    %cst_24 = arith.constant dense<0xFF800000> : vector<2x8xf32>
    %41 = vector.multi_reduction <maximumf>, %40, %cst_24 [2] : vector<2x8x8xf32> to vector<2x8xf32>
    %42 = vector.shape_cast %41 : vector<2x8xf32> to vector<2x8x1xf32>
    %43 = vector.broadcast %42 : vector<2x8x1xf32> to vector<2x8x8xf32>
    %44 = arith.subf %40, %43 : vector<2x8x8xf32>
    %45 = math.exp %44 : vector<2x8x8xf32>
    %cst_25 = arith.constant dense<0.000000e+00> : vector<2x8xf32>
    %46 = vector.multi_reduction <add>, %45, %cst_25 [2] : vector<2x8x8xf32> to vector<2x8xf32>
    %47 = vector.shape_cast %46 : vector<2x8xf32> to vector<2x8x1xf32>
    %48 = tpu.reciprocal %47 {approx = true} : vector<2x8x1xf32> -> vector<2x8x1xf32>
    %49 = vector.broadcast %48 : vector<2x8x1xf32> to vector<2x8x8xf32>
    %50 = arith.mulf %45, %49 : vector<2x8x8xf32>
    "tpu.trace_start"() <{level = 10 : i32, message = "bqk,bkd->bqd"}> : () -> ()
    %cst_26 = arith.constant dense<0.000000e+00> : vector<2x8x4xf32>
    %51 = tpu.matmul %50, %39, %cst_26 {dimension_numbers = #tpu.dot_dimension_numbers<[2], [1], [1], [2], [0, 0, 0, 1, 1, 2], [0], [0]>} : vector<2x8x8xf32>, vector<2x8x4xf32>, vector<2x8x4xf32> -> vector<2x8x4xf32>
    "tpu.trace_stop"() : () -> ()
    %52 = vector.shape_cast %51 : vector<2x8x4xf32> to vector<16x4xf32>
    %c1 = arith.constant 1 : index
    %c0_27 = arith.constant 0 : index
    %c0_28 = arith.constant 0 : index
    %53 = vector.load %arg7[%c1, %c0_27, %c0_28] : memref<8x4x32xf32, #tpu.memory_space<vmem>>, vector<1x4x32xf32>
    %54 = vector.shape_cast %53 : vector<1x4x32xf32> to vector<4x32xf32>
    %cst_29 = arith.constant dense<0.000000e+00> : vector<16x32xf32>
    %55 = tpu.matmul %52, %54, %cst_29 {dimension_numbers = #tpu.dot_dimension_numbers<[1], [0], [0], [1], [0, 0, 1, 1], [], []>} : vector<16x4xf32>, vector<4x32xf32>, vector<16x32xf32> -> vector<16x32xf32>
    %56 = arith.addf %36, %55 : vector<16x32xf32>
    %57 = vector.extract_strided_slice %16 {offsets = [0, 0, 8], sizes = [2, 8, 4], strides = [1, 1, 1]} : vector<2x8x32xf32> to vector<2x8x4xf32>
    %58 = vector.extract_strided_slice %17 {offsets = [0, 0, 8], sizes = [2, 8, 4], strides = [1, 1, 1]} : vector<2x8x64xf32> to vector<2x8x4xf32>
    %59 = vector.extract_strided_slice %17 {offsets = [0, 0, 40], sizes = [2, 8, 4], strides = [1, 1, 1]} : vector<2x8x64xf32> to vector<2x8x4xf32>
    "tpu.trace_start"() <{level = 10 : i32, message = "bqd,bkd->bqk"}> : () -> ()
    %cst_30 = arith.constant dense<0.000000e+00> : vector<2x8x8xf32>
    %60 = tpu.matmul %57, %58, %cst_30 {dimension_numbers = #tpu.dot_dimension_numbers<[2], [2], [1], [1], [0, 0, 0, 1, 1, 1], [0], [0]>} : vector<2x8x4xf32>, vector<2x8x4xf32>, vector<2x8x8xf32> -> vector<2x8x8xf32>
    "tpu.trace_stop"() : () -> ()
    %cst_31 = arith.constant dense<0xFF800000> : vector<2x8xf32>
    %61 = vector.multi_reduction <maximumf>, %60, %cst_31 [2] : vector<2x8x8xf32> to vector<2x8xf32>
    %62 = vector.shape_cast %61 : vector<2x8xf32> to vector<2x8x1xf32>
    %63 = vector.broadcast %62 : vector<2x8x1xf32> to vector<2x8x8xf32>
    %64 = arith.subf %60, %63 : vector<2x8x8xf32>
    %65 = math.exp %64 : vector<2x8x8xf32>
    %cst_32 = arith.constant dense<0.000000e+00> : vector<2x8xf32>
    %66 = vector.multi_reduction <add>, %65, %cst_32 [2] : vector<2x8x8xf32> to vector<2x8xf32>
    %67 = vector.shape_cast %66 : vector<2x8xf32> to vector<2x8x1xf32>
    %68 = tpu.reciprocal %67 {approx = true} : vector<2x8x1xf32> -> vector<2x8x1xf32>
    %69 = vector.broadcast %68 : vector<2x8x1xf32> to vector<2x8x8xf32>
    %70 = arith.mulf %65, %69 : vector<2x8x8xf32>
    "tpu.trace_start"() <{level = 10 : i32, message = "bqk,bkd->bqd"}> : () -> ()
    %cst_33 = arith.constant dense<0.000000e+00> : vector<2x8x4xf32>
    %71 = tpu.matmul %70, %59, %cst_33 {dimension_numbers = #tpu.dot_dimension_numbers<[2], [1], [1], [2], [0, 0, 0, 1, 1, 2], [0], [0]>} : vector<2x8x8xf32>, vector<2x8x4xf32>, vector<2x8x4xf32> -> vector<2x8x4xf32>
    "tpu.trace_stop"() : () -> ()
    %72 = vector.shape_cast %71 : vector<2x8x4xf32> to vector<16x4xf32>
    %c2 = arith.constant 2 : index
    %c0_34 = arith.constant 0 : index
    %c0_35 = arith.constant 0 : index
    %73 = vector.load %arg7[%c2, %c0_34, %c0_35] : memref<8x4x32xf32, #tpu.memory_space<vmem>>, vector<1x4x32xf32>
    %74 = vector.shape_cast %73 : vector<1x4x32xf32> to vector<4x32xf32>
    %cst_36 = arith.constant dense<0.000000e+00> : vector<16x32xf32>
    %75 = tpu.matmul %72, %74, %cst_36 {dimension_numbers = #tpu.dot_dimension_numbers<[1], [0], [0], [1], [0, 0, 1, 1], [], []>} : vector<16x4xf32>, vector<4x32xf32>, vector<16x32xf32> -> vector<16x32xf32>
    %76 = arith.addf %56, %75 : vector<16x32xf32>
    %77 = vector.extract_strided_slice %16 {offsets = [0, 0, 12], sizes = [2, 8, 4], strides = [1, 1, 1]} : vector<2x8x32xf32> to vector<2x8x4xf32>
    %78 = vector.extract_strided_slice %17 {offsets = [0, 0, 12], sizes = [2, 8, 4], strides = [1, 1, 1]} : vector<2x8x64xf32> to vector<2x8x4xf32>
    %79 = vector.extract_strided_slice %17 {offsets = [0, 0, 44], sizes = [2, 8, 4], strides = [1, 1, 1]} : vector<2x8x64xf32> to vector<2x8x4xf32>
    "tpu.trace_start"() <{level = 10 : i32, message = "bqd,bkd->bqk"}> : () -> ()
    %cst_37 = arith.constant dense<0.000000e+00> : vector<2x8x8xf32>
    %80 = tpu.matmul %77, %78, %cst_37 {dimension_numbers = #tpu.dot_dimension_numbers<[2], [2], [1], [1], [0, 0, 0, 1, 1, 1], [0], [0]>} : vector<2x8x4xf32>, vector<2x8x4xf32>, vector<2x8x8xf32> -> vector<2x8x8xf32>
    "tpu.trace_stop"() : () -> ()
    %cst_38 = arith.constant dense<0xFF800000> : vector<2x8xf32>
    %81 = vector.multi_reduction <maximumf>, %80, %cst_38 [2] : vector<2x8x8xf32> to vector<2x8xf32>
    %82 = vector.shape_cast %81 : vector<2x8xf32> to vector<2x8x1xf32>
    %83 = vector.broadcast %82 : vector<2x8x1xf32> to vector<2x8x8xf32>
    %84 = arith.subf %80, %83 : vector<2x8x8xf32>
    %85 = math.exp %84 : vector<2x8x8xf32>
    %cst_39 = arith.constant dense<0.000000e+00> : vector<2x8xf32>
    %86 = vector.multi_reduction <add>, %85, %cst_39 [2] : vector<2x8x8xf32> to vector<2x8xf32>
    %87 = vector.shape_cast %86 : vector<2x8xf32> to vector<2x8x1xf32>
    %88 = tpu.reciprocal %87 {approx = true} : vector<2x8x1xf32> -> vector<2x8x1xf32>
    %89 = vector.broadcast %88 : vector<2x8x1xf32> to vector<2x8x8xf32>
    %90 = arith.mulf %85, %89 : vector<2x8x8xf32>
    "tpu.trace_start"() <{level = 10 : i32, message = "bqk,bkd->bqd"}> : () -> ()
    %cst_40 = arith.constant dense<0.000000e+00> : vector<2x8x4xf32>
    %91 = tpu.matmul %90, %79, %cst_40 {dimension_numbers = #tpu.dot_dimension_numbers<[2], [1], [1], [2], [0, 0, 0, 1, 1, 2], [0], [0]>} : vector<2x8x8xf32>, vector<2x8x4xf32>, vector<2x8x4xf32> -> vector<2x8x4xf32>
    "tpu.trace_stop"() : () -> ()
    %92 = vector.shape_cast %91 : vector<2x8x4xf32> to vector<16x4xf32>
    %c3 = arith.constant 3 : index
    %c0_41 = arith.constant 0 : index
    %c0_42 = arith.constant 0 : index
    %93 = vector.load %arg7[%c3, %c0_41, %c0_42] : memref<8x4x32xf32, #tpu.memory_space<vmem>>, vector<1x4x32xf32>
    %94 = vector.shape_cast %93 : vector<1x4x32xf32> to vector<4x32xf32>
    %cst_43 = arith.constant dense<0.000000e+00> : vector<16x32xf32>
    %95 = tpu.matmul %92, %94, %cst_43 {dimension_numbers = #tpu.dot_dimension_numbers<[1], [0], [0], [1], [0, 0, 1, 1], [], []>} : vector<16x4xf32>, vector<4x32xf32>, vector<16x32xf32> -> vector<16x32xf32>
    %96 = arith.addf %76, %95 : vector<16x32xf32>
    %97 = vector.extract_strided_slice %16 {offsets = [0, 0, 16], sizes = [2, 8, 4], strides = [1, 1, 1]} : vector<2x8x32xf32> to vector<2x8x4xf32>
    %98 = vector.extract_strided_slice %17 {offsets = [0, 0, 16], sizes = [2, 8, 4], strides = [1, 1, 1]} : vector<2x8x64xf32> to vector<2x8x4xf32>
    %99 = vector.extract_strided_slice %17 {offsets = [0, 0, 48], sizes = [2, 8, 4], strides = [1, 1, 1]} : vector<2x8x64xf32> to vector<2x8x4xf32>
    "tpu.trace_start"() <{level = 10 : i32, message = "bqd,bkd->bqk"}> : () -> ()
    %cst_44 = arith.constant dense<0.000000e+00> : vector<2x8x8xf32>
    %100 = tpu.matmul %97, %98, %cst_44 {dimension_numbers = #tpu.dot_dimension_numbers<[2], [2], [1], [1], [0, 0, 0, 1, 1, 1], [0], [0]>} : vector<2x8x4xf32>, vector<2x8x4xf32>, vector<2x8x8xf32> -> vector<2x8x8xf32>
    "tpu.trace_stop"() : () -> ()
    %cst_45 = arith.constant dense<0xFF800000> : vector<2x8xf32>
    %101 = vector.multi_reduction <maximumf>, %100, %cst_45 [2] : vector<2x8x8xf32> to vector<2x8xf32>
    %102 = vector.shape_cast %101 : vector<2x8xf32> to vector<2x8x1xf32>
    %103 = vector.broadcast %102 : vector<2x8x1xf32> to vector<2x8x8xf32>
    %104 = arith.subf %100, %103 : vector<2x8x8xf32>
    %105 = math.exp %104 : vector<2x8x8xf32>
    %cst_46 = arith.constant dense<0.000000e+00> : vector<2x8xf32>
    %106 = vector.multi_reduction <add>, %105, %cst_46 [2] : vector<2x8x8xf32> to vector<2x8xf32>
    %107 = vector.shape_cast %106 : vector<2x8xf32> to vector<2x8x1xf32>
    %108 = tpu.reciprocal %107 {approx = true} : vector<2x8x1xf32> -> vector<2x8x1xf32>
    %109 = vector.broadcast %108 : vector<2x8x1xf32> to vector<2x8x8xf32>
    %110 = arith.mulf %105, %109 : vector<2x8x8xf32>
    "tpu.trace_start"() <{level = 10 : i32, message = "bqk,bkd->bqd"}> : () -> ()
    %cst_47 = arith.constant dense<0.000000e+00> : vector<2x8x4xf32>
    %111 = tpu.matmul %110, %99, %cst_47 {dimension_numbers = #tpu.dot_dimension_numbers<[2], [1], [1], [2], [0, 0, 0, 1, 1, 2], [0], [0]>} : vector<2x8x8xf32>, vector<2x8x4xf32>, vector<2x8x4xf32> -> vector<2x8x4xf32>
    "tpu.trace_stop"() : () -> ()
    %112 = vector.shape_cast %111 : vector<2x8x4xf32> to vector<16x4xf32>
    %c4 = arith.constant 4 : index
    %c0_48 = arith.constant 0 : index
    %c0_49 = arith.constant 0 : index
    %113 = vector.load %arg7[%c4, %c0_48, %c0_49] : memref<8x4x32xf32, #tpu.memory_space<vmem>>, vector<1x4x32xf32>
    %114 = vector.shape_cast %113 : vector<1x4x32xf32> to vector<4x32xf32>
    %cst_50 = arith.constant dense<0.000000e+00> : vector<16x32xf32>
    %115 = tpu.matmul %112, %114, %cst_50 {dimension_numbers = #tpu.dot_dimension_numbers<[1], [0], [0], [1], [0, 0, 1, 1], [], []>} : vector<16x4xf32>, vector<4x32xf32>, vector<16x32xf32> -> vector<16x32xf32>
    %116 = arith.addf %96, %115 : vector<16x32xf32>
    %117 = vector.extract_strided_slice %16 {offsets = [0, 0, 20], sizes = [2, 8, 4], strides = [1, 1, 1]} : vector<2x8x32xf32> to vector<2x8x4xf32>
    %118 = vector.extract_strided_slice %17 {offsets = [0, 0, 20], sizes = [2, 8, 4], strides = [1, 1, 1]} : vector<2x8x64xf32> to vector<2x8x4xf32>
    %119 = vector.extract_strided_slice %17 {offsets = [0, 0, 52], sizes = [2, 8, 4], strides = [1, 1, 1]} : vector<2x8x64xf32> to vector<2x8x4xf32>
    "tpu.trace_start"() <{level = 10 : i32, message = "bqd,bkd->bqk"}> : () -> ()
    %cst_51 = arith.constant dense<0.000000e+00> : vector<2x8x8xf32>
    %120 = tpu.matmul %117, %118, %cst_51 {dimension_numbers = #tpu.dot_dimension_numbers<[2], [2], [1], [1], [0, 0, 0, 1, 1, 1], [0], [0]>} : vector<2x8x4xf32>, vector<2x8x4xf32>, vector<2x8x8xf32> -> vector<2x8x8xf32>
    "tpu.trace_stop"() : () -> ()
    %cst_52 = arith.constant dense<0xFF800000> : vector<2x8xf32>
    %121 = vector.multi_reduction <maximumf>, %120, %cst_52 [2] : vector<2x8x8xf32> to vector<2x8xf32>
    %122 = vector.shape_cast %121 : vector<2x8xf32> to vector<2x8x1xf32>
    %123 = vector.broadcast %122 : vector<2x8x1xf32> to vector<2x8x8xf32>
    %124 = arith.subf %120, %123 : vector<2x8x8xf32>
    %125 = math.exp %124 : vector<2x8x8xf32>
    %cst_53 = arith.constant dense<0.000000e+00> : vector<2x8xf32>
    %126 = vector.multi_reduction <add>, %125, %cst_53 [2] : vector<2x8x8xf32> to vector<2x8xf32>
    %127 = vector.shape_cast %126 : vector<2x8xf32> to vector<2x8x1xf32>
    %128 = tpu.reciprocal %127 {approx = true} : vector<2x8x1xf32> -> vector<2x8x1xf32>
    %129 = vector.broadcast %128 : vector<2x8x1xf32> to vector<2x8x8xf32>
    %130 = arith.mulf %125, %129 : vector<2x8x8xf32>
    "tpu.trace_start"() <{level = 10 : i32, message = "bqk,bkd->bqd"}> : () -> ()
    %cst_54 = arith.constant dense<0.000000e+00> : vector<2x8x4xf32>
    %131 = tpu.matmul %130, %119, %cst_54 {dimension_numbers = #tpu.dot_dimension_numbers<[2], [1], [1], [2], [0, 0, 0, 1, 1, 2], [0], [0]>} : vector<2x8x8xf32>, vector<2x8x4xf32>, vector<2x8x4xf32> -> vector<2x8x4xf32>
    "tpu.trace_stop"() : () -> ()
    %132 = vector.shape_cast %131 : vector<2x8x4xf32> to vector<16x4xf32>
    %c5 = arith.constant 5 : index
    %c0_55 = arith.constant 0 : index
    %c0_56 = arith.constant 0 : index
    %133 = vector.load %arg7[%c5, %c0_55, %c0_56] : memref<8x4x32xf32, #tpu.memory_space<vmem>>, vector<1x4x32xf32>
    %134 = vector.shape_cast %133 : vector<1x4x32xf32> to vector<4x32xf32>
    %cst_57 = arith.constant dense<0.000000e+00> : vector<16x32xf32>
    %135 = tpu.matmul %132, %134, %cst_57 {dimension_numbers = #tpu.dot_dimension_numbers<[1], [0], [0], [1], [0, 0, 1, 1], [], []>} : vector<16x4xf32>, vector<4x32xf32>, vector<16x32xf32> -> vector<16x32xf32>
    %136 = arith.addf %116, %135 : vector<16x32xf32>
    %137 = vector.extract_strided_slice %16 {offsets = [0, 0, 24], sizes = [2, 8, 4], strides = [1, 1, 1]} : vector<2x8x32xf32> to vector<2x8x4xf32>
    %138 = vector.extract_strided_slice %17 {offsets = [0, 0, 24], sizes = [2, 8, 4], strides = [1, 1, 1]} : vector<2x8x64xf32> to vector<2x8x4xf32>
    %139 = vector.extract_strided_slice %17 {offsets = [0, 0, 56], sizes = [2, 8, 4], strides = [1, 1, 1]} : vector<2x8x64xf32> to vector<2x8x4xf32>
    "tpu.trace_start"() <{level = 10 : i32, message = "bqd,bkd->bqk"}> : () -> ()
    %cst_58 = arith.constant dense<0.000000e+00> : vector<2x8x8xf32>
    %140 = tpu.matmul %137, %138, %cst_58 {dimension_numbers = #tpu.dot_dimension_numbers<[2], [2], [1], [1], [0, 0, 0, 1, 1, 1], [0], [0]>} : vector<2x8x4xf32>, vector<2x8x4xf32>, vector<2x8x8xf32> -> vector<2x8x8xf32>
    "tpu.trace_stop"() : () -> ()
    %cst_59 = arith.constant dense<0xFF800000> : vector<2x8xf32>
    %141 = vector.multi_reduction <maximumf>, %140, %cst_59 [2] : vector<2x8x8xf32> to vector<2x8xf32>
    %142 = vector.shape_cast %141 : vector<2x8xf32> to vector<2x8x1xf32>
    %143 = vector.broadcast %142 : vector<2x8x1xf32> to vector<2x8x8xf32>
    %144 = arith.subf %140, %143 : vector<2x8x8xf32>
    %145 = math.exp %144 : vector<2x8x8xf32>
    %cst_60 = arith.constant dense<0.000000e+00> : vector<2x8xf32>
    %146 = vector.multi_reduction <add>, %145, %cst_60 [2] : vector<2x8x8xf32> to vector<2x8xf32>
    %147 = vector.shape_cast %146 : vector<2x8xf32> to vector<2x8x1xf32>
    %148 = tpu.reciprocal %147 {approx = true} : vector<2x8x1xf32> -> vector<2x8x1xf32>
    %149 = vector.broadcast %148 : vector<2x8x1xf32> to vector<2x8x8xf32>
    %150 = arith.mulf %145, %149 : vector<2x8x8xf32>
    "tpu.trace_start"() <{level = 10 : i32, message = "bqk,bkd->bqd"}> : () -> ()
    %cst_61 = arith.constant dense<0.000000e+00> : vector<2x8x4xf32>
    %151 = tpu.matmul %150, %139, %cst_61 {dimension_numbers = #tpu.dot_dimension_numbers<[2], [1], [1], [2], [0, 0, 0, 1, 1, 2], [0], [0]>} : vector<2x8x8xf32>, vector<2x8x4xf32>, vector<2x8x4xf32> -> vector<2x8x4xf32>
    "tpu.trace_stop"() : () -> ()
    %152 = vector.shape_cast %151 : vector<2x8x4xf32> to vector<16x4xf32>
    %c6 = arith.constant 6 : index
    %c0_62 = arith.constant 0 : index
    %c0_63 = arith.constant 0 : index
    %153 = vector.load %arg7[%c6, %c0_62, %c0_63] : memref<8x4x32xf32, #tpu.memory_space<vmem>>, vector<1x4x32xf32>
    %154 = vector.shape_cast %153 : vector<1x4x32xf32> to vector<4x32xf32>
    %cst_64 = arith.constant dense<0.000000e+00> : vector<16x32xf32>
    %155 = tpu.matmul %152, %154, %cst_64 {dimension_numbers = #tpu.dot_dimension_numbers<[1], [0], [0], [1], [0, 0, 1, 1], [], []>} : vector<16x4xf32>, vector<4x32xf32>, vector<16x32xf32> -> vector<16x32xf32>
    %156 = arith.addf %136, %155 : vector<16x32xf32>
    %157 = vector.extract_strided_slice %16 {offsets = [0, 0, 28], sizes = [2, 8, 4], strides = [1, 1, 1]} : vector<2x8x32xf32> to vector<2x8x4xf32>
    %158 = vector.extract_strided_slice %17 {offsets = [0, 0, 28], sizes = [2, 8, 4], strides = [1, 1, 1]} : vector<2x8x64xf32> to vector<2x8x4xf32>
    %159 = vector.extract_strided_slice %17 {offsets = [0, 0, 60], sizes = [2, 8, 4], strides = [1, 1, 1]} : vector<2x8x64xf32> to vector<2x8x4xf32>
    "tpu.trace_start"() <{level = 10 : i32, message = "bqd,bkd->bqk"}> : () -> ()
    %cst_65 = arith.constant dense<0.000000e+00> : vector<2x8x8xf32>
    %160 = tpu.matmul %157, %158, %cst_65 {dimension_numbers = #tpu.dot_dimension_numbers<[2], [2], [1], [1], [0, 0, 0, 1, 1, 1], [0], [0]>} : vector<2x8x4xf32>, vector<2x8x4xf32>, vector<2x8x8xf32> -> vector<2x8x8xf32>
    "tpu.trace_stop"() : () -> ()
    %cst_66 = arith.constant dense<0xFF800000> : vector<2x8xf32>
    %161 = vector.multi_reduction <maximumf>, %160, %cst_66 [2] : vector<2x8x8xf32> to vector<2x8xf32>
    %162 = vector.shape_cast %161 : vector<2x8xf32> to vector<2x8x1xf32>
    %163 = vector.broadcast %162 : vector<2x8x1xf32> to vector<2x8x8xf32>
    %164 = arith.subf %160, %163 : vector<2x8x8xf32>
    %165 = math.exp %164 : vector<2x8x8xf32>
    %cst_67 = arith.constant dense<0.000000e+00> : vector<2x8xf32>
    %166 = vector.multi_reduction <add>, %165, %cst_67 [2] : vector<2x8x8xf32> to vector<2x8xf32>
    %167 = vector.shape_cast %166 : vector<2x8xf32> to vector<2x8x1xf32>
    %168 = tpu.reciprocal %167 {approx = true} : vector<2x8x1xf32> -> vector<2x8x1xf32>
    %169 = vector.broadcast %168 : vector<2x8x1xf32> to vector<2x8x8xf32>
    %170 = arith.mulf %165, %169 : vector<2x8x8xf32>
    "tpu.trace_start"() <{level = 10 : i32, message = "bqk,bkd->bqd"}> : () -> ()
    %cst_68 = arith.constant dense<0.000000e+00> : vector<2x8x4xf32>
    %171 = tpu.matmul %170, %159, %cst_68 {dimension_numbers = #tpu.dot_dimension_numbers<[2], [1], [1], [2], [0, 0, 0, 1, 1, 2], [0], [0]>} : vector<2x8x8xf32>, vector<2x8x4xf32>, vector<2x8x4xf32> -> vector<2x8x4xf32>
    "tpu.trace_stop"() : () -> ()
    %172 = vector.shape_cast %171 : vector<2x8x4xf32> to vector<16x4xf32>
    %c7 = arith.constant 7 : index
    %c0_69 = arith.constant 0 : index
    %c0_70 = arith.constant 0 : index
    %173 = vector.load %arg7[%c7, %c0_69, %c0_70] : memref<8x4x32xf32, #tpu.memory_space<vmem>>, vector<1x4x32xf32>
    %174 = vector.shape_cast %173 : vector<1x4x32xf32> to vector<4x32xf32>
    %cst_71 = arith.constant dense<0.000000e+00> : vector<16x32xf32>
    %175 = tpu.matmul %172, %174, %cst_71 {dimension_numbers = #tpu.dot_dimension_numbers<[1], [0], [0], [1], [0, 0, 1, 1], [], []>} : vector<16x4xf32>, vector<4x32xf32>, vector<16x32xf32> -> vector<16x32xf32>
    %176 = arith.addf %156, %175 : vector<16x32xf32>
    %c0_72 = arith.constant 0 : index
    %c0_73 = arith.constant 0 : index
    %177 = vector.load %arg8[%c0_72, %c0_73] : memref<1x32xf32, #tpu.memory_space<vmem>>, vector<1x32xf32>
    %178 = vector.broadcast %177 : vector<1x32xf32> to vector<16x32xf32>
    %179 = arith.addf %176, %178 : vector<16x32xf32>
    %180 = arith.addf %179, %1 : vector<16x32xf32>
    %c0_74 = arith.constant 0 : index
    %c0_75 = arith.constant 0 : index
    %181 = vector.load %arg9[%c0_74, %c0_75] : memref<1x32xf32, #tpu.memory_space<vmem>>, vector<1x32xf32>
    %c0_76 = arith.constant 0 : index
    %c0_77 = arith.constant 0 : index
    %182 = vector.load %arg10[%c0_76, %c0_77] : memref<1x32xf32, #tpu.memory_space<vmem>>, vector<1x32xf32>
    %cst_78 = arith.constant dense<0.000000e+00> : vector<16xf32>
    %183 = vector.multi_reduction <add>, %180, %cst_78 [1] : vector<16x32xf32> to vector<16xf32>
    %184 = vector.shape_cast %183 : vector<16xf32> to vector<16x1xf32>
    %cst_79 = arith.constant 3.200000e+01 : f32
    %185 = vector.broadcast %cst_79 : f32 to vector<16x1xf32>
    %186 = arith.divf %184, %185 : vector<16x1xf32>
    %187 = vector.broadcast %186 : vector<16x1xf32> to vector<16x32xf32>
    %188 = arith.subf %180, %187 : vector<16x32xf32>
    %189 = arith.mulf %188, %188 : vector<16x32xf32>
    %cst_80 = arith.constant dense<0.000000e+00> : vector<16xf32>
    %190 = vector.multi_reduction <add>, %189, %cst_80 [1] : vector<16x32xf32> to vector<16xf32>
    %191 = vector.shape_cast %190 : vector<16xf32> to vector<16x1xf32>
    %cst_81 = arith.constant 3.200000e+01 : f32
    %192 = vector.broadcast %cst_81 : f32 to vector<16x1xf32>
    %193 = arith.divf %191, %192 : vector<16x1xf32>
    %194 = vector.broadcast %186 : vector<16x1xf32> to vector<16x32xf32>
    %195 = arith.subf %180, %194 : vector<16x32xf32>
    %cst_82 = arith.constant 9.99999974E-6 : f32
    %196 = vector.broadcast %cst_82 : f32 to vector<16x1xf32>
    %197 = arith.addf %193, %196 : vector<16x1xf32>
    %198 = math.rsqrt %197 : vector<16x1xf32>
    %199 = vector.broadcast %198 : vector<16x1xf32> to vector<16x32xf32>
    %200 = arith.mulf %195, %199 : vector<16x32xf32>
    %201 = vector.broadcast %181 : vector<1x32xf32> to vector<16x32xf32>
    %202 = arith.mulf %200, %201 : vector<16x32xf32>
    %203 = vector.broadcast %182 : vector<1x32xf32> to vector<16x32xf32>
    %204 = arith.addf %202, %203 : vector<16x32xf32>
    %205 = vector.shape_cast %204 : vector<16x32xf32> to vector<2x8x32xf32>
    %c0_83 = arith.constant 0 : index
    %c0_84 = arith.constant 0 : index
    %c0_85 = arith.constant 0 : index
    %206 = vector.load %arg11[%c0_83, %c0_84, %c0_85] : memref<2x8x32xf32, #tpu.memory_space<vmem>>, vector<2x8x32xf32>
    tpu.vector_store %arg11[%c0_83, %c0_84, %c0_85], %205 {strides = array<i32>} : memref<2x8x32xf32, #tpu.memory_space<vmem>>, vector<2x8x32xf32>,
    return
  }
  func.func @transform_0(%arg0: i32) -> (i32, i32, i32) {
    %c0_i32 = arith.constant 0 : i32
    %c0_i32_0 = arith.constant 0 : i32
    %c0_i32_1 = arith.constant 0 : i32
    %c0_i32_2 = arith.constant 0 : i32
    return %c0_i32, %c0_i32_0, %c0_i32_1 : i32, i32, i32
  }
  func.func @transform_1(%arg0: i32) -> (i32, i32, i32) {
    %c0_i32 = arith.constant 0 : i32
    %c0_i32_0 = arith.constant 0 : i32
    %c0_i32_1 = arith.constant 0 : i32
    %c0_i32_2 = arith.constant 0 : i32
    return %c0_i32, %c0_i32_0, %c0_i32_1 : i32, i32, i32
  }
  func.func @transform_2(%arg0: i32) -> (i32, i32) {
    %c0_i32 = arith.constant 0 : i32
    %c0_i32_0 = arith.constant 0 : i32
    %c0_i32_1 = arith.constant 0 : i32
    return %c0_i32, %c0_i32_0 : i32, i32
  }
  func.func @transform_3(%arg0: i32) -> (i32, i32) {
    %c0_i32 = arith.constant 0 : i32
    %c0_i32_0 = arith.constant 0 : i32
    %c0_i32_1 = arith.constant 0 : i32
    return %c0_i32, %c0_i32_0 : i32, i32
  }
  func.func @transform_4(%arg0: i32) -> (i32, i32) {
    %c0_i32 = arith.constant 0 : i32
    %c0_i32_0 = arith.constant 0 : i32
    %c0_i32_1 = arith.constant 0 : i32
    return %c0_i32, %c0_i32_0 : i32, i32
  }
  func.func @transform_5(%arg0: i32) -> (i32, i32) {
    %c0_i32 = arith.constant 0 : i32
    %c0_i32_0 = arith.constant 0 : i32
    %c0_i32_1 = arith.constant 0 : i32
    return %c0_i32, %c0_i32_0 : i32, i32
  }
  func.func @transform_6(%arg0: i32) -> (i32, i32, i32) {
    %c0_i32 = arith.constant 0 : i32
    %c0_i32_0 = arith.constant 0 : i32
    %c0_i32_1 = arith.constant 0 : i32
    %c0_i32_2 = arith.constant 0 : i32
    return %c0_i32, %c0_i32_0, %c0_i32_1 : i32, i32, i32
  }
  func.func @transform_7(%arg0: i32) -> (i32, i32) {
    %c0_i32 = arith.constant 0 : i32
    %c0_i32_0 = arith.constant 0 : i32
    %c0_i32_1 = arith.constant 0 : i32
    return %c0_i32, %c0_i32_0 : i32, i32
  }
  func.func @transform_8(%arg0: i32) -> (i32, i32) {
    %c0_i32 = arith.constant 0 : i32
    %c0_i32_0 = arith.constant 0 : i32
    %c0_i32_1 = arith.constant 0 : i32
    return %c0_i32, %c0_i32_0 : i32, i32
  }
  func.func @transform_9(%arg0: i32) -> (i32, i32) {
    %c0_i32 = arith.constant 0 : i32
    %c0_i32_0 = arith.constant 0 : i32
    %c0_i32_1 = arith.constant 0 : i32
    return %c0_i32, %c0_i32_0 : i32, i32
  }
  func.func @transform_10(%arg0: i32) -> (i32, i32, i32) {
    %c0_i32 = arith.constant 0 : i32
    %c0_i32_0 = arith.constant 0 : i32
    %c0_i32_1 = arith.constant 0 : i32
    %c0_i32_2 = arith.constant 0 : i32
    return %c0_i32, %c0_i32_0, %c0_i32_1 : i32, i32, i32
  }
}

module attributes {stable_mosaic.version = 11 : i64} {
  func.func @_encoder_head_kernel(%arg0: i32, %arg1: memref<2xf32, #tpu.memory_space<smem>>, %arg2: memref<16x32xf32, #tpu.memory_space<vmem>>, %arg3: memref<16x32xf32, #tpu.memory_space<vmem>>, %arg4: memref<32x1xf32, #tpu.memory_space<vmem>>, %arg5: memref<1x1xf32, #tpu.memory_space<vmem>>, %arg6: memref<16x32xf32, #tpu.memory_space<vmem>>, %arg7: memref<16x1xf32, #tpu.memory_space<vmem>>) attributes {dimension_semantics = [#tpu.dimension_semantics<arbitrary>], iteration_bounds = array<i64: 1>, scalar_prefetch = 0 : i64, scratch_operands = 0 : i64, tpu.core_type = #tpu.core_type<tc>, window_params = [{transform_indices = @transform_0, window_bounds = array<i64: 2>}, {pipeline_mode = #tpu.pipeline_mode<synchronous>, transform_indices = @transform_1, window_bounds = array<i64: 16, 32>}, {pipeline_mode = #tpu.pipeline_mode<synchronous>, transform_indices = @transform_2, window_bounds = array<i64: 16, 32>}, {pipeline_mode = #tpu.pipeline_mode<synchronous>, transform_indices = @transform_3, window_bounds = array<i64: 32, 1>}, {pipeline_mode = #tpu.pipeline_mode<synchronous>, transform_indices = @transform_4, window_bounds = array<i64: 1, 1>}, {pipeline_mode = #tpu.pipeline_mode<synchronous>, transform_indices = @transform_5, window_bounds = array<i64: 16, 32>}, {pipeline_mode = #tpu.pipeline_mode<synchronous>, transform_indices = @transform_6, window_bounds = array<i64: 16, 1>}]} {
    %c0 = arith.constant 0 : index
    %0 = memref.load %arg1[%c0] : memref<2xf32, #tpu.memory_space<smem>>
    %c0_0 = arith.constant 0 : index
    %c0_1 = arith.constant 0 : index
    %1 = vector.load %arg2[%c0_0, %c0_1] : memref<16x32xf32, #tpu.memory_space<vmem>>, vector<16x32xf32>
    %2 = vector.broadcast %0 : f32 to vector<16x32xf32>
    %3 = arith.mulf %2, %1 : vector<16x32xf32>
    %c1 = arith.constant 1 : index
    %4 = memref.load %arg1[%c1] : memref<2xf32, #tpu.memory_space<smem>>
    %c0_2 = arith.constant 0 : index
    %c0_3 = arith.constant 0 : index
    %5 = vector.load %arg3[%c0_2, %c0_3] : memref<16x32xf32, #tpu.memory_space<vmem>>, vector<16x32xf32>
    %6 = vector.broadcast %4 : f32 to vector<16x32xf32>
    %7 = arith.mulf %6, %5 : vector<16x32xf32>
    %8 = arith.addf %3, %7 : vector<16x32xf32>
    %c0_4 = arith.constant 0 : index
    %c0_5 = arith.constant 0 : index
    %9 = vector.load %arg6[%c0_4, %c0_5] : memref<16x32xf32, #tpu.memory_space<vmem>>, vector<16x32xf32>
    tpu.vector_store %arg6[%c0_4, %c0_5], %8 {strides = array<i32>} : memref<16x32xf32, #tpu.memory_space<vmem>>, vector<16x32xf32>,
    %c0_6 = arith.constant 0 : index
    %c0_7 = arith.constant 0 : index
    %10 = vector.load %arg4[%c0_6, %c0_7] : memref<32x1xf32, #tpu.memory_space<vmem>>, vector<32x1xf32>
    %cst = arith.constant dense<0.000000e+00> : vector<16x1xf32>
    %11 = tpu.matmul %8, %10, %cst {dimension_numbers = #tpu.dot_dimension_numbers<[1], [0], [0], [1], [0, 0, 1, 1], [], []>} : vector<16x32xf32>, vector<32x1xf32>, vector<16x1xf32> -> vector<16x1xf32>
    %c0_8 = arith.constant 0 : index
    %c0_9 = arith.constant 0 : index
    %12 = vector.load %arg5[%c0_8, %c0_9] : memref<1x1xf32, #tpu.memory_space<vmem>>, vector<1x1xf32>
    %13 = vector.broadcast %12 : vector<1x1xf32> to vector<16x1xf32>
    %14 = arith.addf %11, %13 : vector<16x1xf32>
    %cst_10 = arith.constant 0.000000e+00 : f32
    %15 = vector.broadcast %cst_10 : f32 to vector<16x1xf32>
    %16 = arith.subf %15, %14 : vector<16x1xf32>
    %17 = math.exp %16 : vector<16x1xf32>
    %cst_11 = arith.constant 1.000000e+00 : f32
    %18 = vector.broadcast %cst_11 : f32 to vector<16x1xf32>
    %19 = arith.addf %18, %17 : vector<16x1xf32>
    %cst_12 = arith.constant 1.000000e+00 : f32
    %20 = vector.broadcast %cst_12 : f32 to vector<16x1xf32>
    %21 = arith.divf %20, %19 : vector<16x1xf32>
    %c0_13 = arith.constant 0 : index
    %c0_14 = arith.constant 0 : index
    %22 = vector.load %arg7[%c0_13, %c0_14] : memref<16x1xf32, #tpu.memory_space<vmem>>, vector<16x1xf32>
    tpu.vector_store %arg7[%c0_13, %c0_14], %21 {strides = array<i32>} : memref<16x1xf32, #tpu.memory_space<vmem>>, vector<16x1xf32>,
    return
  }
  func.func @transform_0(%arg0: i32) -> i32 {
    %c0_i32 = arith.constant 0 : i32
    %c0_i32_0 = arith.constant 0 : i32
    return %c0_i32 : i32
  }
  func.func @transform_1(%arg0: i32) -> (i32, i32) {
    %c0_i32 = arith.constant 0 : i32
    %c0_i32_0 = arith.constant 0 : i32
    %c0_i32_1 = arith.constant 0 : i32
    return %c0_i32, %c0_i32_0 : i32, i32
  }
  func.func @transform_2(%arg0: i32) -> (i32, i32) {
    %c0_i32 = arith.constant 0 : i32
    %c0_i32_0 = arith.constant 0 : i32
    %c0_i32_1 = arith.constant 0 : i32
    return %c0_i32, %c0_i32_0 : i32, i32
  }
  func.func @transform_3(%arg0: i32) -> (i32, i32) {
    %c0_i32 = arith.constant 0 : i32
    %c0_i32_0 = arith.constant 0 : i32
    %c0_i32_1 = arith.constant 0 : i32
    return %c0_i32, %c0_i32_0 : i32, i32
  }
  func.func @transform_4(%arg0: i32) -> (i32, i32) {
    %c0_i32 = arith.constant 0 : i32
    %c0_i32_0 = arith.constant 0 : i32
    %c0_i32_1 = arith.constant 0 : i32
    return %c0_i32, %c0_i32_0 : i32, i32
  }
  func.func @transform_5(%arg0: i32) -> (i32, i32) {
    %c0_i32 = arith.constant 0 : i32
    %c0_i32_0 = arith.constant 0 : i32
    %c0_i32_1 = arith.constant 0 : i32
    return %c0_i32, %c0_i32_0 : i32, i32
  }
  func.func @transform_6(%arg0: i32) -> (i32, i32) {
    %c0_i32 = arith.constant 0 : i32
    %c0_i32_0 = arith.constant 0 : i32
    %c0_i32_1 = arith.constant 0 : i32
    return %c0_i32, %c0_i32_0 : i32, i32
  }
}

module attributes {stable_mosaic.version = 11 : i64} {
  func.func @_ffn_kernel(%arg0: i32, %arg1: memref<2x8x32xf32, #tpu.memory_space<vmem>>, %arg2: memref<32x128xf32, #tpu.memory_space<vmem>>, %arg3: memref<1x128xf32, #tpu.memory_space<vmem>>, %arg4: memref<128x32xf32, #tpu.memory_space<vmem>>, %arg5: memref<1x32xf32, #tpu.memory_space<vmem>>, %arg6: memref<1x32xf32, #tpu.memory_space<vmem>>, %arg7: memref<1x32xf32, #tpu.memory_space<vmem>>, %arg8: memref<2x8x32xf32, #tpu.memory_space<vmem>>) attributes {dimension_semantics = [#tpu.dimension_semantics<arbitrary>], iteration_bounds = array<i64: 1>, scalar_prefetch = 0 : i64, scratch_operands = 0 : i64, tpu.core_type = #tpu.core_type<tc>, window_params = [{pipeline_mode = #tpu.pipeline_mode<synchronous>, transform_indices = @transform_0, window_bounds = array<i64: 2, 8, 32>}, {pipeline_mode = #tpu.pipeline_mode<synchronous>, transform_indices = @transform_1, window_bounds = array<i64: 32, 128>}, {pipeline_mode = #tpu.pipeline_mode<synchronous>, transform_indices = @transform_2, window_bounds = array<i64: 1, 128>}, {pipeline_mode = #tpu.pipeline_mode<synchronous>, transform_indices = @transform_3, window_bounds = array<i64: 128, 32>}, {pipeline_mode = #tpu.pipeline_mode<synchronous>, transform_indices = @transform_4, window_bounds = array<i64: 1, 32>}, {pipeline_mode = #tpu.pipeline_mode<synchronous>, transform_indices = @transform_5, window_bounds = array<i64: 1, 32>}, {pipeline_mode = #tpu.pipeline_mode<synchronous>, transform_indices = @transform_6, window_bounds = array<i64: 1, 32>}, {pipeline_mode = #tpu.pipeline_mode<synchronous>, transform_indices = @transform_7, window_bounds = array<i64: 2, 8, 32>}]} {
    %c0 = arith.constant 0 : index
    %c0_0 = arith.constant 0 : index
    %c0_1 = arith.constant 0 : index
    %0 = vector.load %arg1[%c0, %c0_0, %c0_1] : memref<2x8x32xf32, #tpu.memory_space<vmem>>, vector<2x8x32xf32>
    %1 = vector.shape_cast %0 : vector<2x8x32xf32> to vector<16x32xf32>
    %c0_2 = arith.constant 0 : index
    %c0_3 = arith.constant 0 : index
    %2 = vector.load %arg2[%c0_2, %c0_3] : memref<32x128xf32, #tpu.memory_space<vmem>>, vector<32x128xf32>
    %cst = arith.constant dense<0.000000e+00> : vector<16x128xf32>
    %3 = tpu.matmul %1, %2, %cst {dimension_numbers = #tpu.dot_dimension_numbers<[1], [0], [0], [1], [0, 0, 1, 1], [], []>} : vector<16x32xf32>, vector<32x128xf32>, vector<16x128xf32> -> vector<16x128xf32>
    %c0_4 = arith.constant 0 : index
    %c0_5 = arith.constant 0 : index
    %4 = vector.load %arg3[%c0_4, %c0_5] : memref<1x128xf32, #tpu.memory_space<vmem>>, vector<1x128xf32>
    %5 = vector.broadcast %4 : vector<1x128xf32> to vector<16x128xf32>
    %6 = arith.addf %3, %5 : vector<16x128xf32>
    %cst_6 = arith.constant 0.000000e+00 : f32
    %7 = vector.broadcast %cst_6 : f32 to vector<16x128xf32>
    %8 = arith.maximumf %6, %7 : vector<16x128xf32>
    %c0_7 = arith.constant 0 : index
    %c0_8 = arith.constant 0 : index
    %9 = vector.load %arg4[%c0_7, %c0_8] : memref<128x32xf32, #tpu.memory_space<vmem>>, vector<128x32xf32>
    %cst_9 = arith.constant dense<0.000000e+00> : vector<16x32xf32>
    %10 = tpu.matmul %8, %9, %cst_9 {dimension_numbers = #tpu.dot_dimension_numbers<[1], [0], [0], [1], [0, 0, 1, 1], [], []>} : vector<16x128xf32>, vector<128x32xf32>, vector<16x32xf32> -> vector<16x32xf32>
    %c0_10 = arith.constant 0 : index
    %c0_11 = arith.constant 0 : index
    %11 = vector.load %arg5[%c0_10, %c0_11] : memref<1x32xf32, #tpu.memory_space<vmem>>, vector<1x32xf32>
    %12 = vector.broadcast %11 : vector<1x32xf32> to vector<16x32xf32>
    %13 = arith.addf %10, %12 : vector<16x32xf32>
    %14 = arith.addf %1, %13 : vector<16x32xf32>
    %c0_12 = arith.constant 0 : index
    %c0_13 = arith.constant 0 : index
    %15 = vector.load %arg6[%c0_12, %c0_13] : memref<1x32xf32, #tpu.memory_space<vmem>>, vector<1x32xf32>
    %c0_14 = arith.constant 0 : index
    %c0_15 = arith.constant 0 : index
    %16 = vector.load %arg7[%c0_14, %c0_15] : memref<1x32xf32, #tpu.memory_space<vmem>>, vector<1x32xf32>
    %cst_16 = arith.constant dense<0.000000e+00> : vector<16xf32>
    %17 = vector.multi_reduction <add>, %14, %cst_16 [1] : vector<16x32xf32> to vector<16xf32>
    %18 = vector.shape_cast %17 : vector<16xf32> to vector<16x1xf32>
    %cst_17 = arith.constant 3.200000e+01 : f32
    %19 = vector.broadcast %cst_17 : f32 to vector<16x1xf32>
    %20 = arith.divf %18, %19 : vector<16x1xf32>
    %21 = vector.broadcast %20 : vector<16x1xf32> to vector<16x32xf32>
    %22 = arith.subf %14, %21 : vector<16x32xf32>
    %23 = arith.mulf %22, %22 : vector<16x32xf32>
    %cst_18 = arith.constant dense<0.000000e+00> : vector<16xf32>
    %24 = vector.multi_reduction <add>, %23, %cst_18 [1] : vector<16x32xf32> to vector<16xf32>
    %25 = vector.shape_cast %24 : vector<16xf32> to vector<16x1xf32>
    %cst_19 = arith.constant 3.200000e+01 : f32
    %26 = vector.broadcast %cst_19 : f32 to vector<16x1xf32>
    %27 = arith.divf %25, %26 : vector<16x1xf32>
    %28 = vector.broadcast %20 : vector<16x1xf32> to vector<16x32xf32>
    %29 = arith.subf %14, %28 : vector<16x32xf32>
    %cst_20 = arith.constant 9.99999974E-6 : f32
    %30 = vector.broadcast %cst_20 : f32 to vector<16x1xf32>
    %31 = arith.addf %27, %30 : vector<16x1xf32>
    %32 = math.rsqrt %31 : vector<16x1xf32>
    %33 = vector.broadcast %32 : vector<16x1xf32> to vector<16x32xf32>
    %34 = arith.mulf %29, %33 : vector<16x32xf32>
    %35 = vector.broadcast %15 : vector<1x32xf32> to vector<16x32xf32>
    %36 = arith.mulf %34, %35 : vector<16x32xf32>
    %37 = vector.broadcast %16 : vector<1x32xf32> to vector<16x32xf32>
    %38 = arith.addf %36, %37 : vector<16x32xf32>
    %39 = vector.shape_cast %38 : vector<16x32xf32> to vector<2x8x32xf32>
    %c0_21 = arith.constant 0 : index
    %c0_22 = arith.constant 0 : index
    %c0_23 = arith.constant 0 : index
    %40 = vector.load %arg8[%c0_21, %c0_22, %c0_23] : memref<2x8x32xf32, #tpu.memory_space<vmem>>, vector<2x8x32xf32>
    tpu.vector_store %arg8[%c0_21, %c0_22, %c0_23], %39 {strides = array<i32>} : memref<2x8x32xf32, #tpu.memory_space<vmem>>, vector<2x8x32xf32>,
    return
  }
  func.func @transform_0(%arg0: i32) -> (i32, i32, i32) {
    %c0_i32 = arith.constant 0 : i32
    %c0_i32_0 = arith.constant 0 : i32
    %c0_i32_1 = arith.constant 0 : i32
    %c0_i32_2 = arith.constant 0 : i32
    return %c0_i32, %c0_i32_0, %c0_i32_1 : i32, i32, i32
  }
  func.func @transform_1(%arg0: i32) -> (i32, i32) {
    %c0_i32 = arith.constant 0 : i32
    %c0_i32_0 = arith.constant 0 : i32
    %c0_i32_1 = arith.constant 0 : i32
    return %c0_i32, %c0_i32_0 : i32, i32
  }
  func.func @transform_2(%arg0: i32) -> (i32, i32) {
    %c0_i32 = arith.constant 0 : i32
    %c0_i32_0 = arith.constant 0 : i32
    %c0_i32_1 = arith.constant 0 : i32
    return %c0_i32, %c0_i32_0 : i32, i32
  }
  func.func @transform_3(%arg0: i32) -> (i32, i32) {
    %c0_i32 = arith.constant 0 : i32
    %c0_i32_0 = arith.constant 0 : i32
    %c0_i32_1 = arith.constant 0 : i32
    return %c0_i32, %c0_i32_0 : i32, i32
  }
  func.func @transform_4(%arg0: i32) -> (i32, i32) {
    %c0_i32 = arith.constant 0 : i32
    %c0_i32_0 = arith.constant 0 : i32
    %c0_i32_1 = arith.constant 0 : i32
    return %c0_i32, %c0_i32_0 : i32, i32
  }
  func.func @transform_5(%arg0: i32) -> (i32, i32) {
    %c0_i32 = arith.constant 0 : i32
    %c0_i32_0 = arith.constant 0 : i32
    %c0_i32_1 = arith.constant 0 : i32
    return %c0_i32, %c0_i32_0 : i32, i32
  }
  func.func @transform_6(%arg0: i32) -> (i32, i32) {
    %c0_i32 = arith.constant 0 : i32
    %c0_i32_0 = arith.constant 0 : i32
    %c0_i32_1 = arith.constant 0 : i32
    return %c0_i32, %c0_i32_0 : i32, i32
  }
  func.func @transform_7(%arg0: i32) -> (i32, i32, i32) {
    %c0_i32 = arith.constant 0 : i32
    %c0_i32_0 = arith.constant 0 : i32
    %c0_i32_1 = arith.constant 0 : i32
    %c0_i32_2 = arith.constant 0 : i32
    return %c0_i32, %c0_i32_0, %c0_i32_1 : i32, i32, i32
  }
}

module attributes {stable_mosaic.version = 11 : i64} {
  func.func @_mha_kernel(%arg0: i32, %arg1: memref<16x4x8xf32, #tpu.memory_space<vmem>>, %arg2: memref<16x4x8xf32, #tpu.memory_space<vmem>>, %arg3: memref<8x8xf32, #tpu.memory_space<vmem>>, %arg4: memref<1x8xf32, #tpu.memory_space<vmem>>, %arg5: memref<8x16xf32, #tpu.memory_space<vmem>>, %arg6: memref<1x16xf32, #tpu.memory_space<vmem>>, %arg7: memref<1x8x8xf32, #tpu.memory_space<vmem>>, %arg8: memref<1x8xf32, #tpu.memory_space<vmem>>, %arg9: memref<1x8xf32, #tpu.memory_space<vmem>>, %arg10: memref<1x8xf32, #tpu.memory_space<vmem>>, %arg11: memref<16x4x8xf32, #tpu.memory_space<vmem>>) attributes {dimension_semantics = [#tpu.dimension_semantics<arbitrary>], iteration_bounds = array<i64: 1>, scalar_prefetch = 0 : i64, scratch_operands = 0 : i64, tpu.core_type = #tpu.core_type<tc>, window_params = [{pipeline_mode = #tpu.pipeline_mode<synchronous>, transform_indices = @transform_0, window_bounds = array<i64: 16, 4, 8>}, {pipeline_mode = #tpu.pipeline_mode<synchronous>, transform_indices = @transform_1, window_bounds = array<i64: 16, 4, 8>}, {pipeline_mode = #tpu.pipeline_mode<synchronous>, transform_indices = @transform_2, window_bounds = array<i64: 8, 8>}, {pipeline_mode = #tpu.pipeline_mode<synchronous>, transform_indices = @transform_3, window_bounds = array<i64: 1, 8>}, {pipeline_mode = #tpu.pipeline_mode<synchronous>, transform_indices = @transform_4, window_bounds = array<i64: 8, 16>}, {pipeline_mode = #tpu.pipeline_mode<synchronous>, transform_indices = @transform_5, window_bounds = array<i64: 1, 16>}, {pipeline_mode = #tpu.pipeline_mode<synchronous>, transform_indices = @transform_6, window_bounds = array<i64: 1, 8, 8>}, {pipeline_mode = #tpu.pipeline_mode<synchronous>, transform_indices = @transform_7, window_bounds = array<i64: 1, 8>}, {pipeline_mode = #tpu.pipeline_mode<synchronous>, transform_indices = @transform_8, window_bounds = array<i64: 1, 8>}, {pipeline_mode = #tpu.pipeline_mode<synchronous>, transform_indices = @transform_9, window_bounds = array<i64: 1, 8>}, {pipeline_mode = #tpu.pipeline_mode<synchronous>, transform_indices = @transform_10, window_bounds = array<i64: 16, 4, 8>}]} {
    %c0 = arith.constant 0 : index
    %c0_0 = arith.constant 0 : index
    %c0_1 = arith.constant 0 : index
    %0 = vector.load %arg1[%c0, %c0_0, %c0_1] : memref<16x4x8xf32, #tpu.memory_space<vmem>>, vector<16x4x8xf32>
    %1 = vector.shape_cast %0 : vector<16x4x8xf32> to vector<64x8xf32>
    %c0_2 = arith.constant 0 : index
    %c0_3 = arith.constant 0 : index
    %c0_4 = arith.constant 0 : index
    %2 = vector.load %arg2[%c0_2, %c0_3, %c0_4] : memref<16x4x8xf32, #tpu.memory_space<vmem>>, vector<16x4x8xf32>
    %3 = vector.shape_cast %2 : vector<16x4x8xf32> to vector<64x8xf32>
    %c0_5 = arith.constant 0 : index
    %c0_6 = arith.constant 0 : index
    %4 = vector.load %arg3[%c0_5, %c0_6] : memref<8x8xf32, #tpu.memory_space<vmem>>, vector<8x8xf32>
    %cst = arith.constant dense<0.000000e+00> : vector<64x8xf32>
    %5 = tpu.matmul %1, %4, %cst {dimension_numbers = #tpu.dot_dimension_numbers<[1], [0], [0], [1], [0, 0, 1, 1], [], []>} : vector<64x8xf32>, vector<8x8xf32>, vector<64x8xf32> -> vector<64x8xf32>
    %c0_7 = arith.constant 0 : index
    %c0_8 = arith.constant 0 : index
    %6 = vector.load %arg4[%c0_7, %c0_8] : memref<1x8xf32, #tpu.memory_space<vmem>>, vector<1x8xf32>
    %7 = vector.broadcast %6 : vector<1x8xf32> to vector<64x8xf32>
    %8 = arith.addf %5, %7 : vector<64x8xf32>
    %c0_9 = arith.constant 0 : index
    %c0_10 = arith.constant 0 : index
    %9 = vector.load %arg5[%c0_9, %c0_10] : memref<8x16xf32, #tpu.memory_space<vmem>>, vector<8x16xf32>
    %cst_11 = arith.constant dense<0.000000e+00> : vector<64x16xf32>
    %10 = tpu.matmul %3, %9, %cst_11 {dimension_numbers = #tpu.dot_dimension_numbers<[1], [0], [0], [1], [0, 0, 1, 1], [], []>} : vector<64x8xf32>, vector<8x16xf32>, vector<64x16xf32> -> vector<64x16xf32>
    %c0_12 = arith.constant 0 : index
    %c0_13 = arith.constant 0 : index
    %11 = vector.load %arg6[%c0_12, %c0_13] : memref<1x16xf32, #tpu.memory_space<vmem>>, vector<1x16xf32>
    %12 = vector.broadcast %11 : vector<1x16xf32> to vector<64x16xf32>
    %13 = arith.addf %10, %12 : vector<64x16xf32>
    %cst_14 = arith.constant 0.353553385 : f32
    %14 = vector.broadcast %cst_14 : f32 to vector<64x8xf32>
    %15 = arith.mulf %8, %14 : vector<64x8xf32>
    %16 = vector.shape_cast %15 : vector<64x8xf32> to vector<16x4x8xf32>
    %17 = vector.shape_cast %13 : vector<64x16xf32> to vector<16x4x16xf32>
    %18 = vector.extract_strided_slice %17 {offsets = [0, 0, 0], sizes = [16, 4, 8], strides = [1, 1, 1]} : vector<16x4x16xf32> to vector<16x4x8xf32>
    %19 = vector.extract_strided_slice %17 {offsets = [0, 0, 8], sizes = [16, 4, 8], strides = [1, 1, 1]} : vector<16x4x16xf32> to vector<16x4x8xf32>
    "tpu.trace_start"() <{level = 10 : i32, message = "bqd,bkd->bqk"}> : () -> ()
    %cst_15 = arith.constant dense<0.000000e+00> : vector<16x4x4xf32>
    %20 = tpu.matmul %16, %18, %cst_15 {dimension_numbers = #tpu.dot_dimension_numbers<[2], [2], [1], [1], [0, 0, 0, 1, 1, 1], [0], [0]>} : vector<16x4x8xf32>, vector<16x4x8xf32>, vector<16x4x4xf32> -> vector<16x4x4xf32>
    "tpu.trace_stop"() : () -> ()
    %cst_16 = arith.constant dense<0xFF800000> : vector<16x4xf32>
    %21 = vector.multi_reduction <maximumf>, %20, %cst_16 [2] : vector<16x4x4xf32> to vector<16x4xf32>
    %22 = vector.shape_cast %21 : vector<16x4xf32> to vector<16x4x1xf32>
    %23 = vector.broadcast %22 : vector<16x4x1xf32> to vector<16x4x4xf32>
    %24 = arith.subf %20, %23 : vector<16x4x4xf32>
    %25 = math.exp %24 : vector<16x4x4xf32>
    %cst_17 = arith.constant dense<0.000000e+00> : vector<16x4xf32>
    %26 = vector.multi_reduction <add>, %25, %cst_17 [2] : vector<16x4x4xf32> to vector<16x4xf32>
    %27 = vector.shape_cast %26 : vector<16x4xf32> to vector<16x4x1xf32>
    %28 = tpu.reciprocal %27 {approx = true} : vector<16x4x1xf32> -> vector<16x4x1xf32>
    %29 = vector.broadcast %28 : vector<16x4x1xf32> to vector<16x4x4xf32>
    %30 = arith.mulf %25, %29 : vector<16x4x4xf32>
    "tpu.trace_start"() <{level = 10 : i32, message = "bqk,bkd->bqd"}> : () -> ()
    %cst_18 = arith.constant dense<0.000000e+00> : vector<16x4x8xf32>
    %31 = tpu.matmul %30, %19, %cst_18 {dimension_numbers = #tpu.dot_dimension_numbers<[2], [1], [1], [2], [0, 0, 0, 1, 1, 2], [0], [0]>} : vector<16x4x4xf32>, vector<16x4x8xf32>, vector<16x4x8xf32> -> vector<16x4x8xf32>
    "tpu.trace_stop"() : () -> ()
    %32 = vector.shape_cast %31 : vector<16x4x8xf32> to vector<64x8xf32>
    %c0_19 = arith.constant 0 : index
    %c0_20 = arith.constant 0 : index
    %c0_21 = arith.constant 0 : index
    %33 = vector.load %arg7[%c0_19, %c0_20, %c0_21] : memref<1x8x8xf32, #tpu.memory_space<vmem>>, vector<1x8x8xf32>
    %34 = vector.shape_cast %33 : vector<1x8x8xf32> to vector<8x8xf32>
    %cst_22 = arith.constant dense<0.000000e+00> : vector<64x8xf32>
    %35 = tpu.matmul %32, %34, %cst_22 {dimension_numbers = #tpu.dot_dimension_numbers<[1], [0], [0], [1], [0, 0, 1, 1], [], []>} : vector<64x8xf32>, vector<8x8xf32>, vector<64x8xf32> -> vector<64x8xf32>
    %c0_23 = arith.constant 0 : index
    %c0_24 = arith.constant 0 : index
    %36 = vector.load %arg8[%c0_23, %c0_24] : memref<1x8xf32, #tpu.memory_space<vmem>>, vector<1x8xf32>
    %37 = vector.broadcast %36 : vector<1x8xf32> to vector<64x8xf32>
    %38 = arith.addf %35, %37 : vector<64x8xf32>
    %39 = arith.addf %38, %1 : vector<64x8xf32>
    %c0_25 = arith.constant 0 : index
    %c0_26 = arith.constant 0 : index
    %40 = vector.load %arg9[%c0_25, %c0_26] : memref<1x8xf32, #tpu.memory_space<vmem>>, vector<1x8xf32>
    %c0_27 = arith.constant 0 : index
    %c0_28 = arith.constant 0 : index
    %41 = vector.load %arg10[%c0_27, %c0_28] : memref<1x8xf32, #tpu.memory_space<vmem>>, vector<1x8xf32>
    %cst_29 = arith.constant dense<0.000000e+00> : vector<64xf32>
    %42 = vector.multi_reduction <add>, %39, %cst_29 [1] : vector<64x8xf32> to vector<64xf32>
    %43 = vector.shape_cast %42 : vector<64xf32> to vector<64x1xf32>
    %cst_30 = arith.constant 8.000000e+00 : f32
    %44 = vector.broadcast %cst_30 : f32 to vector<64x1xf32>
    %45 = arith.divf %43, %44 : vector<64x1xf32>
    %46 = vector.broadcast %45 : vector<64x1xf32> to vector<64x8xf32>
    %47 = arith.subf %39, %46 : vector<64x8xf32>
    %48 = arith.mulf %47, %47 : vector<64x8xf32>
    %cst_31 = arith.constant dense<0.000000e+00> : vector<64xf32>
    %49 = vector.multi_reduction <add>, %48, %cst_31 [1] : vector<64x8xf32> to vector<64xf32>
    %50 = vector.shape_cast %49 : vector<64xf32> to vector<64x1xf32>
    %cst_32 = arith.constant 8.000000e+00 : f32
    %51 = vector.broadcast %cst_32 : f32 to vector<64x1xf32>
    %52 = arith.divf %50, %51 : vector<64x1xf32>
    %53 = vector.broadcast %45 : vector<64x1xf32> to vector<64x8xf32>
    %54 = arith.subf %39, %53 : vector<64x8xf32>
    %cst_33 = arith.constant 9.99999974E-6 : f32
    %55 = vector.broadcast %cst_33 : f32 to vector<64x1xf32>
    %56 = arith.addf %52, %55 : vector<64x1xf32>
    %57 = math.rsqrt %56 : vector<64x1xf32>
    %58 = vector.broadcast %57 : vector<64x1xf32> to vector<64x8xf32>
    %59 = arith.mulf %54, %58 : vector<64x8xf32>
    %60 = vector.broadcast %40 : vector<1x8xf32> to vector<64x8xf32>
    %61 = arith.mulf %59, %60 : vector<64x8xf32>
    %62 = vector.broadcast %41 : vector<1x8xf32> to vector<64x8xf32>
    %63 = arith.addf %61, %62 : vector<64x8xf32>
    %64 = vector.shape_cast %63 : vector<64x8xf32> to vector<16x4x8xf32>
    %c0_34 = arith.constant 0 : index
    %c0_35 = arith.constant 0 : index
    %c0_36 = arith.constant 0 : index
    %65 = vector.load %arg11[%c0_34, %c0_35, %c0_36] : memref<16x4x8xf32, #tpu.memory_space<vmem>>, vector<16x4x8xf32>
    tpu.vector_store %arg11[%c0_34, %c0_35, %c0_36], %64 {strides = array<i32>} : memref<16x4x8xf32, #tpu.memory_space<vmem>>, vector<16x4x8xf32>,
    return
  }
  func.func @transform_0(%arg0: i32) -> (i32, i32, i32) {
    %c0_i32 = arith.constant 0 : i32
    %c0_i32_0 = arith.constant 0 : i32
    %c0_i32_1 = arith.constant 0 : i32
    %c0_i32_2 = arith.constant 0 : i32
    return %c0_i32, %c0_i32_0, %c0_i32_1 : i32, i32, i32
  }
  func.func @transform_1(%arg0: i32) -> (i32, i32, i32) {
    %c0_i32 = arith.constant 0 : i32
    %c0_i32_0 = arith.constant 0 : i32
    %c0_i32_1 = arith.constant 0 : i32
    %c0_i32_2 = arith.constant 0 : i32
    return %c0_i32, %c0_i32_0, %c0_i32_1 : i32, i32, i32
  }
  func.func @transform_2(%arg0: i32) -> (i32, i32) {
    %c0_i32 = arith.constant 0 : i32
    %c0_i32_0 = arith.constant 0 : i32
    %c0_i32_1 = arith.constant 0 : i32
    return %c0_i32, %c0_i32_0 : i32, i32
  }
  func.func @transform_3(%arg0: i32) -> (i32, i32) {
    %c0_i32 = arith.constant 0 : i32
    %c0_i32_0 = arith.constant 0 : i32
    %c0_i32_1 = arith.constant 0 : i32
    return %c0_i32, %c0_i32_0 : i32, i32
  }
  func.func @transform_4(%arg0: i32) -> (i32, i32) {
    %c0_i32 = arith.constant 0 : i32
    %c0_i32_0 = arith.constant 0 : i32
    %c0_i32_1 = arith.constant 0 : i32
    return %c0_i32, %c0_i32_0 : i32, i32
  }
  func.func @transform_5(%arg0: i32) -> (i32, i32) {
    %c0_i32 = arith.constant 0 : i32
    %c0_i32_0 = arith.constant 0 : i32
    %c0_i32_1 = arith.constant 0 : i32
    return %c0_i32, %c0_i32_0 : i32, i32
  }
  func.func @transform_6(%arg0: i32) -> (i32, i32, i32) {
    %c0_i32 = arith.constant 0 : i32
    %c0_i32_0 = arith.constant 0 : i32
    %c0_i32_1 = arith.constant 0 : i32
    %c0_i32_2 = arith.constant 0 : i32
    return %c0_i32, %c0_i32_0, %c0_i32_1 : i32, i32, i32
  }
  func.func @transform_7(%arg0: i32) -> (i32, i32) {
    %c0_i32 = arith.constant 0 : i32
    %c0_i32_0 = arith.constant 0 : i32
    %c0_i32_1 = arith.constant 0 : i32
    return %c0_i32, %c0_i32_0 : i32, i32
  }
  func.func @transform_8(%arg0: i32) -> (i32, i32) {
    %c0_i32 = arith.constant 0 : i32
    %c0_i32_0 = arith.constant 0 : i32
    %c0_i32_1 = arith.constant 0 : i32
    return %c0_i32, %c0_i32_0 : i32, i32
  }
  func.func @transform_9(%arg0: i32) -> (i32, i32) {
    %c0_i32 = arith.constant 0 : i32
    %c0_i32_0 = arith.constant 0 : i32
    %c0_i32_1 = arith.constant 0 : i32
    return %c0_i32, %c0_i32_0 : i32, i32
  }
  func.func @transform_10(%arg0: i32) -> (i32, i32, i32) {
    %c0_i32 = arith.constant 0 : i32
    %c0_i32_0 = arith.constant 0 : i32
    %c0_i32_1 = arith.constant 0 : i32
    %c0_i32_2 = arith.constant 0 : i32
    return %c0_i32, %c0_i32_0, %c0_i32_1 : i32, i32, i32
  }
}

module attributes {stable_mosaic.version = 11 : i64} {
  func.func @_ffn_kernel(%arg0: i32, %arg1: memref<16x4x8xf32, #tpu.memory_space<vmem>>, %arg2: memref<8x32xf32, #tpu.memory_space<vmem>>, %arg3: memref<1x32xf32, #tpu.memory_space<vmem>>, %arg4: memref<32x8xf32, #tpu.memory_space<vmem>>, %arg5: memref<1x8xf32, #tpu.memory_space<vmem>>, %arg6: memref<1x8xf32, #tpu.memory_space<vmem>>, %arg7: memref<1x8xf32, #tpu.memory_space<vmem>>, %arg8: memref<16x4x8xf32, #tpu.memory_space<vmem>>) attributes {dimension_semantics = [#tpu.dimension_semantics<arbitrary>], iteration_bounds = array<i64: 1>, scalar_prefetch = 0 : i64, scratch_operands = 0 : i64, tpu.core_type = #tpu.core_type<tc>, window_params = [{pipeline_mode = #tpu.pipeline_mode<synchronous>, transform_indices = @transform_0, window_bounds = array<i64: 16, 4, 8>}, {pipeline_mode = #tpu.pipeline_mode<synchronous>, transform_indices = @transform_1, window_bounds = array<i64: 8, 32>}, {pipeline_mode = #tpu.pipeline_mode<synchronous>, transform_indices = @transform_2, window_bounds = array<i64: 1, 32>}, {pipeline_mode = #tpu.pipeline_mode<synchronous>, transform_indices = @transform_3, window_bounds = array<i64: 32, 8>}, {pipeline_mode = #tpu.pipeline_mode<synchronous>, transform_indices = @transform_4, window_bounds = array<i64: 1, 8>}, {pipeline_mode = #tpu.pipeline_mode<synchronous>, transform_indices = @transform_5, window_bounds = array<i64: 1, 8>}, {pipeline_mode = #tpu.pipeline_mode<synchronous>, transform_indices = @transform_6, window_bounds = array<i64: 1, 8>}, {pipeline_mode = #tpu.pipeline_mode<synchronous>, transform_indices = @transform_7, window_bounds = array<i64: 16, 4, 8>}]} {
    %c0 = arith.constant 0 : index
    %c0_0 = arith.constant 0 : index
    %c0_1 = arith.constant 0 : index
    %0 = vector.load %arg1[%c0, %c0_0, %c0_1] : memref<16x4x8xf32, #tpu.memory_space<vmem>>, vector<16x4x8xf32>
    %1 = vector.shape_cast %0 : vector<16x4x8xf32> to vector<64x8xf32>
    %c0_2 = arith.constant 0 : index
    %c0_3 = arith.constant 0 : index
    %2 = vector.load %arg2[%c0_2, %c0_3] : memref<8x32xf32, #tpu.memory_space<vmem>>, vector<8x32xf32>
    %cst = arith.constant dense<0.000000e+00> : vector<64x32xf32>
    %3 = tpu.matmul %1, %2, %cst {dimension_numbers = #tpu.dot_dimension_numbers<[1], [0], [0], [1], [0, 0, 1, 1], [], []>} : vector<64x8xf32>, vector<8x32xf32>, vector<64x32xf32> -> vector<64x32xf32>
    %c0_4 = arith.constant 0 : index
    %c0_5 = arith.constant 0 : index
    %4 = vector.load %arg3[%c0_4, %c0_5] : memref<1x32xf32, #tpu.memory_space<vmem>>, vector<1x32xf32>
    %5 = vector.broadcast %4 : vector<1x32xf32> to vector<64x32xf32>
    %6 = arith.addf %3, %5 : vector<64x32xf32>
    %cst_6 = arith.constant 0.000000e+00 : f32
    %7 = vector.broadcast %cst_6 : f32 to vector<64x32xf32>
    %8 = arith.maximumf %6, %7 : vector<64x32xf32>
    %c0_7 = arith.constant 0 : index
    %c0_8 = arith.constant 0 : index
    %9 = vector.load %arg4[%c0_7, %c0_8] : memref<32x8xf32, #tpu.memory_space<vmem>>, vector<32x8xf32>
    %cst_9 = arith.constant dense<0.000000e+00> : vector<64x8xf32>
    %10 = tpu.matmul %8, %9, %cst_9 {dimension_numbers = #tpu.dot_dimension_numbers<[1], [0], [0], [1], [0, 0, 1, 1], [], []>} : vector<64x32xf32>, vector<32x8xf32>, vector<64x8xf32> -> vector<64x8xf32>
    %c0_10 = arith.constant 0 : index
    %c0_11 = arith.constant 0 : index
    %11 = vector.load %arg5[%c0_10, %c0_11] : memref<1x8xf32, #tpu.memory_space<vmem>>, vector<1x8xf32>
    %12 = vector.broadcast %11 : vector<1x8xf32> to vector<64x8xf32>
    %13 = arith.addf %10, %12 : vector<64x8xf32>
    %14 = arith.addf %1, %13 : vector<64x8xf32>
    %c0_12 = arith.constant 0 : index
    %c0_13 = arith.constant 0 : index
    %15 = vector.load %arg6[%c0_12, %c0_13] : memref<1x8xf32, #tpu.memory_space<vmem>>, vector<1x8xf32>
    %c0_14 = arith.constant 0 : index
    %c0_15 = arith.constant 0 : index
    %16 = vector.load %arg7[%c0_14, %c0_15] : memref<1x8xf32, #tpu.memory_space<vmem>>, vector<1x8xf32>
    %cst_16 = arith.constant dense<0.000000e+00> : vector<64xf32>
    %17 = vector.multi_reduction <add>, %14, %cst_16 [1] : vector<64x8xf32> to vector<64xf32>
    %18 = vector.shape_cast %17 : vector<64xf32> to vector<64x1xf32>
    %cst_17 = arith.constant 8.000000e+00 : f32
    %19 = vector.broadcast %cst_17 : f32 to vector<64x1xf32>
    %20 = arith.divf %18, %19 : vector<64x1xf32>
    %21 = vector.broadcast %20 : vector<64x1xf32> to vector<64x8xf32>
    %22 = arith.subf %14, %21 : vector<64x8xf32>
    %23 = arith.mulf %22, %22 : vector<64x8xf32>
    %cst_18 = arith.constant dense<0.000000e+00> : vector<64xf32>
    %24 = vector.multi_reduction <add>, %23, %cst_18 [1] : vector<64x8xf32> to vector<64xf32>
    %25 = vector.shape_cast %24 : vector<64xf32> to vector<64x1xf32>
    %cst_19 = arith.constant 8.000000e+00 : f32
    %26 = vector.broadcast %cst_19 : f32 to vector<64x1xf32>
    %27 = arith.divf %25, %26 : vector<64x1xf32>
    %28 = vector.broadcast %20 : vector<64x1xf32> to vector<64x8xf32>
    %29 = arith.subf %14, %28 : vector<64x8xf32>
    %cst_20 = arith.constant 9.99999974E-6 : f32
    %30 = vector.broadcast %cst_20 : f32 to vector<64x1xf32>
    %31 = arith.addf %27, %30 : vector<64x1xf32>
    %32 = math.rsqrt %31 : vector<64x1xf32>
    %33 = vector.broadcast %32 : vector<64x1xf32> to vector<64x8xf32>
    %34 = arith.mulf %29, %33 : vector<64x8xf32>
    %35 = vector.broadcast %15 : vector<1x8xf32> to vector<64x8xf32>
    %36 = arith.mulf %34, %35 : vector<64x8xf32>
    %37 = vector.broadcast %16 : vector<1x8xf32> to vector<64x8xf32>
    %38 = arith.addf %36, %37 : vector<64x8xf32>
    %39 = vector.shape_cast %38 : vector<64x8xf32> to vector<16x4x8xf32>
    %c0_21 = arith.constant 0 : index
    %c0_22 = arith.constant 0 : index
    %c0_23 = arith.constant 0 : index
    %40 = vector.load %arg8[%c0_21, %c0_22, %c0_23] : memref<16x4x8xf32, #tpu.memory_space<vmem>>, vector<16x4x8xf32>
    tpu.vector_store %arg8[%c0_21, %c0_22, %c0_23], %39 {strides = array<i32>} : memref<16x4x8xf32, #tpu.memory_space<vmem>>, vector<16x4x8xf32>,
    return
  }
  func.func @transform_0(%arg0: i32) -> (i32, i32, i32) {
    %c0_i32 = arith.constant 0 : i32
    %c0_i32_0 = arith.constant 0 : i32
    %c0_i32_1 = arith.constant 0 : i32
    %c0_i32_2 = arith.constant 0 : i32
    return %c0_i32, %c0_i32_0, %c0_i32_1 : i32, i32, i32
  }
  func.func @transform_1(%arg0: i32) -> (i32, i32) {
    %c0_i32 = arith.constant 0 : i32
    %c0_i32_0 = arith.constant 0 : i32
    %c0_i32_1 = arith.constant 0 : i32
    return %c0_i32, %c0_i32_0 : i32, i32
  }
  func.func @transform_2(%arg0: i32) -> (i32, i32) {
    %c0_i32 = arith.constant 0 : i32
    %c0_i32_0 = arith.constant 0 : i32
    %c0_i32_1 = arith.constant 0 : i32
    return %c0_i32, %c0_i32_0 : i32, i32
  }
  func.func @transform_3(%arg0: i32) -> (i32, i32) {
    %c0_i32 = arith.constant 0 : i32
    %c0_i32_0 = arith.constant 0 : i32
    %c0_i32_1 = arith.constant 0 : i32
    return %c0_i32, %c0_i32_0 : i32, i32
  }
  func.func @transform_4(%arg0: i32) -> (i32, i32) {
    %c0_i32 = arith.constant 0 : i32
    %c0_i32_0 = arith.constant 0 : i32
    %c0_i32_1 = arith.constant 0 : i32
    return %c0_i32, %c0_i32_0 : i32, i32
  }
  func.func @transform_5(%arg0: i32) -> (i32, i32) {
    %c0_i32 = arith.constant 0 : i32
    %c0_i32_0 = arith.constant 0 : i32
    %c0_i32_1 = arith.constant 0 : i32
    return %c0_i32, %c0_i32_0 : i32, i32
  }
  func.func @transform_6(%arg0: i32) -> (i32, i32) {
    %c0_i32 = arith.constant 0 : i32
    %c0_i32_0 = arith.constant 0 : i32
    %c0_i32_1 = arith.constant 0 : i32
    return %c0_i32, %c0_i32_0 : i32, i32
  }
  func.func @transform_7(%arg0: i32) -> (i32, i32, i32) {
    %c0_i32 = arith.constant 0 : i32
    %c0_i32_0 = arith.constant 0 : i32
    %c0_i32_1 = arith.constant 0 : i32
    %c0_i32_2 = arith.constant 0 : i32
    return %c0_i32, %c0_i32_0, %c0_i32_1 : i32, i32, i32
  }
}

module attributes {stable_mosaic.version = 11 : i64} {
  func.func @_decoder_head_kernel(%arg0: i32, %arg1: memref<2xf32, #tpu.memory_space<smem>>, %arg2: memref<16x32xf32, #tpu.memory_space<vmem>>, %arg3: memref<16x32xf32, #tpu.memory_space<vmem>>, %arg4: memref<32x6xf32, #tpu.memory_space<vmem>>, %arg5: memref<1x6xf32, #tpu.memory_space<vmem>>, %arg6: memref<16x6xf32, #tpu.memory_space<vmem>>) attributes {dimension_semantics = [#tpu.dimension_semantics<arbitrary>], iteration_bounds = array<i64: 1>, scalar_prefetch = 0 : i64, scratch_operands = 0 : i64, tpu.core_type = #tpu.core_type<tc>, window_params = [{transform_indices = @transform_0, window_bounds = array<i64: 2>}, {pipeline_mode = #tpu.pipeline_mode<synchronous>, transform_indices = @transform_1, window_bounds = array<i64: 16, 32>}, {pipeline_mode = #tpu.pipeline_mode<synchronous>, transform_indices = @transform_2, window_bounds = array<i64: 16, 32>}, {pipeline_mode = #tpu.pipeline_mode<synchronous>, transform_indices = @transform_3, window_bounds = array<i64: 32, 6>}, {pipeline_mode = #tpu.pipeline_mode<synchronous>, transform_indices = @transform_4, window_bounds = array<i64: 1, 6>}, {pipeline_mode = #tpu.pipeline_mode<synchronous>, transform_indices = @transform_5, window_bounds = array<i64: 16, 6>}]} {
    %c0 = arith.constant 0 : index
    %0 = memref.load %arg1[%c0] : memref<2xf32, #tpu.memory_space<smem>>
    %c0_0 = arith.constant 0 : index
    %c0_1 = arith.constant 0 : index
    %1 = vector.load %arg2[%c0_0, %c0_1] : memref<16x32xf32, #tpu.memory_space<vmem>>, vector<16x32xf32>
    %2 = vector.broadcast %0 : f32 to vector<16x32xf32>
    %3 = arith.mulf %2, %1 : vector<16x32xf32>
    %c1 = arith.constant 1 : index
    %4 = memref.load %arg1[%c1] : memref<2xf32, #tpu.memory_space<smem>>
    %c0_2 = arith.constant 0 : index
    %c0_3 = arith.constant 0 : index
    %5 = vector.load %arg3[%c0_2, %c0_3] : memref<16x32xf32, #tpu.memory_space<vmem>>, vector<16x32xf32>
    %6 = vector.broadcast %4 : f32 to vector<16x32xf32>
    %7 = arith.mulf %6, %5 : vector<16x32xf32>
    %8 = arith.addf %3, %7 : vector<16x32xf32>
    %c0_4 = arith.constant 0 : index
    %c0_5 = arith.constant 0 : index
    %9 = vector.load %arg4[%c0_4, %c0_5] : memref<32x6xf32, #tpu.memory_space<vmem>>, vector<32x6xf32>
    %cst = arith.constant dense<0.000000e+00> : vector<16x6xf32>
    %10 = tpu.matmul %8, %9, %cst {dimension_numbers = #tpu.dot_dimension_numbers<[1], [0], [0], [1], [0, 0, 1, 1], [], []>} : vector<16x32xf32>, vector<32x6xf32>, vector<16x6xf32> -> vector<16x6xf32>
    %c0_6 = arith.constant 0 : index
    %c0_7 = arith.constant 0 : index
    %11 = vector.load %arg5[%c0_6, %c0_7] : memref<1x6xf32, #tpu.memory_space<vmem>>, vector<1x6xf32>
    %12 = vector.broadcast %11 : vector<1x6xf32> to vector<16x6xf32>
    %13 = arith.addf %10, %12 : vector<16x6xf32>
    %c0_8 = arith.constant 0 : index
    %c0_9 = arith.constant 0 : index
    %14 = vector.load %arg6[%c0_8, %c0_9] : memref<16x6xf32, #tpu.memory_space<vmem>>, vector<16x6xf32>
    tpu.vector_store %arg6[%c0_8, %c0_9], %13 {strides = array<i32>} : memref<16x6xf32, #tpu.memory_space<vmem>>, vector<16x6xf32>,
    return
  }
  func.func @transform_0(%arg0: i32) -> i32 {
    %c0_i32 = arith.constant 0 : i32
    %c0_i32_0 = arith.constant 0 : i32
    return %c0_i32 : i32
  }
  func.func @transform_1(%arg0: i32) -> (i32, i32) {
    %c0_i32 = arith.constant 0 : i32
    %c0_i32_0 = arith.constant 0 : i32
    %c0_i32_1 = arith.constant 0 : i32
    return %c0_i32, %c0_i32_0 : i32, i32
  }
  func.func @transform_2(%arg0: i32) -> (i32, i32) {
    %c0_i32 = arith.constant 0 : i32
    %c0_i32_0 = arith.constant 0 : i32
    %c0_i32_1 = arith.constant 0 : i32
    return %c0_i32, %c0_i32_0 : i32, i32
  }
  func.func @transform_3(%arg0: i32) -> (i32, i32) {
    %c0_i32 = arith.constant 0 : i32
    %c0_i32_0 = arith.constant 0 : i32
    %c0_i32_1 = arith.constant 0 : i32
    return %c0_i32, %c0_i32_0 : i32, i32
  }
  func.func @transform_4(%arg0: i32) -> (i32, i32) {
    %c0_i32 = arith.constant 0 : i32
    %c0_i32_0 = arith.constant 0 : i32
    %c0_i32_1 = arith.constant 0 : i32
    return %c0_i32, %c0_i32_0 : i32, i32
  }
  func.func @transform_5(%arg0: i32) -> (i32, i32) {
    %c0_i32 = arith.constant 0 : i32
    %c0_i32_0 = arith.constant 0 : i32
    %c0_i32_1 = arith.constant 0 : i32
    return %c0_i32, %c0_i32_0 : i32, i32
  }
}

</mosaic_0001>

<bundles_post_ra>
// kernel: _lambda_.20
= control target key start
LH: loop header
LB: loop body
LE: loop exit
PB: predicated region body
PF: predicated region fallthrough
CT: control target
= control target key end

     0   :  { %vm33_vm0 = vcmask 261120   ;;  %s273_s1 = inlined_call_operand.vmem [shape: f32[32,32], index: 1, kind: input, shape index: {}]   ;;  %s274_s0 = inlined_call_operand.vmem [shape: f32[16,32], index: 0, kind: input, shape index: {}]   ;;  %s275_s2 = inlined_call_operand.vmem [shape: f32[1,32], index: 2, kind: input, shape index: {}]   ;;  %s276_s3 = inlined_call_operand.vmem [shape: f32[1,32], index: 3, kind: input, shape index: {}]   ;;  %s277_s4 = inlined_call_operand.vmem [shape: f32[1,32], index: 4, kind: input, shape index: {}]   ;;  %s278_s5 = inlined_call_operand.vmem [shape: f32[16,32], index: 5, kind: output, shape index: {}]  }
   0x1   :  { %v22_v0 = vld [vmem:[%s273_s1] sm:$0xff]  ;;  %v23_v1 = vld [vmem:[%s273_s1 + $0x8] sm:$0xff]  ;;  %v24_v2 = vld [vmem:[%s273_s1 + $0x10] sm:$0xff] }
   0x2   :  { %v190_v3 = vpack.c.bf16 %v23_v1, %v22_v0  ;;  %v25_v4 = vld [vmem:[%s273_s1 + $0x18] sm:$0xff]  ;;  %v20_v5 = vld [vmem:[%s274_s0] sm:$0xff]  ;;  %v21_v7 = vld [vmem:[%s274_s0 + $0x8] sm:$0xff] }
   0x3   :  { %v194_v6 = vpack.c.bf16 %v25_v4, %v24_v2  ;;  %187 = vmatprep.mubr.msk.f32.mxu0 %vm33_vm0, %v20_v5  ;;  %v168_v8 = vld [vmem:[%s275_s2] ss:$0 sm:$0xff] }
   0x4   :  { %191 = vmatprep.subr.bf16.mxu0 %v190_v3  ;;  %v171_v34 = vld [vmem:[%s276_s3] ss:$0 sm:$0xff] }
   0x5   :  { %193 = vmatpush3.bf16.msra.mxu0 %v190_v3  ;;  %v172_v36 = vld [vmem:[%s277_s4] ss:$0 sm:$0xff] }
   0x6   :  { %195 = vmatprep.subr.bf16.mxu0 %v194_v6 }
   0x9   :  { %197 = vmatpush3.bf16.msra.mxu0 %v194_v6 }
   0xc   :  { %188 = vmatmul.mubr.msk.f32.vlgmr.msra.gmra.mrb[0].mxu0 %vm33_vm0, %v21_v7 }
  0xdf   :  { %v189_v9 = vpop.f32.mrb[0].mxu0 }
  0xe0   :  { %v106_v10 = vpop.f32.mrb[1].mxu0  ;;  %v112_v11 = vadd.f32 %v189_v9, %v168_v8 }
  0xe1   :  { %v107_v12 = vadd.f32 %v168_v8, %v106_v10 }
  0xe2   :  { %v116_v14 = vmax.f32 %v112_v11, 0.0 }
  0xe3   :  { %v115_v13 = vmax.f32 %v107_v12, 0.0 }
  0xe4   :  { %v122_v16 = vsel %vm33_vm0, %v116_v14, 0.0 }
  0xe5   :  { %v119_v15 = vsel %vm33_vm0, %v115_v13, 0.0 }
  0xe6   :  { %120 = vadd.xlane.f32.xlu0 %v119_v15 }
  0xea   :  { %123 = vadd.xlane.f32.xlu0 %v122_v16 }
 0x173   :  { %v121_v17 = vpop.xlane.xlu0 %120 }
 0x174   :  { %v126_v18 = vmul.f32 0.03125, %v121_v17 }
 0x176   :  { %v128_v19 = vsub.f32 %v115_v13, %v126_v18 }
 0x177   :  { %v124_v20 = vpop.xlane.xlu0 %123 }
 0x178   :  { %v127_v21 = vmul.f32 0.03125, %v124_v20  ;;  %v130_v22 = vmul.f32 %v128_v19, %v128_v19 }
 0x17a   :  { %v129_v23 = vsub.f32 %v116_v14, %v127_v21  ;;  %v132_v24 = vsel %vm33_vm0, %v130_v22, 0.0 }
 0x17b   :  { %133 = vadd.xlane.f32.xlu1 %v132_v24 }
 0x17c   :  { %v131_v25 = vmul.f32 %v129_v23, %v129_v23 }
 0x17e   :  { %v135_v26 = vsel %vm33_vm0, %v131_v25, 0.0 }
 0x17f   :  { %136 = vadd.xlane.f32.xlu1 %v135_v26 }
 0x208   :  { %v134_v27 = vpop.xlane.xlu1 %133 }
 0x209   :  { %v138_v28 = vmul.f32 0.03125, %v134_v27 }
 0x20b   :  { %v140_v29 = vadd.f32 1e-05, %v138_v28 }
 0x20c   :  { %v137_v30 = vpop.xlane.xlu1 %136 }
 0x20d   :  { %198 = vrsqrt.f32 %v140_v29  ;;  %v139_v31 = vmul.f32 0.03125, %v137_v30 }
 0x20f   :  { %v141_v32 = vadd.f32 1e-05, %v139_v31 }
 0x211   :  { %200 = vrsqrt.f32 %v141_v32 }
 0x217   :  { %v199_v33 = vpop.eup %198 }
 0x218   :  { %v144_v35 = vmul.f32 %v199_v33, %v128_v19 }
 0x21a   :  { %v152_v37 = vmul.f32 %v171_v34, %v144_v35 }
 0x21b   :  { %v201_v38 = vpop.eup %200 }
 0x21c   :  { %v160_v39 = vadd.f32 %v172_v36, %v152_v37  ;;  %v145_v40 = vmul.f32 %v201_v38, %v129_v23 }
 0x21e   :  { %162 = vst.msk [vmem:[%s278_s5] sm:$0xff] %vm33_vm0, %v160_v39  ;;  %v153_v41 = vmul.f32 %v171_v34, %v145_v40 }
 0x220   :  { %v161_v42 = vadd.f32 %v172_v36, %v153_v41 }
 0x222   :  { %163 = vst.msk [vmem:[%s278_s5 + $0x8] sm:$0xff] %vm33_vm0, %v161_v42 }

// kernel: _lambda_.19
= control target key start
LH: loop header
LB: loop body
LE: loop exit
PB: predicated region body
PF: predicated region fallthrough
CT: control target
= control target key end

     0   :  { %vm99_vm0 = vcmask 1043456   ;;  %vm50_vm1 = vcmask 31744   ;;  %vm273_vm2 = vcmask 130048   ;;  %s1419_s1 = inlined_call_operand.vmem [shape: f32[4,16], index: 1, kind: input, shape index: {}]   ;;  %s1420_s0 = inlined_call_operand.vmem [shape: f32[16,8,4], index: 0, kind: input, shape index: {}]   ;;  %s1421_s3 = inlined_call_operand.vmem [shape: f32[16,4], index: 3, kind: input, shape index: {}]   ;;  %s1422_s2 = inlined_call_operand.vmem [shape: f32[1,16], index: 2, kind: input, shape index: {}]   ;;  %s1423_s4 = inlined_call_operand.vmem [shape: f32[1,4], index: 4, kind: input, shape index: {}]   ;;  %s1424_s5 = inlined_call_operand.vmem [shape: f32[1,4], index: 5, kind: input, shape index: {}]   ;;  %s1425_s6 = inlined_call_operand.vmem [shape: f32[1,4], index: 6, kind: input, shape index: {}]   ;;  %s1426_s7 = inlined_call_operand.vmem [shape: f32[16,8,4], index: 7, kind: output, shape index: {}]  }
   0x1   :  { %v42_v0 = vld [vmem:[%s1419_s1] sm:$0xf]  ;;  %v971_v2 = vld [vmem:[%s1420_s0 + $0x8] sm:$0xff]  ;;  %v978_v3 = vld [vmem:[%s1420_s0 + $0x10] sm:$0xff] }
   0x2   :  { %v966_v1 = vld [vmem:[%s1420_s0] sm:$0xff]  ;;  %830 = vmatprep.subr.msk.mxu0 %vm99_vm0, %v42_v0  ;;  %v987_v4 = vld [vmem:[%s1420_s0 + $0x18] sm:$0xff]  ;;  %v1001_v6 = vld [vmem:[%s1420_s0 + $0x28] sm:$0xff] }
   0x3   :  { %832 = vmatprep.mubr.msk.f32.mxu0 %vm50_vm1, %v966_v1  ;;  %831 = vmatpush3.msk.msra.mxu0 %vm99_vm0, %v42_v0  ;;  %v992_v5 = vld [vmem:[%s1420_s0 + $0x20] sm:$0xff]  ;;  %v1006_v7 = vld [vmem:[%s1420_s0 + $0x30] sm:$0xff]  ;;  %v1015_v8 = vld [vmem:[%s1420_s0 + $0x38] sm:$0xff] }
   0x4   :  { %833 = vmatmul.mubr.msk.f32.vlgmr.msra.gmra.mrb[0].mxu0 %vm50_vm1, %v971_v2  ;;  %v1020_v9 = vld [vmem:[%s1420_s0 + $0x40] sm:$0xff]  ;;  %v1029_v10 = vld [vmem:[%s1420_s0 + $0x48] sm:$0xff]  ;;  %v1034_v11 = vld [vmem:[%s1420_s0 + $0x50] sm:$0xff] }
   0x5   :  { %835 = vmatprep.mubr.msk.f32.mxu0 %vm50_vm1, %v978_v3  ;;  %v1043_v12 = vld [vmem:[%s1420_s0 + $0x58] sm:$0xff]  ;;  %v1048_v13 = vld [vmem:[%s1420_s0 + $0x60] sm:$0xff]  ;;  %v1057_v14 = vld [vmem:[%s1420_s0 + $0x68] sm:$0xff] }
   0x6   :  { %v1062_v15 = vld [vmem:[%s1420_s0 + $0x70] sm:$0xff]  ;;  %v1071_v16 = vld [vmem:[%s1420_s0 + $0x78] sm:$0xff]  ;;  %v264_v17 = vld [vmem:[%s1421_s3] sm:$0xff] }
   0x7   :  { %v265_v18 = vld [vmem:[%s1421_s3 + $0x8] sm:$0xff]  ;;  %v758_v20 = vld [vmem:[%s1422_s2] ss:$0 sm:$0xff] }
   0x8   :  { %836 = vmatmul.mubr.msk.f32.gmra.mrb[2].mxu0 %vm50_vm1, %v987_v4  ;;  %v884_v19 = vpack.c.bf16 %v265_v18, %v264_v17 }
   0x9   :  { %838 = vmatprep.mubr.msk.f32.mxu0 %vm50_vm1, %v992_v5 }
   0xa   :  { %885 = vmatprep.subr.bf16.mxu1 %v884_v19 }
   0xb   :  { %887 = vmatpush3.bf16.msra.mxu1 %v884_v19 }
   0xc   :  { %839 = vmatmul.mubr.msk.f32.gmra.mrb[4].mxu0 %vm50_vm1, %v1001_v6 }
   0xd   :  { %841 = vmatprep.mubr.msk.f32.mxu0 %vm50_vm1, %v1006_v7 }
  0x10   :  { %842 = vmatmul.mubr.msk.f32.gmra.mrb[6].mxu0 %vm50_vm1, %v1015_v8 }
  0x11   :  { %844 = vmatprep.mubr.msk.f32.mxu0 %vm50_vm1, %v1020_v9 }
  0x14   :  { %845 = vmatmul.mubr.msk.f32.gmra.mrb[8].mxu0 %vm50_vm1, %v1029_v10 }
  0x15   :  { %847 = vmatprep.mubr.msk.f32.mxu0 %vm50_vm1, %v1034_v11 }
  0x18   :  { %848 = vmatmul.mubr.msk.f32.gmra.mrb[10].mxu0 %vm50_vm1, %v1043_v12 }
  0x19   :  { %850 = vmatprep.mubr.msk.f32.mxu0 %vm50_vm1, %v1048_v13 }
  0x1c   :  { %851 = vmatmul.mubr.msk.f32.gmra.mrb[12].mxu0 %vm50_vm1, %v1057_v14 }
  0x1d   :  { %853 = vmatprep.mubr.msk.f32.mxu0 %vm50_vm1, %v1062_v15 }
  0x20   :  { %854 = vmatmul.mubr.msk.f32.gmra.mrb[14].mxu0 %vm50_vm1, %v1071_v16 }
  0xd7   :  { %v834_v21 = vpop.f32.mrb[0].mxu0 }
  0xd8   :  { %v175_v22 = vadd.f32 %v834_v21, %v758_v20  ;;  %v169_v23 = vpop.f32.mrb[1].mxu0 }
  0xd9   :  { %v170_v24 = vadd.f32 %v758_v20, %v169_v23 }
  0xda   :  { %v249_v27 = vmax.f32 %v175_v22, 0.0  ;;  %v1103_v22 = vld [vmem:[%s1423_s4] ss:$0 sm:$0xff] }
  0xdb   :  { %v248_v25 = vmax.f32 %v170_v24, 0.0  ;;  %v837_v26 = vpop.f32.mrb[2].mxu0 }
  0xdc   :  { %v185_v28 = vadd.f32 %v837_v26, %v758_v20  ;;  %v179_v29 = vpop.f32.mrb[3].mxu0 }
  0xdd   :  { %v180_v30 = vadd.f32 %v758_v20, %v179_v29  ;;  %860 = vmatprep.mubr.msk.f32.mxu1 %vm273_vm2, %v248_v25 }
  0xde   :  { %861 = vmatmul.mubr.msk.f32.vlgmr.msra.gmra.mrb[0].mxu1 %vm273_vm2, %v249_v27  ;;  %v251_v33 = vmax.f32 %v185_v28, 0.0 }
  0xdf   :  { %v250_v31 = vmax.f32 %v180_v30, 0.0  ;;  %v840_v32 = vpop.f32.mrb[4].mxu0 }
  0xe0   :  { %v195_v34 = vadd.f32 %v840_v32, %v758_v20  ;;  %v189_v35 = vpop.f32.mrb[5].mxu0 }
  0xe1   :  { %v190_v36 = vadd.f32 %v758_v20, %v189_v35  ;;  %863 = vmatprep.mubr.msk.f32.mxu1 %vm273_vm2, %v250_v31 }
  0xe2   :  { %v253_v37 = vmax.f32 %v195_v34, 0.0  ;;  %864 = vmatmul.mubr.msk.f32.gmra.mrb[2].mxu1 %vm273_vm2, %v251_v33 }
  0xe3   :  { %v252_v38 = vmax.f32 %v190_v36, 0.0  ;;  %v843_v39 = vpop.f32.mrb[6].mxu0 }
  0xe4   :  { %v205_v40 = vadd.f32 %v843_v39, %v758_v20  ;;  %v199_v41 = vpop.f32.mrb[7].mxu0 }
  0xe5   :  { %v200_v42 = vadd.f32 %v758_v20, %v199_v41  ;;  %866 = vmatprep.mubr.msk.f32.mxu1 %vm273_vm2, %v252_v38 }
  0xe6   :  { %v255_v43 = vmax.f32 %v205_v40, 0.0  ;;  %867 = vmatmul.mubr.msk.f32.gmra.mrb[4].mxu1 %vm273_vm2, %v253_v37 }
  0xe7   :  { %v254_v44 = vmax.f32 %v200_v42, 0.0  ;;  %v846_v45 = vpop.f32.mrb[8].mxu0 }
  0xe8   :  { %v215_v46 = vadd.f32 %v846_v45, %v758_v20  ;;  %v209_v47 = vpop.f32.mrb[9].mxu0 }
  0xe9   :  { %v210_v48 = vadd.f32 %v758_v20, %v209_v47  ;;  %869 = vmatprep.mubr.msk.f32.mxu1 %vm273_vm2, %v254_v44 }
  0xea   :  { %v257_v49 = vmax.f32 %v215_v46, 0.0  ;;  %870 = vmatmul.mubr.msk.f32.gmra.mrb[6].mxu1 %vm273_vm2, %v255_v43 }
  0xeb   :  { %v256_v50 = vmax.f32 %v210_v48, 0.0  ;;  %v849_v51 = vpop.f32.mrb[10].mxu0 }
  0xec   :  { %v225_v52 = vadd.f32 %v849_v51, %v758_v20  ;;  %v219_v53 = vpop.f32.mrb[11].mxu0 }
  0xed   :  { %v220_v54 = vadd.f32 %v758_v20, %v219_v53  ;;  %872 = vmatprep.mubr.msk.f32.mxu1 %vm273_vm2, %v256_v50 }
  0xee   :  { %v259_v55 = vmax.f32 %v225_v52, 0.0  ;;  %873 = vmatmul.mubr.msk.f32.gmra.mrb[8].mxu1 %vm273_vm2, %v257_v49 }
  0xef   :  { %v258_v56 = vmax.f32 %v220_v54, 0.0  ;;  %v852_v57 = vpop.f32.mrb[12].mxu0 }
  0xf0   :  { %v235_v58 = vadd.f32 %v852_v57, %v758_v20  ;;  %v229_v59 = vpop.f32.mrb[13].mxu0 }
  0xf1   :  { %v230_v60 = vadd.f32 %v758_v20, %v229_v59  ;;  %875 = vmatprep.mubr.msk.f32.mxu1 %vm273_vm2, %v258_v56 }
  0xf2   :  { %v261_v61 = vmax.f32 %v235_v58, 0.0  ;;  %876 = vmatmul.mubr.msk.f32.gmra.mrb[10].mxu1 %vm273_vm2, %v259_v55 }
  0xf3   :  { %v260_v62 = vmax.f32 %v230_v60, 0.0  ;;  %v855_v63 = vpop.f32.mrb[14].mxu0 }
  0xf4   :  { %v245_v0 = vadd.f32 %v855_v63, %v758_v20  ;;  %v239_v17 = vpop.f32.mrb[15].mxu0 }
  0xf5   :  { %v240_v18 = vadd.f32 %v758_v20, %v239_v17  ;;  %878 = vmatprep.mubr.msk.f32.mxu1 %vm273_vm2, %v260_v62 }
  0xf6   :  { %v263_v19 = vmax.f32 %v245_v0, 0.0  ;;  %879 = vmatmul.mubr.msk.f32.gmra.mrb[12].mxu1 %vm273_vm2, %v261_v61 }
  0xf7   :  { %v262_v21 = vmax.f32 %v240_v18, 0.0 }
  0xf9   :  { %881 = vmatprep.mubr.msk.f32.mxu1 %vm273_vm2, %v262_v21 }
  0xfa   :  { %882 = vmatmul.mubr.msk.f32.gmra.mrb[14].mxu1 %vm273_vm2, %v263_v19 }
 0x1b1   :  { %v862_v23 = vpop.f32.mrb[0].mxu1 }
 0x1b2   :  { %v394_v24 = vadd.f32 %v862_v23, %v1103_v22  ;;  %v388_v25 = vpop.f32.mrb[1].mxu1 }
 0x1b3   :  { %v389_v20 = vadd.f32 %v1103_v22, %v388_v25 }
 0x1b4   :  { %v1108_v26 = vadd.f32 %v394_v24, %v971_v2 }
 0x1b5   :  { %v865_v27 = vpop.f32.mrb[2].mxu1  ;;  %v1114_v31 = vadd.f32 %v389_v20, %v966_v1 }
 0x1b6   :  { %v404_v28 = vadd.f32 %v865_v27, %v1103_v22  ;;  %v398_v29 = vpop.f32.mrb[3].mxu1  ;;  %v488_v30 = vsel %vm50_vm1, %v1108_v26, 0.0 }
 0x1b7   :  { %v399_v32 = vadd.f32 %v1103_v22, %v398_v29  ;;  %489 = vadd.xlane.f32.xlu0 %v488_v30  ;;  %v485_v37 = vsel %vm50_vm1, %v1114_v31, 0.0 }
 0x1b8   :  { %v1118_v33 = vadd.f32 %v404_v28, %v987_v4 }
 0x1b9   :  { %v868_v34 = vpop.f32.mrb[4].mxu1  ;;  %v1126_v38 = vadd.f32 %v399_v32, %v978_v3 }
 0x1ba   :  { %v414_v2 = vadd.f32 %v868_v34, %v1103_v22  ;;  %v408_v35 = vpop.f32.mrb[5].mxu1  ;;  %v494_v36 = vsel %vm50_vm1, %v1118_v33, 0.0 }
 0x1bb   :  { %v409_v1 = vadd.f32 %v1103_v22, %v408_v35  ;;  %495 = vadd.xlane.f32.xlu1 %v494_v36  ;;  %486 = vadd.xlane.f32.xlu0 %v485_v37  ;;  %v491_v42 = vsel %vm50_vm1, %v1126_v38, 0.0 }
 0x1bc   :  { %v1136_v43 = vadd.f32 %v414_v2, %v1001_v6 }
 0x1bd   :  { %v871_v39 = vpop.f32.mrb[6].mxu1  ;;  %v1130_v4 = vadd.f32 %v409_v1, %v992_v5 }
 0x1be   :  { %v424_v40 = vadd.f32 %v871_v39, %v1103_v22  ;;  %v418_v41 = vpop.f32.mrb[7].mxu1  ;;  %v500_v48 = vsel %vm50_vm1, %v1136_v43, 0.0 }
 0x1bf   :  { %v419_v3 = vadd.f32 %v1103_v22, %v418_v41  ;;  %492 = vadd.xlane.f32.xlu1 %v491_v42  ;;  %v497_v44 = vsel %vm50_vm1, %v1130_v4, 0.0 }
 0x1c0   :  { %498 = vadd.xlane.f32.xlu0 %v497_v44  ;;  %v1148_v6 = vadd.f32 %v424_v40, %v1015_v8 }
 0x1c1   :  { %v874_v45 = vpop.f32.mrb[8].mxu1  ;;  %v1142_v5 = vadd.f32 %v419_v3, %v1006_v7 }
 0x1c2   :  { %v434_v46 = vadd.f32 %v874_v45, %v1103_v22  ;;  %v428_v47 = vpop.f32.mrb[9].mxu1  ;;  %v506_v54 = vsel %vm50_vm1, %v1148_v6, 0.0 }
 0x1c3   :  { %v429_v49 = vadd.f32 %v1103_v22, %v428_v47  ;;  %501 = vadd.xlane.f32.xlu1 %v500_v48  ;;  %v503_v50 = vsel %vm50_vm1, %v1142_v5, 0.0 }
 0x1c4   :  { %504 = vadd.xlane.f32.xlu0 %v503_v50  ;;  %v1160_v8 = vadd.f32 %v434_v46, %v1029_v10 }
 0x1c5   :  { %v877_v51 = vpop.f32.mrb[10].mxu1  ;;  %v1154_v7 = vadd.f32 %v429_v49, %v1020_v9 }
 0x1c6   :  { %v444_v52 = vadd.f32 %v877_v51, %v1103_v22  ;;  %v438_v53 = vpop.f32.mrb[11].mxu1  ;;  %v512_v60 = vsel %vm50_vm1, %v1160_v8, 0.0 }
 0x1c7   :  { %v439_v55 = vadd.f32 %v1103_v22, %v438_v53  ;;  %507 = vadd.xlane.f32.xlu1 %v506_v54  ;;  %v509_v56 = vsel %vm50_vm1, %v1154_v7, 0.0 }
 0x1c8   :  { %510 = vadd.xlane.f32.xlu0 %v509_v56  ;;  %v1172_v10 = vadd.f32 %v444_v52, %v1043_v12 }
 0x1c9   :  { %v880_v57 = vpop.f32.mrb[12].mxu1  ;;  %v1166_v9 = vadd.f32 %v439_v55, %v1034_v11 }
 0x1ca   :  { %v454_v58 = vadd.f32 %v880_v57, %v1103_v22  ;;  %v448_v59 = vpop.f32.mrb[13].mxu1  ;;  %v518_v18 = vsel %vm50_vm1, %v1172_v10, 0.0 }
 0x1cb   :  { %v449_v61 = vadd.f32 %v1103_v22, %v448_v59  ;;  %513 = vadd.xlane.f32.xlu1 %v512_v60  ;;  %v515_v62 = vsel %vm50_vm1, %v1166_v9, 0.0 }
 0x1cc   :  { %516 = vadd.xlane.f32.xlu0 %v515_v62  ;;  %v1184_v12 = vadd.f32 %v454_v58, %v1057_v14 }
 0x1cd   :  { %v883_v63 = vpop.f32.mrb[14].mxu1  ;;  %v1178_v11 = vadd.f32 %v449_v61, %v1048_v13 }
 0x1ce   :  { %v464_v0 = vadd.f32 %v883_v63, %v1103_v22  ;;  %v458_v17 = vpop.f32.mrb[15].mxu1  ;;  %v524_v13 = vsel %vm50_vm1, %v1184_v12, 0.0 }
 0x1cf   :  { %v459_v19 = vadd.f32 %v1103_v22, %v458_v17  ;;  %519 = vadd.xlane.f32.xlu1 %v518_v18  ;;  %v521_v21 = vsel %vm50_vm1, %v1178_v11, 0.0 }
 0x1d0   :  { %522 = vadd.xlane.f32.xlu0 %v521_v21  ;;  %v1195_v24 = vadd.f32 %v464_v0, %v1071_v16 }
 0x1d1   :  { %v1190_v23 = vadd.f32 %v459_v19, %v1062_v15 }
 0x1d2   :  { %v530_v22 = vsel %vm50_vm1, %v1195_v24, 0.0 }
 0x1d3   :  { %525 = vadd.xlane.f32.xlu1 %v524_v13  ;;  %v527_v14 = vsel %vm50_vm1, %v1190_v23, 0.0 }
 0x1d4   :  { %528 = vadd.xlane.f32.xlu0 %v527_v14 }
 0x1d7   :  { %531 = vadd.xlane.f32.xlu1 %v530_v22 }
 0x244   :  { %v490_v25 = vpop.xlane.xlu0 %489 }
 0x245   :  { %v535_v20 = vmul.f32 0.25, %v490_v25 }
 0x247   :  { %v1202_v15 = vsub.f32 %v1108_v26, %v535_v20 }
 0x248   :  { %v496_v27 = vpop.xlane.xlu1 %495  ;;  %v487_v28 = vpop.xlane.xlu0 %486 }
 0x249   :  { %v537_v29 = vmul.f32 0.25, %v496_v27  ;;  %v534_v30 = vmul.f32 0.25, %v487_v28  ;;  %v567_v16 = vmul.f32 %v1202_v15, %v1202_v15 }
 0x24b   :  { %v1207_v32 = vsub.f32 %v1118_v33, %v537_v29  ;;  %v1210_v34 = vsub.f32 %v1114_v31, %v534_v30  ;;  %v585_v2 = vsel %vm50_vm1, %v567_v16, 0.0 }
 0x24c   :  { %586 = vadd.xlane.f32.xlu1 %v585_v2  ;;  %v493_v35 = vpop.xlane.xlu1 %492 }
 0x24d   :  { %v536_v36 = vmul.f32 0.25, %v493_v35  ;;  %v499_v26 = vpop.xlane.xlu0 %498  ;;  %v569_v37 = vmul.f32 %v1207_v32, %v1207_v32  ;;  %v566_v1 = vmul.f32 %v1210_v34, %v1210_v34 }
 0x24e   :  { %v538_v39 = vmul.f32 0.25, %v499_v26 }
 0x24f   :  { %v1218_v40 = vsub.f32 %v1126_v38, %v536_v36  ;;  %v591_v33 = vsel %vm50_vm1, %v569_v37, 0.0  ;;  %v582_v31 = vsel %vm50_vm1, %v566_v1, 0.0 }
 0x250   :  { %v1223_v41 = vsub.f32 %v1130_v4, %v538_v39  ;;  %592 = vadd.xlane.f32.xlu1 %v591_v33  ;;  %v502_v42 = vpop.xlane.xlu1 %501  ;;  %583 = vadd.xlane.f32.xlu0 %v582_v31 }
 0x251   :  { %v539_v3 = vmul.f32 0.25, %v502_v42  ;;  %v505_v44 = vpop.xlane.xlu0 %504  ;;  %v568_v45 = vmul.f32 %v1218_v40, %v1218_v40 }
 0x252   :  { %v540_v46 = vmul.f32 0.25, %v505_v44  ;;  %v570_v48 = vmul.f32 %v1223_v41, %v1223_v41 }
 0x253   :  { %v1228_v47 = vsub.f32 %v1136_v43, %v539_v3  ;;  %v588_v38 = vsel %vm50_vm1, %v568_v45, 0.0 }
 0x254   :  { %v1234_v4 = vsub.f32 %v1142_v5, %v540_v46  ;;  %v508_v49 = vpop.xlane.xlu1 %507  ;;  %589 = vadd.xlane.f32.xlu0 %v588_v38  ;;  %v594_v55 = vsel %vm50_vm1, %v570_v48, 0.0 }
 0x255   :  { %v541_v50 = vmul.f32 0.25, %v508_v49  ;;  %v511_v51 = vpop.xlane.xlu0 %510  ;;  %v571_v52 = vmul.f32 %v1228_v47, %v1228_v47 }
 0x256   :  { %v542_v53 = vmul.f32 0.25, %v511_v51  ;;  %v572_v56 = vmul.f32 %v1234_v4, %v1234_v4 }
 0x257   :  { %v1239_v54 = vsub.f32 %v1148_v6, %v541_v50  ;;  %v597_v43 = vsel %vm50_vm1, %v571_v52, 0.0 }
 0x258   :  { %v1246_v5 = vsub.f32 %v1154_v7, %v542_v53  ;;  %598 = vadd.xlane.f32.xlu1 %v597_v43  ;;  %v514_v57 = vpop.xlane.xlu1 %513  ;;  %595 = vadd.xlane.f32.xlu0 %v594_v55  ;;  %v600_v63 = vsel %vm50_vm1, %v572_v56, 0.0 }
 0x259   :  { %v543_v58 = vmul.f32 0.25, %v514_v57  ;;  %v517_v59 = vpop.xlane.xlu0 %516  ;;  %v573_v60 = vmul.f32 %v1239_v54, %v1239_v54 }
 0x25a   :  { %v544_v6 = vmul.f32 0.25, %v517_v59  ;;  %v574_v7 = vmul.f32 %v1246_v5, %v1246_v5  ;;  %v1300_v59 = vld [vmem:[%s1424_s5] ss:$0 sm:$0xff] }
 0x25b   :  { %v1251_v61 = vsub.f32 %v1160_v8, %v543_v58  ;;  %v603_v62 = vsel %vm50_vm1, %v573_v60, 0.0 }
 0x25c   :  { %v1258_v0 = vsub.f32 %v1166_v9, %v544_v6  ;;  %604 = vadd.xlane.f32.xlu1 %v603_v62  ;;  %v520_v17 = vpop.xlane.xlu1 %519  ;;  %601 = vadd.xlane.f32.xlu0 %v600_v63  ;;  %v606_v22 = vsel %vm50_vm1, %v574_v7, 0.0 }
 0x25d   :  { %v545_v18 = vmul.f32 0.25, %v520_v17  ;;  %v523_v19 = vpop.xlane.xlu0 %522  ;;  %v575_v21 = vmul.f32 %v1251_v61, %v1251_v61  ;;  %v1306_v17 = vld [vmem:[%s1425_s6] ss:$0 sm:$0xff] }
 0x25e   :  { %v546_v8 = vmul.f32 0.25, %v523_v19  ;;  %v576_v9 = vmul.f32 %v1258_v0, %v1258_v0 }
 0x25f   :  { %v1263_v13 = vsub.f32 %v1172_v10, %v545_v18  ;;  %v609_v14 = vsel %vm50_vm1, %v575_v21, 0.0 }
 0x260   :  { %v1270_v25 = vsub.f32 %v1178_v11, %v546_v8  ;;  %610 = vadd.xlane.f32.xlu1 %v609_v14  ;;  %v526_v20 = vpop.xlane.xlu1 %525  ;;  %607 = vadd.xlane.f32.xlu0 %v606_v22  ;;  %v612_v2 = vsel %vm50_vm1, %v576_v9, 0.0 }
 0x261   :  { %v547_v27 = vmul.f32 0.25, %v526_v20  ;;  %v529_v28 = vpop.xlane.xlu0 %528  ;;  %v577_v29 = vmul.f32 %v1263_v13, %v1263_v13 }
 0x262   :  { %v548_v10 = vmul.f32 0.25, %v529_v28  ;;  %v578_v11 = vmul.f32 %v1270_v25, %v1270_v25 }
 0x263   :  { %v1275_v30 = vsub.f32 %v1184_v12, %v547_v27  ;;  %v615_v16 = vsel %vm50_vm1, %v577_v29, 0.0 }
 0x264   :  { %v1282_v35 = vsub.f32 %v1190_v23, %v548_v10  ;;  %616 = vadd.xlane.f32.xlu1 %v615_v16  ;;  %v532_v36 = vpop.xlane.xlu1 %531  ;;  %613 = vadd.xlane.f32.xlu0 %v612_v2  ;;  %v618_v39 = vsel %vm50_vm1, %v578_v11, 0.0 }
 0x265   :  { %v549_v26 = vmul.f32 0.25, %v532_v36  ;;  %v579_v37 = vmul.f32 %v1275_v30, %v1275_v30 }
 0x266   :  { %v580_v33 = vmul.f32 %v1282_v35, %v1282_v35 }
 0x267   :  { %v1287_v12 = vsub.f32 %v1195_v24, %v549_v26  ;;  %v621_v1 = vsel %vm50_vm1, %v579_v37, 0.0 }
 0x268   :  { %622 = vadd.xlane.f32.xlu1 %v621_v1  ;;  %619 = vadd.xlane.f32.xlu0 %v618_v39  ;;  %v624_v42 = vsel %vm50_vm1, %v580_v33, 0.0 }
 0x269   :  { %v581_v23 = vmul.f32 %v1287_v12, %v1287_v12 }
 0x26b   :  { %v627_v31 = vsel %vm50_vm1, %v581_v23, 0.0 }
 0x26c   :  { %628 = vadd.xlane.f32.xlu1 %v627_v31  ;;  %625 = vadd.xlane.f32.xlu0 %v624_v42 }
 0x2d9   :  { %v587_v24 = vpop.xlane.xlu1 %586 }
 0x2da   :  { %v631_v3 = vmul.f32 0.25, %v587_v24 }
 0x2dc   :  { %v647_v44 = vadd.f32 1e-05, %v631_v3 }
 0x2dd   :  { %v593_v45 = vpop.xlane.xlu1 %592  ;;  %v584_v46 = vpop.xlane.xlu0 %583 }
 0x2de   :  { %888 = vrsqrt.f32 %v647_v44  ;;  %v633_v38 = vmul.f32 0.25, %v593_v45  ;;  %v630_v48 = vmul.f32 0.25, %v584_v46 }
 0x2e0   :  { %v649_v49 = vadd.f32 1e-05, %v633_v38  ;;  %v646_v50 = vadd.f32 1e-05, %v630_v48 }
 0x2e1   :  { %v590_v51 = vpop.xlane.xlu0 %589 }
 0x2e2   :  { %890 = vrsqrt.f32 %v649_v49  ;;  %v632_v52 = vmul.f32 0.25, %v590_v51 }
 0x2e3   :  { %892 = vrsqrt.f32 %v646_v50 }
 0x2e4   :  { %v648_v53 = vadd.f32 1e-05, %v632_v52 }
 0x2e5   :  { %v599_v43 = vpop.xlane.xlu1 %598  ;;  %v596_v55 = vpop.xlane.xlu0 %595 }
 0x2e6   :  { %894 = vrsqrt.f32 %v648_v53  ;;  %v635_v56 = vmul.f32 0.25, %v599_v43  ;;  %v634_v57 = vmul.f32 0.25, %v596_v55 }
 0x2e8   :  { %v889_v58 = vpop.eup %888  ;;  %v651_v60 = vadd.f32 1e-05, %v635_v56  ;;  %v650_v6 = vadd.f32 1e-05, %v634_v57 }
 0x2e9   :  { %v679_v62 = vmul.f32 %v889_v58, %v1202_v15  ;;  %v605_v63 = vpop.xlane.xlu1 %604  ;;  %v602_v7 = vpop.xlane.xlu0 %601 }
 0x2ea   :  { %896 = vrsqrt.f32 %v651_v60  ;;  %v637_v18 = vmul.f32 0.25, %v605_v63  ;;  %v636_v19 = vmul.f32 0.25, %v602_v7 }
 0x2eb   :  { %v701_v21 = vmul.f32 %v1300_v59, %v679_v62  ;;  %898 = vrsqrt.f32 %v650_v6 }
 0x2ec   :  { %v891_v8 = vpop.eup %890  ;;  %v653_v14 = vadd.f32 1e-05, %v637_v18  ;;  %v652_v22 = vadd.f32 1e-05, %v636_v19 }
 0x2ed   :  { %v893_v9 = vpop.eup %892  ;;  %v723_v20 = vadd.f32 %v1306_v17, %v701_v21  ;;  %v681_v15 = vmul.f32 %v891_v8, %v1207_v32  ;;  %v611_v27 = vpop.xlane.xlu1 %610 }
 0x2ee   :  { %v608_v28 = vpop.xlane.xlu0 %607  ;;  %v678_v29 = vmul.f32 %v893_v9, %v1210_v34  ;;  %900 = vrsqrt.f32 %v653_v14  ;;  %v639_v10 = vmul.f32 0.25, %v611_v27 }
 0x2ef   :  { %v638_v16 = vmul.f32 0.25, %v608_v28  ;;  %739 = vst.msk [vmem:[%s1426_s7 + $0x8] sm:$0xff] %vm50_vm1, %v723_v20  ;;  %v703_v2 = vmul.f32 %v1300_v59, %v681_v15  ;;  %902 = vrsqrt.f32 %v652_v22 }
 0x2f0   :  { %v895_v11 = vpop.eup %894  ;;  %v700_v36 = vmul.f32 %v1300_v59, %v678_v29  ;;  %v655_v26 = vadd.f32 1e-05, %v639_v10 }
 0x2f1   :  { %v654_v32 = vadd.f32 1e-05, %v638_v16  ;;  %v725_v37 = vadd.f32 %v1306_v17, %v703_v2  ;;  %v680_v34 = vmul.f32 %v895_v11, %v1218_v40  ;;  %v617_v1 = vpop.xlane.xlu1 %616 }
 0x2f2   :  { %v614_v39 = vpop.xlane.xlu0 %613  ;;  %v722_v33 = vadd.f32 %v1306_v17, %v700_v36  ;;  %904 = vrsqrt.f32 %v655_v26  ;;  %v641_v23 = vmul.f32 0.25, %v617_v1 }
 0x2f3   :  { %v640_v31 = vmul.f32 0.25, %v614_v39  ;;  %741 = vst.msk [vmem:[%s1426_s7 + $0x18] sm:$0xff] %vm50_vm1, %v725_v37  ;;  %v702_v42 = vmul.f32 %v1300_v59, %v680_v34  ;;  %906 = vrsqrt.f32 %v654_v32 }
 0x2f4   :  { %v897_v24 = vpop.eup %896  ;;  %738 = vst.msk [vmem:[%s1426_s7] sm:$0xff] %vm50_vm1, %v722_v33  ;;  %v657_v40 = vadd.f32 1e-05, %v641_v23 }
 0x2f5   :  { %v656_v3 = vadd.f32 1e-05, %v640_v31  ;;  %v899_v44 = vpop.eup %898  ;;  %v724_v45 = vadd.f32 %v1306_v17, %v702_v42  ;;  %v683_v46 = vmul.f32 %v897_v24, %v1228_v47  ;;  %v623_v38 = vpop.xlane.xlu1 %622 }
 0x2f6   :  { %v620_v48 = vpop.xlane.xlu0 %619  ;;  %v682_v49 = vmul.f32 %v899_v44, %v1223_v41  ;;  %908 = vrsqrt.f32 %v657_v40  ;;  %v643_v50 = vmul.f32 0.25, %v623_v38 }
 0x2f7   :  { %v642_v51 = vmul.f32 0.25, %v620_v48  ;;  %740 = vst.msk [vmem:[%s1426_s7 + $0x10] sm:$0xff] %vm50_vm1, %v724_v45  ;;  %v705_v52 = vmul.f32 %v1300_v59, %v683_v46  ;;  %910 = vrsqrt.f32 %v656_v3 }
 0x2f8   :  { %v901_v53 = vpop.eup %900  ;;  %v704_v43 = vmul.f32 %v1300_v59, %v682_v49  ;;  %v659_v55 = vadd.f32 1e-05, %v643_v50 }
 0x2f9   :  { %v658_v47 = vadd.f32 1e-05, %v642_v51  ;;  %v903_v56 = vpop.eup %902  ;;  %v727_v57 = vadd.f32 %v1306_v17, %v705_v52  ;;  %v685_v41 = vmul.f32 %v901_v53, %v1239_v54  ;;  %v629_v58 = vpop.xlane.xlu1 %628 }
 0x2fa   :  { %v626_v60 = vpop.xlane.xlu0 %625  ;;  %v726_v6 = vadd.f32 %v1306_v17, %v704_v43  ;;  %v684_v62 = vmul.f32 %v903_v56, %v1234_v4  ;;  %912 = vrsqrt.f32 %v659_v55  ;;  %v645_v63 = vmul.f32 0.25, %v629_v58 }
 0x2fb   :  { %743 = vst.msk [vmem:[%s1426_s7 + $0x28] sm:$0xff] %vm50_vm1, %v727_v57  ;;  %v707_v7 = vmul.f32 %v1300_v59, %v685_v41  ;;  %914 = vrsqrt.f32 %v658_v47  ;;  %v644_v18 = vmul.f32 0.25, %v626_v60 }
 0x2fc   :  { %v905_v19 = vpop.eup %904  ;;  %742 = vst.msk [vmem:[%s1426_s7 + $0x20] sm:$0xff] %vm50_vm1, %v726_v6  ;;  %v706_v54 = vmul.f32 %v1300_v59, %v684_v62  ;;  %v661_v4 = vadd.f32 1e-05, %v645_v63 }
 0x2fd   :  { %v907_v21 = vpop.eup %906  ;;  %v729_v8 = vadd.f32 %v1306_v17, %v707_v7  ;;  %v687_v14 = vmul.f32 %v905_v19, %v1251_v61  ;;  %v660_v22 = vadd.f32 1e-05, %v644_v18 }
 0x2fe   :  { %v728_v9 = vadd.f32 %v1306_v17, %v706_v54  ;;  %v686_v20 = vmul.f32 %v907_v21, %v1246_v5  ;;  %916 = vrsqrt.f32 %v661_v4 }
 0x2ff   :  { %745 = vst.msk [vmem:[%s1426_s7 + $0x38] sm:$0xff] %vm50_vm1, %v729_v8  ;;  %v709_v15 = vmul.f32 %v1300_v59, %v687_v14  ;;  %918 = vrsqrt.f32 %v660_v22 }
 0x300   :  { %v909_v27 = vpop.eup %908  ;;  %744 = vst.msk [vmem:[%s1426_s7 + $0x30] sm:$0xff] %vm50_vm1, %v728_v9  ;;  %v708_v61 = vmul.f32 %v1300_v59, %v686_v20 }
 0x301   :  { %v911_v28 = vpop.eup %910  ;;  %v731_v5 = vadd.f32 %v1306_v17, %v709_v15  ;;  %v689_v29 = vmul.f32 %v909_v27, %v1263_v13 }
 0x302   :  { %v730_v10 = vadd.f32 %v1306_v17, %v708_v61  ;;  %v688_v16 = vmul.f32 %v911_v28, %v1258_v0 }
 0x303   :  { %747 = vst.msk [vmem:[%s1426_s7 + $0x48] sm:$0xff] %vm50_vm1, %v731_v5  ;;  %v711_v2 = vmul.f32 %v1300_v59, %v689_v29 }
 0x304   :  { %v913_v11 = vpop.eup %912  ;;  %746 = vst.msk [vmem:[%s1426_s7 + $0x40] sm:$0xff] %vm50_vm1, %v730_v10  ;;  %v710_v36 = vmul.f32 %v1300_v59, %v688_v16 }
 0x305   :  { %v915_v13 = vpop.eup %914  ;;  %v733_v26 = vadd.f32 %v1306_v17, %v711_v2  ;;  %v691_v0 = vmul.f32 %v913_v11, %v1275_v30 }
 0x306   :  { %v732_v32 = vadd.f32 %v1306_v17, %v710_v36  ;;  %v690_v37 = vmul.f32 %v915_v13, %v1270_v25 }
 0x307   :  { %749 = vst.msk [vmem:[%s1426_s7 + $0x58] sm:$0xff] %vm50_vm1, %v733_v26  ;;  %v713_v34 = vmul.f32 %v1300_v59, %v691_v0 }
 0x308   :  { %v917_v1 = vpop.eup %916  ;;  %748 = vst.msk [vmem:[%s1426_s7 + $0x50] sm:$0xff] %vm50_vm1, %v732_v32  ;;  %v712_v39 = vmul.f32 %v1300_v59, %v690_v37 }
 0x309   :  { %v919_v30 = vpop.eup %918  ;;  %v735_v33 = vadd.f32 %v1306_v17, %v713_v34  ;;  %v693_v25 = vmul.f32 %v917_v1, %v1287_v12 }
 0x30a   :  { %v734_v23 = vadd.f32 %v1306_v17, %v712_v39  ;;  %v692_v31 = vmul.f32 %v919_v30, %v1282_v35 }
 0x30b   :  { %751 = vst.msk [vmem:[%s1426_s7 + $0x68] sm:$0xff] %vm50_vm1, %v735_v33  ;;  %v715_v42 = vmul.f32 %v1300_v59, %v693_v25 }
 0x30c   :  { %750 = vst.msk [vmem:[%s1426_s7 + $0x60] sm:$0xff] %vm50_vm1, %v734_v23  ;;  %v714_v24 = vmul.f32 %v1300_v59, %v692_v31 }
 0x30d   :  { %v737_v12 = vadd.f32 %v1306_v17, %v715_v42 }
 0x30e   :  { %v736_v40 = vadd.f32 %v1306_v17, %v714_v24 }
 0x30f   :  { %753 = vst.msk [vmem:[%s1426_s7 + $0x78] sm:$0xff] %vm50_vm1, %v737_v12 }
 0x310   :  { %752 = vst.msk [vmem:[%s1426_s7 + $0x70] sm:$0xff] %vm50_vm1, %v736_v40 }

// kernel: _lambda_.25
= control target key start
LH: loop header
LB: loop body
LE: loop exit
PB: predicated region body
PF: predicated region fallthrough
CT: control target
= control target key end

     0   :  { %s300_s0 = inlined_call_operand.vmem [shape: f32[2], index: 0, kind: input, shape index: {}]   ;;  %s301_s1 = inlined_call_operand.vmem [shape: f32[16,32], index: 1, kind: input, shape index: {}]   ;;  %s302_s2 = inlined_call_operand.vmem [shape: f32[16,32], index: 2, kind: input, shape index: {}]   ;;  %s303_s3 = inlined_call_operand.vmem [shape: f32[32,1], index: 3, kind: input, shape index: {}]   ;;  %s304_s4 = inlined_call_operand.<no memory space> [shape: f32[1,1], index: 4, kind: input, shape index: {}]   ;;  %s305_s5 = inlined_call_operand.vmem [shape: f32[16,32], index: 5, kind: output, shape index: {0}]   ;;  %s306_s6 = inlined_call_operand.vmem [shape: f32[16,1], index: 6, kind: output, shape index: {1}]  }
   0x1   :  { %v12_v0 = vstv %s304_s4 }
   0x2   :  { %13 = vst [vmem:[#allocation2] sm:$0x1] %v12_v0 }
   0x3   :  { %14 = vsyncpa [#allocation4], 0  ;;  %s21_s25 = sshll.u32 %s300_s0, 4  ;;  %s22_s25 = int_to_ptr.vmem [resolvable:$true] %s21_s25 }
   0x4   :  { %s208_s26 = scalar_lea.vmem %s22_s25, 16  ;;  %p213_p1 = scmp.lt.s32.totalorder %s22_s25, %s22_s25 }
   0x5   :  { %p209_p0 = scmp.ne.s32.totalorder %s22_s25, %s208_s26  ;;  %p214_p2 = scmp.lt.s32.totalorder %s208_s26, %s208_s26 }
   0x7   :  { %p215_p3 = por %p214_p2, %p213_p1 }
   0x9   :  { %p216_p4 = pnand %p215_p3, %p209_p0 }
   0xb   :  { %219 = shalt.err (!%p216_p4)
}
   0xc   :  { %s222_s27 = smov [#allocation3]  }
   0xd   :  { %24 = dma.vmem_to_smem %s22_s25, 16, %s222_s27, [#allocation4]  }
   0xe   :  { %220 = dma.done.wait [#allocation4], 16  }
   0xf   :  { %221 = vsyncadd [#allocation4], 4294967280 }
  0x10   :  { %36 = sfence }
  0x11   :  { %v54_v1 = vld [vmem:[%s303_s3] sm:$0xff]  ;;  %v55_v2 = vld [vmem:[%s303_s3 + $0x8] sm:$0xff]  ;;  %v56_v3 = vld [vmem:[%s303_s3 + $0x10] sm:$0xff]  ;;  %s37_s8 = sld [smem:[#allocation3]]  ;;  %s170_s11 = sld [smem:[#allocation3 + $0x1]]  ;;  %vm51_vm0 = vcmask 261120  }
  0x12   :  { %v191_v4 = vpack.c.bf16 %v55_v2, %v54_v1  ;;  %v57_v5 = vld [vmem:[%s303_s3 + $0x18] sm:$0xff]  ;;  %v38_v7 = vld [vmem:[%s301_s1] sm:$0xff]  ;;  %v39_v8 = vld [vmem:[%s301_s1 + $0x8] sm:$0xff]  ;;  %vm158_vm1 = vcmask 7168  }
  0x13   :  { %v195_v6 = vpack.c.bf16 %v57_v5, %v56_v3  ;;  %v44_v9 = vld [vmem:[%s302_s2] sm:$0xff]  ;;  %v45_v10 = vld [vmem:[%s302_s2 + $0x8] sm:$0xff] }
  0x14   :  { %192 = vmatprep.subr.bf16.mxu0 %v191_v4  ;;  %v171_v19 = vld [vmem:[#allocation2] ss:$0 sm:$0xff] }
  0x15   :  { %194 = vmatpush3.bf16.msra.mxu0 %v191_v4 }
  0x16   :  { %196 = vmatprep.subr.bf16.mxu0 %v195_v6 }
  0x17   :  { %v40_v11 = vstv %s37_s8  ;;  %v46_v14 = vstv %s170_s11 }
  0x18   :  { %v41_v12 = vmul.f32 %v40_v11, %v38_v7  ;;  %v42_v13 = vmul.f32 %v40_v11, %v39_v8  ;;  %v47_v15 = vmul.f32 %v46_v14, %v44_v9  ;;  %v48_v16 = vmul.f32 %v46_v14, %v45_v10 }
  0x19   :  { %198 = vmatpush3.bf16.msra.mxu0 %v195_v6 }
  0x1a   :  { %v49_v17 = vadd.f32 %v47_v15, %v41_v12  ;;  %v50_v18 = vadd.f32 %v48_v16, %v42_v13 }
  0x1c   :  { %52 = vst.msk [vmem:[%s305_s5] sm:$0xff] %vm51_vm0, %v49_v17  ;;  %53 = vst.msk [vmem:[%s305_s5 + $0x8] sm:$0xff] %vm51_vm0, %v50_v18  ;;  %188 = vmatprep.mubr.msk.f32.mxu0 %vm51_vm0, %v49_v17 }
  0x1d   :  { %189 = vmatmul.mubr.msk.f32.vlgmr.msra.gmra.mrb[0].mxu0 %vm51_vm0, %v50_v18 }
  0xf0   :  { %v190_v20 = vpop.f32.mrb[0].mxu0 }
  0xf1   :  { %v143_v21 = vadd.f32 %v190_v20, %v171_v19  ;;  %v137_v22 = vpop.f32.mrb[1].mxu0 }
  0xf2   :  { %v138_v23 = vadd.f32 %v171_v19, %v137_v22 }
  0xf3   :  { %v147_v24 = vsub.f32 0.0, %v143_v21 }
  0xf4   :  { %v146_v25 = vsub.f32 0.0, %v138_v23 }
  0xf5   :  { %v150_v26 = vmul.f32 1.442695, %v147_v24 }
  0xf6   :  { %v148_v27 = vmul.f32 1.442695, %v146_v25 }
  0xf7   :  { %200 = vpow2.f32 %v150_v26 }
  0xf8   :  { %202 = vpow2.f32 %v148_v27 }
 0x101   :  { %v201_v28 = vpop.eup %200 }
 0x102   :  { %v203_v29 = vpop.eup %202  ;;  %v153_v30 = vadd.f32 1.0, %v201_v28 }
 0x103   :  { %v152_v31 = vadd.f32 1.0, %v203_v29 }
 0x104   :  { %204 = vrcp.f32 %v153_v30 }
 0x105   :  { %206 = vrcp.f32 %v152_v31 }
 0x10e   :  { %v205_v32 = vpop.eup %204 }
 0x10f   :  { %v207_v33 = vpop.eup %206  ;;  %160 = vst.msk [vmem:[%s306_s6 + $0x8] sm:$0xff] %vm158_vm1, %v205_v32 }
 0x110   :  { %159 = vst.msk [vmem:[%s306_s6] sm:$0xff] %vm158_vm1, %v207_v33 }
 0x111   :  { %169 = vsyncpa [#allocation4], 1 }

// kernel: _lambda_.22
= control target key start
LH: loop header
LB: loop body
LE: loop exit
PB: predicated region body
PF: predicated region fallthrough
CT: control target
= control target key end

     0   :  { %vm39_vm0 = vcmask 261120   ;;  %s530_s1 = inlined_call_operand.vmem [shape: f32[32,128], index: 1, kind: input, shape index: {}]   ;;  %s531_s0 = inlined_call_operand.vmem [shape: f32[2,8,32], index: 0, kind: input, shape index: {}]   ;;  %s532_s3 = inlined_call_operand.vmem [shape: f32[128,32], index: 3, kind: input, shape index: {}]   ;;  %s533_s2 = inlined_call_operand.vmem [shape: f32[1,128], index: 2, kind: input, shape index: {}]   ;;  %s534_s4 = inlined_call_operand.vmem [shape: f32[1,32], index: 4, kind: input, shape index: {}]   ;;  %s535_s5 = inlined_call_operand.vmem [shape: f32[1,32], index: 5, kind: input, shape index: {}]   ;;  %s536_s6 = inlined_call_operand.vmem [shape: f32[1,32], index: 6, kind: input, shape index: {}]   ;;  %s537_s7 = inlined_call_operand.vmem [shape: f32[2,8,32], index: 7, kind: output, shape index: {}]  }
   0x1   :  { %v28_v0 = vld [vmem:[%s530_s1] sm:$0xff]  ;;  %v29_v1 = vld [vmem:[%s530_s1 + $0x8] sm:$0xff]  ;;  %v30_v2 = vld [vmem:[%s530_s1 + $0x10] sm:$0xff] }
   0x2   :  { %v350_v3 = vpack.c.bf16 %v29_v1, %v28_v0  ;;  %v31_v4 = vld [vmem:[%s530_s1 + $0x18] sm:$0xff]  ;;  %v449_v5 = vld [vmem:[%s531_s0] sm:$0xff]  ;;  %v124_v8 = vld [vmem:[%s532_s3 + $0x8] sm:$0xff] }
   0x3   :  { %v354_v6 = vpack.c.bf16 %v31_v4, %v30_v2  ;;  %312 = vmatprep.mubr.msk.f32.mxu0 %vm39_vm0, %v449_v5  ;;  %v123_v7 = vld [vmem:[%s532_s3] sm:$0xff]  ;;  %v125_v9 = vld [vmem:[%s532_s3 + $0x10] sm:$0xff]  ;;  %v126_v11 = vld [vmem:[%s532_s3 + $0x18] sm:$0xff] }
   0x4   :  { %351 = vmatprep.subr.bf16.mxu0 %v350_v3  ;;  %v358_v10 = vpack.c.bf16 %v124_v8, %v123_v7  ;;  %v362_v12 = vpack.c.bf16 %v126_v11, %v125_v9  ;;  %v127_v13 = vld [vmem:[%s532_s3 + $0x20] sm:$0xff]  ;;  %v128_v14 = vld [vmem:[%s532_s3 + $0x28] sm:$0xff]  ;;  %v129_v17 = vld [vmem:[%s532_s3 + $0x30] sm:$0xff] }
   0x5   :  { %353 = vmatpush3.bf16.msra.mxu0 %v350_v3  ;;  %v366_v15 = vpack.c.bf16 %v128_v14, %v127_v13  ;;  %v27_v16 = vld [vmem:[%s531_s0 + $0x8] sm:$0xff]  ;;  %v130_v18 = vld [vmem:[%s532_s3 + $0x38] sm:$0xff]  ;;  %v131_v20 = vld [vmem:[%s532_s3 + $0x40] sm:$0xff] }
   0x6   :  { %355 = vmatprep.subr.bf16.mxu0 %v354_v6  ;;  %359 = vmatprep.subr.bf16.mxu1 %v358_v10  ;;  %v370_v19 = vpack.c.bf16 %v130_v18, %v129_v17  ;;  %v132_v21 = vld [vmem:[%s532_s3 + $0x48] sm:$0xff]  ;;  %v133_v23 = vld [vmem:[%s532_s3 + $0x50] sm:$0xff]  ;;  %v134_v24 = vld [vmem:[%s532_s3 + $0x58] sm:$0xff] }
   0x7   :  { %361 = vmatpush3.bf16.msra.mxu1 %v358_v10  ;;  %v374_v22 = vpack.c.bf16 %v132_v21, %v131_v20  ;;  %v378_v25 = vpack.c.bf16 %v134_v24, %v133_v23  ;;  %v135_v26 = vld [vmem:[%s532_s3 + $0x60] sm:$0xff]  ;;  %v136_v27 = vld [vmem:[%s532_s3 + $0x68] sm:$0xff]  ;;  %v137_v29 = vld [vmem:[%s532_s3 + $0x70] sm:$0xff] }
   0x8   :  { %363 = vmatprep.subr.bf16.mxu1 %v362_v12  ;;  %v382_v28 = vpack.c.bf16 %v136_v27, %v135_v26  ;;  %v138_v30 = vld [vmem:[%s532_s3 + $0x78] sm:$0xff]  ;;  %v274_v32 = vld [vmem:[%s533_s2] ss:$0 sm:$0xff] }
   0x9   :  { %357 = vmatpush3.bf16.msra.mxu0 %v354_v6  ;;  %v386_v31 = vpack.c.bf16 %v138_v30, %v137_v29  ;;  %v277_v39 = vld [vmem:[%s534_s4] ss:$0 sm:$0xff] }
   0xa   :  { %v278_v1 = vld [vmem:[%s535_s5] ss:$0 sm:$0xff] }
   0xb   :  { %365 = vmatpush3.bf16.msra.mxu1 %v362_v12  ;;  %v279_v3 = vld [vmem:[%s536_s6] ss:$0 sm:$0xff] }
   0xc   :  { %313 = vmatmul.mubr.msk.f32.vlgmr.msra.gmra.mrb[0].mxu0 %vm39_vm0, %v27_v16  ;;  %367 = vmatprep.subr.bf16.mxu1 %v366_v15 }
   0xf   :  { %369 = vmatpush3.bf16.msra.mxu1 %v366_v15 }
  0x10   :  { %371 = vmatprep.subr.bf16.mxu1 %v370_v19 }
  0x13   :  { %373 = vmatpush3.bf16.msra.mxu1 %v370_v19 }
  0x14   :  { %375 = vmatprep.subr.bf16.mxu1 %v374_v22 }
  0x17   :  { %377 = vmatpush3.bf16.msra.mxu1 %v374_v22 }
  0x18   :  { %379 = vmatprep.subr.bf16.mxu1 %v378_v25 }
  0x1b   :  { %381 = vmatpush3.bf16.msra.mxu1 %v378_v25 }
  0x1c   :  { %383 = vmatprep.subr.bf16.mxu1 %v382_v28 }
  0x1f   :  { %385 = vmatpush3.bf16.msra.mxu1 %v382_v28 }
  0x20   :  { %387 = vmatprep.subr.bf16.mxu1 %v386_v31 }
  0x23   :  { %389 = vmatpush3.bf16.msra.mxu1 %v386_v31 }
  0xdf   :  { %v314_v33 = vpop.f32.mrb[0].mxu0 }
  0xe0   :  { %v118_v34 = vadd.f32 %v314_v33, %v274_v32  ;;  %v112_v35 = vpop.f32.mrb[1].mxu0 }
  0xe1   :  { %v113_v36 = vadd.f32 %v274_v32, %v112_v35 }
  0xe2   :  { %v122_v38 = vmax.f32 %v118_v34, 0.0 }
  0xe3   :  { %v121_v37 = vmax.f32 %v113_v36, 0.0 }
  0xe5   :  { %347 = vmatprep.mubr.f32.mxu1 %v121_v37 }
  0xe6   :  { %348 = vmatmul.mubr.f32.vlgmr.msra.gmra.mrb[0].mxu1 %v122_v38 }
 0x1b9   :  { %v349_v40 = vpop.f32.mrb[0].mxu1 }
 0x1ba   :  { %v212_v41 = vpop.f32.mrb[1].mxu1  ;;  %v218_v42 = vadd.f32 %v349_v40, %v277_v39 }
 0x1bb   :  { %v213_v43 = vadd.f32 %v277_v39, %v212_v41 }
 0x1bc   :  { %v222_v46 = vadd.f32 %v218_v42, %v27_v16 }
 0x1bd   :  { %v221_v44 = vadd.f32 %v213_v43, %v449_v5 }
 0x1be   :  { %v228_v47 = vsel %vm39_vm0, %v222_v46, 0.0 }
 0x1bf   :  { %v225_v45 = vsel %vm39_vm0, %v221_v44, 0.0 }
 0x1c0   :  { %226 = vadd.xlane.f32.xlu0 %v225_v45 }
 0x1c4   :  { %229 = vadd.xlane.f32.xlu0 %v228_v47 }
 0x24d   :  { %v227_v48 = vpop.xlane.xlu0 %226 }
 0x24e   :  { %v232_v49 = vmul.f32 0.03125, %v227_v48 }
 0x250   :  { %v234_v50 = vsub.f32 %v221_v44, %v232_v49 }
 0x251   :  { %v230_v51 = vpop.xlane.xlu0 %229 }
 0x252   :  { %v233_v52 = vmul.f32 0.03125, %v230_v51  ;;  %v236_v53 = vmul.f32 %v234_v50, %v234_v50 }
 0x254   :  { %v235_v54 = vsub.f32 %v222_v46, %v233_v52  ;;  %v238_v55 = vsel %vm39_vm0, %v236_v53, 0.0 }
 0x255   :  { %239 = vadd.xlane.f32.xlu1 %v238_v55 }
 0x256   :  { %v237_v56 = vmul.f32 %v235_v54, %v235_v54 }
 0x258   :  { %v241_v57 = vsel %vm39_vm0, %v237_v56, 0.0 }
 0x259   :  { %242 = vadd.xlane.f32.xlu1 %v241_v57 }
 0x2e2   :  { %v240_v58 = vpop.xlane.xlu1 %239 }
 0x2e3   :  { %v244_v59 = vmul.f32 0.03125, %v240_v58 }
 0x2e5   :  { %v246_v60 = vadd.f32 1e-05, %v244_v59 }
 0x2e6   :  { %v243_v61 = vpop.xlane.xlu1 %242 }
 0x2e7   :  { %390 = vrsqrt.f32 %v246_v60  ;;  %v245_v62 = vmul.f32 0.03125, %v243_v61 }
 0x2e9   :  { %v247_v63 = vadd.f32 1e-05, %v245_v62 }
 0x2eb   :  { %392 = vrsqrt.f32 %v247_v63 }
 0x2f1   :  { %v391_v0 = vpop.eup %390 }
 0x2f2   :  { %v250_v2 = vmul.f32 %v391_v0, %v234_v50 }
 0x2f4   :  { %v258_v4 = vmul.f32 %v278_v1, %v250_v2 }
 0x2f5   :  { %v393_v5 = vpop.eup %392 }
 0x2f6   :  { %v266_v6 = vadd.f32 %v279_v3, %v258_v4  ;;  %v251_v7 = vmul.f32 %v393_v5, %v235_v54 }
 0x2f8   :  { %268 = vst.msk [vmem:[%s537_s7] sm:$0xff] %vm39_vm0, %v266_v6  ;;  %v259_v8 = vmul.f32 %v278_v1, %v251_v7 }
 0x2fa   :  { %v267_v9 = vadd.f32 %v279_v3, %v259_v8 }
 0x2fc   :  { %269 = vst.msk [vmem:[%s537_s7 + $0x8] sm:$0xff] %vm39_vm0, %v267_v9 }

// kernel: _lambda_.21
= control target key start
LH: loop header
LB: loop body
LE: loop exit
PB: predicated region body
PF: predicated region fallthrough
CT: control target
= control target key end

     0   :  { %vm50_vm0 = vcmask 261120   ;;  %v4153_v16 = vmov 0.0   ;;  %vm4154_vm1 = vmmov 0   ;;  %vm226_vm2 = vcmask 31744   ;;  %s4155_s18 = smov 96   ;;  %s4158_s19 = smov 120   ;;  %s4602_s4 = inlined_call_operand.vmem [shape: f32[32,64], index: 4, kind: input, shape index: {}]   ;;  %s4603_s2 = inlined_call_operand.vmem [shape: f32[32,32], index: 2, kind: input, shape index: {}]   ;;  %s4604_s1 = inlined_call_operand.vmem [shape: f32[2,8,32], index: 1, kind: input, shape index: {}, may-alias: {0,1}]   ;;  %s4605_s0 = inlined_call_operand.vmem [shape: f32[2,8,32], index: 0, kind: input, shape index: {}, may-alias: {0,1}]   ;;  %s4606_s5 = inlined_call_operand.vmem [shape: f32[1,64], index: 5, kind: input, shape index: {}]   ;;  %s4607_s3 = inlined_call_operand.vmem [shape: f32[1,32], index: 3, kind: input, shape index: {}]   ;;  %s4608_s6 = inlined_call_operand.vmem [shape: f32[8,4,32], index: 6, kind: input, shape index: {}]   ;;  %s4609_s7 = inlined_call_operand.vmem [shape: f32[1,32], index: 7, kind: input, shape index: {}]   ;;  %s4610_s8 = inlined_call_operand.vmem [shape: f32[1,32], index: 8, kind: input, shape index: {}]   ;;  %s4611_s9 = inlined_call_operand.vmem [shape: f32[1,32], index: 9, kind: input, shape index: {}]   ;;  %s4612_s10 = inlined_call_operand.vmem [shape: f32[2,8,32], index: 10, kind: output, shape index: {}]  }
   0x1   :  { %v132_v0 = vld [vmem:[%s4602_s4] sm:$0xff]  ;;  %v133_v1 = vld [vmem:[%s4602_s4 + $0x8] sm:$0xff]  ;;  %v134_v5 = vld [vmem:[%s4602_s4 + $0x10] sm:$0xff]  ;;  %vm379_vm3 = vcmask 64512   ;;  %s4159_s20 = smov 88   ;;  %s4160_s21 = smov 116  }
   0x2   :  { %v39_v2 = vld [vmem:[%s4603_s2] sm:$0xff]  ;;  %v4044_v3 = vpack.c.bf16 %v133_v1, %v132_v0  ;;  %v40_v4 = vld [vmem:[%s4603_s2 + $0x8] sm:$0xff]  ;;  %v135_v6 = vld [vmem:[%s4602_s4 + $0x18] sm:$0xff]  ;;  %vm893_vm4 = vcmask 1043456   ;;  %s4161_s28 = smov 112   ;;  %s4162_s29 = smov 84  }
   0x3   :  { %v4036_v7 = vpack.c.bf16 %v40_v4, %v39_v2  ;;  %v4048_v8 = vpack.c.bf16 %v135_v6, %v134_v5  ;;  %v41_v9 = vld [vmem:[%s4603_s2 + $0x10] sm:$0xff]  ;;  %v42_v10 = vld [vmem:[%s4603_s2 + $0x18] sm:$0xff]  ;;  %v37_v11 = vld [vmem:[%s4604_s1] sm:$0xff]  ;;  %s4163_s30 = smov 80   ;;  %s4164_s11 = smov 108  }
   0x4   :  { %4045 = vmatprep.subr.bf16.mxu1 %v4044_v3  ;;  %v4040_v12 = vpack.c.bf16 %v42_v10, %v41_v9  ;;  %3833 = vmatprep.mubr.msk.f32.mxu1 %vm50_vm0, %v37_v11  ;;  %v35_v13 = vld [vmem:[%s4605_s0] sm:$0xff]  ;;  %v38_v14 = vld [vmem:[%s4604_s1 + $0x8] sm:$0xff]  ;;  %s4165_s14 = smov 104   ;;  %s4166_s1 = smov 76  }
   0x5   :  { %4037 = vmatprep.subr.bf16.mxu0 %v4036_v7  ;;  %4047 = vmatpush3.bf16.msra.mxu1 %v4044_v3  ;;  %v36_v15 = vld [vmem:[%s4605_s0 + $0x8] sm:$0xff]  ;;  %v3629_v17 = vld [vmem:[%s4606_s5] ss:$0 sm:$0xff]  ;;  %s4157_s5 = smov 92   ;;  %s4167_s15 = smov 72  }
   0x6   :  { %4039 = vmatpush3.bf16.msra.mxu0 %v4036_v7  ;;  %4049 = vmatprep.subr.bf16.mxu1 %v4048_v8  ;;  %v3626_v19 = vld [vmem:[%s4607_s3] ss:$0 sm:$0xff]  ;;  %s4156_s3 = smov 124   ;;  %s4168_s16 = smov 100  }
   0x7   :  { %4041 = vmatprep.subr.bf16.mxu0 %v4040_v12  ;;  %3822 = vmatprep.mubr.msk.f32.mxu0 %vm50_vm0, %v35_v13 }
   0x9   :  { %4051 = vmatpush3.bf16.msra.mxu1 %v4048_v8 }
   0xa   :  { %4043 = vmatpush3.bf16.msra.mxu0 %v4040_v12  ;;  %3836 = vmatprep.subr.mxu1 %v4153_v16 }
   0xb   :  { %3846 = vmatprep.subr.mxu0 %v4153_v16 }
   0xc   :  { %3834 = vmatmul.mubr.msk.f32.vlgmr.msra.gmra.mrb[0].mxu1 %vm50_vm0, %v38_v14 }
   0xd   :  { %3823 = vmatmul.mubr.msk.f32.vlgmr.msra.gmra.mrb[0].mxu0 %vm50_vm0, %v36_v15  ;;  %3838 = vmatprep.mubr.msk.f32.mxu1 %vm4154_vm1, %v4153_v16 }
   0xe   :  { %3848 = vmatprep.mubr.msk.f32.mxu0 %vm4154_vm1, %v4153_v16 }
  0xdf   :  { %v3835_v18 = vpop.f32.mrb[0].mxu1 }
  0xe0   :  { %v4277_v20 = vadd.f32 %v3835_v18, %v3629_v17  ;;  %v3824_v21 = vpop.f32.mrb[0].mxu0  ;;  %v215_v22 = vpop.f32.mrb[1].mxu1 }
  0xe1   :  { %v4279_v23 = vadd.f32 %v3629_v17, %v215_v22  ;;  %v123_v24 = vpop.f32.mrb[1].mxu0  ;;  %v129_v26 = vadd.f32 %v3824_v21, %v3626_v19 }
  0xe2   :  { %v124_v25 = vadd.f32 %v3626_v19, %v123_v24  ;;  %478 = vrot.lane.b32.xlu1 %v4277_v20, %s4155_s18 }
  0xe3   :  { %3837 = vmatpush3.xpose.msk.msra.mxu1 %vm226_vm2, %v4279_v23  ;;  %v4295_v28 = vmul.f32 0.5, %v129_v26 }
  0xe4   :  { %v4284_v27 = vmul.f32 0.5, %v124_v25  ;;  %3841 = vmatprep.subr.mxu1 %v4153_v16 }
  0xe6   :  { %635 = vrot.lane.b32.xlu1 %v4277_v20, %s4156_s3  ;;  %3839 = vmatmul.mubr.msk.f32.vlgmr.msra.gmra.mrb[2].mxu1 %vm226_vm2, %v4284_v27 }
  0xe7   :  { %3842 = vmatpush3.xpose.msk.msra.mxu1 %vm226_vm2, %v4277_v20  ;;  %3843 = vmatprep.mubr.msk.f32.mxu1 %vm4154_vm1, %v4153_v16 }
  0xe8   :  { %3851 = vmatprep.subr.mxu1 %v4153_v16 }
  0xea   :  { %3844 = vmatmul.mubr.msk.f32.vlgmr.msra.gmra.mrb[4].mxu1 %vm226_vm2, %v4295_v28 }
  0xeb   :  { %3853 = vmatprep.mubr.msk.f32.mxu1 %vm4154_vm1, %v4153_v16 }
 0x154   :  { %v479_v29 = vpop.permute.xlu1 %478 }
 0x155   :  { %3852 = vmatpush3.msra.mxu1 %v479_v29 }
 0x156   :  { %3861 = vmatprep.subr.mxu1 %v4153_v16 }
 0x158   :  { %v636_v36 = vpop.permute.xlu1 %635 }
 0x1b9   :  { %v299_v30 = vpop.f32.mrb[2].mxu1 }
 0x1ba   :  { %v3840_v31 = vpop.f32.mrb[3].mxu1  ;;  %v380_v32 = vsel %vm379_vm3, %v299_v30, -inf }
 0x1bb   :  { %381 = vmax.xlane.f32.xlu1 %v380_v32  ;;  %v3644_v31 = vld [vmem:[%s4608_s6 + $0x4] sm:$0xf]  ;;  %v554_v32 = vld [vmem:[%s4608_s6] sm:$0xf] }
 0x1bd   :  { %v375_v33 = vpop.f32.mrb[4].mxu1 }
 0x1be   :  { %v3845_v34 = vpop.f32.mrb[5].mxu1  ;;  %v383_v35 = vsel %vm379_vm3, %v375_v33, -inf }
 0x1bf   :  { %384 = vmax.xlane.f32.xlu0 %v383_v35 }
 0x1cc   :  { %402 = vrot.lane.b32.xlu1 %v4279_v23, %s4155_s18 }
 0x1d0   :  { %555 = vrot.lane.b32.xlu1 %v4284_v27, %s4156_s3 }
 0x248   :  { %v382_v37 = vpop.xlane.xlu1 %381 }
 0x249   :  { %v386_v44 = vsub.f32 %v299_v30, %v382_v37 }
 0x24b   :  { %v388_v45 = vmul.f32 1.442695, %v386_v44 }
 0x24c   :  { %v403_v38 = vpop.permute.xlu1 %402  ;;  %v385_v39 = vpop.xlane.xlu0 %384 }
 0x24d   :  { %v387_v40 = vsub.f32 %v375_v33, %v385_v39  ;;  %3847 = vmatpush3.msra.mxu0 %v403_v38 }
 0x24e   :  { %3856 = vmatprep.subr.mxu0 %v4153_v16 }
 0x24f   :  { %v390_v41 = vmul.f32 1.442695, %v387_v40 }
 0x250   :  { %v556_v56 = vpop.permute.xlu1 %555 }
 0x251   :  { %4083 = vpow2.f32 %v390_v41 }
 0x252   :  { %4085 = vpow2.f32 %v388_v45 }
 0x25b   :  { %v4084_v42 = vpop.eup %4083 }
 0x25c   :  { %v395_v43 = vsel %vm379_vm3, %v4084_v42, 0.0  ;;  %v4086_v46 = vpop.eup %4085 }
 0x25d   :  { %396 = vadd.xlane.f32.xlu0 %v395_v43  ;;  %v392_v47 = vsel %vm379_vm3, %v4086_v46, 0.0 }
 0x273   :  { %633 = vrot.lane.b32.xlu0 %v4295_v28, %s4156_s3 }
 0x292   :  { %393 = vadd.xlane.f32.xlu0 %v392_v47 }
 0x2a8   :  { %557 = vrot.lane.b32.xlu0 %v4279_v23, %s4156_s3 }
 0x2ea   :  { %v397_v48 = vpop.xlane.xlu0 %396 }
 0x2eb   :  { %4087 = vrcp.f32 %v397_v48 }
 0x2ee   :  { %v634_v51 = vpop.permute.xlu0 %633 }
 0x2f5   :  { %v4088_v49 = vpop.eup %4087 }
 0x2f6   :  { %v401_v50 = vmul.f32 %v4088_v49, %v4084_v42 }
 0x2f8   :  { %3854 = vmatmul.mubr.msk.f32.vlgmr.msra.gmra.mrb[6].mxu1 %vm379_vm3, %v401_v50 }
 0x2f9   :  { %3862 = vmatpush3.xpose.msk.msra.mxu1 %vm226_vm2, %v636_v36  ;;  %3863 = vmatprep.mubr.msk.f32.mxu1 %vm4154_vm1, %v4153_v16 }
 0x2fa   :  { %3871 = vmatprep.subr.mxu1 %v4153_v16 }
 0x2fc   :  { %3864 = vmatmul.mubr.msk.f32.vlgmr.msra.gmra.mrb[8].mxu1 %vm226_vm2, %v634_v51 }
 0x2fd   :  { %3873 = vmatprep.mubr.msk.f32.mxu1 %vm4154_vm1, %v4153_v16 }
 0x31f   :  { %v394_v52 = vpop.xlane.xlu0 %393 }
 0x320   :  { %4089 = vrcp.f32 %v394_v52 }
 0x323   :  { %v558_v55 = vpop.permute.xlu0 %557 }
 0x32a   :  { %v4090_v53 = vpop.eup %4089 }
 0x32b   :  { %v400_v54 = vmul.f32 %v4090_v53, %v4086_v46 }
 0x32d   :  { %3849 = vmatmul.mubr.msk.f32.vlgmr.msra.gmra.mrb[2].mxu0 %vm379_vm3, %v400_v54 }
 0x32e   :  { %3857 = vmatpush3.xpose.msk.msra.mxu0 %vm226_vm2, %v558_v55  ;;  %3858 = vmatprep.mubr.msk.f32.mxu0 %vm4154_vm1, %v4153_v16  ;;  %v3657_v55 = vld [vmem:[%s4608_s6 + $0x8] sm:$0xf] }
 0x32f   :  { %3866 = vmatprep.subr.mxu0 %v4153_v16 }
 0x331   :  { %3859 = vmatmul.mubr.msk.f32.vlgmr.msra.gmra.mrb[4].mxu0 %vm226_vm2, %v556_v56 }
 0x332   :  { %3868 = vmatprep.mubr.msk.f32.mxu0 %vm4154_vm1, %v4153_v16 }
 0x3cb   :  { %v4331_v57 = vpop.f32.mrb[6].mxu1 }
 0x3cc   :  { %v3855_v58 = vpop.f32.mrb[7].mxu1 }
 0x3cf   :  { %v707_v59 = vpop.f32.mrb[8].mxu1 }
 0x3d0   :  { %v3865_v60 = vpop.f32.mrb[9].mxu1  ;;  %v714_v61 = vsel %vm379_vm3, %v707_v59, -inf }
 0x3d1   :  { %715 = vmax.xlane.f32.xlu1 %v714_v61 }
 0x3e2   :  { %809 = vrot.lane.b32.xlu1 %v4277_v20, %s4157_s5 }
 0x3e6   :  { %1056 = vrot.lane.b32.xlu1 %v4284_v27, %s4158_s19 }
 0x3ea   :  { %1136 = vrot.lane.b32.xlu1 %v4277_v20, %s4158_s19 }
 0x3ee   :  { %1134 = vrot.lane.b32.xlu1 %v4295_v28, %s4158_s19 }
 0x400   :  { %v4338_v62 = vpop.f32.mrb[2].mxu0 }
 0x401   :  { %v3850_v63 = vpop.f32.mrb[3].mxu0 }
 0x404   :  { %v629_v0 = vpop.f32.mrb[4].mxu0 }
 0x405   :  { %v3860_v1 = vpop.f32.mrb[5].mxu0  ;;  %v711_v2 = vsel %vm379_vm3, %v629_v0, -inf }
 0x412   :  { %712 = vmax.xlane.f32.xlu1 %v711_v2 }
 0x423   :  { %733 = vrot.lane.b32.xlu1 %v4279_v23, %s4157_s5 }
 0x427   :  { %1310 = vrot.lane.b32.xlu1 %v4277_v20, %s4159_s20 }
 0x42b   :  { %1476 = vrot.lane.b32.xlu1 %v4279_v23, %s4160_s21 }
 0x42f   :  { %1474 = vrot.lane.b32.xlu1 %v4284_v27, %s4160_s21 }
 0x433   :  { %1554 = vrot.lane.b32.xlu1 %v4277_v20, %s4160_s21 }
 0x437   :  { %1552 = vrot.lane.b32.xlu1 %v4295_v28, %s4160_s21 }
 0x45e   :  { %v716_v3 = vpop.xlane.xlu1 %715 }
 0x45f   :  { %v718_v4 = vsub.f32 %v707_v59, %v716_v3 }
 0x461   :  { %v721_v5 = vmul.f32 1.442695, %v718_v4 }
 0x462   :  { %v810_v6 = vpop.permute.xlu1 %809 }
 0x463   :  { %4091 = vpow2.f32 %v721_v5  ;;  %3872 = vmatpush3.msra.mxu1 %v810_v6 }
 0x464   :  { %3886 = vmatprep.subr.mxu1 %v4153_v16 }
 0x466   :  { %v1057_v9 = vpop.permute.xlu1 %1056 }
 0x46a   :  { %v1137_v10 = vpop.permute.xlu1 %1136 }
 0x46d   :  { %v4092_v7 = vpop.eup %4091 }
 0x46e   :  { %v726_v8 = vsel %vm379_vm3, %v4092_v7, 0.0  ;;  %v1135_v11 = vpop.permute.xlu1 %1134 }
 0x46f   :  { %727 = vadd.xlane.f32.xlu0 %v726_v8 }
 0x485   :  { %1058 = vrot.lane.b32.xlu0 %v4279_v23, %s4158_s19  ;;  %s4169_s19 = smov 68  }
 0x49f   :  { %v713_v12 = vpop.xlane.xlu1 %712 }
 0x4a0   :  { %v717_v13 = vsub.f32 %v629_v0, %v713_v12 }
 0x4a2   :  { %v719_v14 = vmul.f32 1.442695, %v717_v13 }
 0x4a3   :  { %v734_v15 = vpop.permute.xlu1 %733 }
 0x4a4   :  { %4093 = vpow2.f32 %v719_v14  ;;  %3867 = vmatpush3.msra.mxu0 %v734_v15 }
 0x4a5   :  { %3876 = vmatprep.subr.msk.mxu0 %vm893_vm4, %v3644_v31 }
 0x4a7   :  { %v1311_v25 = vpop.permute.xlu1 %1310 }
 0x4ab   :  { %v1477_v60 = vpop.permute.xlu1 %1476 }
 0x4ae   :  { %v4094_v17 = vpop.eup %4093 }
 0x4af   :  { %v723_v18 = vsel %vm379_vm3, %v4094_v17, 0.0 }
 0x4b0   :  { %724 = vadd.xlane.f32.xlu0 %v723_v18 }
 0x4fc   :  { %v728_v19 = vpop.xlane.xlu0 %727 }
 0x4fd   :  { %4095 = vrcp.f32 %v728_v19 }
 0x500   :  { %v1059_v24 = vpop.permute.xlu0 %1058 }
 0x507   :  { %v4096_v21 = vpop.eup %4095 }
 0x508   :  { %v732_v22 = vmul.f32 %v4096_v21, %v4092_v7 }
 0x50a   :  { %3874 = vmatmul.mubr.msk.f32.vlgmr.msra.gmra.mrb[10].mxu1 %vm379_vm3, %v732_v22 }
 0x50b   :  { %3887 = vmatpush3.xpose.msk.msra.mxu1 %vm226_vm2, %v1059_v24  ;;  %3888 = vmatprep.mubr.msk.f32.mxu1 %vm4154_vm1, %v4153_v16 }
 0x50c   :  { %3891 = vmatprep.subr.mxu1 %v4153_v16 }
 0x50e   :  { %3889 = vmatmul.mubr.msk.f32.vlgmr.msra.gmra.mrb[12].mxu1 %vm226_vm2, %v1057_v9 }
 0x50f   :  { %3892 = vmatpush3.xpose.msk.msra.mxu1 %vm226_vm2, %v1137_v10  ;;  %3893 = vmatprep.mubr.msk.f32.mxu1 %vm4154_vm1, %v4153_v16 }
 0x510   :  { %3901 = vmatprep.subr.mxu1 %v4153_v16 }
 0x512   :  { %3894 = vmatmul.mubr.msk.f32.vlgmr.msra.gmra.mrb[14].mxu1 %vm226_vm2, %v1135_v11 }
 0x513   :  { %3902 = vmatpush3.msra.mxu1 %v1311_v25  ;;  %3903 = vmatprep.mubr.msk.f32.mxu1 %vm4154_vm1, %v4153_v16 }
 0x514   :  { %3911 = vmatprep.subr.mxu1 %v4153_v16 }
 0x53d   :  { %v725_v26 = vpop.xlane.xlu0 %724 }
 0x53e   :  { %4097 = vrcp.f32 %v725_v26 }
 0x548   :  { %v4098_v29 = vpop.eup %4097 }
 0x549   :  { %v731_v30 = vmul.f32 %v4098_v29, %v4094_v17 }
 0x54b   :  { %3869 = vmatmul.mubr.msk.f32.vlgmr.msra.gmra.mrb[6].mxu0 %vm379_vm3, %v731_v30 }
 0x54c   :  { %3877 = vmatpush3.msk.msra.mxu0 %vm893_vm4, %v3644_v31 }
 0x54d   :  { %3881 = vmatprep.subr.msk.mxu0 %vm893_vm4, %v554_v32 }
 0x5dd   :  { %v881_v33 = vpop.f32.mrb[10].mxu1 }
 0x5de   :  { %v3875_v34 = vpop.f32.mrb[11].mxu1 }
 0x5e1   :  { %v1130_v35 = vpop.f32.mrb[12].mxu1 }
 0x5e2   :  { %v3890_v36 = vpop.f32.mrb[13].mxu1  ;;  %v1212_v37 = vsel %vm379_vm3, %v1130_v35, -inf }
 0x5e3   :  { %1213 = vmax.xlane.f32.xlu0 %v1212_v37 }
 0x5e5   :  { %v1208_v38 = vpop.f32.mrb[14].mxu1 }
 0x5e6   :  { %v3895_v39 = vpop.f32.mrb[15].mxu1  ;;  %v1215_v40 = vsel %vm379_vm3, %v1208_v38, -inf }
 0x5e7   :  { %1216 = vmax.xlane.f32.xlu0 %v1215_v40 }
 0x61e   :  { %v805_v41 = vpop.f32.mrb[6].mxu0 }
 0x61f   :  { %v3870_v42 = vpop.f32.mrb[7].mxu0  ;;  %3878 = vmatprep.mubr.msk.f32.mxu0 %vm226_vm2, %v805_v41 }
 0x620   :  { %3879 = vmatmul.mubr.msk.f32.vlgmr.msra.gmra.mrb[8].mxu0 %vm226_vm2, %v881_v33 }
 0x621   :  { %3883 = vmatprep.mubr.msk.f32.mxu0 %vm226_vm2, %v4338_v62  ;;  %3882 = vmatpush3.msk.msra.mxu0 %vm893_vm4, %v554_v32  ;;  %v1475_v62 = vpop.permute.xlu1 %1474 }
 0x622   :  { %3896 = vmatprep.subr.mxu0 %v4153_v16 }
 0x625   :  { %v1555_v1 = vpop.permute.xlu1 %1554 }
 0x628   :  { %3884 = vmatmul.mubr.msk.f32.vlgmr.msra.gmra.mrb[8].mxu0 %vm226_vm2, %v4331_v57 }
 0x629   :  { %3898 = vmatprep.mubr.msk.f32.mxu0 %vm4154_vm1, %v4153_v16  ;;  %v1553_v4 = vpop.permute.xlu1 %1552 }
 0x670   :  { %v1214_v43 = vpop.xlane.xlu0 %1213 }
 0x671   :  { %v1218_v44 = vsub.f32 %v1130_v35, %v1214_v43 }
 0x673   :  { %v1220_v45 = vmul.f32 1.442695, %v1218_v44 }
 0x674   :  { %v1217_v46 = vpop.xlane.xlu0 %1216 }
 0x675   :  { %4099 = vpow2.f32 %v1220_v45  ;;  %v1219_v47 = vsub.f32 %v1208_v38, %v1217_v46  ;;  %v3667_v46 = vld [vmem:[%s4608_s6 + $0xc] sm:$0xf] }
 0x677   :  { %v1222_v48 = vmul.f32 1.442695, %v1219_v47 }
 0x679   :  { %4101 = vpow2.f32 %v1222_v48 }
 0x67f   :  { %v4100_v49 = vpop.eup %4099 }
 0x680   :  { %v1224_v50 = vsel %vm379_vm3, %v4100_v49, 0.0 }
 0x681   :  { %1225 = vadd.xlane.f32.xlu0 %v1224_v50 }
 0x683   :  { %v4102_v51 = vpop.eup %4101 }
 0x684   :  { %v1227_v52 = vsel %vm379_vm3, %v4102_v51, 0.0 }
 0x685   :  { %1228 = vadd.xlane.f32.xlu0 %v1227_v52 }
 0x69b   :  { %1234 = vrot.lane.b32.xlu0 %v4279_v23, %s4159_s20 }
 0x70e   :  { %v1226_v53 = vpop.xlane.xlu0 %1225 }
 0x70f   :  { %4103 = vrcp.f32 %v1226_v53 }
 0x712   :  { %v1229_v54 = vpop.xlane.xlu0 %1228 }
 0x713   :  { %4105 = vrcp.f32 %v1229_v54 }
 0x716   :  { %v1235_v56 = vpop.permute.xlu0 %1234 }
 0x717   :  { %3897 = vmatpush3.msra.mxu0 %v1235_v56 }
 0x718   :  { %3906 = vmatprep.subr.msk.mxu0 %vm893_vm4, %v3657_v55 }
 0x719   :  { %v4104_v57 = vpop.eup %4103 }
 0x71a   :  { %v1232_v58 = vmul.f32 %v4104_v57, %v4100_v49 }
 0x71c   :  { %3899 = vmatmul.mubr.msk.f32.vlgmr.msra.gmra.mrb[10].mxu0 %vm379_vm3, %v1232_v58  ;;  %v3677_v58 = vld [vmem:[%s4608_s6 + $0x10] sm:$0xf] }
 0x71d   :  { %v4106_v59 = vpop.eup %4105  ;;  %3907 = vmatpush3.msk.msra.mxu0 %vm893_vm4, %v3657_v55 }
 0x71e   :  { %v1233_v61 = vmul.f32 %v4106_v59, %v4102_v51  ;;  %3916 = vmatprep.subr.mxu0 %v4153_v16 }
 0x720   :  { %3904 = vmatmul.mubr.msk.f32.vlgmr.msra.gmra.mrb[16].mxu1 %vm379_vm3, %v1233_v61 }
 0x721   :  { %3912 = vmatpush3.xpose.msk.msra.mxu1 %vm226_vm2, %v1477_v60  ;;  %3913 = vmatprep.mubr.msk.f32.mxu1 %vm4154_vm1, %v4153_v16 }
 0x722   :  { %3921 = vmatprep.subr.mxu1 %v4153_v16 }
 0x724   :  { %3914 = vmatmul.mubr.msk.f32.vlgmr.msra.gmra.mrb[18].mxu1 %vm226_vm2, %v1475_v62 }
 0x725   :  { %3923 = vmatprep.mubr.msk.f32.mxu1 %vm4154_vm1, %v4153_v16 }
 0x7ef   :  { %v1306_v63 = vpop.f32.mrb[10].mxu0 }
 0x7f0   :  { %v3900_v0 = vpop.f32.mrb[11].mxu0  ;;  %3908 = vmatprep.mubr.msk.f32.mxu0 %vm226_vm2, %v1306_v63 }
 0x7f3   :  { %v1382_v2 = vpop.f32.mrb[16].mxu1 }
 0x7f4   :  { %v3905_v3 = vpop.f32.mrb[17].mxu1  ;;  %3909 = vmatmul.mubr.msk.f32.vlgmr.msra.gmra.mrb[8].mxu0 %vm226_vm2, %v1382_v2 }
 0x7f5   :  { %3917 = vmatpush3.xpose.msk.msra.mxu0 %vm226_vm2, %v1555_v1  ;;  %3918 = vmatprep.mubr.msk.f32.mxu0 %vm4154_vm1, %v4153_v16 }
 0x7f6   :  { %3926 = vmatprep.subr.mxu0 %v4153_v16 }
 0x7f7   :  { %v1548_v5 = vpop.f32.mrb[18].mxu1 }
 0x7f8   :  { %v3915_v6 = vpop.f32.mrb[19].mxu1  ;;  %3919 = vmatmul.mubr.msk.f32.vlgmr.msra.gmra.mrb[12].mxu0 %vm226_vm2, %v1553_v4  ;;  %v1630_v7 = vsel %vm379_vm3, %v1548_v5, -inf }
 0x7f9   :  { %1631 = vmax.xlane.f32.xlu1 %v1630_v7  ;;  %3928 = vmatprep.mubr.msk.f32.mxu0 %vm4154_vm1, %v4153_v16 }
 0x80a   :  { %1894 = vrot.lane.b32.xlu1 %v4279_v23, %s4161_s28 }
 0x80e   :  { %1892 = vrot.lane.b32.xlu1 %v4284_v27, %s4161_s28 }
 0x812   :  { %1970 = vrot.lane.b32.xlu1 %v4295_v28, %s4161_s28 }
 0x886   :  { %v1632_v8 = vpop.xlane.xlu1 %1631 }
 0x887   :  { %v1636_v9 = vsub.f32 %v1548_v5, %v1632_v8 }
 0x889   :  { %v1638_v10 = vmul.f32 1.442695, %v1636_v9 }
 0x88a   :  { %v1895_v19 = vpop.permute.xlu1 %1894 }
 0x88b   :  { %4107 = vpow2.f32 %v1638_v10 }
 0x88e   :  { %v1893_v24 = vpop.permute.xlu1 %1892 }
 0x892   :  { %v1971_v26 = vpop.permute.xlu1 %1970 }
 0x895   :  { %v4108_v11 = vpop.eup %4107 }
 0x896   :  { %v1642_v12 = vsel %vm379_vm3, %v4108_v11, 0.0 }
 0x897   :  { %1643 = vadd.xlane.f32.xlu0 %v1642_v12 }
 0x8ad   :  { %1652 = vrot.lane.b32.xlu0 %v4279_v23, %s4162_s29 }
 0x8b1   :  { %1972 = vrot.lane.b32.xlu0 %v4277_v20, %s4161_s28 }
 0x8cb   :  { %v1626_v13 = vpop.f32.mrb[12].mxu0 }
 0x8cc   :  { %v3920_v14 = vpop.f32.mrb[13].mxu0  ;;  %v1633_v15 = vsel %vm379_vm3, %v1626_v13, -inf }
 0x8d0   :  { %1634 = vmax.xlane.f32.xlu0 %v1633_v15 }
 0x8e6   :  { %1728 = vrot.lane.b32.xlu0 %v4277_v20, %s4162_s29 }
 0x8ea   :  { %2070 = vrot.lane.b32.xlu0 %v4279_v23, %s4163_s30 }
 0x8ee   :  { %2312 = vrot.lane.b32.xlu0 %v4279_v23, %s4164_s11 }
 0x8f2   :  { %2310 = vrot.lane.b32.xlu0 %v4284_v27, %s4164_s11 }
 0x8f6   :  { %2390 = vrot.lane.b32.xlu0 %v4277_v20, %s4164_s11 }
 0x8fa   :  { %2388 = vrot.lane.b32.xlu0 %v4295_v28, %s4164_s11 }
 0x924   :  { %v1644_v17 = vpop.xlane.xlu0 %1643 }
 0x925   :  { %4109 = vrcp.f32 %v1644_v17 }
 0x928   :  { %v1653_v18 = vpop.permute.xlu0 %1652 }
 0x929   :  { %3922 = vmatpush3.msra.mxu1 %v1653_v18 }
 0x92a   :  { %3936 = vmatprep.subr.mxu1 %v4153_v16 }
 0x92c   :  { %v1973_v25 = vpop.permute.xlu0 %1972 }
 0x92f   :  { %v4110_v21 = vpop.eup %4109 }
 0x930   :  { %v1650_v22 = vmul.f32 %v4110_v21, %v4108_v11 }
 0x932   :  { %3924 = vmatmul.mubr.msk.f32.vlgmr.msra.gmra.mrb[20].mxu1 %vm379_vm3, %v1650_v22 }
 0x933   :  { %3937 = vmatpush3.xpose.msk.msra.mxu1 %vm226_vm2, %v1895_v19  ;;  %3938 = vmatprep.mubr.msk.f32.mxu1 %vm4154_vm1, %v4153_v16 }
 0x934   :  { %3941 = vmatprep.subr.mxu1 %v4153_v16 }
 0x936   :  { %3939 = vmatmul.mubr.msk.f32.vlgmr.msra.gmra.mrb[22].mxu1 %vm226_vm2, %v1893_v24 }
 0x937   :  { %3942 = vmatpush3.xpose.msk.msra.mxu1 %vm226_vm2, %v1973_v25  ;;  %3943 = vmatprep.mubr.msk.f32.mxu1 %vm4154_vm1, %v4153_v16 }
 0x938   :  { %3951 = vmatprep.subr.mxu1 %v4153_v16 }
 0x93a   :  { %3944 = vmatmul.mubr.msk.f32.vlgmr.msra.gmra.mrb[24].mxu1 %vm226_vm2, %v1971_v26 }
 0x93b   :  { %3953 = vmatprep.mubr.msk.f32.mxu1 %vm4154_vm1, %v4153_v16 }
 0x95d   :  { %v1635_v29 = vpop.xlane.xlu0 %1634 }
 0x95e   :  { %v1637_v30 = vsub.f32 %v1626_v13, %v1635_v29 }
 0x960   :  { %v1640_v31 = vmul.f32 1.442695, %v1637_v30 }
 0x961   :  { %v1729_v32 = vpop.permute.xlu0 %1728 }
 0x962   :  { %4111 = vpow2.f32 %v1640_v31  ;;  %3927 = vmatpush3.msra.mxu0 %v1729_v32 }
 0x963   :  { %3931 = vmatprep.subr.msk.mxu0 %vm893_vm4, %v3667_v46 }
 0x965   :  { %v2071_v59 = vpop.permute.xlu0 %2070 }
 0x969   :  { %v2313_v3 = vpop.permute.xlu0 %2312 }
 0x96c   :  { %v4112_v33 = vpop.eup %4111 }
 0x96d   :  { %v1645_v34 = vsel %vm379_vm3, %v4112_v33, 0.0  ;;  %v2311_v5 = vpop.permute.xlu0 %2310 }
 0x96e   :  { %1646 = vadd.xlane.f32.xlu1 %v1645_v34 }
 0x971   :  { %v2391_v8 = vpop.permute.xlu0 %2390 }
 0x975   :  { %v2389_v11 = vpop.permute.xlu0 %2388 }
 0x9fb   :  { %v1647_v35 = vpop.xlane.xlu1 %1646 }
 0x9fc   :  { %4113 = vrcp.f32 %v1647_v35 }
 0xa05   :  { %v1724_v36 = vpop.f32.mrb[20].mxu1 }
 0xa06   :  { %v4114_v37 = vpop.eup %4113  ;;  %v3925_v38 = vpop.f32.mrb[21].mxu1 }
 0xa07   :  { %v1651_v39 = vmul.f32 %v4114_v37, %v4112_v33 }
 0xa09   :  { %3929 = vmatmul.mubr.msk.f32.vlgmr.msra.gmra.mrb[14].mxu0 %vm379_vm3, %v1651_v39  ;;  %v1966_v40 = vpop.f32.mrb[22].mxu1 }
 0xa0a   :  { %3933 = vmatprep.mubr.msk.f32.mxu0 %vm226_vm2, %v1724_v36  ;;  %v3940_v41 = vpop.f32.mrb[23].mxu1  ;;  %v2048_v42 = vsel %vm379_vm3, %v1966_v40, -inf  ;;  %3932 = vmatpush3.msk.msra.mxu0 %vm893_vm4, %v3667_v46 }
 0xa0b   :  { %2049 = vmax.xlane.f32.xlu1 %v2048_v42  ;;  %3946 = vmatprep.subr.mxu0 %v4153_v16 }
 0xa0d   :  { %v2044_v43 = vpop.f32.mrb[24].mxu1 }
 0xa0e   :  { %v3945_v44 = vpop.f32.mrb[25].mxu1  ;;  %v2051_v45 = vsel %vm379_vm3, %v2044_v43, -inf }
 0xa0f   :  { %2052 = vmax.xlane.f32.xlu1 %v2051_v45 }
 0xa98   :  { %v2050_v47 = vpop.xlane.xlu1 %2049 }
 0xa99   :  { %v2054_v48 = vsub.f32 %v1966_v40, %v2050_v47 }
 0xa9b   :  { %v2056_v49 = vmul.f32 1.442695, %v2054_v48 }
 0xa9c   :  { %v2053_v50 = vpop.xlane.xlu1 %2052 }
 0xa9d   :  { %4115 = vpow2.f32 %v2056_v49  ;;  %v2055_v51 = vsub.f32 %v2044_v43, %v2053_v50 }
 0xa9f   :  { %v2058_v52 = vmul.f32 1.442695, %v2055_v51  ;;  %v3687_v51 = vld [vmem:[%s4608_s6 + $0x14] sm:$0xf] }
 0xaa1   :  { %4117 = vpow2.f32 %v2058_v52 }
 0xaa7   :  { %v4116_v53 = vpop.eup %4115 }
 0xaa8   :  { %v2060_v54 = vsel %vm379_vm3, %v4116_v53, 0.0 }
 0xaa9   :  { %2061 = vadd.xlane.f32.xlu1 %v2060_v54 }
 0xaab   :  { %v4118_v55 = vpop.eup %4117 }
 0xaac   :  { %v2063_v56 = vsel %vm379_vm3, %v4118_v55, 0.0 }
 0xaad   :  { %2064 = vadd.xlane.f32.xlu1 %v2063_v56 }
 0xabe   :  { %2146 = vrot.lane.b32.xlu1 %v4277_v20, %s4163_s30 }
 0xadc   :  { %v1800_v57 = vpop.f32.mrb[14].mxu0 }
 0xadd   :  { %v3930_v60 = vpop.f32.mrb[15].mxu0  ;;  %3934 = vmatmul.mubr.msk.f32.vlgmr.msra.gmra.mrb[8].mxu0 %vm226_vm2, %v1800_v57 }
 0xade   :  { %3947 = vmatpush3.msra.mxu0 %v2071_v59  ;;  %3948 = vmatprep.mubr.msk.f32.mxu0 %vm4154_vm1, %v4153_v16 }
 0xadf   :  { %3956 = vmatprep.subr.msk.mxu0 %vm893_vm4, %v3677_v58 }
 0xb36   :  { %v2062_v61 = vpop.xlane.xlu1 %2061 }
 0xb37   :  { %4119 = vrcp.f32 %v2062_v61 }
 0xb3a   :  { %v2065_v62 = vpop.xlane.xlu1 %2064 }
 0xb3b   :  { %4121 = vrcp.f32 %v2065_v62 }
 0xb3e   :  { %v2147_v63 = vpop.permute.xlu1 %2146 }
 0xb3f   :  { %3952 = vmatpush3.msra.mxu1 %v2147_v63  ;;  %v3697_v63 = vld [vmem:[%s4608_s6 + $0x18] sm:$0xf] }
 0xb40   :  { %3961 = vmatprep.subr.mxu1 %v4153_v16 }
 0xb41   :  { %v4120_v0 = vpop.eup %4119 }
 0xb42   :  { %v2068_v1 = vmul.f32 %v4120_v0, %v4116_v53 }
 0xb44   :  { %3949 = vmatmul.mubr.msk.f32.vlgmr.msra.gmra.mrb[16].mxu0 %vm379_vm3, %v2068_v1 }
 0xb45   :  { %v4122_v2 = vpop.eup %4121  ;;  %3957 = vmatpush3.msk.msra.mxu0 %vm893_vm4, %v3677_v58 }
 0xb46   :  { %v2069_v4 = vmul.f32 %v4122_v2, %v4118_v55  ;;  %3966 = vmatprep.subr.mxu0 %v4153_v16 }
 0xb48   :  { %3954 = vmatmul.mubr.msk.f32.vlgmr.msra.gmra.mrb[26].mxu1 %vm379_vm3, %v2069_v4 }
 0xb49   :  { %3962 = vmatpush3.xpose.msk.msra.mxu1 %vm226_vm2, %v2313_v3  ;;  %3963 = vmatprep.mubr.msk.f32.mxu1 %vm4154_vm1, %v4153_v16 }
 0xb4a   :  { %3971 = vmatprep.subr.mxu1 %v4153_v16 }
 0xb4c   :  { %3964 = vmatmul.mubr.msk.f32.vlgmr.msra.gmra.mrb[28].mxu1 %vm226_vm2, %v2311_v5 }
 0xb4d   :  { %3973 = vmatprep.mubr.msk.f32.mxu1 %vm4154_vm1, %v4153_v16 }
 0xc17   :  { %v2142_v6 = vpop.f32.mrb[16].mxu0 }
 0xc18   :  { %v3950_v7 = vpop.f32.mrb[17].mxu0  ;;  %3958 = vmatprep.mubr.msk.f32.mxu0 %vm226_vm2, %v2142_v6 }
 0xc1b   :  { %v2218_v9 = vpop.f32.mrb[26].mxu1 }
 0xc1c   :  { %v3955_v10 = vpop.f32.mrb[27].mxu1  ;;  %3959 = vmatmul.mubr.msk.f32.vlgmr.msra.gmra.mrb[8].mxu0 %vm226_vm2, %v2218_v9 }
 0xc1d   :  { %3967 = vmatpush3.xpose.msk.msra.mxu0 %vm226_vm2, %v2391_v8  ;;  %3968 = vmatprep.mubr.msk.f32.mxu0 %vm4154_vm1, %v4153_v16 }
 0xc1e   :  { %3976 = vmatprep.subr.mxu0 %v4153_v16 }
 0xc1f   :  { %v2384_v12 = vpop.f32.mrb[28].mxu1 }
 0xc20   :  { %v3965_v13 = vpop.f32.mrb[29].mxu1  ;;  %3969 = vmatmul.mubr.msk.f32.vlgmr.msra.gmra.mrb[18].mxu0 %vm226_vm2, %v2389_v11  ;;  %v2466_v14 = vsel %vm379_vm3, %v2384_v12, -inf }
 0xc21   :  { %2467 = vmax.xlane.f32.xlu1 %v2466_v14  ;;  %3978 = vmatprep.mubr.msk.f32.mxu0 %vm4154_vm1, %v4153_v16 }
 0xc32   :  { %2730 = vrot.lane.b32.xlu1 %v4279_v23, %s4165_s14 }
 0xc36   :  { %2728 = vrot.lane.b32.xlu1 %v4284_v27, %s4165_s14 }
 0xc3a   :  { %2806 = vrot.lane.b32.xlu1 %v4295_v28, %s4165_s14 }
 0xcae   :  { %v2468_v15 = vpop.xlane.xlu1 %2467 }
 0xcaf   :  { %v2472_v17 = vsub.f32 %v2384_v12, %v2468_v15 }
 0xcb1   :  { %v2474_v18 = vmul.f32 1.442695, %v2472_v17 }
 0xcb2   :  { %v2731_v30 = vpop.permute.xlu1 %2730 }
 0xcb3   :  { %4123 = vpow2.f32 %v2474_v18 }
 0xcb6   :  { %v2729_v33 = vpop.permute.xlu1 %2728 }
 0xcbd   :  { %v4124_v19 = vpop.eup %4123 }
 0xcbe   :  { %v2478_v21 = vsel %vm379_vm3, %v4124_v19, 0.0 }
 0xcbf   :  { %2479 = vadd.xlane.f32.xlu0 %v2478_v21 }
 0xcd5   :  { %2488 = vrot.lane.b32.xlu0 %v4279_v23, %s4166_s1 }
 0xcd9   :  { %2808 = vrot.lane.b32.xlu0 %v4277_v20, %s4165_s14 }
 0xcf3   :  { %v2462_v22 = vpop.f32.mrb[18].mxu0 }
 0xcf4   :  { %v3970_v24 = vpop.f32.mrb[19].mxu0  ;;  %v2469_v25 = vsel %vm379_vm3, %v2462_v22, -inf }
 0xcf8   :  { %2470 = vmax.xlane.f32.xlu0 %v2469_v25 }
 0xd0e   :  { %2564 = vrot.lane.b32.xlu0 %v4277_v20, %s4166_s1 }
 0xd12   :  { %2906 = vrot.lane.b32.xlu0 %v4279_v23, %s4167_s15 }
 0xd16   :  { %3148 = vrot.lane.b32.xlu0 %v4279_v23, %s4168_s16 }
 0xd1a   :  { %3226 = vrot.lane.b32.xlu0 %v4277_v20, %s4168_s16 }
 0xd1e   :  { %3146 = vrot.lane.b32.xlu0 %v4284_v27, %s4168_s16 }
 0xd22   :  { %3224 = vrot.lane.b32.xlu0 %v4295_v28, %s4168_s16  ;;  %v2807_v28 = vpop.permute.xlu1 %2806 }
 0xd4c   :  { %v2480_v26 = vpop.xlane.xlu0 %2479 }
 0xd4d   :  { %4125 = vrcp.f32 %v2480_v26 }
 0xd50   :  { %v2489_v29 = vpop.permute.xlu0 %2488 }
 0xd51   :  { %3972 = vmatpush3.msra.mxu1 %v2489_v29 }
 0xd52   :  { %3986 = vmatprep.subr.mxu1 %v4153_v16 }
 0xd54   :  { %v2809_v27 = vpop.permute.xlu0 %2808 }
 0xd57   :  { %v4126_v31 = vpop.eup %4125 }
 0xd58   :  { %v2486_v32 = vmul.f32 %v4126_v31, %v4124_v19 }
 0xd5a   :  { %3974 = vmatmul.mubr.msk.f32.vlgmr.msra.gmra.mrb[30].mxu1 %vm379_vm3, %v2486_v32 }
 0xd5b   :  { %3987 = vmatpush3.xpose.msk.msra.mxu1 %vm226_vm2, %v2731_v30  ;;  %3988 = vmatprep.mubr.msk.f32.mxu1 %vm4154_vm1, %v4153_v16 }
 0xd5c   :  { %3991 = vmatprep.subr.mxu1 %v4153_v16 }
 0xd5e   :  { %3989 = vmatmul.mubr.msk.f32.vlgmr.msra.gmra.mrb[32].mxu1 %vm226_vm2, %v2729_v33 }
 0xd5f   :  { %3992 = vmatpush3.xpose.msk.msra.mxu1 %vm226_vm2, %v2809_v27  ;;  %3993 = vmatprep.mubr.msk.f32.mxu1 %vm4154_vm1, %v4153_v16 }
 0xd60   :  { %4001 = vmatprep.subr.mxu1 %v4153_v16 }
 0xd62   :  { %3994 = vmatmul.mubr.msk.f32.vlgmr.msra.gmra.mrb[34].mxu1 %vm226_vm2, %v2807_v28 }
 0xd63   :  { %4003 = vmatprep.mubr.msk.f32.mxu1 %vm4154_vm1, %v4153_v16 }
 0xd85   :  { %v2471_v34 = vpop.xlane.xlu0 %2470 }
 0xd86   :  { %v2473_v35 = vsub.f32 %v2462_v22, %v2471_v34 }
 0xd88   :  { %v2476_v36 = vmul.f32 1.442695, %v2473_v35 }
 0xd89   :  { %v2565_v37 = vpop.permute.xlu0 %2564 }
 0xd8a   :  { %4127 = vpow2.f32 %v2476_v36  ;;  %3977 = vmatpush3.msra.mxu0 %v2565_v37 }
 0xd8b   :  { %3981 = vmatprep.subr.msk.mxu0 %vm893_vm4, %v3687_v51 }
 0xd8d   :  { %v2907_v0 = vpop.permute.xlu0 %2906 }
 0xd91   :  { %v3149_v5 = vpop.permute.xlu0 %3148 }
 0xd94   :  { %v4128_v38 = vpop.eup %4127 }
 0xd95   :  { %v2481_v39 = vsel %vm379_vm3, %v4128_v38, 0.0  ;;  %v3227_v9 = vpop.permute.xlu0 %3226 }
 0xd96   :  { %2482 = vadd.xlane.f32.xlu1 %v2481_v39 }
 0xd99   :  { %v3147_v11 = vpop.permute.xlu0 %3146 }
 0xd9d   :  { %v3225_v17 = vpop.permute.xlu0 %3224 }
 0xe23   :  { %v2483_v40 = vpop.xlane.xlu1 %2482 }
 0xe24   :  { %4129 = vrcp.f32 %v2483_v40 }
 0xe2d   :  { %v2560_v41 = vpop.f32.mrb[30].mxu1 }
 0xe2e   :  { %v4130_v42 = vpop.eup %4129  ;;  %v3975_v43 = vpop.f32.mrb[31].mxu1 }
 0xe2f   :  { %v2487_v44 = vmul.f32 %v4130_v42, %v4128_v38 }
 0xe31   :  { %3979 = vmatmul.mubr.msk.f32.vlgmr.msra.gmra.mrb[20].mxu0 %vm379_vm3, %v2487_v44  ;;  %v2802_v45 = vpop.f32.mrb[32].mxu1 }
 0xe32   :  { %3983 = vmatprep.mubr.msk.f32.mxu0 %vm226_vm2, %v2560_v41  ;;  %v3990_v46 = vpop.f32.mrb[33].mxu1  ;;  %v2884_v47 = vsel %vm379_vm3, %v2802_v45, -inf  ;;  %3982 = vmatpush3.msk.msra.mxu0 %vm893_vm4, %v3687_v51  ;;  %v4151_v51 = vld [vmem:[%s4605_s0 + $0x8] sm:$0xff] }
 0xe33   :  { %2885 = vmax.xlane.f32.xlu1 %v2884_v47  ;;  %3996 = vmatprep.subr.mxu0 %v4153_v16  ;;  %v3711_v46 = vld [vmem:[%s4609_s7] ss:$0 sm:$0xff] }
 0xe35   :  { %v2880_v48 = vpop.f32.mrb[34].mxu1 }
 0xe36   :  { %v3995_v49 = vpop.f32.mrb[35].mxu1  ;;  %v2887_v50 = vsel %vm379_vm3, %v2880_v48, -inf }
 0xe37   :  { %2888 = vmax.xlane.f32.xlu1 %v2887_v50 }
 0xec0   :  { %v2886_v52 = vpop.xlane.xlu1 %2885 }
 0xec1   :  { %v2890_v53 = vsub.f32 %v2802_v45, %v2886_v52 }
 0xec3   :  { %v2892_v54 = vmul.f32 1.442695, %v2890_v53  ;;  %v4152_v53 = vld [vmem:[%s4605_s0] sm:$0xff] }
 0xec4   :  { %v2889_v55 = vpop.xlane.xlu1 %2888 }
 0xec5   :  { %4131 = vpow2.f32 %v2892_v54  ;;  %v2891_v56 = vsub.f32 %v2880_v48, %v2889_v55 }
 0xec7   :  { %v2894_v57 = vmul.f32 1.442695, %v2891_v56 }
 0xec9   :  { %4133 = vpow2.f32 %v2894_v57 }
 0xecf   :  { %v4132_v58 = vpop.eup %4131 }
 0xed0   :  { %v2896_v59 = vsel %vm379_vm3, %v4132_v58, 0.0 }
 0xed1   :  { %2897 = vadd.xlane.f32.xlu1 %v2896_v59 }
 0xed3   :  { %v4134_v60 = vpop.eup %4133 }
 0xed4   :  { %v2899_v61 = vsel %vm379_vm3, %v4134_v60, 0.0 }
 0xed5   :  { %2900 = vadd.xlane.f32.xlu1 %v2899_v61 }
 0xee6   :  { %2982 = vrot.lane.b32.xlu1 %v4277_v20, %s4167_s15 }
 0xf04   :  { %v2636_v62 = vpop.f32.mrb[20].mxu0 }
 0xf05   :  { %v3980_v1 = vpop.f32.mrb[21].mxu0  ;;  %3984 = vmatmul.mubr.msk.f32.vlgmr.msra.gmra.mrb[8].mxu0 %vm226_vm2, %v2636_v62 }
 0xf06   :  { %3997 = vmatpush3.msra.mxu0 %v2907_v0  ;;  %3998 = vmatprep.mubr.msk.f32.mxu0 %vm4154_vm1, %v4153_v16 }
 0xf07   :  { %4006 = vmatprep.subr.msk.mxu0 %vm893_vm4, %v3697_v63 }
 0xf5e   :  { %v2898_v2 = vpop.xlane.xlu1 %2897 }
 0xf5f   :  { %4135 = vrcp.f32 %v2898_v2 }
 0xf62   :  { %v2901_v3 = vpop.xlane.xlu1 %2900 }
 0xf63   :  { %4137 = vrcp.f32 %v2901_v3 }
 0xf66   :  { %v2983_v4 = vpop.permute.xlu1 %2982 }
 0xf67   :  { %4002 = vmatpush3.msra.mxu1 %v2983_v4 }
 0xf68   :  { %4011 = vmatprep.subr.mxu1 %v4153_v16 }
 0xf69   :  { %v4136_v6 = vpop.eup %4135 }
 0xf6a   :  { %v2904_v7 = vmul.f32 %v4136_v6, %v4132_v58 }
 0xf6c   :  { %3999 = vmatmul.mubr.msk.f32.vlgmr.msra.gmra.mrb[22].mxu0 %vm379_vm3, %v2904_v7 }
 0xf6d   :  { %v4138_v8 = vpop.eup %4137  ;;  %4007 = vmatpush3.msk.msra.mxu0 %vm893_vm4, %v3697_v63 }
 0xf6e   :  { %v2905_v10 = vmul.f32 %v4138_v8, %v4134_v60  ;;  %4016 = vmatprep.subr.mxu0 %v4153_v16 }
 0xf70   :  { %4004 = vmatmul.mubr.msk.f32.vlgmr.msra.gmra.mrb[36].mxu1 %vm379_vm3, %v2905_v10  ;;  %v3712_v10 = vld [vmem:[%s4610_s8] ss:$0 sm:$0xff] }
 0xf71   :  { %4012 = vmatpush3.xpose.msk.msra.mxu1 %vm226_vm2, %v3149_v5  ;;  %4013 = vmatprep.mubr.msk.f32.mxu1 %vm4154_vm1, %v4153_v16 }
 0xf72   :  { %4021 = vmatprep.subr.mxu1 %v4153_v16 }
 0xf74   :  { %4014 = vmatmul.mubr.msk.f32.vlgmr.msra.gmra.mrb[38].mxu1 %vm226_vm2, %v3147_v11 }
 0xf75   :  { %4023 = vmatprep.mubr.msk.f32.mxu1 %vm4154_vm1, %v4153_v16 }
0x103f   :  { %v2978_v12 = vpop.f32.mrb[22].mxu0 }
0x1040   :  { %v4000_v13 = vpop.f32.mrb[23].mxu0  ;;  %4008 = vmatprep.mubr.msk.f32.mxu0 %vm226_vm2, %v2978_v12 }
0x1041   :  { %v3713_v13 = vld [vmem:[%s4611_s9] ss:$0 sm:$0xff] }
0x1043   :  { %v3054_v14 = vpop.f32.mrb[36].mxu1 }
0x1044   :  { %v4005_v15 = vpop.f32.mrb[37].mxu1  ;;  %4009 = vmatmul.mubr.msk.f32.vlgmr.msra.gmra.mrb[8].mxu0 %vm226_vm2, %v3054_v14 }
0x1045   :  { %4017 = vmatpush3.xpose.msk.msra.mxu0 %vm226_vm2, %v3227_v9  ;;  %4018 = vmatprep.mubr.msk.f32.mxu0 %vm4154_vm1, %v4153_v16 }
0x1046   :  { %4026 = vmatprep.subr.mxu0 %v4153_v16 }
0x1047   :  { %v3220_v18 = vpop.f32.mrb[38].mxu1 }
0x1048   :  { %v4015_v19 = vpop.f32.mrb[39].mxu1  ;;  %4019 = vmatmul.mubr.msk.f32.vlgmr.msra.gmra.mrb[24].mxu0 %vm226_vm2, %v3225_v17  ;;  %v3302_v21 = vsel %vm379_vm3, %v3220_v18, -inf }
0x1049   :  { %3303 = vmax.xlane.f32.xlu1 %v3302_v21  ;;  %4028 = vmatprep.mubr.msk.f32.mxu0 %vm4154_vm1, %v4153_v16 }
0x10d6   :  { %v3304_v22 = vpop.xlane.xlu1 %3303 }
0x10d7   :  { %v3308_v24 = vsub.f32 %v3220_v18, %v3304_v22 }
0x10d9   :  { %v3310_v25 = vmul.f32 1.442695, %v3308_v24 }
0x10db   :  { %4139 = vpow2.f32 %v3310_v25 }
0x10e5   :  { %v4140_v31 = vpop.eup %4139 }
0x10e6   :  { %v3314_v32 = vsel %vm379_vm3, %v4140_v31, 0.0 }
0x111b   :  { %v3298_v26 = vpop.f32.mrb[24].mxu0 }
0x111c   :  { %v4020_v29 = vpop.f32.mrb[25].mxu0  ;;  %v3305_v30 = vsel %vm379_vm3, %v3298_v26, -inf }
0x111d   :  { %3306 = vmax.xlane.f32.xlu0 %v3305_v30 }
0x1121   :  { %3315 = vadd.xlane.f32.xlu0 %v3314_v32 }
0x1137   :  { %3324 = vrot.lane.b32.xlu0 %v4279_v23, %s4169_s19  ;;  %v3707_v23 = vld [vmem:[%s4608_s6 + $0x1c] sm:$0xf] }
0x11aa   :  { %v3307_v33 = vpop.xlane.xlu0 %3306 }
0x11ab   :  { %v3309_v27 = vsub.f32 %v3298_v26, %v3307_v33 }
0x11ad   :  { %v3312_v28 = vmul.f32 1.442695, %v3309_v27 }
0x11ae   :  { %v3316_v16 = vpop.xlane.xlu0 %3315 }
0x11af   :  { %4141 = vpow2.f32 %v3312_v28 }
0x11b0   :  { %4143 = vrcp.f32 %v3316_v16 }
0x11b2   :  { %v3325_v34 = vpop.permute.xlu0 %3324 }
0x11b3   :  { %4022 = vmatpush3.msra.mxu1 %v3325_v34 }
0x11b9   :  { %v4142_v35 = vpop.eup %4141 }
0x11ba   :  { %v4144_v36 = vpop.eup %4143  ;;  %v3317_v37 = vsel %vm379_vm3, %v4142_v35, 0.0 }
0x11bb   :  { %v3322_v38 = vmul.f32 %v4144_v36, %v4140_v31  ;;  %3318 = vadd.xlane.f32.xlu1 %v3317_v37 }
0x11bd   :  { %4024 = vmatmul.mubr.msk.f32.vlgmr.msra.gmra.mrb[40].mxu1 %vm379_vm3, %v3322_v38 }
0x11cc   :  { %3400 = vrot.lane.b32.xlu1 %v4277_v20, %s4169_s19 }
0x1248   :  { %v3319_v39 = vpop.xlane.xlu1 %3318 }
0x1249   :  { %4145 = vrcp.f32 %v3319_v39 }
0x124c   :  { %v3401_v40 = vpop.permute.xlu1 %3400 }
0x124d   :  { %4027 = vmatpush3.msra.mxu0 %v3401_v40 }
0x124e   :  { %4031 = vmatprep.subr.msk.mxu0 %vm893_vm4, %v3707_v23 }
0x1253   :  { %v4146_v41 = vpop.eup %4145 }
0x1254   :  { %v3323_v42 = vmul.f32 %v4146_v41, %v4142_v35 }
0x1256   :  { %4029 = vmatmul.mubr.msk.f32.vlgmr.msra.gmra.mrb[26].mxu0 %vm379_vm3, %v3323_v42 }
0x1257   :  { %4032 = vmatpush3.msk.msra.mxu0 %vm893_vm4, %v3707_v23 }
0x1290   :  { %v3396_v43 = vpop.f32.mrb[40].mxu1 }
0x1291   :  { %v4025_v44 = vpop.f32.mrb[41].mxu1  ;;  %4033 = vmatprep.mubr.msk.f32.mxu0 %vm226_vm2, %v3396_v43 }
0x1329   :  { %v3472_v20 = vpop.f32.mrb[26].mxu0 }
0x132a   :  { %v4030_v45 = vpop.f32.mrb[27].mxu0  ;;  %4034 = vmatmul.mubr.msk.f32.vlgmr.msra.gmra.mrb[8].mxu0 %vm226_vm2, %v3472_v20 }
0x13fd   :  { %v4035_v47 = vpop.f32.mrb[8].mxu0 }
0x13fe   :  { %v3572_v48 = vadd.f32 %v4035_v47, %v3711_v46  ;;  %v3553_v49 = vpop.f32.mrb[9].mxu0 }
0x13ff   :  { %v3571_v50 = vadd.f32 %v3711_v46, %v3553_v49 }
0x1400   :  { %v3574_v52 = vadd.f32 %v4151_v51, %v3572_v48 }
0x1401   :  { %v3573_v54 = vadd.f32 %v4152_v53, %v3571_v50 }
0x1402   :  { %v3580_v55 = vsel %vm50_vm0, %v3574_v52, 0.0 }
0x1403   :  { %3581 = vadd.xlane.f32.xlu0 %v3580_v55  ;;  %v3577_v56 = vsel %vm50_vm0, %v3573_v54, 0.0 }
0x1404   :  { %3578 = vadd.xlane.f32.xlu1 %v3577_v56 }
0x1490   :  { %v3582_v57 = vpop.xlane.xlu0 %3581 }
0x1491   :  { %v3585_v58 = vmul.f32 0.03125, %v3582_v57  ;;  %v3579_v59 = vpop.xlane.xlu1 %3578 }
0x1492   :  { %v3584_v60 = vmul.f32 0.03125, %v3579_v59 }
0x1493   :  { %v3587_v61 = vsub.f32 %v3574_v52, %v3585_v58 }
0x1494   :  { %v3586_v62 = vsub.f32 %v3573_v54, %v3584_v60 }
0x1495   :  { %v3589_v63 = vmul.f32 %v3587_v61, %v3587_v61 }
0x1496   :  { %v3588_v0 = vmul.f32 %v3586_v62, %v3586_v62 }
0x1497   :  { %v3593_v1 = vsel %vm50_vm0, %v3589_v63, 0.0 }
0x1498   :  { %3594 = vadd.xlane.f32.xlu1 %v3593_v1  ;;  %v3590_v2 = vsel %vm50_vm0, %v3588_v0, 0.0 }
0x1499   :  { %3591 = vadd.xlane.f32.xlu0 %v3590_v2 }
0x1525   :  { %v3595_v3 = vpop.xlane.xlu1 %3594 }
0x1526   :  { %v3597_v4 = vmul.f32 0.03125, %v3595_v3  ;;  %v3592_v5 = vpop.xlane.xlu0 %3591 }
0x1527   :  { %v3596_v6 = vmul.f32 0.03125, %v3592_v5 }
0x1528   :  { %v3599_v7 = vadd.f32 1e-05, %v3597_v4 }
0x1529   :  { %v3598_v8 = vadd.f32 1e-05, %v3596_v6 }
0x152a   :  { %4147 = vrsqrt.f32 %v3599_v7 }
0x152b   :  { %4149 = vrsqrt.f32 %v3598_v8 }
0x1534   :  { %v4148_v9 = vpop.eup %4147 }
0x1535   :  { %v4150_v11 = vpop.eup %4149  ;;  %v3603_v12 = vmul.f32 %v4148_v9, %v3587_v61 }
0x1536   :  { %v3602_v14 = vmul.f32 %v4150_v11, %v3586_v62 }
0x1537   :  { %v3611_v15 = vmul.f32 %v3712_v10, %v3603_v12 }
0x1538   :  { %v3610_v17 = vmul.f32 %v3712_v10, %v3602_v14 }
0x1539   :  { %v3619_v18 = vadd.f32 %v3713_v13, %v3611_v15 }
0x153a   :  { %v3618_v19 = vadd.f32 %v3713_v13, %v3610_v17 }
0x153b   :  { %3621 = vst.msk [vmem:[%s4612_s10 + $0x8] sm:$0xff] %vm50_vm0, %v3619_v18 }
0x153c   :  { %3620 = vst.msk [vmem:[%s4612_s10] sm:$0xff] %vm50_vm0, %v3618_v19 }

// kernel: _lambda_.18
= control target key start
LH: loop header
LB: loop body
LE: loop exit
PB: predicated region body
PF: predicated region fallthrough
CT: control target
= control target key end

     0   :  { %vm124_vm0 = vcmask 1043456   ;;  %vm75_vm1 = vcmask 31744   ;;  %v9098_v34 = vmov 0.0   ;;  %vm7441_vm2 = vmmov 0   ;;  %s7444_s18 = smov 122   ;;  %s9087_s4 = inlined_call_operand.vmem [shape: f32[4,8], index: 4, kind: input, shape index: {}]   ;;  %s9088_s2 = inlined_call_operand.vmem [shape: f32[4,4], index: 2, kind: input, shape index: {}]   ;;  %s9089_s1 = inlined_call_operand.vmem [shape: f32[16,8,4], index: 1, kind: input, shape index: {}, may-alias: {0,1}]   ;;  %s9090_s0 = inlined_call_operand.vmem [shape: f32[16,8,4], index: 0, kind: input, shape index: {}, may-alias: {0,1}]   ;;  %s9091_s5 = inlined_call_operand.vmem [shape: f32[1,8], index: 5, kind: input, shape index: {}]   ;;  %s9092_s3 = inlined_call_operand.vmem [shape: f32[1,4], index: 3, kind: input, shape index: {}]   ;;  %s9093_s6 = inlined_call_operand.vmem [shape: f32[2,2,4], index: 6, kind: input, shape index: {}]   ;;  %s9094_s7 = inlined_call_operand.vmem [shape: f32[1,4], index: 7, kind: input, shape index: {}]   ;;  %s9095_s8 = inlined_call_operand.vmem [shape: f32[1,4], index: 8, kind: input, shape index: {}]   ;;  %s9096_s9 = inlined_call_operand.vmem [shape: f32[1,4], index: 9, kind: input, shape index: {}]   ;;  %s9097_s10 = inlined_call_operand.vmem [shape: f32[16,8,4], index: 10, kind: output, shape index: {}]  }
   0x1   :  { %v273_v0 = vld [vmem:[%s9087_s4] sm:$0xf]  ;;  %v52_v4 = vld [vmem:[%s9089_s1 + $0x8] sm:$0xff]  ;;  %v53_v6 = vld [vmem:[%s9089_s1 + $0x10] sm:$0xff]  ;;  %vm493_vm3 = vcmask 15360   ;;  %vm1710_vm4 = vcmask 64512  }
   0x2   :  { %v67_v1 = vld [vmem:[%s9088_s2] sm:$0xf]  ;;  %6845 = vmatprep.subr.msk.mxu1 %vm124_vm0, %v273_v0  ;;  %v36_v5 = vld [vmem:[%s9090_s0 + $0x8] sm:$0xff]  ;;  %v37_v7 = vld [vmem:[%s9090_s0 + $0x10] sm:$0xff]  ;;  %vm5794_vm5 = vcmask 1041408  }
   0x3   :  { %v51_v2 = vld [vmem:[%s9089_s1] sm:$0xff]  ;;  %6819 = vmatprep.subr.msk.mxu0 %vm124_vm0, %v67_v1  ;;  %6846 = vmatpush3.msk.msra.mxu1 %vm124_vm0, %v273_v0  ;;  %v54_v8 = vld [vmem:[%s9089_s1 + $0x18] sm:$0xff]  ;;  %v56_v12 = vld [vmem:[%s9089_s1 + $0x28] sm:$0xff] }
   0x4   :  { %v35_v3 = vld [vmem:[%s9090_s0] sm:$0xff]  ;;  %6847 = vmatprep.mubr.msk.f32.mxu1 %vm75_vm1, %v51_v2  ;;  %6820 = vmatpush3.msk.msra.mxu0 %vm124_vm0, %v67_v1  ;;  %v38_v9 = vld [vmem:[%s9090_s0 + $0x18] sm:$0xff]  ;;  %v40_v13 = vld [vmem:[%s9090_s0 + $0x28] sm:$0xff] }
   0x5   :  { %6821 = vmatprep.mubr.msk.f32.mxu0 %vm75_vm1, %v35_v3  ;;  %6848 = vmatmul.mubr.msk.f32.vlgmr.msra.gmra.mrb[0].mxu1 %vm75_vm1, %v52_v4  ;;  %v55_v10 = vld [vmem:[%s9089_s1 + $0x20] sm:$0xff]  ;;  %v57_v14 = vld [vmem:[%s9089_s1 + $0x30] sm:$0xff]  ;;  %v58_v16 = vld [vmem:[%s9089_s1 + $0x38] sm:$0xff] }
   0x6   :  { %6822 = vmatmul.mubr.msk.f32.vlgmr.msra.gmra.mrb[0].mxu0 %vm75_vm1, %v36_v5  ;;  %6850 = vmatprep.mubr.msk.f32.mxu1 %vm75_vm1, %v53_v6  ;;  %v39_v11 = vld [vmem:[%s9090_s0 + $0x20] sm:$0xff]  ;;  %v41_v15 = vld [vmem:[%s9090_s0 + $0x30] sm:$0xff]  ;;  %v42_v17 = vld [vmem:[%s9090_s0 + $0x38] sm:$0xff] }
   0x7   :  { %6824 = vmatprep.mubr.msk.f32.mxu0 %vm75_vm1, %v37_v7  ;;  %v59_v18 = vld [vmem:[%s9089_s1 + $0x40] sm:$0xff]  ;;  %v60_v20 = vld [vmem:[%s9089_s1 + $0x48] sm:$0xff]  ;;  %v61_v22 = vld [vmem:[%s9089_s1 + $0x50] sm:$0xff]  ;;  %6876 = vmatprep.subr.mxu1 %v9098_v34 }
   0x8   :  { %v43_v19 = vld [vmem:[%s9090_s0 + $0x40] sm:$0xff]  ;;  %v44_v21 = vld [vmem:[%s9090_s0 + $0x48] sm:$0xff]  ;;  %v45_v23 = vld [vmem:[%s9090_s0 + $0x50] sm:$0xff]  ;;  %6871 = vmatprep.subr.mxu0 %v9098_v34 }
   0x9   :  { %6851 = vmatmul.mubr.msk.f32.gmra.mrb[2].mxu1 %vm75_vm1, %v54_v8  ;;  %v62_v24 = vld [vmem:[%s9089_s1 + $0x58] sm:$0xff]  ;;  %v63_v26 = vld [vmem:[%s9089_s1 + $0x60] sm:$0xff]  ;;  %v64_v28 = vld [vmem:[%s9089_s1 + $0x68] sm:$0xff] }
   0xa   :  { %6825 = vmatmul.mubr.msk.f32.gmra.mrb[2].mxu0 %vm75_vm1, %v38_v9  ;;  %6853 = vmatprep.mubr.msk.f32.mxu1 %vm75_vm1, %v55_v10  ;;  %v46_v25 = vld [vmem:[%s9090_s0 + $0x58] sm:$0xff]  ;;  %v47_v27 = vld [vmem:[%s9090_s0 + $0x60] sm:$0xff]  ;;  %v48_v29 = vld [vmem:[%s9090_s0 + $0x68] sm:$0xff] }
   0xb   :  { %6827 = vmatprep.mubr.msk.f32.mxu0 %vm75_vm1, %v39_v11  ;;  %v65_v30 = vld [vmem:[%s9089_s1 + $0x70] sm:$0xff]  ;;  %v66_v32 = vld [vmem:[%s9089_s1 + $0x78] sm:$0xff]  ;;  %v7647_v35 = vld [vmem:[%s9091_s5] ss:$0 sm:$0xff]  ;;  %s7442_s5 = smov 124  }
   0xc   :  { %v49_v31 = vld [vmem:[%s9090_s0 + $0x70] sm:$0xff]  ;;  %v50_v33 = vld [vmem:[%s9090_s0 + $0x78] sm:$0xff]  ;;  %v7652_v36 = vld [vmem:[%s9092_s3] ss:$0 sm:$0xff]  ;;  %s7443_s3 = smov 126  }
   0xd   :  { %6854 = vmatmul.mubr.msk.f32.gmra.mrb[4].mxu1 %vm75_vm1, %v56_v12 }
   0xe   :  { %6828 = vmatmul.mubr.msk.f32.gmra.mrb[4].mxu0 %vm75_vm1, %v40_v13  ;;  %6856 = vmatprep.mubr.msk.f32.mxu1 %vm75_vm1, %v57_v14 }
   0xf   :  { %6830 = vmatprep.mubr.msk.f32.mxu0 %vm75_vm1, %v41_v15 }
  0x11   :  { %6857 = vmatmul.mubr.msk.f32.gmra.mrb[6].mxu1 %vm75_vm1, %v58_v16 }
  0x12   :  { %6831 = vmatmul.mubr.msk.f32.gmra.mrb[6].mxu0 %vm75_vm1, %v42_v17  ;;  %6859 = vmatprep.mubr.msk.f32.mxu1 %vm75_vm1, %v59_v18 }
  0x13   :  { %6833 = vmatprep.mubr.msk.f32.mxu0 %vm75_vm1, %v43_v19 }
  0x15   :  { %6860 = vmatmul.mubr.msk.f32.gmra.mrb[8].mxu1 %vm75_vm1, %v60_v20 }
  0x16   :  { %6834 = vmatmul.mubr.msk.f32.gmra.mrb[8].mxu0 %vm75_vm1, %v44_v21  ;;  %6862 = vmatprep.mubr.msk.f32.mxu1 %vm75_vm1, %v61_v22 }
  0x17   :  { %6836 = vmatprep.mubr.msk.f32.mxu0 %vm75_vm1, %v45_v23 }
  0x19   :  { %6863 = vmatmul.mubr.msk.f32.gmra.mrb[10].mxu1 %vm75_vm1, %v62_v24 }
  0x1a   :  { %6837 = vmatmul.mubr.msk.f32.gmra.mrb[10].mxu0 %vm75_vm1, %v46_v25  ;;  %6865 = vmatprep.mubr.msk.f32.mxu1 %vm75_vm1, %v63_v26 }
  0x1b   :  { %6839 = vmatprep.mubr.msk.f32.mxu0 %vm75_vm1, %v47_v27 }
  0x1d   :  { %6866 = vmatmul.mubr.msk.f32.gmra.mrb[12].mxu1 %vm75_vm1, %v64_v28 }
  0x1e   :  { %6840 = vmatmul.mubr.msk.f32.gmra.mrb[12].mxu0 %vm75_vm1, %v48_v29  ;;  %6868 = vmatprep.mubr.msk.f32.mxu1 %vm75_vm1, %v65_v30 }
  0x1f   :  { %6842 = vmatprep.mubr.msk.f32.mxu0 %vm75_vm1, %v49_v31 }
  0x21   :  { %6869 = vmatmul.mubr.msk.f32.gmra.mrb[14].mxu1 %vm75_vm1, %v66_v32 }
  0x22   :  { %6843 = vmatmul.mubr.msk.f32.gmra.mrb[14].mxu0 %vm75_vm1, %v50_v33  ;;  %6878 = vmatprep.mubr.msk.f32.mxu1 %vm7441_vm2, %v9098_v34 }
  0x23   :  { %6873 = vmatprep.mubr.msk.f32.mxu0 %vm7441_vm2, %v9098_v34 }
  0xd8   :  { %v6849_v37 = vpop.f32.mrb[0].mxu1 }
  0xd9   :  { %v6823_v38 = vpop.f32.mrb[0].mxu0  ;;  %v7655_v39 = vadd.f32 %v6849_v37, %v7647_v35  ;;  %v398_v41 = vpop.f32.mrb[1].mxu1 }
  0xda   :  { %v200_v40 = vadd.f32 %v6823_v38, %v7652_v36  ;;  %v194_v42 = vpop.f32.mrb[1].mxu0  ;;  %v7659_v43 = vadd.f32 %v7647_v35, %v398_v41 }
  0xdb   :  { %v195_v44 = vadd.f32 %v7652_v36, %v194_v42  ;;  %1963 = vrot.lane.b32.xlu1 %v7655_v39, %s7442_s5  ;;  %6877 = vmatpush3.xpose.msk.msra.mxu1 %vm493_vm3, %v7655_v39 }
  0xdc   :  { %v478_v45 = vmul.f32 0.70710677, %v200_v40  ;;  %v6852_v47 = vpop.f32.mrb[2].mxu1  ;;  %1887 = vrot.lane.b32.xlu0 %v7659_v43, %s7442_s5  ;;  %6872 = vmatpush3.xpose.msk.msra.mxu0 %vm493_vm3, %v7659_v43 }
  0xdd   :  { %v7666_v46 = vmul.f32 0.70710677, %v195_v44  ;;  %v6826_v48 = vpop.f32.mrb[2].mxu0  ;;  %v7673_v49 = vadd.f32 %v6852_v47, %v7647_v35  ;;  %v408_v51 = vpop.f32.mrb[3].mxu1  ;;  %6886 = vmatprep.subr.mxu1 %v9098_v34  ;;  %6881 = vmatprep.subr.mxu0 %v9098_v34 }
  0xde   :  { %v210_v50 = vadd.f32 %v6826_v48, %v7652_v36  ;;  %v204_v52 = vpop.f32.mrb[3].mxu0  ;;  %v7679_v53 = vadd.f32 %v7647_v35, %v408_v51  ;;  %6879 = vmatmul.mubr.msk.f32.vlgmr.msra.gmra.mrb[16].mxu1 %vm493_vm3, %v478_v45 }
  0xdf   :  { %v205_v54 = vadd.f32 %v7652_v36, %v204_v52  ;;  %3184 = vrot.lane.b32.xlu1 %v7655_v39, %s7443_s3  ;;  %6874 = vmatmul.mubr.msk.f32.vlgmr.msra.gmra.mrb[16].mxu0 %vm493_vm3, %v7666_v46 }
  0xe0   :  { %v7683_v55 = vmul.f32 0.70710677, %v210_v50  ;;  %6887 = vmatpush3.xpose.msk.msra.mxu1 %vm493_vm3, %v7673_v49  ;;  %v6855_v57 = vpop.f32.mrb[4].mxu1  ;;  %3106 = vrot.lane.b32.xlu0 %v7659_v43, %s7443_s3 }
  0xe1   :  { %v7689_v56 = vmul.f32 0.70710677, %v205_v54  ;;  %v6829_v58 = vpop.f32.mrb[4].mxu0  ;;  %6882 = vmatpush3.xpose.msk.msra.mxu0 %vm493_vm3, %v7679_v53  ;;  %v418_v60 = vpop.f32.mrb[5].mxu1  ;;  %6888 = vmatprep.mubr.msk.f32.mxu1 %vm7441_vm2, %v9098_v34  ;;  %v7701_v62 = vadd.f32 %v6855_v57, %v7647_v35 }
  0xe2   :  { %v220_v59 = vadd.f32 %v6829_v58, %v7652_v36  ;;  %v214_v61 = vpop.f32.mrb[5].mxu0  ;;  %v7704_v63 = vadd.f32 %v7647_v35, %v418_v60  ;;  %6883 = vmatprep.mubr.msk.f32.mxu0 %vm7441_vm2, %v9098_v34  ;;  %6891 = vmatprep.subr.mxu0 %v9098_v34 }
  0xe3   :  { %v215_v0 = vadd.f32 %v7652_v36, %v214_v61  ;;  %6889 = vmatmul.mubr.msk.f32.vlgmr.msra.gmra.mrb[18].mxu1 %vm493_vm3, %v7683_v55  ;;  %6896 = vmatprep.subr.mxu1 %v9098_v34 }
  0xe4   :  { %6884 = vmatmul.mubr.msk.f32.vlgmr.msra.gmra.mrb[18].mxu0 %vm493_vm3, %v7689_v56  ;;  %v6858_v2 = vpop.f32.mrb[6].mxu1  ;;  %3182 = vrot.lane.b32.xlu1 %v478_v45, %s7443_s3  ;;  %v7718_v4 = vmul.f32 0.70710677, %v220_v59 }
  0xe5   :  { %v7713_v1 = vmul.f32 0.70710677, %v215_v0  ;;  %v6832_v3 = vpop.f32.mrb[6].mxu0  ;;  %6892 = vmatpush3.xpose.msk.msra.mxu0 %vm493_vm3, %v7704_v63  ;;  %v428_v6 = vpop.f32.mrb[7].mxu1  ;;  %6893 = vmatprep.mubr.msk.f32.mxu0 %vm7441_vm2, %v9098_v34  ;;  %v7726_v8 = vadd.f32 %v6858_v2, %v7647_v35 }
  0xe6   :  { %v230_v5 = vadd.f32 %v6832_v3, %v7652_v36  ;;  %v224_v7 = vpop.f32.mrb[7].mxu0  ;;  %v7729_v9 = vadd.f32 %v7647_v35, %v428_v6  ;;  %6897 = vmatpush3.xpose.msk.msra.mxu1 %vm493_vm3, %v7701_v62  ;;  %6901 = vmatprep.subr.mxu0 %v9098_v34 }
  0xe7   :  { %v225_v10 = vadd.f32 %v7652_v36, %v224_v7  ;;  %6898 = vmatprep.mubr.msk.f32.mxu1 %vm7441_vm2, %v9098_v34  ;;  %6906 = vmatprep.subr.mxu1 %v9098_v34 }
  0xe8   :  { %6894 = vmatmul.mubr.msk.f32.vlgmr.msra.gmra.mrb[20].mxu0 %vm493_vm3, %v7713_v1  ;;  %v6861_v12 = vpop.f32.mrb[8].mxu1  ;;  %2115 = vrot.lane.b32.xlu1 %v7673_v49, %s7442_s5  ;;  %v7744_v14 = vmul.f32 0.70710677, %v230_v5 }
  0xe9   :  { %v7738_v11 = vmul.f32 0.70710677, %v225_v10  ;;  %v6835_v13 = vpop.f32.mrb[8].mxu0  ;;  %6902 = vmatpush3.xpose.msk.msra.mxu0 %vm493_vm3, %v7729_v9  ;;  %v438_v15 = vpop.f32.mrb[9].mxu1  ;;  %6899 = vmatmul.mubr.msk.f32.vlgmr.msra.gmra.mrb[20].mxu1 %vm493_vm3, %v7718_v4  ;;  %v7760_v20 = vadd.f32 %v6861_v12, %v7647_v35 }
  0xea   :  { %v234_v16 = vpop.f32.mrb[9].mxu0  ;;  %v240_v17 = vadd.f32 %v6835_v13, %v7652_v36  ;;  %v7752_v18 = vadd.f32 %v7647_v35, %v438_v15  ;;  %6903 = vmatprep.mubr.msk.f32.mxu0 %vm7441_vm2, %v9098_v34  ;;  %6907 = vmatpush3.xpose.msk.msra.mxu1 %vm493_vm3, %v7726_v8 }
  0xeb   :  { %v235_v19 = vadd.f32 %v7652_v36, %v234_v16  ;;  %6911 = vmatprep.subr.mxu0 %v9098_v34  ;;  %6908 = vmatprep.mubr.msk.f32.mxu1 %vm7441_vm2, %v9098_v34 }
  0xec   :  { %6904 = vmatmul.mubr.msk.f32.vlgmr.msra.gmra.mrb[22].mxu0 %vm493_vm3, %v7738_v11  ;;  %v6864_v22 = vpop.f32.mrb[10].mxu1  ;;  %6916 = vmatprep.subr.mxu1 %v9098_v34  ;;  %v7774_v26 = vmul.f32 0.70710677, %v240_v17 }
  0xed   :  { %v7765_v21 = vmul.f32 0.70710677, %v235_v19  ;;  %v6838_v23 = vpop.f32.mrb[10].mxu0  ;;  %6912 = vmatpush3.xpose.msk.msra.mxu0 %vm493_vm3, %v7752_v18  ;;  %v448_v24 = vpop.f32.mrb[11].mxu1  ;;  %6909 = vmatmul.mubr.msk.f32.vlgmr.msra.gmra.mrb[22].mxu1 %vm493_vm3, %v7744_v14  ;;  %v7790_v30 = vadd.f32 %v6864_v22, %v7647_v35 }
  0xee   :  { %v244_v25 = vpop.f32.mrb[11].mxu0  ;;  %v7777_v27 = vadd.f32 %v7647_v35, %v448_v24  ;;  %6913 = vmatprep.mubr.msk.f32.mxu0 %vm7441_vm2, %v9098_v34  ;;  %3340 = vrot.lane.b32.xlu1 %v7673_v49, %s7443_s3  ;;  %v250_v29 = vadd.f32 %v6838_v23, %v7652_v36 }
  0xef   :  { %v245_v28 = vadd.f32 %v7652_v36, %v244_v25  ;;  %6917 = vmatpush3.xpose.msk.msra.mxu1 %vm493_vm3, %v7760_v20  ;;  %3104 = vrot.lane.b32.xlu0 %v7666_v46, %s7443_s3 }
  0xf0   :  { %6914 = vmatmul.mubr.msk.f32.vlgmr.msra.gmra.mrb[24].mxu0 %vm493_vm3, %v7765_v21  ;;  %6921 = vmatprep.subr.mxu0 %v9098_v34  ;;  %v6867_v31 = vpop.f32.mrb[12].mxu1  ;;  %v7809_v42 = vmul.f32 0.70710677, %v250_v29 }
  0xf1   :  { %v6841_v32 = vpop.f32.mrb[12].mxu0  ;;  %v7795_v33 = vmul.f32 0.70710677, %v245_v28  ;;  %6922 = vmatpush3.xpose.msk.msra.mxu0 %vm493_vm3, %v7777_v27  ;;  %v458_v37 = vpop.f32.mrb[13].mxu1  ;;  %6918 = vmatprep.mubr.msk.f32.mxu1 %vm7441_vm2, %v9098_v34  ;;  %v7820_v47 = vadd.f32 %v6867_v31, %v7647_v35 }
  0xf2   :  { %v254_v38 = vpop.f32.mrb[13].mxu0  ;;  %v7802_v40 = vadd.f32 %v7647_v35, %v458_v37  ;;  %6919 = vmatmul.mubr.msk.f32.vlgmr.msra.gmra.mrb[24].mxu1 %vm493_vm3, %v7774_v26  ;;  %6923 = vmatprep.mubr.msk.f32.mxu0 %vm7441_vm2, %v9098_v34  ;;  %v260_v44 = vadd.f32 %v6841_v32, %v7652_v36 }
  0xf3   :  { %v255_v41 = vadd.f32 %v7652_v36, %v254_v38  ;;  %6926 = vmatprep.subr.mxu1 %v9098_v34  ;;  %3338 = vrot.lane.b32.xlu1 %v7683_v55, %s7443_s3 }
  0xf4   :  { %6927 = vmatpush3.xpose.msk.msra.mxu1 %vm493_vm3, %v7790_v30  ;;  %2039 = vrot.lane.b32.xlu0 %v7679_v53, %s7442_s5  ;;  %v6870_v45 = vpop.f32.mrb[14].mxu1  ;;  %v7839_v55 = vmul.f32 0.70710677, %v260_v44 }
  0xf5   :  { %v6844_v46 = vpop.f32.mrb[14].mxu0  ;;  %6924 = vmatmul.mubr.msk.f32.vlgmr.msra.gmra.mrb[26].mxu0 %vm493_vm3, %v7795_v33  ;;  %6931 = vmatprep.subr.mxu0 %v9098_v34  ;;  %v468_v48 = vpop.f32.mrb[15].mxu1  ;;  %v7825_v51 = vmul.f32 0.70710677, %v255_v41  ;;  %v7850_v58 = vadd.f32 %v6870_v45, %v7647_v35 }
  0xf6   :  { %v264_v50 = vpop.f32.mrb[15].mxu0  ;;  %6932 = vmatpush3.xpose.msk.msra.mxu0 %vm493_vm3, %v7802_v40  ;;  %6928 = vmatprep.mubr.msk.f32.mxu1 %vm7441_vm2, %v9098_v34  ;;  %v7832_v52 = vadd.f32 %v7647_v35, %v468_v48  ;;  %v270_v57 = vadd.f32 %v6844_v46, %v7652_v36 }
  0xf7   :  { %v265_v54 = vadd.f32 %v7652_v36, %v264_v50  ;;  %6929 = vmatmul.mubr.msk.f32.vlgmr.msra.gmra.mrb[26].mxu1 %vm493_vm3, %v7809_v42  ;;  %6933 = vmatprep.mubr.msk.f32.mxu0 %vm7441_vm2, %v9098_v34 }
  0xf8   :  { %6936 = vmatprep.subr.mxu1 %v9098_v34  ;;  %2267 = vrot.lane.b32.xlu1 %v7701_v62, %s7442_s5  ;;  %v7865_v35 = vmul.f32 0.70710677, %v270_v57 }
  0xf9   :  { %6937 = vmatpush3.xpose.msk.msra.mxu1 %vm493_vm3, %v7820_v47  ;;  %3262 = vrot.lane.b32.xlu0 %v7679_v53, %s7443_s3  ;;  %v7855_v59 = vmul.f32 0.70710677, %v265_v54 }
  0xfa   :  { %6934 = vmatmul.mubr.msk.f32.vlgmr.msra.gmra.mrb[28].mxu0 %vm493_vm3, %v7825_v51  ;;  %6941 = vmatprep.subr.mxu0 %v9098_v34 }
  0xfb   :  { %6942 = vmatpush3.xpose.msk.msra.mxu0 %vm493_vm3, %v7832_v52  ;;  %6938 = vmatprep.mubr.msk.f32.mxu1 %vm7441_vm2, %v9098_v34 }
  0xfc   :  { %6939 = vmatmul.mubr.msk.f32.vlgmr.msra.gmra.mrb[28].mxu1 %vm493_vm3, %v7839_v55  ;;  %6943 = vmatprep.mubr.msk.f32.mxu0 %vm7441_vm2, %v9098_v34 }
  0xfd   :  { %6946 = vmatprep.subr.mxu1 %v9098_v34  ;;  %3496 = vrot.lane.b32.xlu1 %v7701_v62, %s7443_s3 }
  0xfe   :  { %6947 = vmatpush3.xpose.msk.msra.mxu1 %vm493_vm3, %v7850_v58  ;;  %3260 = vrot.lane.b32.xlu0 %v7689_v56, %s7443_s3 }
  0xff   :  { %6944 = vmatmul.mubr.msk.f32.vlgmr.msra.gmra.mrb[30].mxu0 %vm493_vm3, %v7855_v59  ;;  %6948 = vmatprep.mubr.msk.f32.mxu1 %vm7441_vm2, %v9098_v34 }
 0x100   :  { %6956 = vmatprep.subr.mxu1 %v9098_v34  ;;  %6951 = vmatprep.subr.mxu0 %v9098_v34 }
 0x101   :  { %6949 = vmatmul.mubr.msk.f32.vlgmr.msra.gmra.mrb[30].mxu1 %vm493_vm3, %v7865_v35  ;;  %3494 = vrot.lane.b32.xlu1 %v7718_v4, %s7443_s3 }
 0x102   :  { %2191 = vrot.lane.b32.xlu0 %v7704_v63, %s7442_s5  ;;  %6958 = vmatprep.mubr.msk.f32.mxu1 %vm7441_vm2, %v9098_v34 }
 0x103   :  { %6953 = vmatprep.mubr.msk.f32.mxu0 %vm7441_vm2, %v9098_v34 }
 0x105   :  { %2419 = vrot.lane.b32.xlu1 %v7726_v8, %s7442_s5 }
 0x106   :  { %3418 = vrot.lane.b32.xlu0 %v7704_v63, %s7443_s3 }
 0x109   :  { %2343 = vrot.lane.b32.xlu1 %v7729_v9, %s7442_s5 }
 0x10a   :  { %3416 = vrot.lane.b32.xlu0 %v7713_v1, %s7443_s3 }
 0x10d   :  { %2571 = vrot.lane.b32.xlu1 %v7760_v20, %s7442_s5 }
 0x10e   :  { %2495 = vrot.lane.b32.xlu0 %v7752_v18, %s7442_s5 }
 0x111   :  { %2723 = vrot.lane.b32.xlu1 %v7790_v30, %s7442_s5 }
 0x112   :  { %2647 = vrot.lane.b32.xlu0 %v7777_v27, %s7442_s5 }
 0x115   :  { %2875 = vrot.lane.b32.xlu1 %v7820_v47, %s7442_s5 }
 0x116   :  { %2799 = vrot.lane.b32.xlu0 %v7802_v40, %s7442_s5 }
 0x119   :  { %3027 = vrot.lane.b32.xlu1 %v7850_v58, %s7442_s5 }
 0x11a   :  { %2951 = vrot.lane.b32.xlu0 %v7832_v52, %s7442_s5 }
 0x14d   :  { %v1964_v36 = vpop.permute.xlu1 %1963 }
 0x14e   :  { %v1888_v56 = vpop.permute.xlu0 %1887  ;;  %6957 = vmatpush3.msra.mxu1 %v1964_v36 }
 0x14f   :  { %6952 = vmatpush3.msra.mxu0 %v1888_v56  ;;  %6966 = vmatprep.subr.mxu1 %v9098_v34 }
 0x150   :  { %6961 = vmatprep.subr.mxu0 %v9098_v34 }
 0x1b1   :  { %v7916_v60 = vpop.f32.mrb[16].mxu1 }
 0x1b2   :  { %v1714_v61 = vsel %vm1710_vm4, %v7916_v60, -inf  ;;  %v6880_v0 = vpop.f32.mrb[17].mxu1  ;;  %v7920_v1 = vpop.f32.mrb[16].mxu0 }
 0x1b3   :  { %1715 = vmax.xlane.f32.xlu0 %v1714_v61  ;;  %v6875_v2 = vpop.f32.mrb[17].mxu0  ;;  %v1711_v4 = vsel %vm1710_vm4, %v7920_v1, -inf }
 0x1b6   :  { %v7922_v3 = vpop.f32.mrb[18].mxu1 }
 0x1b7   :  { %v1720_v5 = vsel %vm1710_vm4, %v7922_v3, -inf  ;;  %1712 = vmax.xlane.f32.xlu0 %v1711_v4  ;;  %v7928_v6 = vpop.f32.mrb[18].mxu0  ;;  %v6890_v7 = vpop.f32.mrb[19].mxu1 }
 0x1b8   :  { %1721 = vmax.xlane.f32.xlu1 %v1720_v5  ;;  %v6885_v10 = vpop.f32.mrb[19].mxu0  ;;  %v1717_v13 = vsel %vm1710_vm4, %v7928_v6, -inf }
 0x1bb   :  { %v7930_v12 = vpop.f32.mrb[20].mxu0 }
 0x1bc   :  { %1718 = vmax.xlane.f32.xlu1 %v1717_v13  ;;  %v1723_v15 = vsel %vm1710_vm4, %v7930_v12, -inf  ;;  %v7936_v16 = vpop.f32.mrb[20].mxu1  ;;  %v6895_v17 = vpop.f32.mrb[21].mxu0 }
 0x1bd   :  { %1724 = vmax.xlane.f32.xlu0 %v1723_v15  ;;  %v1726_v19 = vsel %vm1710_vm4, %v7936_v16, -inf  ;;  %v6900_v22 = vpop.f32.mrb[21].mxu1 }
 0x1be   :  { %v7984_v22 = vpop.permute.xlu1 %3184 }
 0x1bf   :  { %v7940_v23 = vpop.f32.mrb[22].mxu0  ;;  %9100 = vst [vmem:[#allocation2_spill] sm:$0xff] %v7984_v22 }
 0x1c0   :  { %1727 = vmax.xlane.f32.xlu1 %v1726_v19  ;;  %v1729_v24 = vsel %vm1710_vm4, %v7940_v23, -inf  ;;  %v6905_v25 = vpop.f32.mrb[23].mxu0  ;;  %v7944_v28 = vpop.f32.mrb[22].mxu1 }
 0x1c1   :  { %1730 = vmax.xlane.f32.xlu0 %v1729_v24  ;;  %v1732_v29 = vsel %vm1710_vm4, %v7944_v28, -inf  ;;  %v6910_v31 = vpop.f32.mrb[23].mxu1  ;;  %v7988_v25 = vpop.permute.xlu0 %3106 }
 0x1c2   :  { %v7986_v24 = vpop.permute.xlu1 %3182  ;;  %9102 = vst [vmem:[#allocation4_spill] sm:$0xff] %v7988_v25 }
 0x1c3   :  { %v7948_v32 = vpop.f32.mrb[24].mxu0  ;;  %9101 = vst [vmem:[#allocation3_spill] sm:$0xff] %v7986_v24 }
 0x1c4   :  { %1733 = vmax.xlane.f32.xlu1 %v1732_v29  ;;  %v1735_v37 = vsel %vm1710_vm4, %v7948_v32, -inf  ;;  %v6915_v38 = vpop.f32.mrb[25].mxu0 }
 0x1c5   :  { %1736 = vmax.xlane.f32.xlu0 %v1735_v37  ;;  %v7952_v41 = vpop.f32.mrb[24].mxu1  ;;  %v7992_v31 = vpop.permute.xlu0 %3104 }
 0x1c6   :  { %v1738_v44 = vsel %vm1710_vm4, %v7952_v41, -inf  ;;  %v6920_v45 = vpop.f32.mrb[25].mxu1  ;;  %v7990_v29 = vpop.permute.xlu1 %2115  ;;  %9103 = vst [vmem:[#allocation5_spill] sm:$0xff] %v7992_v31 }
 0x1c8   :  { %v7956_v46 = vpop.f32.mrb[26].mxu0  ;;  %1739 = vmax.xlane.f32.xlu1 %v1738_v44 }
 0x1c9   :  { %v1741_v48 = vsel %vm1710_vm4, %v7956_v46, -inf  ;;  %v6925_v50 = vpop.f32.mrb[27].mxu0  ;;  %v7996_v38 = vpop.permute.xlu0 %2039 }
 0x1ca   :  { %1742 = vmax.xlane.f32.xlu0 %v1741_v48  ;;  %v7960_v54 = vpop.f32.mrb[26].mxu1  ;;  %v7994_v37 = vpop.permute.xlu1 %3340 }
 0x1cb   :  { %v1744_v57 = vsel %vm1710_vm4, %v7960_v54, -inf  ;;  %v6930_v36 = vpop.f32.mrb[27].mxu1  ;;  %9104 = vst [vmem:[#allocation6_spill] sm:$0xff] %v7994_v37 }
 0x1cc   :  { %1745 = vmax.xlane.f32.xlu1 %v1744_v57 }
 0x1cd   :  { %v7964_v56 = vpop.f32.mrb[28].mxu0  ;;  %v8000_v45 = vpop.permute.xlu0 %3262 }
 0x1ce   :  { %v1747_v61 = vsel %vm1710_vm4, %v7964_v56, -inf  ;;  %v6935_v0 = vpop.f32.mrb[29].mxu0  ;;  %v7998_v44 = vpop.permute.xlu1 %3338  ;;  %9106 = vst [vmem:[#allocation8_spill] sm:$0xff] %v8000_v45 }
 0x1cf   :  { %1748 = vmax.xlane.f32.xlu0 %v1747_v61  ;;  %v7968_v2 = vpop.f32.mrb[28].mxu1  ;;  %9105 = vst [vmem:[#allocation7_spill] sm:$0xff] %v7998_v44 }
 0x1d0   :  { %v1750_v4 = vsel %vm1710_vm4, %v7968_v2, -inf  ;;  %v6940_v5 = vpop.f32.mrb[29].mxu1 }
 0x1d1   :  { %1751 = vmax.xlane.f32.xlu1 %v1750_v4  ;;  %v8004_v50 = vpop.permute.xlu0 %3260 }
 0x1d2   :  { %v7972_v7 = vpop.f32.mrb[30].mxu0  ;;  %v8002_v48 = vpop.permute.xlu1 %2267  ;;  %9107 = vst [vmem:[#allocation9_spill] sm:$0xff] %v8004_v50 }
 0x1d3   :  { %v1753_v10 = vsel %vm1710_vm4, %v7972_v7, -inf  ;;  %v6945_v13 = vpop.f32.mrb[31].mxu0 }
 0x1d4   :  { %1754 = vmax.xlane.f32.xlu0 %v1753_v10  ;;  %v7976_v15 = vpop.f32.mrb[30].mxu1 }
 0x1d5   :  { %v1756_v17 = vsel %vm1710_vm4, %v7976_v15, -inf  ;;  %v6950_v19 = vpop.f32.mrb[31].mxu1  ;;  %v8008_v36 = vpop.permute.xlu0 %2191 }
 0x1d6   :  { %1757 = vmax.xlane.f32.xlu1 %v1756_v17  ;;  %v8006_v57 = vpop.permute.xlu1 %3496 }
 0x1d7   :  { %9108 = vst [vmem:[#allocation10_spill] sm:$0xff] %v8006_v57 }
 0x1d9   :  { %v8012_v0 = vpop.permute.xlu0 %3418 }
 0x1da   :  { %v8010_v61 = vpop.permute.xlu1 %3494  ;;  %9110 = vst [vmem:[#allocation12_spill] sm:$0xff] %v8012_v0 }
 0x1db   :  { %9109 = vst [vmem:[#allocation11_spill] sm:$0xff] %v8010_v61 }
 0x1dd   :  { %v8016_v5 = vpop.permute.xlu0 %3416 }
 0x1de   :  { %v8014_v4 = vpop.permute.xlu1 %2419  ;;  %9111 = vst [vmem:[#allocation13_spill] sm:$0xff] %v8016_v5 }
 0x1e1   :  { %v8020_v13 = vpop.permute.xlu0 %2495 }
 0x1e2   :  { %v8018_v10 = vpop.permute.xlu1 %2343 }
 0x1e5   :  { %v8024_v19 = vpop.permute.xlu0 %2647 }
 0x1e6   :  { %v8022_v17 = vpop.permute.xlu1 %2571  ;;  %9112 = vst [vmem:[#allocation14_spill] sm:$0xff] %v8024_v19 }
 0x1e7   :  { %3652 = vrot.lane.b32.xlu1 %v7726_v8, %s7443_s3 }
 0x1e9   :  { %v8028_v50 = vpop.permute.xlu0 %2799 }
 0x1ea   :  { %3574 = vrot.lane.b32.xlu0 %v7729_v9, %s7443_s3  ;;  %v8026_v34 = vpop.permute.xlu1 %2723  ;;  %9114 = vst [vmem:[#allocation16_spill] sm:$0xff] %v8028_v50 }
 0x1eb   :  { %9113 = vst [vmem:[#allocation15_spill] sm:$0xff] %v8026_v34 }
 0x1ed   :  { %v8030_v45 = vpop.permute.xlu0 %2951 }
 0x1ee   :  { %9115 = vst [vmem:[#allocation17_spill] sm:$0xff] %v8030_v45  ;;  %v8032_v61 = vpop.permute.xlu1 %2875 }
 0x1ef   :  { %9116 = vst [vmem:[#allocation18_spill] sm:$0xff] %v8032_v61 }
 0x1f2   :  { %v8034_v57 = vpop.permute.xlu1 %3027 }
 0x1f3   :  { %9117 = vst [vmem:[#allocation19_spill] sm:$0xff] %v8034_v57 }
 0x240   :  { %v1716_v0 = vpop.xlane.xlu0 %1715 }
 0x241   :  { %v1760_v5 = vsub.f32 %v7916_v60, %v1716_v0 }
 0x243   :  { %v1777_v31 = vmul.f32 1.442695, %v1760_v5 }
 0x244   :  { %v1713_v44 = vpop.xlane.xlu0 %1712 }
 0x245   :  { %7264 = vpow2.f32 %v1777_v31  ;;  %v1722_v25 = vpop.xlane.xlu1 %1721  ;;  %v1759_v37 = vsub.f32 %v7920_v1, %v1713_v44 }
 0x246   :  { %v1762_v24 = vsub.f32 %v7922_v3, %v1722_v25 }
 0x247   :  { %v1775_v22 = vmul.f32 1.442695, %v1759_v37 }
 0x248   :  { %v1781_v19 = vmul.f32 1.442695, %v1762_v24 }
 0x249   :  { %7266 = vpow2.f32 %v1775_v22  ;;  %v1719_v50 = vpop.xlane.xlu1 %1718 }
 0x24a   :  { %7268 = vpow2.f32 %v1781_v19  ;;  %v1761_v45 = vsub.f32 %v7928_v6, %v1719_v50  ;;  %v1725_v61 = vpop.xlane.xlu0 %1724 }
 0x24b   :  { %v1763_v57 = vsub.f32 %v7930_v12, %v1725_v61 }
 0x24c   :  { %v1779_v34 = vmul.f32 1.442695, %v1761_v45 }
 0x24d   :  { %v1783_v60 = vmul.f32 1.442695, %v1763_v57  ;;  %v1728_v0 = vpop.xlane.xlu1 %1727 }
 0x24e   :  { %7270 = vpow2.f32 %v1779_v34  ;;  %v1764_v31 = vsub.f32 %v7936_v16, %v1728_v0  ;;  %v1731_v5 = vpop.xlane.xlu0 %1730 }
 0x24f   :  { %v8042_v1 = vpop.eup %7264  ;;  %v1765_v3 = vsub.f32 %v7940_v23, %v1731_v5  ;;  %7272 = vpow2.f32 %v1783_v60 }
 0x250   :  { %v1785_v22 = vmul.f32 1.442695, %v1764_v31  ;;  %v1810_v24 = vsel %vm1710_vm4, %v8042_v1, 0.0 }
 0x251   :  { %v1787_v6 = vmul.f32 1.442695, %v1765_v3  ;;  %v1734_v25 = vpop.xlane.xlu1 %1733  ;;  %1811 = vadd.xlane.f32.xlu1 %v1810_v24 }
 0x252   :  { %7274 = vpow2.f32 %v1785_v22  ;;  %v1766_v12 = vsub.f32 %v7944_v28, %v1734_v25  ;;  %v1737_v37 = vpop.xlane.xlu0 %1736 }
 0x253   :  { %v8048_v34 = vpop.eup %7266  ;;  %v1767_v16 = vsub.f32 %v7948_v32, %v1737_v37  ;;  %7276 = vpow2.f32 %v1787_v6 }
 0x254   :  { %v8051_v44 = vpop.eup %7268  ;;  %v1789_v23 = vmul.f32 1.442695, %v1766_v12  ;;  %v1807_v45 = vsel %vm1710_vm4, %v8048_v34, 0.0 }
 0x255   :  { %v1791_v50 = vmul.f32 1.442695, %v1767_v16  ;;  %v1740_v57 = vpop.xlane.xlu1 %1739  ;;  %v1816_v61 = vsel %vm1710_vm4, %v8051_v44, 0.0  ;;  %1808 = vadd.xlane.f32.xlu0 %v1807_v45 }
 0x256   :  { %7278 = vpow2.f32 %v1789_v23  ;;  %v1768_v28 = vsub.f32 %v7952_v41, %v1740_v57  ;;  %1817 = vadd.xlane.f32.xlu1 %v1816_v61 }
 0x257   :  { %v1743_v19 = vpop.xlane.xlu0 %1742  ;;  %7280 = vpow2.f32 %v1791_v50 }
 0x258   :  { %v8058_v60 = vpop.eup %7270  ;;  %v1793_v32 = vmul.f32 1.442695, %v1768_v28  ;;  %v1769_v0 = vsub.f32 %v7956_v46, %v1743_v19 }
 0x259   :  { %v1746_v31 = vpop.xlane.xlu1 %1745  ;;  %v1813_v5 = vsel %vm1710_vm4, %v8058_v60, 0.0  ;;  %v8063_v3 = vpop.eup %7272 }
 0x25a   :  { %7282 = vpow2.f32 %v1793_v32  ;;  %v1795_v22 = vmul.f32 1.442695, %v1769_v0  ;;  %v1770_v24 = vsub.f32 %v7960_v54, %v1746_v31  ;;  %1814 = vadd.xlane.f32.xlu0 %v1813_v5  ;;  %v1819_v37 = vsel %vm1710_vm4, %v8063_v3, 0.0 }
 0x25c   :  { %v8066_v41 = vpop.eup %7274  ;;  %7284 = vpow2.f32 %v1795_v22  ;;  %v1797_v6 = vmul.f32 1.442695, %v1770_v24  ;;  %v1749_v25 = vpop.xlane.xlu0 %1748 }
 0x25d   :  { %v1771_v12 = vsub.f32 %v7964_v56, %v1749_v25  ;;  %v1822_v46 = vsel %vm1710_vm4, %v8066_v41, 0.0  ;;  %v8073_v16 = vpop.eup %7276 }
 0x25e   :  { %7286 = vpow2.f32 %v1797_v6  ;;  %v1752_v23 = vpop.xlane.xlu1 %1751  ;;  %1823 = vadd.xlane.f32.xlu1 %v1822_v46  ;;  %1820 = vadd.xlane.f32.xlu0 %v1819_v37  ;;  %v1825_v61 = vsel %vm1710_vm4, %v8073_v16, 0.0 }
 0x25f   :  { %v1799_v54 = vmul.f32 1.442695, %v1771_v12  ;;  %v1772_v45 = vsub.f32 %v7968_v2, %v1752_v23 }
 0x260   :  { %v8076_v50 = vpop.eup %7278 }
 0x261   :  { %7288 = vpow2.f32 %v1799_v54  ;;  %v1801_v57 = vmul.f32 1.442695, %v1772_v45  ;;  %v1828_v56 = vsel %vm1710_vm4, %v8076_v50, 0.0  ;;  %v8082_v28 = vpop.eup %7280  ;;  %v1755_v23 = vpop.xlane.xlu0 %1754 }
 0x262   :  { %1829 = vadd.xlane.f32.xlu1 %v1828_v56  ;;  %1826 = vadd.xlane.f32.xlu0 %v1825_v61  ;;  %v1831_v32 = vsel %vm1710_vm4, %v8082_v28, 0.0  ;;  %v1773_v45 = vsub.f32 %v7972_v7, %v1755_v23  ;;  %v9122_v23 = vld [vmem:[#allocation16_spill] sm:$0xff] }
 0x263   :  { %7290 = vpow2.f32 %v1801_v57  ;;  %v1758_v46 = vpop.xlane.xlu1 %1757 }
 0x264   :  { %v8084_v19 = vpop.eup %7282  ;;  %v1774_v37 = vsub.f32 %v7976_v15, %v1758_v46  ;;  %v1803_v57 = vmul.f32 1.442695, %v1773_v45  ;;  %v9121_v46 = vld [vmem:[#allocation18_spill] sm:$0xff]  ;;  %v9124_v45 = vld [vmem:[#allocation19_spill] sm:$0xff] }
 0x265   :  { %v1834_v2 = vsel %vm1710_vm4, %v8084_v19, 0.0 }
 0x266   :  { %v8090_v0 = vpop.eup %7284  ;;  %1835 = vadd.xlane.f32.xlu1 %v1834_v2  ;;  %1832 = vadd.xlane.f32.xlu0 %v1831_v32  ;;  %v1805_v54 = vmul.f32 1.442695, %v1774_v37 }
 0x267   :  { %v1837_v22 = vsel %vm1710_vm4, %v8090_v0, 0.0 }
 0x268   :  { %v8092_v31 = vpop.eup %7286  ;;  %7292 = vpow2.f32 %v1805_v54  ;;  %v9123_v54 = vld [vmem:[#allocation17_spill] sm:$0xff] }
 0x269   :  { %v1840_v5 = vsel %vm1710_vm4, %v8092_v31, 0.0  ;;  %7294 = vpow2.f32 %v1803_v57 }
 0x26a   :  { %1841 = vadd.xlane.f32.xlu1 %v1840_v5  ;;  %1838 = vadd.xlane.f32.xlu0 %v1837_v22 }
 0x26b   :  { %v8098_v24 = vpop.eup %7288 }
 0x26c   :  { %v1843_v25 = vsel %vm1710_vm4, %v8098_v24, 0.0 }
 0x26d   :  { %v8100_v6 = vpop.eup %7290 }
 0x26e   :  { %v1846_v12 = vsel %vm1710_vm4, %v8100_v6, 0.0  ;;  %1844 = vadd.xlane.f32.xlu0 %v1843_v25  ;;  %v9120_v25 = vld [vmem:[#allocation14_spill] sm:$0xff] }
 0x26f   :  { %1847 = vadd.xlane.f32.xlu1 %v1846_v12 }
 0x272   :  { %v8114_v56 = vpop.eup %7292 }
 0x273   :  { %v8118_v61 = vpop.eup %7294 }
 0x280   :  { %3650 = vrot.lane.b32.xlu1 %v7744_v14, %s7443_s3  ;;  %v1852_v14 = vsel %vm1710_vm4, %v8114_v56, 0.0 }
 0x284   :  { %3808 = vrot.lane.b32.xlu1 %v7760_v20, %s7443_s3  ;;  %3572 = vrot.lane.b32.xlu0 %v7738_v11, %s7443_s3  ;;  %v1849_v11 = vsel %vm1710_vm4, %v8118_v61, 0.0 }
 0x2a3   :  { %1853 = vadd.xlane.f32.xlu0 %v1852_v14 }
 0x2a8   :  { %1850 = vadd.xlane.f32.xlu1 %v1849_v11 }
 0x2b9   :  { %3806 = vrot.lane.b32.xlu1 %v7774_v26, %s7443_s3  ;;  %3730 = vrot.lane.b32.xlu0 %v7752_v18, %s7443_s3  ;;  %v8164_v26 = vpop.permute.xlu0 %3574 }
 0x2bd   :  { %3964 = vrot.lane.b32.xlu1 %v7790_v30, %s7443_s3  ;;  %3728 = vrot.lane.b32.xlu0 %v7765_v21, %s7443_s3  ;;  %v8158_v21 = vpop.permute.xlu1 %3652 }
 0x2c1   :  { %3962 = vrot.lane.b32.xlu1 %v7809_v42, %s7443_s3  ;;  %3886 = vrot.lane.b32.xlu0 %v7777_v27, %s7443_s3 }
 0x2c5   :  { %4120 = vrot.lane.b32.xlu1 %v7820_v47, %s7443_s3  ;;  %3884 = vrot.lane.b32.xlu0 %v7795_v33, %s7443_s3 }
 0x2c9   :  { %4118 = vrot.lane.b32.xlu1 %v7839_v55, %s7443_s3  ;;  %4042 = vrot.lane.b32.xlu0 %v7802_v40, %s7443_s3 }
 0x2cd   :  { %4276 = vrot.lane.b32.xlu1 %v7850_v58, %s7443_s3  ;;  %4040 = vrot.lane.b32.xlu0 %v7825_v51, %s7443_s3 }
 0x2d1   :  { %4274 = vrot.lane.b32.xlu1 %v7865_v35, %s7443_s3  ;;  %4198 = vrot.lane.b32.xlu0 %v7832_v52, %s7443_s3 }
 0x2d5   :  { %4604 = vrot.lane.b32.xlu1 %v7655_v39, %s7444_s18  ;;  %4196 = vrot.lane.b32.xlu0 %v7855_v59, %s7443_s3 }
 0x2d9   :  { %4756 = vrot.lane.b32.xlu1 %v7673_v49, %s7444_s18  ;;  %4528 = vrot.lane.b32.xlu0 %v7659_v43, %s7444_s18 }
 0x2dd   :  { %4832 = vrot.lane.b32.xlu1 %v7704_v63, %s7444_s18  ;;  %4680 = vrot.lane.b32.xlu0 %v7679_v53, %s7444_s18 }
 0x2de   :  { %v1812_v39 = vpop.xlane.xlu1 %1811 }
 0x2df   :  { %7296 = vrcp.f32 %v1812_v39 }
 0x2e1   :  { %4908 = vrot.lane.b32.xlu1 %v7701_v62, %s7444_s18  ;;  %4984 = vrot.lane.b32.xlu0 %v7729_v9, %s7444_s18 }
 0x2e2   :  { %v1809_v49 = vpop.xlane.xlu0 %1808 }
 0x2e3   :  { %v1818_v43 = vpop.xlane.xlu1 %1817  ;;  %7298 = vrcp.f32 %v1809_v49 }
 0x2e4   :  { %7300 = vrcp.f32 %v1818_v43 }
 0x2e5   :  { %5060 = vrot.lane.b32.xlu1 %v7726_v8, %s7444_s18  ;;  %5136 = vrot.lane.b32.xlu0 %v7752_v18, %s7444_s18  ;;  %v9118_v8 = vmov 0.0  }
 0x2e7   :  { %v1815_v53 = vpop.xlane.xlu0 %1814 }
 0x2e8   :  { %7302 = vrcp.f32 %v1815_v53 }
 0x2e9   :  { %v7297_v63 = vpop.eup %7296  ;;  %5212 = vrot.lane.b32.xlu1 %v7760_v20, %s7444_s18 }
 0x2ea   :  { %v1872_v62 = vmul.f32 %v7297_v63, %v8042_v1 }
 0x2eb   :  { %v1824_v33 = vpop.xlane.xlu1 %1823  ;;  %v1821_v9 = vpop.xlane.xlu0 %1820 }
 0x2ec   :  { %7304 = vrcp.f32 %v1824_v33  ;;  %6959 = vmatmul.mubr.msk.f32.vlgmr.msra.gmra.mrb[32].mxu1 %vm1710_vm4, %v1872_v62 }
 0x2ed   :  { %v7299_v42 = vpop.eup %7298  ;;  %7306 = vrcp.f32 %v1821_v9  ;;  %6967 = vmatpush3.msra.mxu1 %v7990_v29  ;;  %6968 = vmatprep.mubr.msk.f32.mxu1 %vm7441_vm2, %v9118_v8  ;;  %v9125_v9 = vld [vmem:[#allocation2_spill] sm:$0xff] }
 0x2ee   :  { %v7301_v18 = vpop.eup %7300  ;;  %6976 = vmatprep.subr.mxu1 %v9118_v8  ;;  %v1871_v51 = vmul.f32 %v7299_v42, %v8048_v34 }
 0x2ef   :  { %v1830_v20 = vpop.xlane.xlu1 %1829  ;;  %v1827_v55 = vpop.xlane.xlu0 %1826  ;;  %v1874_v59 = vmul.f32 %v7301_v18, %v8051_v44 }
 0x2f0   :  { %7308 = vrcp.f32 %v1830_v20  ;;  %6954 = vmatmul.mubr.msk.f32.vlgmr.msra.gmra.mrb[32].mxu0 %vm1710_vm4, %v1871_v51  ;;  %v9126_v20 = vld [vmem:[#allocation3_spill] sm:$0xff] }
 0x2f1   :  { %7310 = vrcp.f32 %v1827_v55  ;;  %6962 = vmatpush3.msra.mxu0 %v7996_v38  ;;  %6969 = vmatmul.mubr.msk.f32.vlgmr.msra.gmra.mrb[34].mxu1 %vm1710_vm4, %v1874_v59  ;;  %v9128_v55 = vld [vmem:[#allocation4_spill] sm:$0xff] }
 0x2f2   :  { %v7303_v35 = vpop.eup %7302  ;;  %6977 = vmatpush3.msra.mxu1 %v8002_v48  ;;  %6963 = vmatprep.mubr.msk.f32.mxu0 %vm7441_vm2, %v9118_v8 }
 0x2f3   :  { %v1836_v7 = vpop.xlane.xlu1 %1835  ;;  %v1833_v15 = vpop.xlane.xlu0 %1832  ;;  %6971 = vmatprep.subr.mxu0 %v9118_v8  ;;  %v1873_v29 = vmul.f32 %v7303_v35, %v8058_v60  ;;  %6978 = vmatprep.mubr.msk.f32.mxu1 %vm7441_vm2, %v9118_v8  ;;  %v9129_v35 = vld [vmem:[#allocation7_spill] sm:$0xff] }
 0x2f4   :  { %7312 = vrcp.f32 %v1836_v7  ;;  %6986 = vmatprep.subr.mxu1 %v9118_v8  ;;  %v9130_v7 = vld [vmem:[#allocation5_spill] sm:$0xff] }
 0x2f5   :  { %7314 = vrcp.f32 %v1833_v15  ;;  %6964 = vmatmul.mubr.msk.f32.vlgmr.msra.gmra.mrb[34].mxu0 %vm1710_vm4, %v1873_v29  ;;  %v9131_v15 = vld [vmem:[#allocation10_spill] sm:$0xff]  ;;  %v9132_v29 = vld [vmem:[#allocation8_spill] sm:$0xff] }
 0x2f6   :  { %v7305_v38 = vpop.eup %7304  ;;  %6972 = vmatpush3.msra.mxu0 %v8008_v36  ;;  %6973 = vmatprep.mubr.msk.f32.mxu0 %vm7441_vm2, %v9118_v8 }
 0x2f7   :  { %v7307_v48 = vpop.eup %7306  ;;  %v1842_v1 = vpop.xlane.xlu1 %1841  ;;  %6981 = vmatprep.subr.mxu0 %v9118_v8  ;;  %v1876_v44 = vmul.f32 %v7305_v38, %v8066_v41  ;;  %v9133_v38 = vld [vmem:[#allocation11_spill] sm:$0xff] }
 0x2f8   :  { %v1839_v34 = vpop.xlane.xlu0 %1838  ;;  %7316 = vrcp.f32 %v1842_v1  ;;  %v1875_v60 = vmul.f32 %v7307_v48, %v8063_v3  ;;  %v9134_v1 = vld [vmem:[#allocation9_spill] sm:$0xff] }
 0x2f9   :  { %7318 = vrcp.f32 %v1839_v34  ;;  %6979 = vmatmul.mubr.msk.f32.vlgmr.msra.gmra.mrb[36].mxu1 %vm1710_vm4, %v1876_v44  ;;  %v9135_v44 = vld [vmem:[#allocation12_spill] sm:$0xff] }
 0x2fa   :  { %v7309_v2 = vpop.eup %7308  ;;  %6974 = vmatmul.mubr.msk.f32.vlgmr.msra.gmra.mrb[36].mxu0 %vm1710_vm4, %v1875_v60  ;;  %6987 = vmatpush3.msra.mxu1 %v8014_v4  ;;  %v9136_v60 = vld [vmem:[#allocation13_spill] sm:$0xff] }
 0x2fb   :  { %v7311_v36 = vpop.eup %7310  ;;  %6982 = vmatpush3.msra.mxu0 %v8018_v10  ;;  %6983 = vmatprep.mubr.msk.f32.mxu0 %vm7441_vm2, %v9118_v8  ;;  %v1878_v41 = vmul.f32 %v7309_v2, %v8076_v50 }
 0x2fc   :  { %v1845_v32 = vpop.xlane.xlu0 %1844  ;;  %v1848_v5 = vpop.xlane.xlu1 %1847  ;;  %6988 = vmatprep.mubr.msk.f32.mxu1 %vm7441_vm2, %v9118_v8  ;;  %6991 = vmatprep.subr.mxu0 %v9118_v8  ;;  %v1877_v3 = vmul.f32 %v7311_v36, %v8073_v16 }
 0x2fd   :  { %7320 = vrcp.f32 %v1845_v32  ;;  %6996 = vmatprep.subr.mxu1 %v9118_v8  ;;  %6989 = vmatmul.mubr.msk.f32.vlgmr.msra.gmra.mrb[38].mxu1 %vm1710_vm4, %v1878_v41 }
 0x2fe   :  { %7322 = vrcp.f32 %v1848_v5  ;;  %v7313_v4 = vpop.eup %7312  ;;  %6984 = vmatmul.mubr.msk.f32.vlgmr.msra.gmra.mrb[38].mxu0 %vm1710_vm4, %v1877_v3  ;;  %6997 = vmatpush3.msra.mxu1 %v8022_v17 }
 0x2ff   :  { %v7315_v10 = vpop.eup %7314  ;;  %6992 = vmatpush3.msra.mxu0 %v8020_v13  ;;  %6993 = vmatprep.mubr.msk.f32.mxu0 %vm7441_vm2, %v9118_v8  ;;  %v1880_v50 = vmul.f32 %v7313_v4, %v8084_v19  ;;  %v9119_v13 = vld [vmem:[#allocation15_spill] sm:$0xff] }
 0x300   :  { %6998 = vmatprep.mubr.msk.f32.mxu1 %vm7441_vm2, %v9118_v8  ;;  %7001 = vmatprep.subr.mxu0 %v9118_v8  ;;  %v1879_v16 = vmul.f32 %v7315_v10, %v8082_v28 }
 0x301   :  { %7006 = vmatprep.subr.mxu1 %v9118_v8  ;;  %6999 = vmatmul.mubr.msk.f32.vlgmr.msra.gmra.mrb[40].mxu1 %vm1710_vm4, %v1880_v50 }
 0x302   :  { %v7317_v17 = vpop.eup %7316  ;;  %6994 = vmatmul.mubr.msk.f32.vlgmr.msra.gmra.mrb[40].mxu0 %vm1710_vm4, %v1879_v16  ;;  %7007 = vmatpush3.msra.mxu1 %v9119_v13 }
 0x303   :  { %v7319_v22 = vpop.eup %7318  ;;  %7002 = vmatpush3.msra.mxu0 %v9120_v25  ;;  %7003 = vmatprep.mubr.msk.f32.mxu0 %vm7441_vm2, %v9118_v8  ;;  %v1882_v19 = vmul.f32 %v7317_v17, %v8092_v31 }
 0x304   :  { %7008 = vmatprep.mubr.msk.f32.mxu1 %vm7441_vm2, %v9118_v8  ;;  %7011 = vmatprep.subr.mxu0 %v9118_v8  ;;  %v1881_v28 = vmul.f32 %v7319_v22, %v8090_v0 }
 0x305   :  { %7016 = vmatprep.subr.mxu1 %v9118_v8  ;;  %7009 = vmatmul.mubr.msk.f32.vlgmr.msra.gmra.mrb[42].mxu1 %vm1710_vm4, %v1882_v19 }
 0x306   :  { %7004 = vmatmul.mubr.msk.f32.vlgmr.msra.gmra.mrb[42].mxu0 %vm1710_vm4, %v1881_v28  ;;  %7017 = vmatpush3.msra.mxu1 %v9121_v46 }
 0x307   :  { %v7321_v12 = vpop.eup %7320  ;;  %7012 = vmatpush3.msra.mxu0 %v9122_v23  ;;  %7013 = vmatprep.mubr.msk.f32.mxu0 %vm7441_vm2, %v9118_v8 }
 0x308   :  { %v7323_v37 = vpop.eup %7322  ;;  %v1883_v31 = vmul.f32 %v7321_v12, %v8098_v24  ;;  %7018 = vmatprep.mubr.msk.f32.mxu1 %vm7441_vm2, %v9118_v8  ;;  %7021 = vmatprep.subr.mxu0 %v9118_v8  ;;  %v3651_v24 = vpop.permute.xlu1 %3650 }
 0x309   :  { %v1884_v0 = vmul.f32 %v7323_v37, %v8100_v6  ;;  %7026 = vmatprep.subr.mxu1 %v9118_v8  ;;  %v3573_v6 = vpop.permute.xlu0 %3572 }
 0x30a   :  { %7014 = vmatmul.mubr.msk.f32.vlgmr.msra.gmra.mrb[44].mxu0 %vm1710_vm4, %v1883_v31 }
 0x30b   :  { %7019 = vmatmul.mubr.msk.f32.vlgmr.msra.gmra.mrb[44].mxu1 %vm1710_vm4, %v1884_v0  ;;  %7022 = vmatpush3.msra.mxu0 %v9123_v54 }
 0x30c   :  { %7027 = vmatpush3.msra.mxu1 %v9124_v45  ;;  %7028 = vmatprep.mubr.msk.f32.mxu1 %vm7441_vm2, %v9118_v8  ;;  %v3809_v14 = vpop.permute.xlu1 %3808 }
 0x30d   :  { %7036 = vmatprep.subr.mxu1 %v9118_v8  ;;  %7023 = vmatprep.mubr.msk.f32.mxu0 %vm7441_vm2, %v9118_v8 }
 0x30e   :  { %7031 = vmatprep.subr.mxu0 %v9118_v8 }
 0x330   :  { %v1854_v57 = vpop.xlane.xlu0 %1853 }
 0x331   :  { %7324 = vrcp.f32 %v1854_v57 }
 0x334   :  { %v3731_v11 = vpop.permute.xlu0 %3730 }
 0x335   :  { %v1851_v39 = vpop.xlane.xlu1 %1850 }
 0x336   :  { %7326 = vrcp.f32 %v1851_v39 }
 0x338   :  { %v3729_v43 = vpop.permute.xlu0 %3728 }
 0x339   :  { %v3807_v49 = vpop.permute.xlu1 %3806 }
 0x33b   :  { %v7325_v53 = vpop.eup %7324 }
 0x33c   :  { %v1886_v63 = vmul.f32 %v7325_v53, %v8114_v56  ;;  %v3887_v33 = vpop.permute.xlu0 %3886  ;;  %v9127_v56 = vld [vmem:[#allocation6_spill] sm:$0xff] }
 0x33d   :  { %v3965_v62 = vpop.permute.xlu1 %3964 }
 0x33e   :  { %7029 = vmatmul.mubr.msk.f32.vlgmr.msra.gmra.mrb[46].mxu1 %vm1710_vm4, %v1886_v63 }
 0x33f   :  { %7037 = vmatpush3.xpose.msk.msra.mxu1 %vm493_vm3, %v9125_v9  ;;  %7038 = vmatprep.mubr.msk.f32.mxu1 %vm7441_vm2, %v9118_v8 }
 0x340   :  { %v7327_v42 = vpop.eup %7326  ;;  %7046 = vmatprep.subr.mxu1 %v9118_v8  ;;  %v3885_v59 = vpop.permute.xlu0 %3884 }
 0x341   :  { %v1885_v18 = vmul.f32 %v7327_v42, %v8118_v61  ;;  %v3963_v51 = vpop.permute.xlu1 %3962 }
 0x342   :  { %7039 = vmatmul.mubr.msk.f32.vlgmr.msra.gmra.mrb[48].mxu1 %vm493_vm3, %v9126_v20 }
 0x343   :  { %7024 = vmatmul.mubr.msk.f32.vlgmr.msra.gmra.mrb[46].mxu0 %vm1710_vm4, %v1885_v18  ;;  %7047 = vmatpush3.xpose.msk.msra.mxu1 %vm493_vm3, %v9127_v56 }
 0x344   :  { %7032 = vmatpush3.xpose.msk.msra.mxu0 %vm493_vm3, %v9128_v55  ;;  %7033 = vmatprep.mubr.msk.f32.mxu0 %vm7441_vm2, %v9118_v8  ;;  %v4043_v48 = vpop.permute.xlu0 %4042 }
 0x345   :  { %7041 = vmatprep.subr.mxu0 %v9118_v8  ;;  %7048 = vmatprep.mubr.msk.f32.mxu1 %vm7441_vm2, %v9118_v8  ;;  %v4121_v61 = vpop.permute.xlu1 %4120 }
 0x346   :  { %7056 = vmatprep.subr.mxu1 %v9118_v8  ;;  %7049 = vmatmul.mubr.msk.f32.vlgmr.msra.gmra.mrb[50].mxu1 %vm493_vm3, %v9129_v35 }
 0x347   :  { %7034 = vmatmul.mubr.msk.f32.vlgmr.msra.gmra.mrb[48].mxu0 %vm493_vm3, %v9130_v7  ;;  %7057 = vmatpush3.xpose.msk.msra.mxu1 %vm493_vm3, %v9131_v15 }
 0x348   :  { %7042 = vmatpush3.xpose.msk.msra.mxu0 %vm493_vm3, %v9132_v29  ;;  %7043 = vmatprep.mubr.msk.f32.mxu0 %vm7441_vm2, %v9118_v8 }
 0x349   :  { %7051 = vmatprep.subr.mxu0 %v9118_v8  ;;  %7058 = vmatprep.mubr.msk.f32.mxu1 %vm7441_vm2, %v9118_v8  ;;  %v4119_v34 = vpop.permute.xlu1 %4118 }
 0x34a   :  { %7066 = vmatprep.subr.mxu1 %v9118_v8  ;;  %7059 = vmatmul.mubr.msk.f32.vlgmr.msra.gmra.mrb[52].mxu1 %vm493_vm3, %v9133_v38 }
 0x34b   :  { %7044 = vmatmul.mubr.msk.f32.vlgmr.msra.gmra.mrb[50].mxu0 %vm493_vm3, %v9134_v1  ;;  %7067 = vmatpush3.xpose.msk.msra.mxu1 %vm493_vm3, %v8158_v21  ;;  %v4041_v21 = vpop.permute.xlu0 %4040 }
 0x34c   :  { %7052 = vmatpush3.xpose.msk.msra.mxu0 %vm493_vm3, %v9135_v44  ;;  %7053 = vmatprep.mubr.msk.f32.mxu0 %vm7441_vm2, %v9118_v8 }
 0x34d   :  { %7061 = vmatprep.subr.mxu0 %v9118_v8  ;;  %7068 = vmatprep.mubr.msk.f32.mxu1 %vm7441_vm2, %v9118_v8  ;;  %v4277_v2 = vpop.permute.xlu1 %4276 }
 0x34e   :  { %7076 = vmatprep.subr.mxu1 %v9118_v8  ;;  %7069 = vmatmul.mubr.msk.f32.vlgmr.msra.gmra.mrb[54].mxu1 %vm493_vm3, %v3651_v24 }
 0x34f   :  { %7054 = vmatmul.mubr.msk.f32.vlgmr.msra.gmra.mrb[52].mxu0 %vm493_vm3, %v9136_v60  ;;  %7077 = vmatpush3.xpose.msk.msra.mxu1 %vm493_vm3, %v3809_v14 }
 0x350   :  { %7062 = vmatpush3.xpose.msk.msra.mxu0 %vm493_vm3, %v8164_v26  ;;  %7063 = vmatprep.mubr.msk.f32.mxu0 %vm7441_vm2, %v9118_v8  ;;  %v4199_v26 = vpop.permute.xlu0 %4198 }
 0x351   :  { %7071 = vmatprep.subr.mxu0 %v9118_v8  ;;  %7078 = vmatprep.mubr.msk.f32.mxu1 %vm7441_vm2, %v9118_v8  ;;  %v4275_v36 = vpop.permute.xlu1 %4274 }
 0x352   :  { %7086 = vmatprep.subr.mxu1 %v9118_v8  ;;  %7079 = vmatmul.mubr.msk.f32.vlgmr.msra.gmra.mrb[56].mxu1 %vm493_vm3, %v3807_v49 }
 0x353   :  { %7064 = vmatmul.mubr.msk.f32.vlgmr.msra.gmra.mrb[54].mxu0 %vm493_vm3, %v3573_v6  ;;  %7087 = vmatpush3.xpose.msk.msra.mxu1 %vm493_vm3, %v3965_v62 }
 0x354   :  { %7072 = vmatpush3.xpose.msk.msra.mxu0 %vm493_vm3, %v3731_v11  ;;  %7073 = vmatprep.mubr.msk.f32.mxu0 %vm7441_vm2, %v9118_v8  ;;  %v4197_v32 = vpop.permute.xlu0 %4196 }
 0x355   :  { %7081 = vmatprep.subr.mxu0 %v9118_v8  ;;  %7088 = vmatprep.mubr.msk.f32.mxu1 %vm7441_vm2, %v9118_v8  ;;  %v4605_v41 = vpop.permute.xlu1 %4604 }
 0x356   :  { %7096 = vmatprep.subr.mxu1 %v9118_v8  ;;  %7089 = vmatmul.mubr.msk.f32.vlgmr.msra.gmra.mrb[58].mxu1 %vm493_vm3, %v3963_v51 }
 0x357   :  { %7074 = vmatmul.mubr.msk.f32.vlgmr.msra.gmra.mrb[56].mxu0 %vm493_vm3, %v3729_v43  ;;  %7097 = vmatpush3.xpose.msk.msra.mxu1 %vm493_vm3, %v4121_v61 }
 0x358   :  { %7082 = vmatpush3.xpose.msk.msra.mxu0 %vm493_vm3, %v3887_v33  ;;  %7083 = vmatprep.mubr.msk.f32.mxu0 %vm7441_vm2, %v9118_v8  ;;  %v4529_v5 = vpop.permute.xlu0 %4528 }
 0x359   :  { %7091 = vmatprep.subr.mxu0 %v9118_v8  ;;  %7098 = vmatprep.mubr.msk.f32.mxu1 %vm7441_vm2, %v9118_v8 }
 0x35a   :  { %7106 = vmatprep.subr.mxu1 %v9118_v8  ;;  %7099 = vmatmul.mubr.msk.f32.vlgmr.msra.gmra.mrb[60].mxu1 %vm493_vm3, %v4119_v34 }
 0x35b   :  { %7084 = vmatmul.mubr.msk.f32.vlgmr.msra.gmra.mrb[58].mxu0 %vm493_vm3, %v3885_v59  ;;  %7107 = vmatpush3.xpose.msk.msra.mxu1 %vm493_vm3, %v4277_v2 }
 0x35c   :  { %7092 = vmatpush3.xpose.msk.msra.mxu0 %vm493_vm3, %v4043_v48  ;;  %7093 = vmatprep.mubr.msk.f32.mxu0 %vm7441_vm2, %v9118_v8 }
 0x35d   :  { %7101 = vmatprep.subr.mxu0 %v9118_v8  ;;  %7108 = vmatprep.mubr.msk.f32.mxu1 %vm7441_vm2, %v9118_v8 }
 0x35e   :  { %7116 = vmatprep.subr.mxu1 %v9118_v8  ;;  %7109 = vmatmul.mubr.msk.f32.vlgmr.msra.gmra.mrb[62].mxu1 %vm493_vm3, %v4275_v36 }
 0x35f   :  { %7094 = vmatmul.mubr.msk.f32.vlgmr.msra.gmra.mrb[60].mxu0 %vm493_vm3, %v4041_v21  ;;  %7117 = vmatpush3.msra.mxu1 %v4605_v41 }
 0x360   :  { %7102 = vmatpush3.xpose.msk.msra.mxu0 %vm493_vm3, %v4199_v26  ;;  %7103 = vmatprep.mubr.msk.f32.mxu0 %vm7441_vm2, %v9118_v8 }
 0x361   :  { %7111 = vmatprep.subr.mxu0 %v9118_v8  ;;  %7118 = vmatprep.mubr.msk.f32.mxu1 %vm7441_vm2, %v9118_v8 }
 0x362   :  { %7126 = vmatprep.subr.mxu1 %v9118_v8 }
 0x363   :  { %7104 = vmatmul.mubr.msk.f32.vlgmr.msra.gmra.mrb[62].mxu0 %vm493_vm3, %v4197_v32 }
 0x364   :  { %7112 = vmatpush3.msra.mxu0 %v4529_v5  ;;  %7113 = vmatprep.mubr.msk.f32.mxu0 %vm7441_vm2, %v9118_v8 }
 0x365   :  { %7121 = vmatprep.subr.mxu0 %v9118_v8 }
 0x3bf   :  { %v8364_v3 = vpop.f32.mrb[32].mxu1 }
 0x3c0   :  { %v6960_v4 = vpop.f32.mrb[33].mxu1 }
 0x3c3   :  { %v8366_v10 = vpop.f32.mrb[32].mxu0 }
 0x3c4   :  { %v8368_v50 = vpop.f32.mrb[34].mxu1  ;;  %v6955_v16 = vpop.f32.mrb[33].mxu0 }
 0x3c5   :  { %v6970_v17 = vpop.f32.mrb[35].mxu1 }
 0x3c8   :  { %v8370_v13 = vpop.f32.mrb[34].mxu0 }
 0x3c9   :  { %v6965_v22 = vpop.f32.mrb[35].mxu0 }
 0x3cc   :  { %v8372_v25 = vpop.f32.mrb[36].mxu1 }
 0x3cd   :  { %v8374_v19 = vpop.f32.mrb[36].mxu0  ;;  %v6980_v28 = vpop.f32.mrb[37].mxu1 }
 0x3ce   :  { %v6975_v12 = vpop.f32.mrb[37].mxu0 }
 0x3d0   :  { %v8376_v46 = vpop.f32.mrb[38].mxu1 }
 0x3d1   :  { %v8378_v37 = vpop.f32.mrb[38].mxu0  ;;  %v6990_v23 = vpop.f32.mrb[39].mxu1 }
 0x3d2   :  { %v6985_v31 = vpop.f32.mrb[39].mxu0 }
 0x3d4   :  { %v8380_v0 = vpop.f32.mrb[40].mxu1 }
 0x3d5   :  { %v8382_v54 = vpop.f32.mrb[40].mxu0  ;;  %v7000_v45 = vpop.f32.mrb[41].mxu1 }
 0x3d6   :  { %v6995_v24 = vpop.f32.mrb[41].mxu0 }
 0x3d8   :  { %v8384_v6 = vpop.f32.mrb[42].mxu1 }
 0x3d9   :  { %v8386_v57 = vpop.f32.mrb[42].mxu0  ;;  %v7010_v14 = vpop.f32.mrb[43].mxu1 }
 0x3da   :  { %v7005_v11 = vpop.f32.mrb[43].mxu0 }
 0x3dd   :  { %v8388_v39 = vpop.f32.mrb[44].mxu0 }
 0x3de   :  { %v8390_v49 = vpop.f32.mrb[44].mxu1  ;;  %v7015_v43 = vpop.f32.mrb[45].mxu0 }
 0x3df   :  { %v7020_v53 = vpop.f32.mrb[45].mxu1 }
 0x411   :  { %v8392_v63 = vpop.f32.mrb[46].mxu1 }
 0x412   :  { %v7030_v62 = vpop.f32.mrb[47].mxu1 }
 0x415   :  { %v8394_v33 = vpop.f32.mrb[48].mxu1 }
 0x416   :  { %v8396_v9 = vpop.f32.mrb[46].mxu0  ;;  %v7040_v42 = vpop.f32.mrb[49].mxu1  ;;  %v4355_v18 = vsel %vm1710_vm4, %v8394_v33, -inf }
 0x417   :  { %v7025_v51 = vpop.f32.mrb[47].mxu0  ;;  %4356 = vmax.xlane.f32.xlu1 %v4355_v18 }
 0x419   :  { %v8400_v20 = vpop.f32.mrb[50].mxu1 }
 0x41a   :  { %v8402_v56 = vpop.f32.mrb[48].mxu0  ;;  %v7050_v55 = vpop.f32.mrb[51].mxu1  ;;  %v4361_v48 = vsel %vm1710_vm4, %v8400_v20, -inf }
 0x41b   :  { %v7035_v59 = vpop.f32.mrb[49].mxu0  ;;  %v4352_v61 = vsel %vm1710_vm4, %v8402_v56, -inf }
 0x41c   :  { %4353 = vmax.xlane.f32.xlu0 %v4352_v61 }
 0x41d   :  { %v8406_v35 = vpop.f32.mrb[52].mxu1 }
 0x41e   :  { %v8408_v7 = vpop.f32.mrb[50].mxu0  ;;  %v7060_v15 = vpop.f32.mrb[53].mxu1  ;;  %v4367_v29 = vsel %vm1710_vm4, %v8406_v35, -inf }
 0x41f   :  { %v7045_v38 = vpop.f32.mrb[51].mxu0  ;;  %4368 = vmax.xlane.f32.xlu1 %v4367_v29  ;;  %v4358_v2 = vsel %vm1710_vm4, %v8408_v7, -inf }
 0x420   :  { %4362 = vmax.xlane.f32.xlu0 %v4361_v48  ;;  %v8468_v38 = vpop.permute.xlu1 %4756 }
 0x421   :  { %v8414_v1 = vpop.f32.mrb[54].mxu1 }
 0x422   :  { %v8416_v34 = vpop.f32.mrb[52].mxu0  ;;  %v7070_v44 = vpop.f32.mrb[55].mxu1  ;;  %v4373_v60 = vsel %vm1710_vm4, %v8414_v1, -inf }
 0x423   :  { %v7055_v21 = vpop.f32.mrb[53].mxu0  ;;  %4374 = vmax.xlane.f32.xlu1 %v4373_v60  ;;  %v4364_v4 = vsel %vm1710_vm4, %v8416_v34, -inf  ;;  %v8474_v60 = vpop.permute.xlu0 %4680 }
 0x424   :  { %4359 = vmax.xlane.f32.xlu0 %v4358_v2  ;;  %v8470_v48 = vpop.permute.xlu1 %4832 }
 0x425   :  { %v8422_v26 = vpop.f32.mrb[56].mxu1 }
 0x426   :  { %v8424_v36 = vpop.f32.mrb[54].mxu0  ;;  %v7080_v32 = vpop.f32.mrb[57].mxu1  ;;  %v4379_v41 = vsel %vm1710_vm4, %v8422_v26, -inf }
 0x427   :  { %v7065_v5 = vpop.f32.mrb[55].mxu0  ;;  %4380 = vmax.xlane.f32.xlu1 %v4379_v41  ;;  %v4370_v23 = vsel %vm1710_vm4, %v8424_v36, -inf }
 0x428   :  { %4365 = vmax.xlane.f32.xlu0 %v4364_v4  ;;  %v8472_v44 = vpop.permute.xlu1 %4908 }
 0x429   :  { %v8430_v16 = vpop.f32.mrb[58].mxu1 }
 0x42a   :  { %v8432_v17 = vpop.f32.mrb[56].mxu0  ;;  %v7090_v22 = vpop.f32.mrb[59].mxu1  ;;  %v4385_v28 = vsel %vm1710_vm4, %v8430_v16, -inf }
 0x42b   :  { %v7075_v12 = vpop.f32.mrb[57].mxu0  ;;  %4386 = vmax.xlane.f32.xlu1 %v4385_v28  ;;  %v4376_v43 = vsel %vm1710_vm4, %v8432_v17, -inf }
 0x42c   :  { %4371 = vmax.xlane.f32.xlu0 %v4370_v23  ;;  %v8476_v21 = vpop.permute.xlu1 %5060 }
 0x42d   :  { %v8438_v31 = vpop.f32.mrb[60].mxu1 }
 0x42e   :  { %v8440_v45 = vpop.f32.mrb[58].mxu0  ;;  %v7100_v24 = vpop.f32.mrb[61].mxu1  ;;  %v4391_v14 = vsel %vm1710_vm4, %v8438_v31, -inf }
 0x42f   :  { %v7085_v11 = vpop.f32.mrb[59].mxu0  ;;  %4392 = vmax.xlane.f32.xlu1 %v4391_v14  ;;  %v4382_v55 = vsel %vm1710_vm4, %v8440_v45, -inf }
 0x430   :  { %4377 = vmax.xlane.f32.xlu0 %v4376_v43  ;;  %v8480_v2 = vpop.permute.xlu1 %5212 }
 0x431   :  { %v8446_v53 = vpop.f32.mrb[62].mxu1 }
 0x432   :  { %v8448_v62 = vpop.f32.mrb[60].mxu0  ;;  %v7110_v42 = vpop.f32.mrb[63].mxu1  ;;  %v4397_v18 = vsel %vm1710_vm4, %v8446_v53, -inf }
 0x433   :  { %v7095_v51 = vpop.f32.mrb[61].mxu0  ;;  %4398 = vmax.xlane.f32.xlu1 %v4397_v18  ;;  %v4388_v15 = vsel %vm1710_vm4, %v8448_v62, -inf }
 0x434   :  { %4383 = vmax.xlane.f32.xlu0 %v4382_v55 }
 0x436   :  { %v8454_v59 = vpop.f32.mrb[62].mxu0 }
 0x437   :  { %v7105_v61 = vpop.f32.mrb[63].mxu0  ;;  %v4394_v29 = vsel %vm1710_vm4, %v8454_v59, -inf }
 0x438   :  { %4389 = vmax.xlane.f32.xlu0 %v4388_v15 }
 0x43c   :  { %4395 = vmax.xlane.f32.xlu0 %v4394_v29 }
 0x444   :  { %5364 = vrot.lane.b32.xlu1 %v7790_v30, %s7444_s18  ;;  %v8478_v30 = vpop.permute.xlu0 %4984 }
 0x448   :  { %5516 = vrot.lane.b32.xlu1 %v7820_v47, %s7444_s18  ;;  %v8482_v32 = vpop.permute.xlu0 %5136 }
 0x452   :  { %5288 = vrot.lane.b32.xlu0 %v7777_v27, %s7444_s18 }
 0x456   :  { %5440 = vrot.lane.b32.xlu0 %v7802_v40, %s7444_s18 }
 0x4a4   :  { %v4357_v47 = vpop.xlane.xlu1 %4356 }
 0x4a5   :  { %v4401_v27 = vsub.f32 %v8394_v33, %v4357_v47 }
 0x4a7   :  { %v4418_v40 = vmul.f32 1.442695, %v4401_v27 }
 0x4a9   :  { %7328 = vpow2.f32 %v4418_v40  ;;  %v4354_v41 = vpop.xlane.xlu0 %4353 }
 0x4aa   :  { %v4400_v5 = vsub.f32 %v8402_v56, %v4354_v41 }
 0x4ac   :  { %v4416_v4 = vmul.f32 1.442695, %v4400_v5  ;;  %v4369_v22 = vpop.xlane.xlu1 %4368 }
 0x4ad   :  { %v4405_v28 = vsub.f32 %v8406_v35, %v4369_v22  ;;  %v4363_v12 = vpop.xlane.xlu0 %4362 }
 0x4ae   :  { %7330 = vpow2.f32 %v4416_v4  ;;  %v4403_v23 = vsub.f32 %v8400_v20, %v4363_v12 }
 0x4af   :  { %v4426_v24 = vmul.f32 1.442695, %v4405_v28 }
 0x4b0   :  { %v4422_v14 = vmul.f32 1.442695, %v4403_v23  ;;  %v4375_v11 = vpop.xlane.xlu1 %4374 }
 0x4b1   :  { %v4407_v43 = vsub.f32 %v8414_v1, %v4375_v11  ;;  %v4360_v42 = vpop.xlane.xlu0 %4359 }
 0x4b2   :  { %7332 = vpow2.f32 %v4422_v14  ;;  %v4402_v33 = vsub.f32 %v8408_v7, %v4360_v42 }
 0x4b3   :  { %v8490_v18 = vpop.eup %7328  ;;  %7334 = vpow2.f32 %v4426_v24  ;;  %v4430_v56 = vmul.f32 1.442695, %v4407_v43 }
 0x4b4   :  { %v4420_v51 = vmul.f32 1.442695, %v4402_v33  ;;  %v4381_v55 = vpop.xlane.xlu1 %4380  ;;  %v4451_v35 = vsel %vm1710_vm4, %v8490_v18, 0.0 }
 0x4b5   :  { %v4409_v20 = vsub.f32 %v8422_v26, %v4381_v55  ;;  %v4366_v61 = vpop.xlane.xlu0 %4365  ;;  %4452 = vadd.xlane.f32.xlu1 %v4451_v35 }
 0x4b6   :  { %7336 = vpow2.f32 %v4420_v51  ;;  %v4404_v1 = vsub.f32 %v8416_v34, %v4366_v61 }
 0x4b7   :  { %7338 = vpow2.f32 %v4430_v56  ;;  %v4434_v7 = vmul.f32 1.442695, %v4409_v20 }
 0x4b8   :  { %v8496_v15 = vpop.eup %7330  ;;  %v4424_v29 = vmul.f32 1.442695, %v4404_v1  ;;  %v4387_v47 = vpop.xlane.xlu1 %4386 }
 0x4b9   :  { %v4411_v27 = vsub.f32 %v8430_v16, %v4387_v47  ;;  %v4372_v40 = vpop.xlane.xlu0 %4371  ;;  %v4448_v41 = vsel %vm1710_vm4, %v8496_v15, 0.0 }
 0x4ba   :  { %7340 = vpow2.f32 %v4424_v29  ;;  %v4406_v26 = vsub.f32 %v8424_v36, %v4372_v40  ;;  %4449 = vadd.xlane.f32.xlu0 %v4448_v41 }
 0x4bb   :  { %7342 = vpow2.f32 %v4434_v7  ;;  %v4438_v34 = vmul.f32 1.442695, %v4411_v27 }
 0x4bc   :  { %v8502_v5 = vpop.eup %7332  ;;  %v4428_v4 = vmul.f32 1.442695, %v4406_v26  ;;  %v4393_v22 = vpop.xlane.xlu1 %4392 }
 0x4bd   :  { %v4413_v28 = vsub.f32 %v8438_v31, %v4393_v22  ;;  %v4378_v12 = vpop.xlane.xlu0 %4377  ;;  %v4457_v16 = vsel %vm1710_vm4, %v8502_v5, 0.0  ;;  %v8507_v23 = vpop.eup %7334 }
 0x4be   :  { %7344 = vpow2.f32 %v4428_v4  ;;  %v4408_v24 = vsub.f32 %v8432_v17, %v4378_v12  ;;  %4458 = vadd.xlane.f32.xlu1 %v4457_v16  ;;  %v4463_v31 = vsel %vm1710_vm4, %v8507_v23, 0.0 }
 0x4bf   :  { %7346 = vpow2.f32 %v4438_v34  ;;  %v4442_v14 = vmul.f32 1.442695, %v4413_v28 }
 0x4c0   :  { %v8510_v36 = vpop.eup %7336  ;;  %v4432_v11 = vmul.f32 1.442695, %v4408_v24  ;;  %v4399_v43 = vpop.xlane.xlu1 %4398 }
 0x4c1   :  { %v4384_v42 = vpop.xlane.xlu0 %4383  ;;  %v4454_v33 = vsel %vm1710_vm4, %v8510_v36, 0.0  ;;  %v8516_v56 = vpop.eup %7338  ;;  %v4415_v55 = vsub.f32 %v8446_v53, %v4399_v43 }
 0x4c2   :  { %7348 = vpow2.f32 %v4432_v11  ;;  %v4410_v51 = vsub.f32 %v8440_v45, %v4384_v42  ;;  %4464 = vadd.xlane.f32.xlu1 %v4463_v31  ;;  %4455 = vadd.xlane.f32.xlu0 %v4454_v33  ;;  %v4469_v61 = vsel %vm1710_vm4, %v8516_v56, 0.0 }
 0x4c3   :  { %7350 = vpow2.f32 %v4442_v14  ;;  %v4446_v47 = vmul.f32 1.442695, %v4415_v55 }
 0x4c4   :  { %v8519_v17 = vpop.eup %7340  ;;  %v4436_v35 = vmul.f32 1.442695, %v4410_v51  ;;  %v8568_v51 = vpop.permute.xlu1 %5364 }
 0x4c5   :  { %v4390_v20 = vpop.xlane.xlu0 %4389  ;;  %v4460_v1 = vsel %vm1710_vm4, %v8519_v17, 0.0  ;;  %v8526_v7 = vpop.eup %7342 }
 0x4c6   :  { %7352 = vpow2.f32 %v4436_v35  ;;  %v4412_v45 = vsub.f32 %v8448_v62, %v4390_v20  ;;  %4470 = vadd.xlane.f32.xlu1 %v4469_v61  ;;  %4461 = vadd.xlane.f32.xlu0 %v4460_v1  ;;  %v4475_v40 = vsel %vm1710_vm4, %v8526_v7, 0.0 }
 0x4c8   :  { %v8529_v29 = vpop.eup %7344  ;;  %v4440_v27 = vmul.f32 1.442695, %v4412_v45  ;;  %v8572_v35 = vpop.permute.xlu1 %5516 }
 0x4c9   :  { %v4396_v53 = vpop.xlane.xlu0 %4395  ;;  %v4466_v41 = vsel %vm1710_vm4, %v8529_v29, 0.0  ;;  %v8535_v26 = vpop.eup %7346 }
 0x4ca   :  { %7354 = vpow2.f32 %v4440_v27  ;;  %v4414_v34 = vsub.f32 %v8454_v59, %v4396_v53  ;;  %4476 = vadd.xlane.f32.xlu1 %v4475_v40  ;;  %4467 = vadd.xlane.f32.xlu0 %v4466_v41  ;;  %v4481_v22 = vsel %vm1710_vm4, %v8535_v26, 0.0 }
 0x4cb   :  { %7356 = vpow2.f32 %v4446_v47 }
 0x4cc   :  { %v8538_v62 = vpop.eup %7348  ;;  %v4444_v4 = vmul.f32 1.442695, %v4414_v34 }
 0x4cd   :  { %v4472_v28 = vsel %vm1710_vm4, %v8538_v62, 0.0  ;;  %v8544_v12 = vpop.eup %7350  ;;  %v8570_v55 = vpop.permute.xlu0 %5288 }
 0x4ce   :  { %7358 = vpow2.f32 %v4444_v4  ;;  %4482 = vadd.xlane.f32.xlu1 %v4481_v22  ;;  %4473 = vadd.xlane.f32.xlu0 %v4472_v28  ;;  %v4487_v59 = vsel %vm1710_vm4, %v8544_v12, 0.0 }
 0x4d0   :  { %v8546_v16 = vpop.eup %7352 }
 0x4d1   :  { %v4478_v24 = vsel %vm1710_vm4, %v8546_v16, 0.0  ;;  %v8574_v61 = vpop.permute.xlu0 %5440 }
 0x4d2   :  { %4488 = vadd.xlane.f32.xlu1 %v4487_v59  ;;  %4479 = vadd.xlane.f32.xlu0 %v4478_v24 }
 0x4d4   :  { %v8552_v14 = vpop.eup %7354 }
 0x4d5   :  { %v4484_v11 = vsel %vm1710_vm4, %v8552_v14, 0.0  ;;  %v8556_v43 = vpop.eup %7356 }
 0x4d6   :  { %4485 = vadd.xlane.f32.xlu0 %v4484_v11  ;;  %v4493_v31 = vsel %vm1710_vm4, %v8556_v43, 0.0 }
 0x4d8   :  { %v8558_v42 = vpop.eup %7358 }
 0x4d9   :  { %v4490_v33 = vsel %vm1710_vm4, %v8558_v42, 0.0 }
 0x4da   :  { %4494 = vadd.xlane.f32.xlu0 %v4493_v31  ;;  %4491 = vadd.xlane.f32.xlu1 %v4490_v33 }
 0x4eb   :  { %5668 = vrot.lane.b32.xlu1 %v7850_v58, %s7444_s18 }
 0x4f0   :  { %5592 = vrot.lane.b32.xlu0 %v7832_v52, %s7444_s18 }
 0x542   :  { %v4453_v20 = vpop.xlane.xlu1 %4452 }
 0x543   :  { %7360 = vrcp.f32 %v4453_v20 }
 0x547   :  { %v4450_v1 = vpop.xlane.xlu0 %4449 }
 0x548   :  { %7362 = vrcp.f32 %v4450_v1 }
 0x54b   :  { %v4459_v45 = vpop.xlane.xlu1 %4458 }
 0x54c   :  { %7364 = vrcp.f32 %v4459_v45 }
 0x54d   :  { %v7361_v47 = vpop.eup %7360 }
 0x54e   :  { %v4513_v58 = vmul.f32 %v7361_v47, %v8490_v18 }
 0x54f   :  { %v4465_v27 = vpop.xlane.xlu1 %4464  ;;  %v4456_v53 = vpop.xlane.xlu0 %4455 }
 0x550   :  { %7366 = vrcp.f32 %v4465_v27  ;;  %7119 = vmatmul.mubr.msk.f32.vlgmr.msra.gmra.mrb[64].mxu1 %vm1710_vm4, %v4513_v58 }
 0x551   :  { %7368 = vrcp.f32 %v4456_v53  ;;  %7127 = vmatpush3.msra.mxu1 %v8468_v38  ;;  %7128 = vmatprep.mubr.msk.f32.mxu1 %vm7441_vm2, %v9118_v8 }
 0x552   :  { %v7363_v52 = vpop.eup %7362  ;;  %7136 = vmatprep.subr.mxu1 %v9118_v8 }
 0x553   :  { %v4512_v40 = vmul.f32 %v7363_v52, %v8496_v15  ;;  %v4471_v41 = vpop.xlane.xlu1 %4470  ;;  %v4462_v34 = vpop.xlane.xlu0 %4461 }
 0x554   :  { %7370 = vrcp.f32 %v4471_v41 }
 0x555   :  { %7372 = vrcp.f32 %v4462_v34  ;;  %7114 = vmatmul.mubr.msk.f32.vlgmr.msra.gmra.mrb[64].mxu0 %vm1710_vm4, %v4512_v40 }
 0x556   :  { %v7365_v18 = vpop.eup %7364  ;;  %7122 = vmatpush3.msra.mxu0 %v8474_v60  ;;  %7123 = vmatprep.mubr.msk.f32.mxu0 %vm7441_vm2, %v9118_v8 }
 0x557   :  { %v4515_v38 = vmul.f32 %v7365_v18, %v8502_v5  ;;  %v4477_v4 = vpop.xlane.xlu1 %4476  ;;  %v4468_v22 = vpop.xlane.xlu0 %4467  ;;  %7131 = vmatprep.subr.mxu0 %v9118_v8 }
 0x558   :  { %7374 = vrcp.f32 %v4477_v4 }
 0x559   :  { %7376 = vrcp.f32 %v4468_v22  ;;  %7129 = vmatmul.mubr.msk.f32.vlgmr.msra.gmra.mrb[66].mxu1 %vm1710_vm4, %v4515_v38 }
 0x55a   :  { %v7367_v15 = vpop.eup %7366  ;;  %7137 = vmatpush3.msra.mxu1 %v8472_v44  ;;  %7138 = vmatprep.mubr.msk.f32.mxu1 %vm7441_vm2, %v9118_v8 }
 0x55b   :  { %v7369_v60 = vpop.eup %7368  ;;  %v4517_v28 = vmul.f32 %v7367_v15, %v8507_v23  ;;  %v4483_v59 = vpop.xlane.xlu1 %4482  ;;  %7146 = vmatprep.subr.mxu1 %v9118_v8 }
 0x55c   :  { %v4474_v24 = vpop.xlane.xlu0 %4473  ;;  %v4514_v5 = vmul.f32 %v7369_v60, %v8510_v36  ;;  %7378 = vrcp.f32 %v4483_v59 }
 0x55d   :  { %7380 = vrcp.f32 %v4474_v24  ;;  %7139 = vmatmul.mubr.msk.f32.vlgmr.msra.gmra.mrb[68].mxu1 %vm1710_vm4, %v4517_v28 }
 0x55e   :  { %v7371_v11 = vpop.eup %7370  ;;  %7124 = vmatmul.mubr.msk.f32.vlgmr.msra.gmra.mrb[66].mxu0 %vm1710_vm4, %v4514_v5  ;;  %7147 = vmatpush3.msra.mxu1 %v8476_v21 }
 0x55f   :  { %v7373_v44 = vpop.eup %7372  ;;  %v4519_v31 = vmul.f32 %v7371_v11, %v8516_v56  ;;  %7132 = vmatpush3.msra.mxu0 %v8470_v48  ;;  %v4489_v23 = vpop.xlane.xlu1 %4488  ;;  %7133 = vmatprep.mubr.msk.f32.mxu0 %vm7441_vm2, %v9118_v8 }
 0x560   :  { %v4480_v33 = vpop.xlane.xlu0 %4479  ;;  %v4516_v36 = vmul.f32 %v7373_v44, %v8519_v17  ;;  %7382 = vrcp.f32 %v4489_v23  ;;  %7141 = vmatprep.subr.mxu0 %v9118_v8  ;;  %7148 = vmatprep.mubr.msk.f32.mxu1 %vm7441_vm2, %v9118_v8 }
 0x561   :  { %7384 = vrcp.f32 %v4480_v33  ;;  %7156 = vmatprep.subr.mxu1 %v9118_v8  ;;  %7149 = vmatmul.mubr.msk.f32.vlgmr.msra.gmra.mrb[70].mxu1 %vm1710_vm4, %v4519_v31 }
 0x562   :  { %v7375_v21 = vpop.eup %7374  ;;  %7134 = vmatmul.mubr.msk.f32.vlgmr.msra.gmra.mrb[68].mxu0 %vm1710_vm4, %v4516_v36  ;;  %7157 = vmatpush3.msra.mxu1 %v8480_v2 }
 0x563   :  { %v7377_v48 = vpop.eup %7376  ;;  %v4521_v56 = vmul.f32 %v7375_v21, %v8526_v7  ;;  %7142 = vmatpush3.msra.mxu0 %v8478_v30  ;;  %7143 = vmatprep.mubr.msk.f32.mxu0 %vm7441_vm2, %v9118_v8 }
 0x564   :  { %v4486_v17 = vpop.xlane.xlu0 %4485  ;;  %v4518_v20 = vmul.f32 %v7377_v48, %v8529_v29  ;;  %7151 = vmatprep.subr.mxu0 %v9118_v8  ;;  %7158 = vmatprep.mubr.msk.f32.mxu1 %vm7441_vm2, %v9118_v8 }
 0x565   :  { %7386 = vrcp.f32 %v4486_v17  ;;  %7166 = vmatprep.subr.mxu1 %v9118_v8  ;;  %7159 = vmatmul.mubr.msk.f32.vlgmr.msra.gmra.mrb[72].mxu1 %vm1710_vm4, %v4521_v56 }
 0x566   :  { %v7379_v2 = vpop.eup %7378  ;;  %7144 = vmatmul.mubr.msk.f32.vlgmr.msra.gmra.mrb[70].mxu0 %vm1710_vm4, %v4518_v20  ;;  %7167 = vmatpush3.msra.mxu1 %v8568_v51 }
 0x567   :  { %v7381_v30 = vpop.eup %7380  ;;  %v4523_v7 = vmul.f32 %v7379_v2, %v8535_v26  ;;  %7152 = vmatpush3.msra.mxu0 %v8482_v32  ;;  %v4492_v29 = vpop.xlane.xlu1 %4491  ;;  %7153 = vmatprep.mubr.msk.f32.mxu0 %vm7441_vm2, %v9118_v8 }
 0x568   :  { %v4495_v1 = vpop.xlane.xlu0 %4494  ;;  %v4520_v45 = vmul.f32 %v7381_v30, %v8538_v62  ;;  %7388 = vrcp.f32 %v4492_v29  ;;  %7161 = vmatprep.subr.mxu0 %v9118_v8  ;;  %7168 = vmatprep.mubr.msk.f32.mxu1 %vm7441_vm2, %v9118_v8 }
 0x569   :  { %7390 = vrcp.f32 %v4495_v1  ;;  %7176 = vmatprep.subr.mxu1 %v9118_v8  ;;  %7169 = vmatmul.mubr.msk.f32.vlgmr.msra.gmra.mrb[74].mxu1 %vm1710_vm4, %v4523_v7 }
 0x56a   :  { %v7383_v26 = vpop.eup %7382  ;;  %7154 = vmatmul.mubr.msk.f32.vlgmr.msra.gmra.mrb[72].mxu0 %vm1710_vm4, %v4520_v45  ;;  %7177 = vmatpush3.msra.mxu1 %v8572_v35  ;;  %v8733_v45 = vld [vmem:[%s9094_s7] ss:$0 sm:$0xff] }
 0x56b   :  { %v7385_v32 = vpop.eup %7384  ;;  %v4525_v51 = vmul.f32 %v7383_v26, %v8544_v12  ;;  %7162 = vmatpush3.msra.mxu0 %v8570_v55  ;;  %v5669_v62 = vpop.permute.xlu1 %5668  ;;  %7163 = vmatprep.mubr.msk.f32.mxu0 %vm7441_vm2, %v9118_v8 }
 0x56c   :  { %v4522_v47 = vmul.f32 %v7385_v32, %v8546_v16  ;;  %7171 = vmatprep.subr.mxu0 %v9118_v8  ;;  %7178 = vmatprep.mubr.msk.f32.mxu1 %vm7441_vm2, %v9118_v8  ;;  %v3103_v16 = vld [vmem:[%s9093_s6] sm:$0x3]  ;;  %v5593_v58 = vpop.permute.xlu0 %5592 }
 0x56d   :  { %7186 = vmatprep.subr.mxu1 %v9118_v8  ;;  %7179 = vmatmul.mubr.msk.f32.vlgmr.msra.gmra.mrb[76].mxu1 %vm1710_vm4, %v4525_v51 }
 0x56e   :  { %7164 = vmatmul.mubr.msk.f32.vlgmr.msra.gmra.mrb[74].mxu0 %vm1710_vm4, %v4522_v47  ;;  %7187 = vmatpush3.msra.mxu1 %v5669_v62 }
 0x56f   :  { %v7387_v35 = vpop.eup %7386  ;;  %7172 = vmatpush3.msra.mxu0 %v8574_v61  ;;  %7173 = vmatprep.mubr.msk.f32.mxu0 %vm7441_vm2, %v9118_v8 }
 0x570   :  { %v4524_v12 = vmul.f32 %v7387_v35, %v8552_v14  ;;  %7181 = vmatprep.subr.mxu0 %v9118_v8  ;;  %7188 = vmatprep.mubr.msk.f32.mxu1 %vm7441_vm2, %v9118_v8  ;;  %v7424_v35 = vld [vmem:[%s9090_s0 + $0x8] sm:$0xff] }
 0x572   :  { %v7389_v55 = vpop.eup %7388  ;;  %7174 = vmatmul.mubr.msk.f32.vlgmr.msra.gmra.mrb[76].mxu0 %vm1710_vm4, %v4524_v12 }
 0x573   :  { %v7391_v14 = vpop.eup %7390  ;;  %v4526_v61 = vmul.f32 %v7389_v55, %v8558_v42  ;;  %7182 = vmatpush3.msra.mxu0 %v5593_v58  ;;  %7183 = vmatprep.mubr.msk.f32.mxu0 %vm7441_vm2, %v9118_v8  ;;  %v6585_v8 = vld [vmem:[%s9093_s6 + $0x2] sm:$0x3] }
 0x574   :  { %v4527_v27 = vmul.f32 %v7391_v14, %v8556_v43  ;;  %7217 = vmatprep.subr.msk.mxu0 %vm5794_vm5, %v3103_v16  ;;  %7191 = vmatprep.subr.msk.mxu1 %vm5794_vm5, %v6585_v8 }
 0x576   :  { %7184 = vmatmul.mubr.msk.f32.vlgmr.msra.gmra.mrb[78].mxu0 %vm1710_vm4, %v4526_v61  ;;  %7189 = vmatmul.mubr.msk.f32.vlgmr.msra.gmra.mrb[78].mxu1 %vm1710_vm4, %v4527_v27 }
 0x577   :  { %7219 = vmatprep.mubr.msk.f32.mxu0 %vm493_vm3, %v8366_v10  ;;  %7218 = vmatpush3.msk.msra.mxu0 %vm5794_vm5, %v3103_v16  ;;  %v7425_v16 = vld [vmem:[%s9090_s0] sm:$0xff] }
 0x578   :  { %7192 = vmatpush3.msk.msra.mxu1 %vm5794_vm5, %v6585_v8 }
 0x57a   :  { %7220 = vmatmul.mubr.msk.f32.vlgmr.msra.gmra.mrb[80].mxu0 %vm493_vm3, %v8364_v3 }
 0x57b   :  { %7222 = vmatprep.mubr.msk.f32.mxu0 %vm493_vm3, %v8370_v13 }
 0x57e   :  { %7223 = vmatmul.mubr.msk.f32.gmra.mrb[82].mxu0 %vm493_vm3, %v8368_v50 }
 0x57f   :  { %7225 = vmatprep.mubr.msk.f32.mxu0 %vm493_vm3, %v8374_v19 }
 0x582   :  { %7226 = vmatmul.mubr.msk.f32.gmra.mrb[84].mxu0 %vm493_vm3, %v8372_v25 }
 0x583   :  { %7228 = vmatprep.mubr.msk.f32.mxu0 %vm493_vm3, %v8378_v37 }
 0x586   :  { %7229 = vmatmul.mubr.msk.f32.gmra.mrb[86].mxu0 %vm493_vm3, %v8376_v46 }
 0x587   :  { %7231 = vmatprep.mubr.msk.f32.mxu0 %vm493_vm3, %v8382_v54 }
 0x58a   :  { %7232 = vmatmul.mubr.msk.f32.gmra.mrb[88].mxu0 %vm493_vm3, %v8380_v0 }
 0x58b   :  { %7234 = vmatprep.mubr.msk.f32.mxu0 %vm493_vm3, %v8386_v57 }
 0x58e   :  { %7235 = vmatmul.mubr.msk.f32.gmra.mrb[90].mxu0 %vm493_vm3, %v8384_v6 }
 0x58f   :  { %7237 = vmatprep.mubr.msk.f32.mxu0 %vm493_vm3, %v8388_v39 }
 0x592   :  { %7238 = vmatmul.mubr.msk.f32.gmra.mrb[92].mxu0 %vm493_vm3, %v8390_v49 }
 0x593   :  { %7240 = vmatprep.mubr.msk.f32.mxu0 %vm493_vm3, %v8396_v9 }
 0x596   :  { %7241 = vmatmul.mubr.msk.f32.gmra.mrb[94].mxu0 %vm493_vm3, %v8392_v63 }
 0x623   :  { %v4676_v3 = vpop.f32.mrb[64].mxu1 }
 0x624   :  { %v7120_v10 = vpop.f32.mrb[65].mxu1 }
 0x628   :  { %v4600_v50 = vpop.f32.mrb[64].mxu0 }
 0x629   :  { %v7115_v13 = vpop.f32.mrb[65].mxu0  ;;  %7193 = vmatprep.mubr.msk.f32.mxu1 %vm493_vm3, %v4600_v50 }
 0x62a   :  { %7194 = vmatmul.mubr.msk.f32.vlgmr.msra.gmra.mrb[80].mxu1 %vm493_vm3, %v4676_v3 }
 0x62c   :  { %v4828_v25 = vpop.f32.mrb[66].mxu1 }
 0x62d   :  { %v7130_v19 = vpop.f32.mrb[67].mxu1 }
 0x630   :  { %v4980_v46 = vpop.f32.mrb[68].mxu1 }
 0x631   :  { %v4752_v37 = vpop.f32.mrb[66].mxu0  ;;  %v7140_v0 = vpop.f32.mrb[69].mxu1 }
 0x632   :  { %v7125_v54 = vpop.f32.mrb[67].mxu0  ;;  %7196 = vmatprep.mubr.msk.f32.mxu1 %vm493_vm3, %v4752_v37 }
 0x633   :  { %7197 = vmatmul.mubr.msk.f32.gmra.mrb[82].mxu1 %vm493_vm3, %v4828_v25 }
 0x634   :  { %v5132_v6 = vpop.f32.mrb[70].mxu1 }
 0x635   :  { %v4904_v57 = vpop.f32.mrb[68].mxu0  ;;  %v7150_v39 = vpop.f32.mrb[71].mxu1 }
 0x636   :  { %v7135_v49 = vpop.f32.mrb[69].mxu0  ;;  %7199 = vmatprep.mubr.msk.f32.mxu1 %vm493_vm3, %v4904_v57  ;;  %v7427_v57 = vld [vmem:[%s9090_s0 + $0x10] sm:$0xff] }
 0x637   :  { %7200 = vmatmul.mubr.msk.f32.gmra.mrb[84].mxu1 %vm493_vm3, %v4980_v46  ;;  %v7426_v46 = vld [vmem:[%s9090_s0 + $0x18] sm:$0xff] }
 0x638   :  { %v5284_v63 = vpop.f32.mrb[72].mxu1 }
 0x639   :  { %v5056_v9 = vpop.f32.mrb[70].mxu0  ;;  %v7160_v43 = vpop.f32.mrb[73].mxu1 }
 0x63a   :  { %v7145_v42 = vpop.f32.mrb[71].mxu0  ;;  %7202 = vmatprep.mubr.msk.f32.mxu1 %vm493_vm3, %v5056_v9 }
 0x63b   :  { %7203 = vmatmul.mubr.msk.f32.gmra.mrb[86].mxu1 %vm493_vm3, %v5132_v6  ;;  %v7428_v42 = vld [vmem:[%s9090_s0 + $0x28] sm:$0xff] }
 0x63c   :  { %v5436_v53 = vpop.f32.mrb[74].mxu1 }
 0x63d   :  { %v5208_v52 = vpop.f32.mrb[72].mxu0  ;;  %v7170_v40 = vpop.f32.mrb[75].mxu1 }
 0x63e   :  { %v7155_v41 = vpop.f32.mrb[73].mxu0  ;;  %7205 = vmatprep.mubr.msk.f32.mxu1 %vm493_vm3, %v5208_v52 }
 0x63f   :  { %7206 = vmatmul.mubr.msk.f32.gmra.mrb[88].mxu1 %vm493_vm3, %v5284_v63 }
 0x640   :  { %v5588_v34 = vpop.f32.mrb[76].mxu1 }
 0x641   :  { %v5360_v18 = vpop.f32.mrb[74].mxu0  ;;  %v7180_v38 = vpop.f32.mrb[77].mxu1 }
 0x642   :  { %v7165_v4 = vpop.f32.mrb[75].mxu0  ;;  %7208 = vmatprep.mubr.msk.f32.mxu1 %vm493_vm3, %v5360_v18  ;;  %v7429_v18 = vld [vmem:[%s9090_s0 + $0x20] sm:$0xff] }
 0x643   :  { %7209 = vmatmul.mubr.msk.f32.gmra.mrb[90].mxu1 %vm493_vm3, %v5436_v53 }
 0x645   :  { %v5512_v22 = vpop.f32.mrb[76].mxu0 }
 0x646   :  { %v7175_v15 = vpop.f32.mrb[77].mxu0  ;;  %7211 = vmatprep.mubr.msk.f32.mxu1 %vm493_vm3, %v5512_v22 }
 0x647   :  { %7212 = vmatmul.mubr.msk.f32.gmra.mrb[92].mxu1 %vm493_vm3, %v5588_v34 }
 0x649   :  { %v5664_v60 = vpop.f32.mrb[78].mxu0  ;;  %v5740_v28 = vpop.f32.mrb[78].mxu1 }
 0x64a   :  { %v7185_v59 = vpop.f32.mrb[79].mxu0  ;;  %v7190_v24 = vpop.f32.mrb[79].mxu1  ;;  %7214 = vmatprep.mubr.msk.f32.mxu1 %vm493_vm3, %v5664_v60 }
 0x64b   :  { %7215 = vmatmul.mubr.msk.f32.gmra.mrb[94].mxu1 %vm493_vm3, %v5740_v28  ;;  %v7430_v28 = vld [vmem:[%s9090_s0 + $0x38] sm:$0xff] }
 0x64d   :  { %v7221_v5 = vpop.f32.mrb[80].mxu0 }
 0x64e   :  { %v6060_v11 = vpop.f32.mrb[81].mxu0 }
 0x651   :  { %v7224_v44 = vpop.f32.mrb[82].mxu0 }
 0x652   :  { %v6070_v31 = vpop.f32.mrb[83].mxu0 }
 0x655   :  { %v7227_v23 = vpop.f32.mrb[84].mxu0 }
 0x656   :  { %v6080_v33 = vpop.f32.mrb[85].mxu0 }
 0x659   :  { %v7230_v36 = vpop.f32.mrb[86].mxu0 }
 0x65a   :  { %v6090_v21 = vpop.f32.mrb[87].mxu0 }
 0x65d   :  { %v7233_v48 = vpop.f32.mrb[88].mxu0 }
 0x65e   :  { %v6100_v56 = vpop.f32.mrb[89].mxu0 }
 0x661   :  { %v8718_v17 = vpop.f32.mrb[90].mxu0 }
 0x662   :  { %v8720_v20 = vpop.f32.mrb[91].mxu0 }
 0x665   :  { %v8722_v2 = vpop.f32.mrb[92].mxu0 }
 0x666   :  { %v8724_v30 = vpop.f32.mrb[93].mxu0 }
 0x669   :  { %v8726_v7 = vpop.f32.mrb[94].mxu0 }
 0x66a   :  { %v8728_v29 = vpop.f32.mrb[95].mxu0 }
 0x6fd   :  { %v7195_v1 = vpop.f32.mrb[80].mxu1 }
 0x6fe   :  { %v6066_v26 = vadd.f32 %v7221_v5, %v7195_v1  ;;  %v5864_v32 = vpop.f32.mrb[81].mxu1 }
 0x6ff   :  { %v6061_v51 = vadd.f32 %v6060_v11, %v5864_v32 }
 0x700   :  { %v6147_v62 = vadd.f32 %v8733_v45, %v6066_v26 }
 0x701   :  { %v6146_v47 = vadd.f32 %v8733_v45, %v6061_v51 }
 0x702   :  { %v8740_v12 = vadd.f32 %v7424_v35, %v6147_v62 }
 0x703   :  { %v8745_v55 = vadd.f32 %v7425_v16, %v6146_v47 }
 0x704   :  { %v6183_v58 = vsel %vm75_vm1, %v8740_v12, 0.0 }
 0x705   :  { %6184 = vadd.xlane.f32.xlu1 %v6183_v58  ;;  %v6180_v14 = vsel %vm75_vm1, %v8745_v55, 0.0 }
 0x706   :  { %v7198_v61 = vpop.f32.mrb[82].mxu1  ;;  %6181 = vadd.xlane.f32.xlu0 %v6180_v14  ;;  %v7434_v14 = vld [vmem:[%s9090_s0 + $0x58] sm:$0xff] }
 0x707   :  { %v6076_v27 = vadd.f32 %v7224_v44, %v7198_v61  ;;  %v5874_v8 = vpop.f32.mrb[83].mxu1 }
 0x708   :  { %v6071_v3 = vadd.f32 %v6070_v31, %v5874_v8  ;;  %v7431_v31 = vld [vmem:[%s9090_s0 + $0x30] sm:$0xff] }
 0x709   :  { %v6149_v10 = vadd.f32 %v8733_v45, %v6076_v27 }
 0x70a   :  { %v6148_v50 = vadd.f32 %v8733_v45, %v6071_v3  ;;  %v7201_v13 = vpop.f32.mrb[84].mxu1 }
 0x70b   :  { %v6086_v25 = vadd.f32 %v7227_v23, %v7201_v13  ;;  %v5884_v19 = vpop.f32.mrb[85].mxu1  ;;  %v8756_v37 = vadd.f32 %v7426_v46, %v6149_v10  ;;  %v7436_v46 = vld [vmem:[%s9090_s0 + $0x68] sm:$0xff] }
 0x70c   :  { %v6081_v0 = vadd.f32 %v6080_v33, %v5884_v19  ;;  %v8764_v39 = vadd.f32 %v7427_v57, %v6148_v50 }
 0x70d   :  { %v6151_v54 = vadd.f32 %v8733_v45, %v6086_v25  ;;  %v6189_v6 = vsel %vm75_vm1, %v8756_v37, 0.0 }
 0x70e   :  { %v6150_v49 = vadd.f32 %v8733_v45, %v6081_v0  ;;  %v7204_v63 = vpop.f32.mrb[86].mxu1  ;;  %6190 = vadd.xlane.f32.xlu0 %v6189_v6  ;;  %v6186_v34 = vsel %vm75_vm1, %v8764_v39, 0.0 }
 0x70f   :  { %v6096_v9 = vadd.f32 %v7230_v36, %v7204_v63  ;;  %v5894_v43 = vpop.f32.mrb[87].mxu1  ;;  %v8770_v53 = vadd.f32 %v7428_v42, %v6151_v54 }
 0x710   :  { %v6091_v52 = vadd.f32 %v6090_v21, %v5894_v43  ;;  %v8780_v38 = vadd.f32 %v7429_v18, %v6150_v49 }
 0x711   :  { %v6153_v40 = vadd.f32 %v8733_v45, %v6096_v9  ;;  %v6195_v41 = vsel %vm75_vm1, %v8770_v53, 0.0 }
 0x712   :  { %v6152_v4 = vadd.f32 %v8733_v45, %v6091_v52  ;;  %v7207_v22 = vpop.f32.mrb[88].mxu1  ;;  %6196 = vadd.xlane.f32.xlu1 %v6195_v41  ;;  %6187 = vadd.xlane.f32.xlu0 %v6186_v34  ;;  %v6192_v44 = vsel %vm75_vm1, %v8780_v38, 0.0 }
 0x713   :  { %v6106_v15 = vadd.f32 %v7233_v48, %v7207_v22  ;;  %v5904_v60 = vpop.f32.mrb[89].mxu1  ;;  %v8786_v59 = vadd.f32 %v7430_v28, %v6153_v40  ;;  %v7439_v40 = vld [vmem:[%s9090_s0 + $0x70] sm:$0xff] }
 0x714   :  { %v6101_v24 = vadd.f32 %v6100_v56, %v5904_v60  ;;  %v8796_v23 = vadd.f32 %v7431_v31, %v6152_v4  ;;  %v7432_v56 = vld [vmem:[%s9090_s0 + $0x48] sm:$0xff] }
 0x715   :  { %v6155_v5 = vadd.f32 %v8733_v45, %v6106_v15  ;;  %v6201_v11 = vsel %vm75_vm1, %v8786_v59, 0.0 }
 0x716   :  { %v6154_v33 = vadd.f32 %v8733_v45, %v6101_v24  ;;  %v7210_v36 = vpop.f32.mrb[90].mxu1  ;;  %6202 = vadd.xlane.f32.xlu1 %v6201_v11  ;;  %6193 = vadd.xlane.f32.xlu0 %v6192_v44  ;;  %v6198_v62 = vsel %vm75_vm1, %v8796_v23, 0.0 }
 0x717   :  { %v6116_v21 = vadd.f32 %v8718_v17, %v7210_v36  ;;  %v5914_v48 = vpop.f32.mrb[91].mxu1  ;;  %v8803_v1 = vadd.f32 %v7432_v56, %v6155_v5  ;;  %v7433_v17 = vld [vmem:[%s9090_s0 + $0x40] sm:$0xff] }
 0x718   :  { %v6111_v26 = vadd.f32 %v8720_v20, %v5914_v48  ;;  %v8814_v47 = vadd.f32 %v7433_v17, %v6154_v33 }
 0x719   :  { %v6157_v32 = vadd.f32 %v8733_v45, %v6116_v21  ;;  %v6207_v51 = vsel %vm75_vm1, %v8803_v1, 0.0 }
 0x71a   :  { %v6156_v35 = vadd.f32 %v8733_v45, %v6111_v26  ;;  %v7213_v16 = vpop.f32.mrb[92].mxu1  ;;  %6208 = vadd.xlane.f32.xlu1 %v6207_v51  ;;  %6199 = vadd.xlane.f32.xlu0 %v6198_v62  ;;  %v6204_v10 = vsel %vm75_vm1, %v8814_v47, 0.0 }
 0x71b   :  { %v6126_v20 = vadd.f32 %v8722_v2, %v7213_v16  ;;  %v5924_v58 = vpop.f32.mrb[93].mxu1  ;;  %v8821_v61 = vadd.f32 %v7434_v14, %v6157_v32  ;;  %v7435_v2 = vld [vmem:[%s9090_s0 + $0x50] sm:$0xff] }
 0x71c   :  { %v6121_v27 = vadd.f32 %v8724_v30, %v5924_v58  ;;  %v8832_v50 = vadd.f32 %v7435_v2, %v6156_v35 }
 0x71d   :  { %v6159_v8 = vadd.f32 %v8733_v45, %v6126_v20  ;;  %v6213_v3 = vsel %vm75_vm1, %v8821_v61, 0.0 }
 0x71e   :  { %v6158_v13 = vadd.f32 %v8733_v45, %v6121_v27  ;;  %v7216_v25 = vpop.f32.mrb[94].mxu1  ;;  %6214 = vadd.xlane.f32.xlu1 %v6213_v3  ;;  %6205 = vadd.xlane.f32.xlu0 %v6204_v10  ;;  %v6210_v49 = vsel %vm75_vm1, %v8832_v50, 0.0 }
 0x71f   :  { %v6136_v30 = vadd.f32 %v8726_v7, %v7216_v25  ;;  %v5934_v19 = vpop.f32.mrb[95].mxu1  ;;  %v8839_v0 = vadd.f32 %v7436_v46, %v6159_v8  ;;  %v7437_v7 = vld [vmem:[%s9090_s0 + $0x60] sm:$0xff] }
 0x720   :  { %v6131_v54 = vadd.f32 %v8728_v29, %v5934_v19  ;;  %v8850_v63 = vadd.f32 %v7437_v7, %v6158_v13  ;;  %v7438_v29 = vld [vmem:[%s9090_s0 + $0x78] sm:$0xff] }
 0x721   :  { %v6161_v6 = vadd.f32 %v8733_v45, %v6136_v30  ;;  %v6219_v57 = vsel %vm75_vm1, %v8839_v0, 0.0 }
 0x722   :  { %v6160_v9 = vadd.f32 %v8733_v45, %v6131_v54  ;;  %6220 = vadd.xlane.f32.xlu1 %v6219_v57  ;;  %6211 = vadd.xlane.f32.xlu0 %v6210_v49  ;;  %v6216_v52 = vsel %vm75_vm1, %v8850_v63, 0.0 }
 0x723   :  { %v8856_v43 = vadd.f32 %v7438_v29, %v6161_v6 }
 0x724   :  { %v8865_v41 = vadd.f32 %v7439_v40, %v6160_v9 }
 0x725   :  { %v6225_v42 = vsel %vm75_vm1, %v8856_v43, 0.0 }
 0x726   :  { %6226 = vadd.xlane.f32.xlu1 %v6225_v42  ;;  %6217 = vadd.xlane.f32.xlu0 %v6216_v52  ;;  %v6222_v45 = vsel %vm75_vm1, %v8865_v41, 0.0 }
 0x72a   :  { %6223 = vadd.xlane.f32.xlu0 %v6222_v45 }
 0x792   :  { %v6185_v34 = vpop.xlane.xlu1 %6184 }
 0x793   :  { %v6230_v18 = vmul.f32 0.25, %v6185_v34  ;;  %v6182_v4 = vpop.xlane.xlu0 %6181 }
 0x794   :  { %v6229_v22 = vmul.f32 0.25, %v6182_v4 }
 0x795   :  { %v8870_v15 = vsub.f32 %v8740_v12, %v6230_v18 }
 0x796   :  { %v8873_v60 = vsub.f32 %v8745_v55, %v6229_v22 }
 0x797   :  { %v6262_v28 = vmul.f32 %v8870_v15, %v8870_v15 }
 0x798   :  { %v6261_v24 = vmul.f32 %v8873_v60, %v8873_v60 }
 0x799   :  { %v6280_v5 = vsel %vm75_vm1, %v6262_v28, 0.0 }
 0x79a   :  { %6281 = vadd.xlane.f32.xlu1 %v6280_v5  ;;  %v6277_v11 = vsel %vm75_vm1, %v6261_v24, 0.0 }
 0x79b   :  { %v6191_v44 = vpop.xlane.xlu0 %6190  ;;  %6278 = vadd.xlane.f32.xlu0 %v6277_v11 }
 0x79c   :  { %v6232_v31 = vmul.f32 0.25, %v6191_v44 }
 0x79e   :  { %v8882_v12 = vsub.f32 %v8756_v37, %v6232_v31 }
 0x79f   :  { %v6197_v33 = vpop.xlane.xlu1 %6196  ;;  %v6188_v55 = vpop.xlane.xlu0 %6187 }
 0x7a0   :  { %v6234_v36 = vmul.f32 0.25, %v6197_v33  ;;  %v6231_v21 = vmul.f32 0.25, %v6188_v55  ;;  %v6264_v48 = vmul.f32 %v8882_v12, %v8882_v12 }
 0x7a2   :  { %v8887_v56 = vsub.f32 %v8770_v53, %v6234_v36  ;;  %v8890_v26 = vsub.f32 %v8764_v39, %v6231_v21  ;;  %v6286_v32 = vsel %vm75_vm1, %v6264_v48, 0.0 }
 0x7a3   :  { %v6203_v51 = vpop.xlane.xlu1 %6202  ;;  %6287 = vadd.xlane.f32.xlu1 %v6286_v32  ;;  %v6194_v62 = vpop.xlane.xlu0 %6193 }
 0x7a4   :  { %v6236_v37 = vmul.f32 0.25, %v6203_v51  ;;  %v6233_v17 = vmul.f32 0.25, %v6194_v62  ;;  %v6266_v35 = vmul.f32 %v8887_v56, %v8887_v56  ;;  %v6263_v16 = vmul.f32 %v8890_v26, %v8890_v26 }
 0x7a6   :  { %v8898_v20 = vsub.f32 %v8786_v59, %v6236_v37  ;;  %v8901_v53 = vsub.f32 %v8780_v38, %v6233_v17  ;;  %v6292_v39 = vsel %vm75_vm1, %v6266_v35, 0.0  ;;  %v6283_v58 = vsel %vm75_vm1, %v6263_v16, 0.0 }
 0x7a7   :  { %v6209_v14 = vpop.xlane.xlu1 %6208  ;;  %6293 = vadd.xlane.f32.xlu1 %v6292_v39  ;;  %6284 = vadd.xlane.f32.xlu0 %v6283_v58  ;;  %v6200_v27 = vpop.xlane.xlu0 %6199 }
 0x7a8   :  { %v6238_v8 = vmul.f32 0.25, %v6209_v14  ;;  %v6235_v3 = vmul.f32 0.25, %v6200_v27  ;;  %v6268_v10 = vmul.f32 %v8898_v20, %v8898_v20  ;;  %v6265_v59 = vmul.f32 %v8901_v53, %v8901_v53 }
 0x7aa   :  { %v8910_v2 = vsub.f32 %v8803_v1, %v6238_v8  ;;  %v8913_v38 = vsub.f32 %v8796_v23, %v6235_v3  ;;  %v6298_v13 = vsel %vm75_vm1, %v6268_v10, 0.0  ;;  %v6289_v25 = vsel %vm75_vm1, %v6265_v59, 0.0 }
 0x7ab   :  { %v6215_v30 = vpop.xlane.xlu1 %6214  ;;  %6299 = vadd.xlane.f32.xlu1 %v6298_v13  ;;  %6290 = vadd.xlane.f32.xlu0 %v6289_v25  ;;  %v6206_v19 = vpop.xlane.xlu0 %6205  ;;  %v8968_v13 = vld [vmem:[%s9095_s8] ss:$0 sm:$0xff] }
 0x7ac   :  { %v6240_v46 = vmul.f32 0.25, %v6215_v30  ;;  %v6237_v54 = vmul.f32 0.25, %v6206_v19  ;;  %v6270_v6 = vmul.f32 %v8910_v2, %v8910_v2  ;;  %v6267_v1 = vmul.f32 %v8913_v38, %v8913_v38 }
 0x7ae   :  { %v8922_v57 = vsub.f32 %v8821_v61, %v6240_v46  ;;  %v8925_v23 = vsub.f32 %v8814_v47, %v6237_v54  ;;  %v6304_v49 = vsel %vm75_vm1, %v6270_v6, 0.0  ;;  %v6295_v7 = vsel %vm75_vm1, %v6267_v1, 0.0  ;;  %v8974_v54 = vld [vmem:[%s9096_s9] ss:$0 sm:$0xff] }
 0x7af   :  { %v6221_v9 = vpop.xlane.xlu1 %6220  ;;  %6305 = vadd.xlane.f32.xlu1 %v6304_v49  ;;  %6296 = vadd.xlane.f32.xlu0 %v6295_v7  ;;  %v6212_v29 = vpop.xlane.xlu0 %6211 }
 0x7b0   :  { %v6242_v42 = vmul.f32 0.25, %v6221_v9  ;;  %v6239_v52 = vmul.f32 0.25, %v6212_v29  ;;  %v6272_v40 = vmul.f32 %v8922_v57, %v8922_v57  ;;  %v6269_v61 = vmul.f32 %v8925_v23, %v8925_v23 }
 0x7b2   :  { %v8934_v45 = vsub.f32 %v8839_v0, %v6242_v42  ;;  %v8937_v47 = vsub.f32 %v8832_v50, %v6239_v52  ;;  %v6310_v34 = vsel %vm75_vm1, %v6272_v40, 0.0  ;;  %v6301_v18 = vsel %vm75_vm1, %v6269_v61, 0.0 }
 0x7b3   :  { %v6227_v4 = vpop.xlane.xlu1 %6226  ;;  %6311 = vadd.xlane.f32.xlu1 %v6310_v34  ;;  %6302 = vadd.xlane.f32.xlu0 %v6301_v18  ;;  %v6218_v22 = vpop.xlane.xlu0 %6217 }
 0x7b4   :  { %v6244_v28 = vmul.f32 0.25, %v6227_v4  ;;  %v6241_v24 = vmul.f32 0.25, %v6218_v22  ;;  %v6274_v5 = vmul.f32 %v8934_v45, %v8934_v45  ;;  %v6271_v0 = vmul.f32 %v8937_v47, %v8937_v47 }
 0x7b6   :  { %v8946_v11 = vsub.f32 %v8856_v43, %v6244_v28  ;;  %v8949_v50 = vsub.f32 %v8850_v63, %v6241_v24  ;;  %v6316_v44 = vsel %vm75_vm1, %v6274_v5, 0.0  ;;  %v6307_v31 = vsel %vm75_vm1, %v6271_v0, 0.0 }
 0x7b7   :  { %6317 = vadd.xlane.f32.xlu1 %v6316_v44  ;;  %6308 = vadd.xlane.f32.xlu0 %v6307_v31  ;;  %v6224_v33 = vpop.xlane.xlu0 %6223 }
 0x7b8   :  { %v6243_v55 = vmul.f32 0.25, %v6224_v33  ;;  %v6276_v36 = vmul.f32 %v8946_v11, %v8946_v11  ;;  %v6273_v21 = vmul.f32 %v8949_v50, %v8949_v50 }
 0x7ba   :  { %v8958_v43 = vsub.f32 %v8865_v41, %v6243_v55  ;;  %v6322_v63 = vsel %vm75_vm1, %v6276_v36, 0.0  ;;  %v6313_v48 = vsel %vm75_vm1, %v6273_v21, 0.0 }
 0x7bb   :  { %6323 = vadd.xlane.f32.xlu1 %v6322_v63  ;;  %6314 = vadd.xlane.f32.xlu0 %v6313_v48 }
 0x7bc   :  { %v6275_v32 = vmul.f32 %v8958_v43, %v8958_v43 }
 0x7be   :  { %v6319_v51 = vsel %vm75_vm1, %v6275_v32, 0.0 }
 0x7bf   :  { %6320 = vadd.xlane.f32.xlu0 %v6319_v51 }
 0x827   :  { %v6282_v62 = vpop.xlane.xlu1 %6281 }
 0x828   :  { %v6326_v37 = vmul.f32 0.25, %v6282_v62  ;;  %v6279_v17 = vpop.xlane.xlu0 %6278 }
 0x829   :  { %v6325_v35 = vmul.f32 0.25, %v6279_v17 }
 0x82a   :  { %v6342_v16 = vadd.f32 1e-05, %v6326_v37 }
 0x82b   :  { %v6341_v39 = vadd.f32 1e-05, %v6325_v35 }
 0x82c   :  { %7392 = vrsqrt.f32 %v6342_v16 }
 0x82d   :  { %7394 = vrsqrt.f32 %v6341_v39 }
 0x830   :  { %v6288_v41 = vpop.xlane.xlu1 %6287 }
 0x831   :  { %v6328_v58 = vmul.f32 0.25, %v6288_v41 }
 0x833   :  { %v6344_v14 = vadd.f32 1e-05, %v6328_v58 }
 0x834   :  { %v6294_v27 = vpop.xlane.xlu1 %6293  ;;  %v6285_v8 = vpop.xlane.xlu0 %6284 }
 0x835   :  { %7396 = vrsqrt.f32 %v6344_v14  ;;  %v6330_v3 = vmul.f32 0.25, %v6294_v27  ;;  %v6327_v10 = vmul.f32 0.25, %v6285_v8 }
 0x836   :  { %v7393_v59 = vpop.eup %7392 }
 0x837   :  { %v7395_v25 = vpop.eup %7394  ;;  %v6374_v30 = vmul.f32 %v7393_v59, %v8870_v15  ;;  %v6346_v19 = vadd.f32 1e-05, %v6330_v3  ;;  %v6343_v46 = vadd.f32 1e-05, %v6327_v10 }
 0x838   :  { %v6373_v6 = vmul.f32 %v7395_v25, %v8873_v60  ;;  %v6300_v1 = vpop.xlane.xlu1 %6299  ;;  %v6291_v49 = vpop.xlane.xlu0 %6290 }
 0x839   :  { %v6396_v7 = vmul.f32 %v8968_v13, %v6374_v30  ;;  %7398 = vrsqrt.f32 %v6346_v19  ;;  %v6332_v9 = vmul.f32 0.25, %v6300_v1  ;;  %v6329_v29 = vmul.f32 0.25, %v6291_v49 }
 0x83a   :  { %v6395_v42 = vmul.f32 %v8968_v13, %v6373_v6  ;;  %7400 = vrsqrt.f32 %v6343_v46 }
 0x83b   :  { %v6418_v15 = vadd.f32 %v8974_v54, %v6396_v7  ;;  %v6348_v52 = vadd.f32 1e-05, %v6332_v9  ;;  %v6345_v40 = vadd.f32 1e-05, %v6329_v29 }
 0x83c   :  { %v6417_v61 = vadd.f32 %v8974_v54, %v6395_v42  ;;  %v6306_v34 = vpop.xlane.xlu1 %6305  ;;  %v6297_v18 = vpop.xlane.xlu0 %6296 }
 0x83d   :  { %6434 = vst.msk [vmem:[%s9097_s10 + $0x8] sm:$0xff] %vm75_vm1, %v6418_v15  ;;  %7402 = vrsqrt.f32 %v6348_v52  ;;  %v6334_v60 = vmul.f32 0.25, %v6306_v34  ;;  %v6331_v4 = vmul.f32 0.25, %v6297_v18 }
 0x83e   :  { %6433 = vst.msk [vmem:[%s9097_s10] sm:$0xff] %vm75_vm1, %v6417_v61  ;;  %7404 = vrsqrt.f32 %v6345_v40 }
 0x83f   :  { %v7397_v22 = vpop.eup %7396  ;;  %v6350_v28 = vadd.f32 1e-05, %v6334_v60  ;;  %v6347_v24 = vadd.f32 1e-05, %v6331_v4 }
 0x840   :  { %v6376_v5 = vmul.f32 %v7397_v22, %v8882_v12  ;;  %v6312_v0 = vpop.xlane.xlu1 %6311  ;;  %v6303_v44 = vpop.xlane.xlu0 %6302 }
 0x841   :  { %7406 = vrsqrt.f32 %v6350_v28  ;;  %v6336_v31 = vmul.f32 0.25, %v6312_v0  ;;  %v6333_v33 = vmul.f32 0.25, %v6303_v44 }
 0x842   :  { %v6398_v55 = vmul.f32 %v8968_v13, %v6376_v5  ;;  %7408 = vrsqrt.f32 %v6347_v24 }
 0x843   :  { %v7399_v36 = vpop.eup %7398  ;;  %v6352_v21 = vadd.f32 1e-05, %v6336_v31  ;;  %v6349_v63 = vadd.f32 1e-05, %v6333_v33 }
 0x844   :  { %v7401_v48 = vpop.eup %7400  ;;  %v6420_v32 = vadd.f32 %v8974_v54, %v6398_v55  ;;  %v6378_v51 = vmul.f32 %v7399_v36, %v8887_v56  ;;  %v6318_v62 = vpop.xlane.xlu1 %6317 }
 0x845   :  { %v6309_v37 = vpop.xlane.xlu0 %6308  ;;  %v6375_v12 = vmul.f32 %v7401_v48, %v8890_v26  ;;  %7410 = vrsqrt.f32 %v6352_v21  ;;  %v6338_v17 = vmul.f32 0.25, %v6318_v62 }
 0x846   :  { %v6335_v35 = vmul.f32 0.25, %v6309_v37  ;;  %6436 = vst.msk [vmem:[%s9097_s10 + $0x18] sm:$0xff] %vm75_vm1, %v6420_v32  ;;  %v6400_v16 = vmul.f32 %v8968_v13, %v6378_v51  ;;  %7412 = vrsqrt.f32 %v6349_v63 }
 0x847   :  { %v7403_v39 = vpop.eup %7402  ;;  %v6397_v41 = vmul.f32 %v8968_v13, %v6375_v12  ;;  %v6354_v58 = vadd.f32 1e-05, %v6338_v17 }
 0x848   :  { %v6351_v56 = vadd.f32 1e-05, %v6335_v35  ;;  %v7405_v14 = vpop.eup %7404  ;;  %v6422_v27 = vadd.f32 %v8974_v54, %v6400_v16  ;;  %v6380_v26 = vmul.f32 %v7403_v39, %v8898_v20  ;;  %v6324_v8 = vpop.xlane.xlu1 %6323 }
 0x849   :  { %v6315_v3 = vpop.xlane.xlu0 %6314  ;;  %v6419_v10 = vadd.f32 %v8974_v54, %v6397_v41  ;;  %v6377_v59 = vmul.f32 %v7405_v14, %v8901_v53  ;;  %7414 = vrsqrt.f32 %v6354_v58  ;;  %v6340_v25 = vmul.f32 0.25, %v6324_v8 }
 0x84a   :  { %6438 = vst.msk [vmem:[%s9097_s10 + $0x28] sm:$0xff] %vm75_vm1, %v6422_v27  ;;  %v6402_v30 = vmul.f32 %v8968_v13, %v6380_v26  ;;  %7416 = vrsqrt.f32 %v6351_v56  ;;  %v6337_v19 = vmul.f32 0.25, %v6315_v3 }
 0x84b   :  { %v7407_v46 = vpop.eup %7406  ;;  %6435 = vst.msk [vmem:[%s9097_s10 + $0x10] sm:$0xff] %vm75_vm1, %v6419_v10  ;;  %v6399_v20 = vmul.f32 %v8968_v13, %v6377_v59  ;;  %v6356_v53 = vadd.f32 1e-05, %v6340_v25 }
 0x84c   :  { %v7409_v6 = vpop.eup %7408  ;;  %v6424_v1 = vadd.f32 %v8974_v54, %v6402_v30  ;;  %v6382_v49 = vmul.f32 %v7407_v46, %v8910_v2  ;;  %v6353_v7 = vadd.f32 1e-05, %v6337_v19 }
 0x84d   :  { %v6321_v9 = vpop.xlane.xlu0 %6320  ;;  %v6421_v29 = vadd.f32 %v8974_v54, %v6399_v20  ;;  %v6379_v42 = vmul.f32 %v7409_v6, %v8913_v38  ;;  %7418 = vrsqrt.f32 %v6356_v53 }
 0x84e   :  { %v6339_v15 = vmul.f32 0.25, %v6321_v9  ;;  %6440 = vst.msk [vmem:[%s9097_s10 + $0x38] sm:$0xff] %vm75_vm1, %v6424_v1  ;;  %v6404_v52 = vmul.f32 %v8968_v13, %v6382_v49  ;;  %7420 = vrsqrt.f32 %v6353_v7 }
 0x84f   :  { %v7411_v40 = vpop.eup %7410  ;;  %6437 = vst.msk [vmem:[%s9097_s10 + $0x20] sm:$0xff] %vm75_vm1, %v6421_v29  ;;  %v6401_v2 = vmul.f32 %v8968_v13, %v6379_v42 }
 0x850   :  { %v6355_v61 = vadd.f32 1e-05, %v6339_v15  ;;  %v7413_v38 = vpop.eup %7412  ;;  %v6426_v34 = vadd.f32 %v8974_v54, %v6404_v52  ;;  %v6384_v18 = vmul.f32 %v7411_v40, %v8922_v57 }
 0x851   :  { %v6423_v60 = vadd.f32 %v8974_v54, %v6401_v2  ;;  %v6381_v4 = vmul.f32 %v7413_v38, %v8925_v23 }
 0x852   :  { %7422 = vrsqrt.f32 %v6355_v61  ;;  %6442 = vst.msk [vmem:[%s9097_s10 + $0x48] sm:$0xff] %vm75_vm1, %v6426_v34  ;;  %v6406_v22 = vmul.f32 %v8968_v13, %v6384_v18 }
 0x853   :  { %v7415_v28 = vpop.eup %7414  ;;  %6439 = vst.msk [vmem:[%s9097_s10 + $0x30] sm:$0xff] %vm75_vm1, %v6423_v60  ;;  %v6403_v57 = vmul.f32 %v8968_v13, %v6381_v4 }
 0x854   :  { %v7417_v24 = vpop.eup %7416  ;;  %v6428_v5 = vadd.f32 %v8974_v54, %v6406_v22  ;;  %v6386_v23 = vmul.f32 %v7415_v28, %v8934_v45 }
 0x855   :  { %v6425_v0 = vadd.f32 %v8974_v54, %v6403_v57  ;;  %v6383_v44 = vmul.f32 %v7417_v24, %v8937_v47 }
 0x856   :  { %6444 = vst.msk [vmem:[%s9097_s10 + $0x58] sm:$0xff] %vm75_vm1, %v6428_v5  ;;  %v6408_v31 = vmul.f32 %v8968_v13, %v6386_v23 }
 0x857   :  { %v7419_v33 = vpop.eup %7418  ;;  %6441 = vst.msk [vmem:[%s9097_s10 + $0x40] sm:$0xff] %vm75_vm1, %v6425_v0  ;;  %v6405_v55 = vmul.f32 %v8968_v13, %v6383_v44 }
 0x858   :  { %v7421_v45 = vpop.eup %7420  ;;  %v6430_v36 = vadd.f32 %v8974_v54, %v6408_v31  ;;  %v6388_v47 = vmul.f32 %v7419_v33, %v8946_v11 }
 0x859   :  { %v6427_v21 = vadd.f32 %v8974_v54, %v6405_v55  ;;  %v6385_v63 = vmul.f32 %v7421_v45, %v8949_v50 }
 0x85a   :  { %6446 = vst.msk [vmem:[%s9097_s10 + $0x68] sm:$0xff] %vm75_vm1, %v6430_v36  ;;  %v6410_v48 = vmul.f32 %v8968_v13, %v6388_v47 }
 0x85b   :  { %6443 = vst.msk [vmem:[%s9097_s10 + $0x50] sm:$0xff] %vm75_vm1, %v6427_v21  ;;  %v6407_v51 = vmul.f32 %v8968_v13, %v6385_v63 }
 0x85c   :  { %v7423_v32 = vpop.eup %7422  ;;  %v6432_v11 = vadd.f32 %v8974_v54, %v6410_v48 }
 0x85d   :  { %v6387_v62 = vmul.f32 %v7423_v32, %v8958_v43  ;;  %v6429_v50 = vadd.f32 %v8974_v54, %v6407_v51 }
 0x85e   :  { %6448 = vst.msk [vmem:[%s9097_s10 + $0x78] sm:$0xff] %vm75_vm1, %v6432_v11 }
 0x85f   :  { %v6409_v37 = vmul.f32 %v8968_v13, %v6387_v62  ;;  %6445 = vst.msk [vmem:[%s9097_s10 + $0x60] sm:$0xff] %vm75_vm1, %v6429_v50 }
 0x861   :  { %v6431_v12 = vadd.f32 %v8974_v54, %v6409_v37 }
 0x863   :  { %6447 = vst.msk [vmem:[%s9097_s10 + $0x70] sm:$0xff] %vm75_vm1, %v6431_v12 }

// kernel: _lambda_.27
= control target key start
LH: loop header
LB: loop body
LE: loop exit
PB: predicated region body
PF: predicated region fallthrough
CT: control target
= control target key end

     0   :  { %vm74_vm0 = vcmask 64512   ;;  %vm215_vm1 = vcmask 261120   ;;  %vm900_vm2 = vcmask 60416   ;;  %s1531_s1 = inlined_call_operand.vmem [shape: f32[8,32], index: 1, kind: input, shape index: {}]   ;;  %s1532_s0 = inlined_call_operand.vmem [shape: f32[16,4,8], index: 0, kind: input, shape index: {}]   ;;  %s1533_s3 = inlined_call_operand.vmem [shape: f32[32,8], index: 3, kind: input, shape index: {}]   ;;  %s1534_s2 = inlined_call_operand.vmem [shape: f32[1,32], index: 2, kind: input, shape index: {}]   ;;  %s1535_s4 = inlined_call_operand.vmem [shape: f32[1,8], index: 4, kind: input, shape index: {}]   ;;  %s1536_s5 = inlined_call_operand.vmem [shape: f32[1,8], index: 5, kind: input, shape index: {}]   ;;  %s1537_s6 = inlined_call_operand.vmem [shape: f32[1,8], index: 6, kind: input, shape index: {}]   ;;  %s1538_s7 = inlined_call_operand.vmem [shape: f32[16,4,8], index: 7, kind: output, shape index: {}]  }
   0x1   :  { %v42_v0 = vld [vmem:[%s1531_s1] sm:$0xff]  ;;  %v1090_v4 = vld [vmem:[%s1532_s0 + $0x8] sm:$0xf]  ;;  %v1095_v5 = vld [vmem:[%s1532_s0 + $0xc] sm:$0xf] }
   0x2   :  { %v1078_v1 = vld [vmem:[%s1532_s0] sm:$0xf]  ;;  %v1083_v2 = vld [vmem:[%s1532_s0 + $0x4] sm:$0xf]  ;;  %962 = vmatprep.subr.mxu0 %v42_v0  ;;  %v1100_v6 = vld [vmem:[%s1532_s0 + $0x10] sm:$0xf]  ;;  %v67_v7 = vcombine.low %v1090_v4, %v1095_v5 }
   0x3   :  { %v66_v3 = vcombine.low %v1078_v1, %v1083_v2  ;;  %963 = vmatpush3.msra.mxu0 %v42_v0  ;;  %v1107_v8 = vld [vmem:[%s1532_s0 + $0x14] sm:$0xf]  ;;  %v1112_v9 = vld [vmem:[%s1532_s0 + $0x18] sm:$0xf]  ;;  %v1117_v10 = vld [vmem:[%s1532_s0 + $0x1c] sm:$0xf] }
   0x4   :  { %v68_v11 = vcombine.low %v1100_v6, %v1107_v8  ;;  %v1125_v12 = vld [vmem:[%s1532_s0 + $0x20] sm:$0xf]  ;;  %v1130_v13 = vld [vmem:[%s1532_s0 + $0x24] sm:$0xf]  ;;  %v69_v14 = vcombine.low %v1112_v9, %v1117_v10  ;;  %v1141_v16 = vld [vmem:[%s1532_s0 + $0x28] sm:$0xf] }
   0x5   :  { %964 = vmatprep.mubr.msk.f32.mxu0 %vm74_vm0, %v66_v3  ;;  %v70_v15 = vcombine.low %v1125_v12, %v1130_v13  ;;  %v1146_v17 = vld [vmem:[%s1532_s0 + $0x2c] sm:$0xf]  ;;  %v204_v18 = vld [vmem:[%s1533_s3] sm:$0xff]  ;;  %v1154_v19 = vld [vmem:[%s1532_s0 + $0x30] sm:$0xf] }
   0x6   :  { %965 = vmatmul.mubr.msk.f32.vlgmr.msra.gmra.mrb[0].mxu0 %vm74_vm0, %v67_v7  ;;  %v1159_v20 = vld [vmem:[%s1532_s0 + $0x34] sm:$0xf]  ;;  %v205_v21 = vld [vmem:[%s1533_s3 + $0x8] sm:$0xff]  ;;  %v71_v23 = vcombine.low %v1141_v16, %v1146_v17  ;;  %v1173_v25 = vld [vmem:[%s1532_s0 + $0x38] sm:$0xf] }
   0x7   :  { %967 = vmatprep.mubr.msk.f32.mxu0 %vm74_vm0, %v68_v11  ;;  %v996_v22 = vpack.c.bf16 %v205_v21, %v204_v18  ;;  %v72_v24 = vcombine.low %v1154_v19, %v1159_v20  ;;  %v1178_v26 = vld [vmem:[%s1532_s0 + $0x3c] sm:$0xf]  ;;  %v206_v28 = vld [vmem:[%s1533_s3 + $0x10] sm:$0xff]  ;;  %v921_v31 = vld [vmem:[%s1534_s2] ss:$0 sm:$0xff] }
   0x8   :  { %v73_v27 = vcombine.low %v1173_v25, %v1178_v26  ;;  %v207_v29 = vld [vmem:[%s1533_s3 + $0x18] sm:$0xff]  ;;  %v930_v56 = vld [vmem:[%s1535_s4] ss:$0 sm:$0xff] }
   0x9   :  { %997 = vmatprep.subr.bf16.mxu1 %v996_v22  ;;  %v1000_v30 = vpack.c.bf16 %v207_v29, %v206_v28 }
   0xa   :  { %968 = vmatmul.mubr.msk.f32.gmra.mrb[2].mxu0 %vm74_vm0, %v69_v14  ;;  %999 = vmatpush3.bf16.msra.mxu1 %v996_v22 }
   0xb   :  { %970 = vmatprep.mubr.msk.f32.mxu0 %vm74_vm0, %v70_v15  ;;  %1001 = vmatprep.subr.bf16.mxu1 %v1000_v30 }
   0xe   :  { %971 = vmatmul.mubr.msk.f32.gmra.mrb[4].mxu0 %vm74_vm0, %v71_v23  ;;  %1003 = vmatpush3.bf16.msra.mxu1 %v1000_v30 }
   0xf   :  { %973 = vmatprep.mubr.msk.f32.mxu0 %vm74_vm0, %v72_v24 }
  0x12   :  { %974 = vmatmul.mubr.msk.f32.gmra.mrb[6].mxu0 %vm74_vm0, %v73_v27 }
  0xd9   :  { %v966_v32 = vpop.f32.mrb[0].mxu0 }
  0xda   :  { %v163_v33 = vadd.f32 %v966_v32, %v921_v31  ;;  %v157_v34 = vpop.f32.mrb[1].mxu0 }
  0xdb   :  { %v158_v35 = vadd.f32 %v921_v31, %v157_v34 }
  0xdc   :  { %v197_v38 = vmax.f32 %v163_v33, 0.0 }
  0xdd   :  { %v196_v36 = vmax.f32 %v158_v35, 0.0  ;;  %v969_v37 = vpop.f32.mrb[2].mxu0 }
  0xde   :  { %v173_v39 = vadd.f32 %v969_v37, %v921_v31  ;;  %v167_v40 = vpop.f32.mrb[3].mxu0 }
  0xdf   :  { %v168_v41 = vadd.f32 %v921_v31, %v167_v40  ;;  %984 = vmatprep.mubr.msk.f32.mxu1 %vm215_vm1, %v196_v36 }
  0xe0   :  { %985 = vmatmul.mubr.msk.f32.vlgmr.msra.gmra.mrb[0].mxu1 %vm215_vm1, %v197_v38  ;;  %v199_v44 = vmax.f32 %v173_v39, 0.0 }
  0xe1   :  { %v198_v42 = vmax.f32 %v168_v41, 0.0  ;;  %v972_v43 = vpop.f32.mrb[4].mxu0 }
  0xe2   :  { %v183_v45 = vadd.f32 %v972_v43, %v921_v31  ;;  %v177_v46 = vpop.f32.mrb[5].mxu0 }
  0xe3   :  { %v178_v47 = vadd.f32 %v921_v31, %v177_v46  ;;  %987 = vmatprep.mubr.msk.f32.mxu1 %vm215_vm1, %v198_v42 }
  0xe4   :  { %v201_v48 = vmax.f32 %v183_v45, 0.0  ;;  %988 = vmatmul.mubr.msk.f32.gmra.mrb[2].mxu1 %vm215_vm1, %v199_v44 }
  0xe5   :  { %v200_v49 = vmax.f32 %v178_v47, 0.0  ;;  %v975_v50 = vpop.f32.mrb[6].mxu0 }
  0xe6   :  { %v193_v51 = vadd.f32 %v975_v50, %v921_v31  ;;  %v187_v52 = vpop.f32.mrb[7].mxu0  ;;  %v1030_v50 = vmov 839922192  }
  0xe7   :  { %v188_v53 = vadd.f32 %v921_v31, %v187_v52  ;;  %990 = vmatprep.mubr.msk.f32.mxu1 %vm215_vm1, %v200_v49  ;;  %v1031_v52 = vmov 1985246804  }
  0xe8   :  { %v203_v54 = vmax.f32 %v193_v51, 0.0  ;;  %991 = vmatmul.mubr.msk.f32.gmra.mrb[4].mxu1 %vm215_vm1, %v201_v48  ;;  %v461_v51 = vunpack.c.l.s4 %v1030_v50 }
  0xe9   :  { %v202_v55 = vmax.f32 %v188_v53, 0.0  ;;  %v468_v53 = vunpack.c.l.s4 %v1031_v52 }
  0xeb   :  { %993 = vmatprep.mubr.msk.f32.mxu1 %vm215_vm1, %v202_v55 }
  0xec   :  { %994 = vmatmul.mubr.msk.f32.gmra.mrb[6].mxu1 %vm215_vm1, %v203_v54  ;;  %v462_v54 = vunpack.c.0.s8 %v461_v51 }
 0x1b3   :  { %v986_v57 = vpop.f32.mrb[0].mxu1 }
 0x1b4   :  { %v312_v58 = vadd.f32 %v986_v57, %v930_v56  ;;  %v306_v59 = vpop.f32.mrb[1].mxu1 }
 0x1b5   :  { %v307_v60 = vadd.f32 %v930_v56, %v306_v59 }
 0x1b6   :  { %v354_v61 = vcombine.high %v312_v58, %v312_v58  ;;  %v1206_v0 = vadd.f32 %v312_v58, %v1090_v4 }
 0x1b7   :  { %v353_v62 = vcombine.high %v307_v60, %v307_v60  ;;  %v989_v63 = vpop.f32.mrb[2].mxu1  ;;  %v1212_v14 = vadd.f32 %v307_v60, %v1078_v1 }
 0x1b8   :  { %v322_v3 = vadd.f32 %v989_v63, %v930_v56  ;;  %v316_v7 = vpop.f32.mrb[3].mxu1  ;;  %v1209_v11 = vadd.f32 %v354_v61, %v1095_v5 }
 0x1b9   :  { %v317_v15 = vadd.f32 %v930_v56, %v316_v7  ;;  %v1215_v18 = vadd.f32 %v353_v62, %v1083_v2 }
 0x1ba   :  { %v356_v21 = vcombine.high %v322_v3, %v322_v3  ;;  %v404_v22 = vcombine.low %v1206_v0, %v1209_v11  ;;  %v1222_v27 = vadd.f32 %v322_v3, %v1112_v9 }
 0x1bb   :  { %v355_v23 = vcombine.high %v317_v15, %v317_v15  ;;  %v992_v24 = vpop.f32.mrb[4].mxu1  ;;  %v403_v4 = vcombine.low %v1212_v14, %v1215_v18  ;;  %v1232_v31 = vadd.f32 %v317_v15, %v1100_v6 }
 0x1bc   :  { %v332_v5 = vadd.f32 %v992_v24, %v930_v56  ;;  %v326_v28 = vpop.f32.mrb[5].mxu1  ;;  %v422_v1 = vsel %vm74_vm0, %v404_v22, 0.0  ;;  %v1226_v29 = vadd.f32 %v356_v21, %v1117_v10 }
 0x1bd   :  { %v327_v2 = vadd.f32 %v930_v56, %v326_v28  ;;  %423 = vadd.xlane.f32.xlu0 %v422_v1  ;;  %v1229_v30 = vadd.f32 %v355_v23, %v1107_v8  ;;  %v419_v10 = vsel %vm74_vm0, %v403_v4, 0.0 }
 0x1be   :  { %v358_v32 = vcombine.high %v332_v5, %v332_v5  ;;  %v406_v9 = vcombine.low %v1222_v27, %v1226_v29  ;;  %v1237_v33 = vadd.f32 %v332_v5, %v1141_v16 }
 0x1bf   :  { %v357_v34 = vcombine.high %v327_v2, %v327_v2  ;;  %v995_v35 = vpop.f32.mrb[6].mxu1  ;;  %v405_v8 = vcombine.low %v1232_v31, %v1229_v30  ;;  %v1247_v39 = vadd.f32 %v327_v2, %v1125_v12 }
 0x1c0   :  { %v342_v36 = vadd.f32 %v995_v35, %v930_v56  ;;  %v336_v37 = vpop.f32.mrb[7].mxu1  ;;  %v428_v38 = vsel %vm74_vm0, %v406_v9, 0.0  ;;  %v1244_v6 = vadd.f32 %v358_v32, %v1146_v17 }
 0x1c1   :  { %v337_v40 = vadd.f32 %v930_v56, %v336_v37  ;;  %429 = vadd.xlane.f32.xlu1 %v428_v38  ;;  %420 = vadd.xlane.f32.xlu0 %v419_v10  ;;  %v1250_v16 = vadd.f32 %v357_v34, %v1130_v13  ;;  %v425_v17 = vsel %vm74_vm0, %v405_v8, 0.0  ;;  %v469_v56 = vunpack.c.0.s8 %v468_v53 }
 0x1c2   :  { %v360_v41 = vcombine.high %v342_v36, %v342_v36  ;;  %v1255_v44 = vadd.f32 %v342_v36, %v1173_v25  ;;  %v408_v12 = vcombine.low %v1237_v33, %v1244_v6 }
 0x1c3   :  { %v359_v42 = vcombine.high %v337_v40, %v337_v40  ;;  %v407_v43 = vcombine.low %v1247_v39, %v1250_v16  ;;  %v1264_v46 = vadd.f32 %v337_v40, %v1154_v19 }
 0x1c4   :  { %v1261_v45 = vadd.f32 %v360_v41, %v1178_v26  ;;  %v434_v48 = vsel %vm74_vm0, %v408_v12, 0.0 }
 0x1c5   :  { %426 = vadd.xlane.f32.xlu1 %v425_v17  ;;  %v431_v13 = vsel %vm74_vm0, %v407_v43, 0.0  ;;  %v1268_v47 = vadd.f32 %v359_v42, %v1159_v20  ;;  %v463_v20 = vlaneseq }
 0x1c6   :  { %432 = vadd.xlane.f32.xlu0 %v431_v13  ;;  %v410_v49 = vcombine.low %v1255_v44, %v1261_v45 }
 0x1c7   :  { %v409_v25 = vcombine.low %v1264_v46, %v1268_v47  ;;  %v464_v55 = vshrl.u32 %v463_v20, 7 }
 0x1c8   :  { %v440_v19 = vsel %vm74_vm0, %v410_v49, 0.0 }
 0x1c9   :  { %435 = vadd.xlane.f32.xlu1 %v434_v48  ;;  %v437_v26 = vsel %vm74_vm0, %v409_v25, 0.0  ;;  %v1277_v57 = vsub.s32 %v462_v54, %v464_v55  ;;  %v1279_v58 = vsub.s32 %v469_v56, %v464_v55 }
 0x1ca   :  { %438 = vadd.xlane.f32.xlu0 %v437_v26 }
 0x1cd   :  { %441 = vadd.xlane.f32.xlu1 %v440_v19 }
 0x24a   :  { %v424_v59 = vpop.xlane.xlu0 %423 }
 0x24b   :  { %v445_v60 = vmul.f32 0.125, %v424_v59 }
 0x24d   :  { %v480_v61 = vrot.slane %v445_v60, %v1277_v57  ;;  %v487_v62 = vrot.slane %v445_v60, %v1279_v58 }
 0x24e   :  { %v430_v63 = vpop.xlane.xlu1 %429  ;;  %v421_v3 = vpop.xlane.xlu0 %420 }
 0x24f   :  { %v1284_v7 = vsub.f32 %v1206_v0, %v480_v61  ;;  %v1287_v15 = vsub.f32 %v1209_v11, %v487_v62  ;;  %v447_v21 = vmul.f32 0.125, %v430_v63  ;;  %v444_v22 = vmul.f32 0.125, %v421_v3 }
 0x251   :  { %v508_v23 = vrot.slane %v447_v21, %v1277_v57  ;;  %v515_v24 = vrot.slane %v447_v21, %v1279_v58  ;;  %v466_v4 = vrot.slane %v444_v22, %v1277_v57  ;;  %v473_v5 = vrot.slane %v444_v22, %v1279_v58 }
 0x252   :  { %v427_v28 = vpop.xlane.xlu1 %426  ;;  %v606_v1 = vmul.f32 %v1284_v7, %v1284_v7  ;;  %v607_v0 = vmul.f32 %v1287_v15, %v1287_v15 }
 0x253   :  { %v1298_v11 = vsub.f32 %v1222_v27, %v508_v23  ;;  %v1301_v2 = vsub.f32 %v1226_v29, %v515_v24  ;;  %v1304_v32 = vsub.f32 %v1212_v14, %v466_v4  ;;  %v1307_v9 = vsub.f32 %v1215_v18, %v473_v5  ;;  %v433_v34 = vpop.xlane.xlu0 %432 }
 0x254   :  { %v446_v35 = vmul.f32 0.125, %v427_v28  ;;  %v448_v10 = vmul.f32 0.125, %v433_v34  ;;  %v637_v36 = vcombine.low %v606_v1, %v607_v0 }
 0x255   :  { %v610_v37 = vmul.f32 %v1298_v11, %v1298_v11  ;;  %v611_v27 = vmul.f32 %v1301_v2, %v1301_v2  ;;  %v604_v29 = vmul.f32 %v1304_v32, %v1304_v32  ;;  %v605_v14 = vmul.f32 %v1307_v9, %v1307_v9 }
 0x256   :  { %v494_v38 = vrot.slane %v446_v35, %v1277_v57  ;;  %v501_v18 = vrot.slane %v446_v35, %v1279_v58  ;;  %v522_v8 = vrot.slane %v448_v10, %v1277_v57  ;;  %v529_v40 = vrot.slane %v448_v10, %v1279_v58  ;;  %v436_v41 = vpop.xlane.xlu1 %435 }
 0x257   :  { %v655_v42 = vsel %vm74_vm0, %v637_v36, 0.0  ;;  %v449_v43 = vmul.f32 0.125, %v436_v41  ;;  %v439_v17 = vpop.xlane.xlu0 %438  ;;  %v639_v12 = vcombine.low %v610_v37, %v611_v27  ;;  %v636_v13 = vcombine.low %v604_v29, %v605_v14 }
 0x258   :  { %v1323_v25 = vsub.f32 %v1232_v31, %v494_v38  ;;  %v1326_v48 = vsub.f32 %v1229_v30, %v501_v18  ;;  %v1329_v49 = vsub.f32 %v1247_v39, %v522_v8  ;;  %v1332_v26 = vsub.f32 %v1250_v16, %v529_v40  ;;  %656 = vadd.xlane.f32.xlu1 %v655_v42 }
 0x259   :  { %v536_v19 = vrot.slane %v449_v43, %v1277_v57  ;;  %v543_v50 = vrot.slane %v449_v43, %v1279_v58  ;;  %v450_v51 = vmul.f32 0.125, %v439_v17  ;;  %v661_v20 = vsel %vm74_vm0, %v639_v12, 0.0 }
 0x25a   :  { %v442_v52 = vpop.xlane.xlu1 %441  ;;  %v652_v31 = vsel %vm74_vm0, %v636_v13, 0.0  ;;  %v608_v30 = vmul.f32 %v1323_v25, %v1323_v25  ;;  %v609_v39 = vmul.f32 %v1326_v48, %v1326_v48  ;;  %v612_v16 = vmul.f32 %v1329_v49, %v1329_v49 }
 0x25b   :  { %v1345_v53 = vsub.f32 %v1237_v33, %v536_v19  ;;  %v1348_v54 = vsub.f32 %v1244_v6, %v543_v50  ;;  %v550_v55 = vrot.slane %v450_v51, %v1277_v57  ;;  %v557_v56 = vrot.slane %v450_v51, %v1279_v58  ;;  %653 = vadd.xlane.f32.xlu0 %v652_v31  ;;  %v1388_v19 = vld [vmem:[%s1536_s5] ss:$0 sm:$0xff] }
 0x25c   :  { %662 = vadd.xlane.f32.xlu1 %v661_v20  ;;  %v451_v59 = vmul.f32 0.125, %v442_v52  ;;  %v638_v60 = vcombine.low %v608_v30, %v609_v39  ;;  %v613_v61 = vmul.f32 %v1332_v26, %v1332_v26  ;;  %v1393_v31 = vld [vmem:[%s1537_s6] ss:$0 sm:$0xff]  ;;  %v1397_v30 = vcombine.high %v1388_v19, %v1388_v19 }
 0x25d   :  { %v1355_v62 = vsub.f32 %v1264_v46, %v550_v55  ;;  %v1358_v33 = vsub.f32 %v1268_v47, %v557_v56  ;;  %v614_v6 = vmul.f32 %v1345_v53, %v1345_v53  ;;  %v615_v63 = vmul.f32 %v1348_v54, %v1348_v54 }
 0x25e   :  { %v564_v3 = vrot.slane %v451_v59, %v1277_v57  ;;  %v571_v21 = vrot.slane %v451_v59, %v1279_v58  ;;  %v658_v22 = vsel %vm74_vm0, %v638_v60, 0.0  ;;  %v640_v23 = vcombine.low %v612_v16, %v613_v61 }
 0x25f   :  { %659 = vadd.xlane.f32.xlu0 %v658_v22  ;;  %v641_v24 = vcombine.low %v614_v6, %v615_v63  ;;  %v616_v46 = vmul.f32 %v1355_v62, %v1355_v62  ;;  %v617_v47 = vmul.f32 %v1358_v33, %v1358_v33  ;;  %v1403_v6 = vcombine.high %v1393_v31, %v1393_v31 }
 0x260   :  { %v1372_v4 = vsub.f32 %v1255_v44, %v564_v3  ;;  %v1375_v5 = vsub.f32 %v1261_v45, %v571_v21  ;;  %v664_v1 = vsel %vm74_vm0, %v640_v23, 0.0 }
 0x261   :  { %v667_v28 = vsel %vm74_vm0, %v641_v24, 0.0  ;;  %v642_v35 = vcombine.low %v616_v46, %v617_v47 }
 0x262   :  { %668 = vadd.xlane.f32.xlu1 %v667_v28  ;;  %v618_v0 = vmul.f32 %v1372_v4, %v1372_v4  ;;  %v619_v34 = vmul.f32 %v1375_v5, %v1375_v5 }
 0x263   :  { %665 = vadd.xlane.f32.xlu0 %v664_v1  ;;  %v670_v36 = vsel %vm74_vm0, %v642_v35, 0.0 }
 0x264   :  { %v643_v10 = vcombine.low %v618_v0, %v619_v34 }
 0x266   :  { %v673_v44 = vsel %vm74_vm0, %v643_v10, 0.0 }
 0x267   :  { %674 = vadd.xlane.f32.xlu1 %v673_v44  ;;  %671 = vadd.xlane.f32.xlu0 %v670_v36 }
 0x2e5   :  { %v657_v45 = vpop.xlane.xlu1 %656 }
 0x2e6   :  { %v677_v37 = vmul.f32 0.125, %v657_v45 }
 0x2e8   :  { %v685_v27 = vadd.f32 1e-05, %v677_v37  ;;  %v654_v29 = vpop.xlane.xlu0 %653 }
 0x2e9   :  { %v663_v14 = vpop.xlane.xlu1 %662  ;;  %v676_v38 = vmul.f32 0.125, %v654_v29 }
 0x2ea   :  { %1014 = vrsqrt.f32 %v685_v27  ;;  %v679_v18 = vmul.f32 0.125, %v663_v14 }
 0x2eb   :  { %v684_v8 = vadd.f32 1e-05, %v676_v38 }
 0x2ec   :  { %v687_v40 = vadd.f32 1e-05, %v679_v18  ;;  %v660_v41 = vpop.xlane.xlu0 %659 }
 0x2ed   :  { %1016 = vrsqrt.f32 %v684_v8  ;;  %v678_v42 = vmul.f32 0.125, %v660_v41 }
 0x2ee   :  { %1018 = vrsqrt.f32 %v687_v40 }
 0x2ef   :  { %v686_v43 = vadd.f32 1e-05, %v678_v42  ;;  %v669_v17 = vpop.xlane.xlu1 %668 }
 0x2f0   :  { %v681_v12 = vmul.f32 0.125, %v669_v17  ;;  %v666_v13 = vpop.xlane.xlu0 %665 }
 0x2f1   :  { %1020 = vrsqrt.f32 %v686_v43  ;;  %v680_v50 = vmul.f32 0.125, %v666_v13 }
 0x2f2   :  { %v689_v51 = vadd.f32 1e-05, %v681_v12 }
 0x2f3   :  { %v688_v20 = vadd.f32 1e-05, %v680_v50 }
 0x2f4   :  { %v1015_v52 = vpop.eup %1014  ;;  %1022 = vrsqrt.f32 %v689_v51  ;;  %v675_v39 = vpop.xlane.xlu1 %674 }
 0x2f5   :  { %v672_v16 = vpop.xlane.xlu0 %671  ;;  %v728_v55 = vrot.slane %v1015_v52, %v1277_v57  ;;  %v735_v56 = vrot.slane %v1015_v52, %v1279_v58  ;;  %1024 = vrsqrt.f32 %v688_v20  ;;  %v683_v59 = vmul.f32 0.125, %v675_v39 }
 0x2f6   :  { %v682_v60 = vmul.f32 0.125, %v672_v16 }
 0x2f7   :  { %v1017_v61 = vpop.eup %1016  ;;  %v838_v63 = vmul.f32 %v728_v55, %v1284_v7  ;;  %v839_v3 = vmul.f32 %v735_v56, %v1287_v15  ;;  %v691_v21 = vadd.f32 1e-05, %v683_v59 }
 0x2f8   :  { %v1019_v22 = vpop.eup %1018  ;;  %v714_v23 = vrot.slane %v1017_v61, %v1277_v57  ;;  %v721_v24 = vrot.slane %v1017_v61, %v1279_v58  ;;  %v690_v46 = vadd.f32 1e-05, %v682_v60 }
 0x2f9   :  { %v862_v47 = vmul.f32 %v1388_v19, %v838_v63  ;;  %v863_v28 = vmul.f32 %v1397_v30, %v839_v3  ;;  %v756_v1 = vrot.slane %v1019_v22, %v1277_v57  ;;  %v763_v0 = vrot.slane %v1019_v22, %v1279_v58 }
 0x2fa   :  { %v836_v7 = vmul.f32 %v714_v23, %v1304_v32  ;;  %v837_v15 = vmul.f32 %v721_v24, %v1307_v9  ;;  %1026 = vrsqrt.f32 %v691_v21 }
 0x2fb   :  { %v1021_v34 = vpop.eup %1020  ;;  %v886_v35 = vadd.f32 %v1393_v31, %v862_v47  ;;  %v887_v10 = vadd.f32 %v1403_v6, %v863_v28  ;;  %v842_v44 = vmul.f32 %v756_v1, %v1298_v11  ;;  %v843_v36 = vmul.f32 %v763_v0, %v1301_v2 }
 0x2fc   :  { %v860_v45 = vmul.f32 %v1388_v19, %v836_v7  ;;  %v861_v37 = vmul.f32 %v1397_v30, %v837_v15  ;;  %v742_v27 = vrot.slane %v1021_v34, %v1277_v57  ;;  %v749_v32 = vrot.slane %v1021_v34, %v1279_v58 }
 0x2fd   :  { %903 = vst.msk [vmem:[%s1538_s7 + $0x8] sm:$0xf] %vm900_vm2, %v886_v35  ;;  %904 = vst.msk [vmem:[%s1538_s7 + $0xc] sm:$0xf] %vm900_vm2, %v887_v10  ;;  %v866_v11 = vmul.f32 %v1388_v19, %v842_v44  ;;  %v867_v2 = vmul.f32 %v1397_v30, %v843_v36  ;;  %1028 = vrsqrt.f32 %v690_v46 }
 0x2fe   :  { %v1023_v9 = vpop.eup %1022  ;;  %v884_v29 = vadd.f32 %v1393_v31, %v860_v45  ;;  %v885_v14 = vadd.f32 %v1403_v6, %v861_v37  ;;  %v840_v38 = vmul.f32 %v742_v27, %v1323_v25  ;;  %v841_v18 = vmul.f32 %v749_v32, %v1326_v48 }
 0x2ff   :  { %v1025_v8 = vpop.eup %1024  ;;  %v890_v40 = vadd.f32 %v1393_v31, %v866_v11  ;;  %v891_v41 = vadd.f32 %v1403_v6, %v867_v2  ;;  %v784_v42 = vrot.slane %v1023_v9, %v1277_v57  ;;  %v791_v43 = vrot.slane %v1023_v9, %v1279_v58 }
 0x300   :  { %901 = vst.msk [vmem:[%s1538_s7] sm:$0xf] %vm900_vm2, %v884_v29  ;;  %902 = vst.msk [vmem:[%s1538_s7 + $0x4] sm:$0xf] %vm900_vm2, %v885_v14  ;;  %v864_v25 = vmul.f32 %v1388_v19, %v840_v38  ;;  %v865_v48 = vmul.f32 %v1397_v30, %v841_v18  ;;  %v770_v17 = vrot.slane %v1025_v8, %v1277_v57 }
 0x301   :  { %v777_v12 = vrot.slane %v1025_v8, %v1279_v58  ;;  %907 = vst.msk [vmem:[%s1538_s7 + $0x18] sm:$0xf] %vm900_vm2, %v890_v40  ;;  %908 = vst.msk [vmem:[%s1538_s7 + $0x1c] sm:$0xf] %vm900_vm2, %v891_v41  ;;  %v846_v13 = vmul.f32 %v784_v42, %v1345_v53  ;;  %v847_v50 = vmul.f32 %v791_v43, %v1348_v54 }
 0x302   :  { %v888_v51 = vadd.f32 %v1393_v31, %v864_v25  ;;  %v889_v20 = vadd.f32 %v1403_v6, %v865_v48  ;;  %v844_v52 = vmul.f32 %v770_v17, %v1329_v49 }
 0x303   :  { %v845_v39 = vmul.f32 %v777_v12, %v1332_v26  ;;  %v870_v16 = vmul.f32 %v1388_v19, %v846_v13  ;;  %v871_v55 = vmul.f32 %v1397_v30, %v847_v50 }
 0x304   :  { %v1027_v56 = vpop.eup %1026  ;;  %905 = vst.msk [vmem:[%s1538_s7 + $0x10] sm:$0xf] %vm900_vm2, %v888_v51  ;;  %906 = vst.msk [vmem:[%s1538_s7 + $0x14] sm:$0xf] %vm900_vm2, %v889_v20  ;;  %v868_v53 = vmul.f32 %v1388_v19, %v844_v52 }
 0x305   :  { %v869_v49 = vmul.f32 %v1397_v30, %v845_v39  ;;  %v894_v26 = vadd.f32 %v1393_v31, %v870_v16  ;;  %v895_v54 = vadd.f32 %v1403_v6, %v871_v55  ;;  %v812_v59 = vrot.slane %v1027_v56, %v1277_v57 }
 0x306   :  { %v819_v60 = vrot.slane %v1027_v56, %v1279_v58  ;;  %v892_v61 = vadd.f32 %v1393_v31, %v868_v53 }
 0x307   :  { %v893_v63 = vadd.f32 %v1403_v6, %v869_v49  ;;  %v1029_v3 = vpop.eup %1028  ;;  %911 = vst.msk [vmem:[%s1538_s7 + $0x28] sm:$0xf] %vm900_vm2, %v894_v26  ;;  %912 = vst.msk [vmem:[%s1538_s7 + $0x2c] sm:$0xf] %vm900_vm2, %v895_v54  ;;  %v850_v21 = vmul.f32 %v812_v59, %v1372_v4 }
 0x308   :  { %v851_v22 = vmul.f32 %v819_v60, %v1375_v5  ;;  %909 = vst.msk [vmem:[%s1538_s7 + $0x20] sm:$0xf] %vm900_vm2, %v892_v61  ;;  %v798_v23 = vrot.slane %v1029_v3, %v1277_v57  ;;  %v805_v24 = vrot.slane %v1029_v3, %v1279_v58 }
 0x309   :  { %910 = vst.msk [vmem:[%s1538_s7 + $0x24] sm:$0xf] %vm900_vm2, %v893_v63  ;;  %v874_v46 = vmul.f32 %v1388_v19, %v850_v21 }
 0x30a   :  { %v875_v4 = vmul.f32 %v1397_v30, %v851_v22  ;;  %v848_v5 = vmul.f32 %v798_v23, %v1355_v62  ;;  %v849_v47 = vmul.f32 %v805_v24, %v1358_v33 }
 0x30b   :  { %v898_v28 = vadd.f32 %v1393_v31, %v874_v46 }
 0x30c   :  { %v899_v1 = vadd.f32 %v1403_v6, %v875_v4  ;;  %v872_v0 = vmul.f32 %v1388_v19, %v848_v5  ;;  %v873_v7 = vmul.f32 %v1397_v30, %v849_v47 }
 0x30d   :  { %915 = vst.msk [vmem:[%s1538_s7 + $0x38] sm:$0xf] %vm900_vm2, %v898_v28 }
 0x30e   :  { %916 = vst.msk [vmem:[%s1538_s7 + $0x3c] sm:$0xf] %vm900_vm2, %v899_v1  ;;  %v896_v57 = vadd.f32 %v1393_v31, %v872_v0  ;;  %v897_v58 = vadd.f32 %v1403_v6, %v873_v7 }
 0x310   :  { %913 = vst.msk [vmem:[%s1538_s7 + $0x30] sm:$0xf] %vm900_vm2, %v896_v57  ;;  %914 = vst.msk [vmem:[%s1538_s7 + $0x34] sm:$0xf] %vm900_vm2, %v897_v58 }

// kernel: _lambda_.35
= control target key start
LH: loop header
LB: loop body
LE: loop exit
PB: predicated region body
PF: predicated region fallthrough
CT: control target
= control target key end

     0   :  { %10 = vsyncpa [#allocation3], 0  ;;  %s259_s0 = inlined_call_operand.vmem [shape: f32[2], index: 0, kind: input, shape index: {}]   ;;  %s260_s1 = inlined_call_operand.vmem [shape: f32[16,32], index: 1, kind: input, shape index: {}]   ;;  %s261_s2 = inlined_call_operand.vmem [shape: f32[16,32], index: 2, kind: input, shape index: {}]   ;;  %s262_s3 = inlined_call_operand.vmem [shape: f32[32,6], index: 3, kind: input, shape index: {}]   ;;  %s263_s4 = inlined_call_operand.vmem [shape: f32[1,6], index: 4, kind: input, shape index: {}]   ;;  %s264_s5 = inlined_call_operand.vmem [shape: f32[16,6], index: 5, kind: output, shape index: {}]  }
   0x1   :  { %s17_s20 = sshll.u32 %s259_s0, 4  ;;  %s18_s20 = int_to_ptr.vmem [resolvable:$true] %s17_s20 }
   0x2   :  { %s178_s21 = scalar_lea.vmem %s18_s20, 16  ;;  %p183_p1 = scmp.lt.s32.totalorder %s18_s20, %s18_s20 }
   0x3   :  { %p179_p0 = scmp.ne.s32.totalorder %s18_s20, %s178_s21  ;;  %p184_p2 = scmp.lt.s32.totalorder %s178_s21, %s178_s21 }
   0x5   :  { %p185_p3 = por %p184_p2, %p183_p1 }
   0x7   :  { %p186_p4 = pnand %p185_p3, %p179_p0 }
   0x9   :  { %189 = shalt.err (!%p186_p4)
}
   0xa   :  { %s192_s22 = smov [#allocation2]  }
   0xb   :  { %20 = dma.vmem_to_smem %s18_s20, 16, %s192_s22, [#allocation3]  }
   0xc   :  { %190 = dma.done.wait [#allocation3], 16  }
   0xd   :  { %191 = vsyncadd [#allocation3], 4294967280 }
   0xe   :  { %32 = sfence }
   0xf   :  { %v47_v0 = vld [vmem:[%s262_s3] sm:$0xff]  ;;  %v48_v1 = vld [vmem:[%s262_s3 + $0x8] sm:$0xff]  ;;  %v49_v2 = vld [vmem:[%s262_s3 + $0x10] sm:$0xff]  ;;  %s33_s28 = sld [smem:[#allocation2]]  ;;  %s148_s6 = sld [smem:[#allocation2 + $0x1]]  ;;  %vm58_vm0 = vcmask 261120  }
  0x10   :  { %v169_v3 = vpack.c.bf16 %v48_v1, %v47_v0  ;;  %v50_v4 = vld [vmem:[%s262_s3 + $0x18] sm:$0xff]  ;;  %v34_v6 = vld [vmem:[%s260_s1] sm:$0xff]  ;;  %v35_v7 = vld [vmem:[%s260_s1 + $0x8] sm:$0xff]  ;;  %vm140_vm1 = vcmask 48128  }
  0x11   :  { %v173_v5 = vpack.c.bf16 %v50_v4, %v49_v2  ;;  %v40_v8 = vld [vmem:[%s261_s2] sm:$0xff]  ;;  %v41_v9 = vld [vmem:[%s261_s2 + $0x8] sm:$0xff] }
  0x12   :  { %170 = vmatprep.subr.bf16.mxu0 %v169_v3  ;;  %v149_v18 = vld [vmem:[%s263_s4] ss:$0 sm:$0xff] }
  0x13   :  { %172 = vmatpush3.bf16.msra.mxu0 %v169_v3 }
  0x14   :  { %174 = vmatprep.subr.bf16.mxu0 %v173_v5 }
  0x15   :  { %v36_v10 = vstv %s33_s28  ;;  %v42_v13 = vstv %s148_s6 }
  0x16   :  { %v37_v11 = vmul.f32 %v36_v10, %v34_v6  ;;  %v38_v12 = vmul.f32 %v36_v10, %v35_v7  ;;  %v43_v14 = vmul.f32 %v42_v13, %v40_v8  ;;  %v44_v15 = vmul.f32 %v42_v13, %v41_v9 }
  0x17   :  { %176 = vmatpush3.bf16.msra.mxu0 %v173_v5 }
  0x18   :  { %v45_v16 = vadd.f32 %v43_v14, %v37_v11  ;;  %v46_v17 = vadd.f32 %v44_v15, %v38_v12 }
  0x1a   :  { %166 = vmatprep.mubr.msk.f32.mxu0 %vm58_vm0, %v45_v16 }
  0x1b   :  { %167 = vmatmul.mubr.msk.f32.vlgmr.msra.gmra.mrb[0].mxu0 %vm58_vm0, %v46_v17 }
  0xee   :  { %v168_v19 = vpop.f32.mrb[0].mxu0 }
  0xef   :  { %v137_v20 = vadd.f32 %v168_v19, %v149_v18  ;;  %v131_v21 = vpop.f32.mrb[1].mxu0 }
  0xf0   :  { %v132_v22 = vadd.f32 %v149_v18, %v131_v21 }
  0xf1   :  { %142 = vst.msk [vmem:[%s264_s5 + $0x8] sm:$0xff] %vm140_vm1, %v137_v20 }
  0xf2   :  { %141 = vst.msk [vmem:[%s264_s5] sm:$0xff] %vm140_vm1, %v132_v22 }
  0xf3   :  { %147 = vsyncpa [#allocation3], 1 }

// kernel: _lambda_.26
= control target key start
LH: loop header
LB: loop body
LE: loop exit
PB: predicated region body
PF: predicated region fallthrough
CT: control target
= control target key end

     0   :  { %vm99_vm0 = vcmask 64512   ;;  %v3853_v18 = vmov 0.0   ;;  %vm3854_vm1 = vmmov 0   ;;  %vm1781_vm2 = vcmask 1043456   ;;  %s4601_s2 = inlined_call_operand.vmem [shape: f32[8,8], index: 2, kind: input, shape index: {}]   ;;  %s4602_s0 = inlined_call_operand.vmem [shape: f32[16,4,8], index: 0, kind: input, shape index: {}, may-alias: {0,1}]   ;;  %s4603_s4 = inlined_call_operand.vmem [shape: f32[8,16], index: 4, kind: input, shape index: {}]   ;;  %s4604_s1 = inlined_call_operand.vmem [shape: f32[16,4,8], index: 1, kind: input, shape index: {}, may-alias: {0,1}]   ;;  %s4605_s5 = inlined_call_operand.vmem [shape: f32[1,16], index: 5, kind: input, shape index: {}]   ;;  %s4606_s3 = inlined_call_operand.vmem [shape: f32[1,8], index: 3, kind: input, shape index: {}]   ;;  %s4607_s6 = inlined_call_operand.vmem [shape: f32[1,8,8], index: 6, kind: input, shape index: {}]   ;;  %s4608_s7 = inlined_call_operand.vmem [shape: f32[1,8], index: 7, kind: input, shape index: {}]   ;;  %s4609_s8 = inlined_call_operand.vmem [shape: f32[1,8], index: 8, kind: input, shape index: {}]   ;;  %s4610_s9 = inlined_call_operand.vmem [shape: f32[1,8], index: 9, kind: input, shape index: {}]   ;;  %s4611_s10 = inlined_call_operand.vmem [shape: f32[16,4,8], index: 10, kind: output, shape index: {}]  }
   0x1   :  { %v67_v0 = vld [vmem:[%s4601_s2] sm:$0xff]  ;;  %v3750_v2 = vld [vmem:[%s4602_s0 + $0x28] sm:$0xff]   ;;  %v3751_v3 = vld [vmem:[%s4602_s0 + $0x30] sm:$0xff]   ;;  %vm1598_vm3 = vcmask 27648   ;;  %vm1777_vm4 = vcmask 31744   ;;  %vm3337_vm5 = vcmask 60416  }
   0x2   :  { %3744 = vmatprep.subr.mxu1 %v67_v0  ;;  %v3749_v1 = vld [vmem:[%s4602_s0 + $0x20] sm:$0xff]   ;;  %3542 = vmatprep.subr.mxu0 %v67_v0  ;;  %v3752_v4 = vld [vmem:[%s4602_s0 + $0x38] sm:$0xff]   ;;  %v3755_v8 = vld [vmem:[%s4604_s1 + $0x8] sm:$0xff]  }
   0x3   :  { %3745 = vmatpush3.msra.mxu1 %v67_v0  ;;  %3543 = vmatpush3.msra.mxu0 %v67_v0  ;;  %v221_v5 = vld [vmem:[%s4603_s4] sm:$0xff]  ;;  %v3756_v9 = vld [vmem:[%s4602_s0 + $0x8] sm:$0xff]   ;;  %v3757_v10 = vld [vmem:[%s4604_s1 + $0x10] sm:$0xff]  }
   0x4   :  { %3550 = vmatprep.mubr.msk.f32.mxu1 %vm99_vm0, %v3749_v1  ;;  %3556 = vmatprep.subr.mxu1 %v221_v5  ;;  %v3753_v6 = vld [vmem:[%s4604_s1] sm:$0xff]   ;;  %v3758_v11 = vld [vmem:[%s4602_s0 + $0x10] sm:$0xff]   ;;  %v3759_v12 = vld [vmem:[%s4604_s1 + $0x18] sm:$0xff]  }
   0x5   :  { %3551 = vmatmul.mubr.msk.f32.vlgmr.msra.gmra.mrb[0].mxu1 %vm99_vm0, %v3750_v2  ;;  %v3754_v7 = vld [vmem:[%s4602_s0] sm:$0xff]   ;;  %v3760_v13 = vld [vmem:[%s4602_s0 + $0x18] sm:$0xff]   ;;  %v3762_v15 = vld [vmem:[%s4604_s1 + $0x28] sm:$0xff]   ;;  %3570 = vmatprep.subr.mxu0 %v3853_v18 }
   0x6   :  { %3553 = vmatprep.mubr.msk.f32.mxu1 %vm99_vm0, %v3751_v3  ;;  %3557 = vmatpush3.msra.mxu1 %v221_v5  ;;  %v3761_v14 = vld [vmem:[%s4604_s1 + $0x20] sm:$0xff]   ;;  %v3763_v16 = vld [vmem:[%s4604_s1 + $0x30] sm:$0xff]   ;;  %v3764_v17 = vld [vmem:[%s4604_s1 + $0x38] sm:$0xff]  }
   0x7   :  { %3544 = vmatprep.mubr.msk.f32.mxu0 %vm99_vm0, %v3754_v7  ;;  %3575 = vmatprep.subr.mxu1 %v3853_v18  ;;  %v3998_v23 = vld [vmem:[%s4605_s5] ss:$0 sm:$0xff]  ;;  %s3855_s5 = smov 120  }
   0x8   :  { %3545 = vmatmul.mubr.msk.f32.vlgmr.msra.gmra.mrb[0].mxu0 %vm99_vm0, %v3756_v9  ;;  %v4003_v25 = vld [vmem:[%s4606_s3] ss:$0 sm:$0xff] }
   0x9   :  { %3554 = vmatmul.mubr.msk.f32.gmra.mrb[2].mxu1 %vm99_vm0, %v3752_v4  ;;  %3547 = vmatprep.mubr.msk.f32.mxu0 %vm99_vm0, %v3758_v11 }
   0xa   :  { %3558 = vmatprep.mubr.msk.f32.mxu1 %vm99_vm0, %v3753_v6 }
   0xc   :  { %3548 = vmatmul.mubr.msk.f32.gmra.mrb[2].mxu0 %vm99_vm0, %v3760_v13 }
   0xd   :  { %3559 = vmatmul.mubr.msk.f32.vlgmr.msra.gmra.mrb[4].mxu1 %vm99_vm0, %v3755_v8  ;;  %3572 = vmatprep.mubr.msk.f32.mxu0 %vm3854_vm1, %v3853_v18 }
   0xe   :  { %3561 = vmatprep.mubr.msk.f32.mxu1 %vm99_vm0, %v3757_v10 }
  0x11   :  { %3562 = vmatmul.mubr.msk.f32.gmra.mrb[6].mxu1 %vm99_vm0, %v3759_v12 }
  0x12   :  { %3564 = vmatprep.mubr.msk.f32.mxu1 %vm99_vm0, %v3761_v14 }
  0x15   :  { %3565 = vmatmul.mubr.msk.f32.gmra.mrb[8].mxu1 %vm99_vm0, %v3762_v15 }
  0x16   :  { %3567 = vmatprep.mubr.msk.f32.mxu1 %vm99_vm0, %v3763_v16 }
  0x19   :  { %3568 = vmatmul.mubr.msk.f32.gmra.mrb[10].mxu1 %vm99_vm0, %v3764_v17 }
  0x1a   :  { %3577 = vmatprep.mubr.msk.f32.mxu1 %vm3854_vm1, %v3853_v18 }
  0xd8   :  { %v3987_v19 = vpop.f32.mrb[0].mxu1 }
  0xd9   :  { %v3989_v20 = vpop.f32.mrb[1].mxu1  ;;  %v208_v60 = vadd.f32 %v3987_v19, %v4003_v25 }
  0xda   :  { %v203_v56 = vadd.f32 %v4003_v25, %v3989_v20 }
  0xdb   :  { %v3546_v24 = vpop.f32.mrb[0].mxu0  ;;  %v379_v0 = vmul.f32 0.35355338, %v208_v60 }
  0xdc   :  { %v3991_v21 = vpop.f32.mrb[2].mxu1  ;;  %v182_v26 = vpop.f32.mrb[1].mxu0  ;;  %v188_v34 = vadd.f32 %v3546_v24, %v4003_v25  ;;  %v378_v61 = vmul.f32 0.35355338, %v203_v56 }
  0xdd   :  { %v3993_v22 = vpop.f32.mrb[3].mxu1  ;;  %v183_v28 = vadd.f32 %v4003_v25, %v182_v26  ;;  %v395_v5 = vcombine.high %v379_v0, %v379_v0  ;;  %v218_v7 = vadd.f32 %v3991_v21, %v4003_v25 }
  0xde   :  { %v375_v43 = vmul.f32 0.35355338, %v188_v34  ;;  %v394_v1 = vcombine.high %v378_v61, %v378_v61  ;;  %v213_v2 = vadd.f32 %v4003_v25, %v3993_v22 }
  0xdf   :  { %v374_v32 = vmul.f32 0.35355338, %v183_v28  ;;  %v3549_v33 = vpop.f32.mrb[2].mxu0  ;;  %v381_v10 = vmul.f32 0.35355338, %v218_v7 }
  0xe0   :  { %v3560_v27 = vpop.f32.mrb[4].mxu1  ;;  %v192_v36 = vpop.f32.mrb[3].mxu0  ;;  %v391_v48 = vcombine.high %v375_v43, %v375_v43  ;;  %v198_v49 = vadd.f32 %v3549_v33, %v4003_v25  ;;  %v380_v6 = vmul.f32 0.35355338, %v213_v2 }
  0xe1   :  { %v341_v29 = vadd.f32 %v3560_v27, %v3998_v23  ;;  %v335_v30 = vpop.f32.mrb[5].mxu1  ;;  %v390_v39 = vcombine.high %v374_v32, %v374_v32  ;;  %v193_v41 = vadd.f32 %v4003_v25, %v192_v36  ;;  %v397_v12 = vcombine.high %v381_v10, %v381_v10 }
  0xe2   :  { %v336_v31 = vadd.f32 %v3998_v23, %v335_v30  ;;  %v377_v55 = vmul.f32 0.35355338, %v198_v49  ;;  %v396_v9 = vcombine.high %v380_v6, %v380_v6 }
  0xe3   :  { %1931 = vrot.lane.b32.xlu0 %v341_v29, %s3855_s5  ;;  %v407_v35 = vcombine.high %v341_v29, %v341_v29  ;;  %v376_v45 = vmul.f32 0.35355338, %v193_v41 }
  0xe4   :  { %v406_v37 = vcombine.high %v336_v31, %v336_v31  ;;  %3571 = vmatpush3.xpose.msk.msra.mxu0 %vm99_vm0, %v336_v31  ;;  %v3563_v38 = vpop.f32.mrb[6].mxu1  ;;  %v393_v59 = vcombine.high %v377_v55, %v377_v55 }
  0xe5   :  { %2008 = vrot.lane.b32.xlu1 %v407_v35, %s3855_s5  ;;  %3580 = vmatprep.subr.mxu0 %v3853_v18  ;;  %v345_v40 = vpop.f32.mrb[7].mxu1  ;;  %v351_v51 = vadd.f32 %v3563_v38, %v3998_v23  ;;  %v392_v52 = vcombine.high %v376_v45, %v376_v45 }
  0xe6   :  { %3576 = vmatpush3.xpose.msk.msra.mxu1 %vm99_vm0, %v406_v37  ;;  %v346_v42 = vadd.f32 %v3998_v23, %v345_v40 }
  0xe7   :  { %1775 = vrot.lane.b32.xlu0 %v336_v31, %s3855_s5  ;;  %3573 = vmatmul.mubr.msk.f32.vlgmr.msra.gmra.mrb[4].mxu0 %vm99_vm0, %v374_v32  ;;  %v409_v57 = vcombine.high %v351_v51, %v351_v51 }
  0xe8   :  { %3581 = vmatpush3.xpose.msk.msra.mxu0 %vm99_vm0, %v341_v29  ;;  %3585 = vmatprep.subr.mxu1 %v3853_v18  ;;  %v3566_v44 = vpop.f32.mrb[8].mxu1  ;;  %v408_v47 = vcombine.high %v346_v42, %v346_v42 }
  0xe9   :  { %1854 = vrot.lane.b32.xlu1 %v406_v37, %s3855_s5  ;;  %3578 = vmatmul.mubr.msk.f32.vlgmr.msra.gmra.mrb[12].mxu1 %vm99_vm0, %v390_v39  ;;  %v355_v46 = vpop.f32.mrb[9].mxu1  ;;  %v4065_v62 = vadd.f32 %v3566_v44, %v3998_v23 }
  0xea   :  { %3582 = vmatprep.mubr.msk.f32.mxu0 %vm3854_vm1, %v3853_v18  ;;  %3586 = vmatpush3.xpose.msk.msra.mxu1 %vm99_vm0, %v407_v35  ;;  %v4040_v54 = vadd.f32 %v3998_v23, %v355_v46 }
  0xeb   :  { %3583 = vmatmul.mubr.msk.f32.vlgmr.msra.gmra.mrb[6].mxu0 %vm99_vm0, %v375_v43  ;;  %3590 = vmatprep.subr.mxu0 %v3853_v18  ;;  %v4084_v3 = vcombine.high %v4065_v62, %v4065_v62 }
  0xec   :  { %3587 = vmatprep.mubr.msk.f32.mxu1 %vm3854_vm1, %v3853_v18  ;;  %3591 = vmatpush3.xpose.msk.msra.mxu0 %vm99_vm0, %v346_v42  ;;  %v3569_v50 = vpop.f32.mrb[10].mxu1  ;;  %v410_v58 = vcombine.high %v4040_v54, %v4040_v54 }
  0xed   :  { %3588 = vmatmul.mubr.msk.f32.vlgmr.msra.gmra.mrb[14].mxu1 %vm99_vm0, %v391_v48  ;;  %3595 = vmatprep.subr.mxu1 %v3853_v18  ;;  %v365_v53 = vpop.f32.mrb[11].mxu1  ;;  %v4108_v8 = vadd.f32 %v3569_v50, %v3998_v23 }
  0xee   :  { %3592 = vmatprep.mubr.msk.f32.mxu0 %vm3854_vm1, %v3853_v18  ;;  %3596 = vmatpush3.xpose.msk.msra.mxu1 %vm99_vm0, %v408_v47  ;;  %v4075_v63 = vadd.f32 %v3998_v23, %v365_v53 }
  0xef   :  { %3593 = vmatmul.mubr.msk.f32.vlgmr.msra.gmra.mrb[8].mxu0 %vm99_vm0, %v376_v45  ;;  %3600 = vmatprep.subr.mxu0 %v3853_v18  ;;  %v4124_v11 = vcombine.high %v4108_v8, %v4108_v8 }
  0xf0   :  { %3597 = vmatprep.mubr.msk.f32.mxu1 %vm3854_vm1, %v3853_v18  ;;  %3601 = vmatpush3.xpose.msk.msra.mxu0 %vm99_vm0, %v351_v51  ;;  %v4093_v4 = vcombine.high %v4075_v63, %v4075_v63 }
  0xf1   :  { %2085 = vrot.lane.b32.xlu1 %v346_v42, %s3855_s5  ;;  %3598 = vmatmul.mubr.msk.f32.vlgmr.msra.gmra.mrb[16].mxu1 %vm99_vm0, %v392_v52 }
  0xf2   :  { %3605 = vmatprep.subr.mxu1 %v3853_v18  ;;  %3602 = vmatprep.mubr.msk.f32.mxu0 %vm3854_vm1, %v3853_v18 }
  0xf3   :  { %3606 = vmatpush3.xpose.msk.msra.mxu1 %vm99_vm0, %v409_v57  ;;  %3603 = vmatmul.mubr.msk.f32.vlgmr.msra.gmra.mrb[10].mxu0 %vm99_vm0, %v377_v55 }
  0xf4   :  { %3610 = vmatprep.subr.mxu0 %v3853_v18  ;;  %3607 = vmatprep.mubr.msk.f32.mxu1 %vm3854_vm1, %v3853_v18 }
  0xf5   :  { %3611 = vmatpush3.xpose.msk.msra.mxu0 %vm99_vm0, %v4040_v54  ;;  %2316 = vrot.lane.b32.xlu1 %v409_v57, %s3855_s5 }
  0xf6   :  { %3608 = vmatmul.mubr.msk.f32.vlgmr.msra.gmra.mrb[18].mxu1 %vm99_vm0, %v393_v59  ;;  %3615 = vmatprep.subr.mxu1 %v3853_v18 }
  0xf7   :  { %3612 = vmatprep.mubr.msk.f32.mxu0 %vm3854_vm1, %v3853_v18  ;;  %3616 = vmatpush3.xpose.msk.msra.mxu1 %vm99_vm0, %v410_v58 }
  0xf8   :  { %2239 = vrot.lane.b32.xlu0 %v351_v51, %s3855_s5  ;;  %3613 = vmatmul.mubr.msk.f32.vlgmr.msra.gmra.mrb[12].mxu0 %vm99_vm0, %v378_v61 }
  0xf9   :  { %3620 = vmatprep.subr.mxu0 %v3853_v18  ;;  %3617 = vmatprep.mubr.msk.f32.mxu1 %vm3854_vm1, %v3853_v18 }
  0xfa   :  { %3621 = vmatpush3.xpose.msk.msra.mxu0 %vm99_vm0, %v4065_v62  ;;  %2162 = vrot.lane.b32.xlu1 %v408_v47, %s3855_s5 }
  0xfb   :  { %3618 = vmatmul.mubr.msk.f32.vlgmr.msra.gmra.mrb[20].mxu1 %vm99_vm0, %v394_v1  ;;  %3625 = vmatprep.subr.mxu1 %v3853_v18 }
  0xfc   :  { %3622 = vmatprep.mubr.msk.f32.mxu0 %vm3854_vm1, %v3853_v18  ;;  %3626 = vmatpush3.xpose.msk.msra.mxu1 %vm99_vm0, %v4084_v3 }
  0xfd   :  { %3623 = vmatmul.mubr.msk.f32.vlgmr.msra.gmra.mrb[14].mxu0 %vm99_vm0, %v379_v0  ;;  %3630 = vmatprep.subr.mxu0 %v3853_v18 }
  0xfe   :  { %3627 = vmatprep.mubr.msk.f32.mxu1 %vm3854_vm1, %v3853_v18  ;;  %3631 = vmatpush3.xpose.msk.msra.mxu0 %vm99_vm0, %v4075_v63 }
  0xff   :  { %3628 = vmatmul.mubr.msk.f32.vlgmr.msra.gmra.mrb[22].mxu1 %vm99_vm0, %v395_v5  ;;  %3635 = vmatprep.subr.mxu1 %v3853_v18 }
 0x100   :  { %3632 = vmatprep.mubr.msk.f32.mxu0 %vm3854_vm1, %v3853_v18  ;;  %3636 = vmatpush3.xpose.msk.msra.mxu1 %vm99_vm0, %v4093_v4 }
 0x101   :  { %3633 = vmatmul.mubr.msk.f32.vlgmr.msra.gmra.mrb[16].mxu0 %vm99_vm0, %v380_v6  ;;  %3640 = vmatprep.subr.mxu0 %v3853_v18 }
 0x102   :  { %3637 = vmatprep.mubr.msk.f32.mxu1 %vm3854_vm1, %v3853_v18  ;;  %3641 = vmatpush3.xpose.msk.msra.mxu0 %vm99_vm0, %v4108_v8 }
 0x103   :  { %2470 = vrot.lane.b32.xlu1 %v410_v58, %s3855_s5  ;;  %3638 = vmatmul.mubr.msk.f32.vlgmr.msra.gmra.mrb[24].mxu1 %vm99_vm0, %v396_v9 }
 0x104   :  { %3645 = vmatprep.subr.mxu1 %v3853_v18  ;;  %3642 = vmatprep.mubr.msk.f32.mxu0 %vm3854_vm1, %v3853_v18 }
 0x105   :  { %3646 = vmatpush3.xpose.msk.msra.mxu1 %vm99_vm0, %v4124_v11  ;;  %3643 = vmatmul.mubr.msk.f32.vlgmr.msra.gmra.mrb[18].mxu0 %vm99_vm0, %v381_v10 }
 0x106   :  { %3647 = vmatprep.mubr.msk.f32.mxu1 %vm3854_vm1, %v3853_v18  ;;  %3650 = vmatprep.subr.mxu0 %v3853_v18 }
 0x107   :  { %3655 = vmatprep.subr.mxu1 %v3853_v18  ;;  %3652 = vmatprep.mubr.msk.f32.mxu0 %vm3854_vm1, %v3853_v18 }
 0x108   :  { %3648 = vmatmul.mubr.msk.f32.vlgmr.msra.gmra.mrb[26].mxu1 %vm99_vm0, %v397_v12 }
 0x109   :  { %3657 = vmatprep.mubr.msk.f32.mxu1 %vm3854_vm1, %v3853_v18 }
 0x155   :  { %v4143_v13 = vpop.permute.xlu0 %1931 }
 0x157   :  { %v4145_v14 = vpop.permute.xlu1 %2008 }
 0x159   :  { %v1776_v15 = vpop.permute.xlu0 %1775 }
 0x15a   :  { %3651 = vmatpush3.msk.msra.mxu0 %vm1781_vm2, %v1776_v15 }
 0x15b   :  { %v1855_v16 = vpop.permute.xlu1 %1854  ;;  %3660 = vmatprep.subr.mxu0 %v3853_v18 }
 0x15c   :  { %3656 = vmatpush3.msk.msra.mxu1 %vm1781_vm2, %v1855_v16 }
 0x15d   :  { %3665 = vmatprep.subr.mxu1 %v3853_v18 }
 0x163   :  { %v4225_v5 = vpop.permute.xlu1 %2085 }
 0x167   :  { %v4227_v6 = vpop.permute.xlu1 %2316 }
 0x16a   :  { %v4231_v9 = vpop.permute.xlu0 %2239 }
 0x16c   :  { %v4229_v7 = vpop.permute.xlu1 %2162 }
 0x175   :  { %v4233_v10 = vpop.permute.xlu1 %2470 }
 0x1ba   :  { %v4151_v17 = vpop.f32.mrb[4].mxu0 }
 0x1bb   :  { %v1599_v19 = vsel %vm1598_vm3, %v4151_v17, -inf  ;;  %v3574_v20 = vpop.f32.mrb[5].mxu0 }
 0x1bc   :  { %1600 = vmax.xlane.f32.xlu0 %v1599_v19  ;;  %v4155_v21 = vpop.f32.mrb[12].mxu1 }
 0x1bd   :  { %v3579_v22 = vpop.f32.mrb[13].mxu1  ;;  %v1602_v25 = vsel %vm1598_vm3, %v4155_v21, -inf }
 0x1be   :  { %v4157_v23 = vpop.f32.mrb[6].mxu0 }
 0x1bf   :  { %v1605_v24 = vsel %vm1598_vm3, %v4157_v23, -inf  ;;  %v3584_v26 = vpop.f32.mrb[7].mxu0 }
 0x1c0   :  { %1606 = vmax.xlane.f32.xlu1 %v1605_v24  ;;  %1603 = vmax.xlane.f32.xlu0 %v1602_v25  ;;  %v4163_v27 = vpop.f32.mrb[14].mxu1 }
 0x1c1   :  { %v3589_v28 = vpop.f32.mrb[15].mxu1  ;;  %v1608_v30 = vsel %vm1598_vm3, %v4163_v27, -inf }
 0x1c2   :  { %v4165_v29 = vpop.f32.mrb[8].mxu0 }
 0x1c3   :  { %v3594_v31 = vpop.f32.mrb[9].mxu0  ;;  %v1611_v60 = vsel %vm1598_vm3, %v4165_v29, -inf }
 0x1c4   :  { %1609 = vmax.xlane.f32.xlu1 %v1608_v30  ;;  %v4169_v32 = vpop.f32.mrb[16].mxu1 }
 0x1c5   :  { %v1614_v33 = vsel %vm1598_vm3, %v4169_v32, -inf  ;;  %v3599_v34 = vpop.f32.mrb[17].mxu1 }
 0x1c6   :  { %v4173_v35 = vpop.f32.mrb[10].mxu0 }
 0x1c7   :  { %v3604_v36 = vpop.f32.mrb[11].mxu0 }
 0x1c8   :  { %1615 = vmax.xlane.f32.xlu1 %v1614_v33 }
 0x1c9   :  { %v4175_v37 = vpop.f32.mrb[18].mxu1 }
 0x1ca   :  { %v3609_v38 = vpop.f32.mrb[19].mxu1  ;;  %v1620_v40 = vsel %vm1598_vm3, %v4175_v37, -inf }
 0x1cb   :  { %v4177_v39 = vpop.f32.mrb[12].mxu0 }
 0x1cc   :  { %v3614_v41 = vpop.f32.mrb[13].mxu0  ;;  %1621 = vmax.xlane.f32.xlu1 %v1620_v40  ;;  %v1623_v61 = vsel %vm1598_vm3, %v4177_v39, -inf }
 0x1ce   :  { %v4181_v42 = vpop.f32.mrb[20].mxu1 }
 0x1cf   :  { %v3619_v43 = vpop.f32.mrb[21].mxu1  ;;  %v1626_v44 = vsel %vm1598_vm3, %v4181_v42, -inf }
 0x1d0   :  { %v4185_v45 = vpop.f32.mrb[14].mxu0  ;;  %1627 = vmax.xlane.f32.xlu1 %v1626_v44 }
 0x1d1   :  { %v3624_v46 = vpop.f32.mrb[15].mxu0  ;;  %v1629_v0 = vsel %vm1598_vm3, %v4185_v45, -inf }
 0x1d2   :  { %v4187_v47 = vpop.f32.mrb[22].mxu1 }
 0x1d3   :  { %v3629_v48 = vpop.f32.mrb[23].mxu1  ;;  %v1632_v49 = vsel %vm1598_vm3, %v4187_v47, -inf }
 0x1d4   :  { %v4191_v50 = vpop.f32.mrb[16].mxu0  ;;  %1633 = vmax.xlane.f32.xlu1 %v1632_v49 }
 0x1d5   :  { %v3634_v51 = vpop.f32.mrb[17].mxu0  ;;  %v1635_v1 = vsel %vm1598_vm3, %v4191_v50, -inf }
 0x1d6   :  { %v4193_v52 = vpop.f32.mrb[24].mxu1  ;;  %2393 = vrot.lane.b32.xlu0 %v4040_v54, %s3855_s5  ;;  %v1617_v54 = vsel %vm1598_vm3, %v4173_v35, -inf }
 0x1d7   :  { %v3639_v53 = vpop.f32.mrb[25].mxu1  ;;  %v1638_v55 = vsel %vm1598_vm3, %v4193_v52, -inf }
 0x1d8   :  { %v4199_v56 = vpop.f32.mrb[18].mxu0  ;;  %1639 = vmax.xlane.f32.xlu1 %v1638_v55 }
 0x1d9   :  { %v3644_v57 = vpop.f32.mrb[19].mxu0  ;;  %v1641_v2 = vsel %vm1598_vm3, %v4199_v56, -inf }
 0x1db   :  { %v4201_v58 = vpop.f32.mrb[26].mxu1 }
 0x1dc   :  { %v3649_v59 = vpop.f32.mrb[27].mxu1 }
 0x1e9   :  { %2624 = vrot.lane.b32.xlu1 %v4084_v3, %s3855_s5  ;;  %v1644_v3 = vsel %vm1598_vm3, %v4201_v58, -inf }
 0x1f5   :  { %1612 = vmax.xlane.f32.xlu0 %v1611_v60 }
 0x1f9   :  { %1618 = vmax.xlane.f32.xlu0 %v1617_v54 }
 0x1fd   :  { %1624 = vmax.xlane.f32.xlu0 %v1623_v61 }
 0x201   :  { %1630 = vmax.xlane.f32.xlu0 %v1629_v0 }
 0x205   :  { %1636 = vmax.xlane.f32.xlu0 %v1635_v1 }
 0x209   :  { %1642 = vmax.xlane.f32.xlu0 %v1641_v2 }
 0x20d   :  { %1645 = vmax.xlane.f32.xlu1 %v1644_v3 }
 0x21e   :  { %2778 = vrot.lane.b32.xlu1 %v4093_v4, %s3855_s5 }
 0x21f   :  { %2547 = vrot.lane.b32.xlu0 %v4065_v62, %s3855_s5 }
 0x223   :  { %2701 = vrot.lane.b32.xlu0 %v4075_v63, %s3855_s5 }
 0x249   :  { %v1601_v12 = vpop.xlane.xlu0 %1600 }
 0x24a   :  { %v1647_v15 = vsub.f32 %v4151_v17, %v1601_v12 }
 0x24c   :  { %v1663_v4 = vmul.f32 1.442695, %v1647_v15 }
 0x24d   :  { %v1607_v16 = vpop.xlane.xlu1 %1606  ;;  %v1604_v19 = vpop.xlane.xlu0 %1603 }
 0x24e   :  { %3765 = vpow2.f32 %v1663_v4  ;;  %v1649_v62 = vsub.f32 %v4157_v23, %v1607_v16  ;;  %v1648_v63 = vsub.f32 %v4155_v21, %v1604_v19 }
 0x250   :  { %v1667_v20 = vmul.f32 1.442695, %v1649_v62  ;;  %v1665_v22 = vmul.f32 1.442695, %v1648_v63 }
 0x251   :  { %v1610_v24 = vpop.xlane.xlu1 %1609  ;;  %v4280_v2 = vpop.permute.xlu0 %2393 }
 0x252   :  { %3767 = vpow2.f32 %v1667_v20  ;;  %v1650_v25 = vsub.f32 %v4163_v27, %v1610_v24 }
 0x253   :  { %3769 = vpow2.f32 %v1665_v22 }
 0x254   :  { %v1669_v26 = vmul.f32 1.442695, %v1650_v25 }
 0x255   :  { %v1616_v28 = vpop.xlane.xlu1 %1615 }
 0x256   :  { %3771 = vpow2.f32 %v1669_v26  ;;  %v1652_v17 = vsub.f32 %v4169_v32, %v1616_v28 }
 0x258   :  { %v4240_v30 = vpop.eup %3765  ;;  %v1673_v31 = vmul.f32 1.442695, %v1652_v17 }
 0x259   :  { %v1622_v33 = vpop.xlane.xlu1 %1621  ;;  %v1695_v23 = vsel %vm1598_vm3, %v4240_v30, 0.0 }
 0x25a   :  { %3773 = vpow2.f32 %v1673_v31  ;;  %v1654_v21 = vsub.f32 %v4175_v37, %v1622_v33  ;;  %1696 = vadd.xlane.f32.xlu0 %v1695_v23 }
 0x25c   :  { %v4245_v34 = vpop.eup %3767  ;;  %v1677_v27 = vmul.f32 1.442695, %v1654_v21 }
 0x25d   :  { %v4247_v36 = vpop.eup %3769  ;;  %v1628_v38 = vpop.xlane.xlu1 %1627  ;;  %v1701_v32 = vsel %vm1598_vm3, %v4245_v34, 0.0 }
 0x25e   :  { %3775 = vpow2.f32 %v1677_v27  ;;  %v1656_v40 = vsub.f32 %v4181_v42, %v1628_v38  ;;  %1702 = vadd.xlane.f32.xlu0 %v1701_v32  ;;  %v1698_v41 = vsel %vm1598_vm3, %v4247_v36, 0.0 }
 0x25f   :  { %1699 = vadd.xlane.f32.xlu1 %v1698_v41 }
 0x260   :  { %v4254_v43 = vpop.eup %3771  ;;  %v1681_v37 = vmul.f32 1.442695, %v1656_v40 }
 0x261   :  { %v1634_v44 = vpop.xlane.xlu1 %1633  ;;  %v1704_v46 = vsel %vm1598_vm3, %v4254_v43, 0.0 }
 0x262   :  { %3777 = vpow2.f32 %v1681_v37  ;;  %v1658_v48 = vsub.f32 %v4187_v47, %v1634_v44 }
 0x263   :  { %1705 = vadd.xlane.f32.xlu1 %v1704_v46 }
 0x264   :  { %v4259_v49 = vpop.eup %3773  ;;  %v1685_v51 = vmul.f32 1.442695, %v1658_v48 }
 0x265   :  { %v1640_v42 = vpop.xlane.xlu1 %1639  ;;  %v1710_v53 = vsel %vm1598_vm3, %v4259_v49, 0.0 }
 0x266   :  { %3779 = vpow2.f32 %v1685_v51  ;;  %v1660_v55 = vsub.f32 %v4193_v52, %v1640_v42 }
 0x267   :  { %1711 = vadd.xlane.f32.xlu1 %v1710_v53 }
 0x268   :  { %v4264_v57 = vpop.eup %3775  ;;  %v1689_v59 = vmul.f32 1.442695, %v1660_v55 }
 0x269   :  { %v1716_v60 = vsel %vm1598_vm3, %v4264_v57, 0.0 }
 0x26a   :  { %3781 = vpow2.f32 %v1689_v59 }
 0x26b   :  { %1717 = vadd.xlane.f32.xlu1 %v1716_v60 }
 0x26c   :  { %v4268_v47 = vpop.eup %3777 }
 0x26d   :  { %v1722_v54 = vsel %vm1598_vm3, %v4268_v47, 0.0 }
 0x26f   :  { %1723 = vadd.xlane.f32.xlu1 %v1722_v54 }
 0x270   :  { %v4272_v61 = vpop.eup %3779 }
 0x271   :  { %v1728_v52 = vsel %vm1598_vm3, %v4272_v61, 0.0 }
 0x273   :  { %1729 = vadd.xlane.f32.xlu1 %v1728_v52 }
 0x274   :  { %v4276_v0 = vpop.eup %3781 }
 0x275   :  { %v1734_v1 = vsel %vm1598_vm3, %v4276_v0, 0.0 }
 0x277   :  { %1735 = vadd.xlane.f32.xlu1 %v1734_v1 }
 0x282   :  { %v1613_v3 = vpop.xlane.xlu0 %1612 }
 0x283   :  { %v1651_v12 = vsub.f32 %v4165_v29, %v1613_v3 }
 0x285   :  { %v1671_v15 = vmul.f32 1.442695, %v1651_v12 }
 0x286   :  { %v1619_v4 = vpop.xlane.xlu0 %1618 }
 0x287   :  { %3783 = vpow2.f32 %v1671_v15  ;;  %v1653_v16 = vsub.f32 %v4173_v35, %v1619_v4 }
 0x289   :  { %v1675_v19 = vmul.f32 1.442695, %v1653_v16 }
 0x28a   :  { %v1625_v62 = vpop.xlane.xlu0 %1624 }
 0x28b   :  { %3785 = vpow2.f32 %v1675_v19  ;;  %v1655_v63 = vsub.f32 %v4177_v39, %v1625_v62  ;;  %v4293_v39 = vpop.permute.xlu1 %2624 }
 0x28d   :  { %v1679_v20 = vmul.f32 1.442695, %v1655_v63 }
 0x28e   :  { %v1631_v22 = vpop.xlane.xlu0 %1630 }
 0x28f   :  { %3787 = vpow2.f32 %v1679_v20  ;;  %v1657_v24 = vsub.f32 %v4185_v45, %v1631_v22 }
 0x291   :  { %v4286_v25 = vpop.eup %3783  ;;  %v1683_v26 = vmul.f32 1.442695, %v1657_v24 }
 0x292   :  { %v1637_v28 = vpop.xlane.xlu0 %1636  ;;  %v1707_v29 = vsel %vm1598_vm3, %v4286_v25, 0.0 }
 0x293   :  { %3789 = vpow2.f32 %v1683_v26  ;;  %v1659_v35 = vsub.f32 %v4191_v50, %v1637_v28  ;;  %1708 = vadd.xlane.f32.xlu0 %v1707_v29 }
 0x295   :  { %v4291_v17 = vpop.eup %3785  ;;  %v1687_v31 = vmul.f32 1.442695, %v1659_v35 }
 0x296   :  { %v1643_v33 = vpop.xlane.xlu0 %1642  ;;  %v1713_v45 = vsel %vm1598_vm3, %v4291_v17, 0.0 }
 0x297   :  { %3791 = vpow2.f32 %v1687_v31  ;;  %v1661_v23 = vsub.f32 %v4199_v56, %v1643_v33  ;;  %1714 = vadd.xlane.f32.xlu0 %v1713_v45 }
 0x299   :  { %v4298_v21 = vpop.eup %3787  ;;  %v1691_v27 = vmul.f32 1.442695, %v1661_v23 }
 0x29a   :  { %v1646_v38 = vpop.xlane.xlu1 %1645  ;;  %v1719_v50 = vsel %vm1598_vm3, %v4298_v21, 0.0  ;;  %v4323_v42 = vpop.permute.xlu0 %2547 }
 0x29b   :  { %3793 = vpow2.f32 %v1691_v27  ;;  %v1662_v32 = vsub.f32 %v4201_v58, %v1646_v38  ;;  %1720 = vadd.xlane.f32.xlu0 %v1719_v50 }
 0x29d   :  { %v4303_v40 = vpop.eup %3789  ;;  %v1693_v41 = vmul.f32 1.442695, %v1662_v32  ;;  %v3009_v32 = vld [vmem:[%s4607_s6] sm:$0xff] }
 0x29e   :  { %v1725_v37 = vsel %vm1598_vm3, %v4303_v40, 0.0  ;;  %v4325_v53 = vpop.permute.xlu0 %2701  ;;  %v4327_v59 = vpop.permute.xlu1 %2778 }
 0x29f   :  { %3795 = vpow2.f32 %v1693_v41  ;;  %1726 = vadd.xlane.f32.xlu0 %v1725_v37 }
 0x2a1   :  { %v4307_v56 = vpop.eup %3791 }
 0x2a2   :  { %v1731_v44 = vsel %vm1598_vm3, %v4307_v56, 0.0 }
 0x2a3   :  { %1732 = vadd.xlane.f32.xlu0 %v1731_v44 }
 0x2a5   :  { %v4311_v46 = vpop.eup %3793 }
 0x2a6   :  { %v1737_v58 = vsel %vm1598_vm3, %v4311_v46, 0.0 }
 0x2a7   :  { %1738 = vadd.xlane.f32.xlu1 %v1737_v58 }
 0x2a9   :  { %v4315_v48 = vpop.eup %3795 }
 0x2aa   :  { %v1740_v51 = vsel %vm1598_vm3, %v4315_v48, 0.0 }
 0x2ab   :  { %1741 = vadd.xlane.f32.xlu0 %v1740_v51 }
 0x2b8   :  { %2932 = vrot.lane.b32.xlu1 %v4124_v11, %s3855_s5 }
 0x2c1   :  { %2855 = vrot.lane.b32.xlu0 %v4108_v8, %s3855_s5 }
 0x2e7   :  { %v1697_v55 = vpop.xlane.xlu0 %1696 }
 0x2e8   :  { %3797 = vrcp.f32 %v1697_v55 }
 0x2eb   :  { %v1703_v60 = vpop.xlane.xlu0 %1702 }
 0x2ec   :  { %3799 = vrcp.f32 %v1703_v60  ;;  %v1700_v54 = vpop.xlane.xlu1 %1699 }
 0x2ed   :  { %3801 = vrcp.f32 %v1700_v54 }
 0x2f0   :  { %v1706_v52 = vpop.xlane.xlu1 %1705 }
 0x2f1   :  { %3803 = vrcp.f32 %v1706_v52 }
 0x2f2   :  { %v3798_v1 = vpop.eup %3797 }
 0x2f3   :  { %v1759_v11 = vmul.f32 %v3798_v1, %v4240_v30 }
 0x2f4   :  { %v1712_v3 = vpop.xlane.xlu1 %1711 }
 0x2f5   :  { %3805 = vrcp.f32 %v1712_v3  ;;  %3653 = vmatmul.mubr.msk.f32.vlgmr.msra.gmra.mrb[20].mxu0 %vm1777_vm4, %v1759_v11 }
 0x2f6   :  { %v3800_v8 = vpop.eup %3799  ;;  %3661 = vmatpush3.msk.msra.mxu0 %vm1781_vm2, %v4143_v13  ;;  %3662 = vmatprep.mubr.msk.f32.mxu0 %vm3854_vm1, %v3853_v18 }
 0x2f7   :  { %v3802_v12 = vpop.eup %3801  ;;  %v1761_v15 = vmul.f32 %v3800_v8, %v4245_v34  ;;  %3670 = vmatprep.subr.mxu0 %v3853_v18 }
 0x2f8   :  { %v1760_v4 = vmul.f32 %v3802_v12, %v4247_v36  ;;  %v1718_v16 = vpop.xlane.xlu1 %1717 }
 0x2f9   :  { %3807 = vrcp.f32 %v1718_v16  ;;  %3663 = vmatmul.mubr.msk.f32.vlgmr.msra.gmra.mrb[22].mxu0 %vm1777_vm4, %v1761_v15 }
 0x2fa   :  { %3658 = vmatmul.mubr.msk.f32.vlgmr.msra.gmra.mrb[28].mxu1 %vm1777_vm4, %v1760_v4  ;;  %3671 = vmatpush3.msk.msra.mxu0 %vm1781_vm2, %v4225_v5 }
 0x2fb   :  { %v3804_v13 = vpop.eup %3803  ;;  %3666 = vmatpush3.msk.msra.mxu1 %vm1781_vm2, %v4145_v14  ;;  %3667 = vmatprep.mubr.msk.f32.mxu1 %vm3854_vm1, %v3853_v18 }
 0x2fc   :  { %v1762_v30 = vmul.f32 %v3804_v13, %v4254_v43  ;;  %v1724_v34 = vpop.xlane.xlu1 %1723  ;;  %3675 = vmatprep.subr.mxu1 %v3853_v18  ;;  %3672 = vmatprep.mubr.msk.f32.mxu0 %vm3854_vm1, %v3853_v18 }
 0x2fd   :  { %3809 = vrcp.f32 %v1724_v34  ;;  %3680 = vmatprep.subr.mxu0 %v3853_v18 }
 0x2fe   :  { %3668 = vmatmul.mubr.msk.f32.vlgmr.msra.gmra.mrb[30].mxu1 %vm1777_vm4, %v1762_v30 }
 0x2ff   :  { %v3806_v5 = vpop.eup %3805  ;;  %3676 = vmatpush3.msk.msra.mxu1 %vm1781_vm2, %v4229_v7  ;;  %3677 = vmatprep.mubr.msk.f32.mxu1 %vm3854_vm1, %v3853_v18 }
 0x300   :  { %v1764_v14 = vmul.f32 %v3806_v5, %v4259_v49  ;;  %v1730_v36 = vpop.xlane.xlu1 %1729  ;;  %3685 = vmatprep.subr.mxu1 %v3853_v18 }
 0x301   :  { %3811 = vrcp.f32 %v1730_v36 }
 0x302   :  { %3678 = vmatmul.mubr.msk.f32.vlgmr.msra.gmra.mrb[32].mxu1 %vm1777_vm4, %v1764_v14 }
 0x303   :  { %v3808_v43 = vpop.eup %3807  ;;  %3686 = vmatpush3.msk.msra.mxu1 %vm1781_vm2, %v4227_v6  ;;  %3687 = vmatprep.mubr.msk.f32.mxu1 %vm3854_vm1, %v3853_v18 }
 0x304   :  { %v1766_v7 = vmul.f32 %v3808_v43, %v4264_v57  ;;  %v1736_v19 = vpop.xlane.xlu1 %1735  ;;  %3695 = vmatprep.subr.mxu1 %v3853_v18 }
 0x305   :  { %3813 = vrcp.f32 %v1736_v19 }
 0x306   :  { %3688 = vmatmul.mubr.msk.f32.vlgmr.msra.gmra.mrb[34].mxu1 %vm1777_vm4, %v1766_v7 }
 0x307   :  { %v3810_v49 = vpop.eup %3809  ;;  %3696 = vmatpush3.msk.msra.mxu1 %vm1781_vm2, %v4233_v10  ;;  %3697 = vmatprep.mubr.msk.f32.mxu1 %vm3854_vm1, %v3853_v18 }
 0x308   :  { %v1768_v6 = vmul.f32 %v3810_v49, %v4268_v47  ;;  %3705 = vmatprep.subr.mxu1 %v3853_v18 }
 0x30a   :  { %3698 = vmatmul.mubr.msk.f32.vlgmr.msra.gmra.mrb[36].mxu1 %vm1777_vm4, %v1768_v6 }
 0x30b   :  { %v3812_v57 = vpop.eup %3811  ;;  %3706 = vmatpush3.msk.msra.mxu1 %vm1781_vm2, %v4293_v39  ;;  %3707 = vmatprep.mubr.msk.f32.mxu1 %vm3854_vm1, %v3853_v18 }
 0x30c   :  { %v1770_v62 = vmul.f32 %v3812_v57, %v4272_v61  ;;  %3715 = vmatprep.subr.mxu1 %v3853_v18 }
 0x30e   :  { %3708 = vmatmul.mubr.msk.f32.vlgmr.msra.gmra.mrb[38].mxu1 %vm1777_vm4, %v1770_v62 }
 0x30f   :  { %v3814_v10 = vpop.eup %3813  ;;  %3716 = vmatpush3.msk.msra.mxu1 %vm1781_vm2, %v4327_v59  ;;  %3717 = vmatprep.mubr.msk.f32.mxu1 %vm3854_vm1, %v3853_v18 }
 0x310   :  { %v1772_v47 = vmul.f32 %v3814_v10, %v4276_v0  ;;  %3725 = vmatprep.subr.mxu1 %v3853_v18 }
 0x312   :  { %3718 = vmatmul.mubr.msk.f32.vlgmr.msra.gmra.mrb[40].mxu1 %vm1777_vm4, %v1772_v47 }
 0x313   :  { %3727 = vmatprep.mubr.msk.f32.mxu1 %vm3854_vm1, %v3853_v18 }
 0x320   :  { %v1709_v61 = vpop.xlane.xlu0 %1708 }
 0x321   :  { %3815 = vrcp.f32 %v1709_v61  ;;  %v3440_v61 = vld [vmem:[%s4608_s7] ss:$0 sm:$0xff] }
 0x324   :  { %v1715_v63 = vpop.xlane.xlu0 %1714 }
 0x325   :  { %3817 = vrcp.f32 %v1715_v63 }
 0x328   :  { %v1721_v20 = vpop.xlane.xlu0 %1720 }
 0x329   :  { %3819 = vrcp.f32 %v1721_v20 }
 0x32b   :  { %v3816_v22 = vpop.eup %3815 }
 0x32c   :  { %v1763_v24 = vmul.f32 %v3816_v22, %v4286_v25  ;;  %v1727_v26 = vpop.xlane.xlu0 %1726 }
 0x32d   :  { %3821 = vrcp.f32 %v1727_v26  ;;  %v3845_v26 = vld [vmem:[%s4602_s0 + $0x8] sm:$0xff]  }
 0x32e   :  { %3673 = vmatmul.mubr.msk.f32.vlgmr.msra.gmra.mrb[24].mxu0 %vm1777_vm4, %v1763_v24 }
 0x32f   :  { %v3818_v0 = vpop.eup %3817  ;;  %3681 = vmatpush3.msk.msra.mxu0 %vm1781_vm2, %v4231_v9  ;;  %3682 = vmatprep.mubr.msk.f32.mxu0 %vm3854_vm1, %v3853_v18 }
 0x330   :  { %v1765_v28 = vmul.f32 %v3818_v0, %v4291_v17  ;;  %v1733_v29 = vpop.xlane.xlu0 %1732  ;;  %3690 = vmatprep.subr.mxu0 %v3853_v18 }
 0x331   :  { %3823 = vrcp.f32 %v1733_v29 }
 0x332   :  { %3683 = vmatmul.mubr.msk.f32.vlgmr.msra.gmra.mrb[26].mxu0 %vm1777_vm4, %v1765_v28  ;;  %v3846_v28 = vld [vmem:[%s4602_s0] sm:$0xff]  }
 0x333   :  { %v3820_v25 = vpop.eup %3819  ;;  %3691 = vmatpush3.msk.msra.mxu0 %vm1781_vm2, %v4280_v2  ;;  %3692 = vmatprep.mubr.msk.f32.mxu0 %vm3854_vm1, %v3853_v18 }
 0x334   :  { %v1767_v9 = vmul.f32 %v3820_v25, %v4298_v21  ;;  %v1739_v35 = vpop.xlane.xlu1 %1738  ;;  %3700 = vmatprep.subr.mxu0 %v3853_v18 }
 0x335   :  { %3825 = vrcp.f32 %v1739_v35 }
 0x336   :  { %3693 = vmatmul.mubr.msk.f32.vlgmr.msra.gmra.mrb[28].mxu0 %vm1777_vm4, %v1767_v9 }
 0x337   :  { %v3822_v17 = vpop.eup %3821  ;;  %3701 = vmatpush3.msk.msra.mxu0 %vm1781_vm2, %v4323_v42  ;;  %3702 = vmatprep.mubr.msk.f32.mxu0 %vm3854_vm1, %v3853_v18 }
 0x338   :  { %v1769_v2 = vmul.f32 %v3822_v17, %v4303_v40  ;;  %v1742_v31 = vpop.xlane.xlu0 %1741  ;;  %v2933_v39 = vpop.permute.xlu1 %2932  ;;  %3710 = vmatprep.subr.mxu0 %v3853_v18 }
 0x339   :  { %3827 = vrcp.f32 %v1742_v31  ;;  %3726 = vmatpush3.msk.msra.mxu1 %vm1781_vm2, %v2933_v39  ;;  %v3847_v39 = vld [vmem:[%s4602_s0 + $0x18] sm:$0xff]  }
 0x33a   :  { %3703 = vmatmul.mubr.msk.f32.vlgmr.msra.gmra.mrb[30].mxu0 %vm1777_vm4, %v1769_v2 }
 0x33b   :  { %v3824_v33 = vpop.eup %3823  ;;  %3711 = vmatpush3.msk.msra.mxu0 %vm1781_vm2, %v4325_v53  ;;  %3712 = vmatprep.mubr.msk.f32.mxu0 %vm3854_vm1, %v3853_v18 }
 0x33c   :  { %v1771_v45 = vmul.f32 %v3824_v33, %v4307_v56  ;;  %v2856_v23 = vpop.permute.xlu0 %2855  ;;  %3720 = vmatprep.subr.mxu0 %v3853_v18 }
 0x33e   :  { %3713 = vmatmul.mubr.msk.f32.vlgmr.msra.gmra.mrb[32].mxu0 %vm1777_vm4, %v1771_v45 }
 0x33f   :  { %v3826_v21 = vpop.eup %3825  ;;  %3721 = vmatpush3.msk.msra.mxu0 %vm1781_vm2, %v2856_v23  ;;  %3722 = vmatprep.mubr.msk.f32.mxu0 %vm3854_vm1, %v3853_v18  ;;  %v3848_v23 = vld [vmem:[%s4602_s0 + $0x10] sm:$0xff]  }
 0x340   :  { %v1773_v27 = vmul.f32 %v3826_v21, %v4311_v46  ;;  %3730 = vmatprep.subr.mxu0 %v3009_v32 }
 0x342   :  { %3723 = vmatmul.mubr.msk.f32.vlgmr.msra.gmra.mrb[34].mxu0 %vm1777_vm4, %v1773_v27 }
 0x343   :  { %v3828_v38 = vpop.eup %3827  ;;  %3731 = vmatpush3.msra.mxu0 %v3009_v32 }
 0x344   :  { %v1774_v50 = vmul.f32 %v3828_v38, %v4315_v48 }
 0x346   :  { %3728 = vmatmul.mubr.msk.f32.vlgmr.msra.gmra.mrb[42].mxu1 %vm1777_vm4, %v1774_v50 }
 0x3c8   :  { %v1850_v40 = vpop.f32.mrb[20].mxu0 }
 0x3c9   :  { %v3654_v41 = vpop.f32.mrb[21].mxu0 }
 0x3ca   :  { %v3849_v41 = vld [vmem:[%s4602_s0 + $0x28] sm:$0xff]  }
 0x3cc   :  { %v2004_v37 = vpop.f32.mrb[22].mxu0 }
 0x3cd   :  { %v1927_v56 = vpop.f32.mrb[28].mxu1  ;;  %v3664_v18 = vpop.f32.mrb[23].mxu0 }
 0x3ce   :  { %v3033_v44 = vcombine.low %v1850_v40, %v1927_v56  ;;  %v3659_v46 = vpop.f32.mrb[29].mxu1  ;;  %v3850_v56 = vld [vmem:[%s4602_s0 + $0x20] sm:$0xff]  }
 0x3d0   :  { %3732 = vmatprep.mubr.msk.f32.mxu0 %vm99_vm0, %v3033_v44 }
 0x3d1   :  { %v2081_v58 = vpop.f32.mrb[30].mxu1 }
 0x3d2   :  { %v3034_v51 = vcombine.low %v2004_v37, %v2081_v58  ;;  %v3669_v48 = vpop.f32.mrb[31].mxu1 }
 0x3d4   :  { %3733 = vmatmul.mubr.msk.f32.vlgmr.msra.gmra.mrb[36].mxu0 %vm99_vm0, %v3034_v51 }
 0x3d5   :  { %v2235_v42 = vpop.f32.mrb[32].mxu1 }
 0x3d6   :  { %v3679_v53 = vpop.f32.mrb[33].mxu1 }
 0x3d7   :  { %v3851_v53 = vld [vmem:[%s4602_s0 + $0x38] sm:$0xff]  }
 0x3d9   :  { %v2389_v55 = vpop.f32.mrb[34].mxu1 }
 0x3da   :  { %v3689_v59 = vpop.f32.mrb[35].mxu1 }
 0x3db   :  { %v3852_v59 = vld [vmem:[%s4602_s0 + $0x30] sm:$0xff]  }
 0x3dd   :  { %v2543_v60 = vpop.f32.mrb[36].mxu1 }
 0x3de   :  { %v3699_v54 = vpop.f32.mrb[37].mxu1 }
 0x3e1   :  { %v2697_v52 = vpop.f32.mrb[38].mxu1 }
 0x3e2   :  { %v3709_v1 = vpop.f32.mrb[39].mxu1 }
 0x3e5   :  { %v2851_v11 = vpop.f32.mrb[40].mxu1 }
 0x3e6   :  { %v3719_v3 = vpop.f32.mrb[41].mxu1 }
 0x401   :  { %v2158_v8 = vpop.f32.mrb[24].mxu0 }
 0x402   :  { %v3035_v12 = vcombine.low %v2158_v8, %v2235_v42  ;;  %v3674_v15 = vpop.f32.mrb[25].mxu0 }
 0x404   :  { %3735 = vmatprep.mubr.msk.f32.mxu0 %vm99_vm0, %v3035_v12 }
 0x405   :  { %v2312_v4 = vpop.f32.mrb[26].mxu0 }
 0x406   :  { %v3036_v16 = vcombine.low %v2312_v4, %v2389_v55  ;;  %v3684_v13 = vpop.f32.mrb[27].mxu0 }
 0x408   :  { %3736 = vmatmul.mubr.msk.f32.gmra.mrb[38].mxu0 %vm99_vm0, %v3036_v16 }
 0x409   :  { %v2466_v30 = vpop.f32.mrb[28].mxu0 }
 0x40a   :  { %v3037_v34 = vcombine.low %v2466_v30, %v2543_v60  ;;  %v3694_v5 = vpop.f32.mrb[29].mxu0 }
 0x40c   :  { %3738 = vmatprep.mubr.msk.f32.mxu0 %vm99_vm0, %v3037_v34 }
 0x40d   :  { %v2620_v14 = vpop.f32.mrb[30].mxu0 }
 0x40e   :  { %v3038_v36 = vcombine.low %v2620_v14, %v2697_v52  ;;  %v3704_v43 = vpop.f32.mrb[31].mxu0 }
 0x410   :  { %3739 = vmatmul.mubr.msk.f32.gmra.mrb[40].mxu0 %vm99_vm0, %v3038_v36 }
 0x411   :  { %v2774_v7 = vpop.f32.mrb[32].mxu0 }
 0x412   :  { %v3039_v19 = vcombine.low %v2774_v7, %v2851_v11  ;;  %v3714_v49 = vpop.f32.mrb[33].mxu0 }
 0x414   :  { %3741 = vmatprep.mubr.msk.f32.mxu0 %vm99_vm0, %v3039_v19 }
 0x415   :  { %v2928_v6 = vpop.f32.mrb[34].mxu0 }
 0x416   :  { %v3724_v57 = vpop.f32.mrb[35].mxu0 }
 0x419   :  { %v3005_v62 = vpop.f32.mrb[42].mxu1 }
 0x41a   :  { %v3040_v10 = vcombine.low %v2928_v6, %v3005_v62  ;;  %v3729_v47 = vpop.f32.mrb[43].mxu1 }
 0x41c   :  { %3742 = vmatmul.mubr.msk.f32.gmra.mrb[42].mxu0 %vm99_vm0, %v3040_v10 }
 0x4a7   :  { %v3734_v63 = vpop.f32.mrb[36].mxu0 }
 0x4a8   :  { %v3129_v20 = vadd.f32 %v3734_v63, %v3440_v61  ;;  %v3123_v22 = vpop.f32.mrb[37].mxu0 }
 0x4a9   :  { %v3124_v24 = vadd.f32 %v3440_v61, %v3123_v22 }
 0x4aa   :  { %v3171_v0 = vadd.f32 %v3845_v26, %v3129_v20 }
 0x4ab   :  { %v3170_v29 = vadd.f32 %v3846_v28, %v3124_v24 }
 0x4ac   :  { %v3183_v25 = vsel %vm99_vm0, %v3171_v0, 0.0 }
 0x4ad   :  { %3184 = vadd.xlane.f32.xlu1 %v3183_v25  ;;  %v3180_v9 = vsel %vm99_vm0, %v3170_v29, 0.0 }
 0x4ae   :  { %3181 = vadd.xlane.f32.xlu0 %v3180_v9 }
 0x4db   :  { %v3737_v35 = vpop.f32.mrb[38].mxu0 }
 0x4dc   :  { %v3139_v17 = vadd.f32 %v3737_v35, %v3440_v61  ;;  %v3133_v2 = vpop.f32.mrb[39].mxu0 }
 0x4dd   :  { %v3134_v31 = vadd.f32 %v3440_v61, %v3133_v2 }
 0x4de   :  { %v3173_v33 = vadd.f32 %v3847_v39, %v3139_v17 }
 0x4df   :  { %v3172_v21 = vadd.f32 %v3848_v23, %v3134_v31 }
 0x4e0   :  { %v3189_v45 = vsel %vm99_vm0, %v3173_v33, 0.0 }
 0x4e1   :  { %3190 = vadd.xlane.f32.xlu0 %v3189_v45  ;;  %v3186_v32 = vsel %vm99_vm0, %v3172_v21, 0.0 }
 0x4e3   :  { %v3740_v27 = vpop.f32.mrb[40].mxu0 }
 0x4e4   :  { %v3149_v38 = vadd.f32 %v3740_v27, %v3440_v61  ;;  %v3143_v50 = vpop.f32.mrb[41].mxu0 }
 0x4e5   :  { %v3144_v40 = vadd.f32 %v3440_v61, %v3143_v50  ;;  %3187 = vadd.xlane.f32.xlu0 %v3186_v32 }
 0x4e6   :  { %v3175_v37 = vadd.f32 %v3849_v41, %v3149_v38 }
 0x4e7   :  { %v3174_v18 = vadd.f32 %v3850_v56, %v3144_v40  ;;  %v4508_v40 = vld [vmem:[%s4609_s8] ss:$0 sm:$0xff] }
 0x4e8   :  { %v3195_v44 = vsel %vm99_vm0, %v3175_v37, 0.0  ;;  %v4513_v56 = vld [vmem:[%s4610_s9] ss:$0 sm:$0xff] }
 0x4e9   :  { %3196 = vadd.xlane.f32.xlu1 %v3195_v44  ;;  %v3192_v46 = vsel %vm99_vm0, %v3174_v18, 0.0 }
 0x4ea   :  { %3193 = vadd.xlane.f32.xlu0 %v3192_v46 }
 0x4ef   :  { %v3743_v58 = vpop.f32.mrb[42].mxu0 }
 0x4f0   :  { %v3159_v51 = vadd.f32 %v3743_v58, %v3440_v61  ;;  %v3153_v48 = vpop.f32.mrb[43].mxu0 }
 0x4f1   :  { %v3154_v42 = vadd.f32 %v3440_v61, %v3153_v48 }
 0x4f2   :  { %v3177_v55 = vadd.f32 %v3851_v53, %v3159_v51 }
 0x4f3   :  { %v3176_v60 = vadd.f32 %v3852_v59, %v3154_v42 }
 0x4f4   :  { %v3201_v54 = vsel %vm99_vm0, %v3177_v55, 0.0 }
 0x4f5   :  { %3202 = vadd.xlane.f32.xlu1 %v3201_v54  ;;  %v3198_v52 = vsel %vm99_vm0, %v3176_v60, 0.0 }
 0x4f6   :  { %3199 = vadd.xlane.f32.xlu0 %v3198_v52 }
 0x53a   :  { %v3185_v1 = vpop.xlane.xlu1 %3184 }
 0x53b   :  { %v3206_v11 = vmul.f32 0.125, %v3185_v1  ;;  %v3182_v3 = vpop.xlane.xlu0 %3181 }
 0x53c   :  { %v3205_v8 = vmul.f32 0.125, %v3182_v3 }
 0x53d   :  { %v3214_v12 = vsub.f32 %v3171_v0, %v3206_v11 }
 0x53e   :  { %v3213_v15 = vsub.f32 %v3170_v29, %v3205_v8 }
 0x53f   :  { %v3222_v4 = vmul.f32 %v3214_v12, %v3214_v12 }
 0x540   :  { %v3221_v16 = vmul.f32 %v3213_v15, %v3213_v15 }
 0x541   :  { %v3232_v13 = vsel %vm99_vm0, %v3222_v4, 0.0 }
 0x542   :  { %3233 = vadd.xlane.f32.xlu1 %v3232_v13  ;;  %v3229_v30 = vsel %vm99_vm0, %v3221_v16, 0.0 }
 0x543   :  { %3230 = vadd.xlane.f32.xlu0 %v3229_v30 }
 0x56e   :  { %v3191_v34 = vpop.xlane.xlu0 %3190 }
 0x56f   :  { %v3208_v5 = vmul.f32 0.125, %v3191_v34 }
 0x571   :  { %v4475_v14 = vsub.f32 %v3173_v33, %v3208_v5 }
 0x572   :  { %v3188_v36 = vpop.xlane.xlu0 %3187 }
 0x573   :  { %v3207_v43 = vmul.f32 0.125, %v3188_v36  ;;  %v3224_v7 = vmul.f32 %v4475_v14, %v4475_v14 }
 0x575   :  { %v4479_v19 = vsub.f32 %v3172_v21, %v3207_v43  ;;  %v3238_v49 = vsel %vm99_vm0, %v3224_v7, 0.0 }
 0x576   :  { %v3197_v6 = vpop.xlane.xlu1 %3196  ;;  %3239 = vadd.xlane.f32.xlu1 %v3238_v49 }
 0x577   :  { %v3210_v57 = vmul.f32 0.125, %v3197_v6  ;;  %v3194_v62 = vpop.xlane.xlu0 %3193  ;;  %v3223_v10 = vmul.f32 %v4479_v19, %v4479_v19 }
 0x578   :  { %v3209_v47 = vmul.f32 0.125, %v3194_v62 }
 0x579   :  { %v4484_v61 = vsub.f32 %v3175_v37, %v3210_v57  ;;  %v3235_v63 = vsel %vm99_vm0, %v3223_v10, 0.0 }
 0x57a   :  { %v4487_v20 = vsub.f32 %v3174_v18, %v3209_v47  ;;  %3236 = vadd.xlane.f32.xlu0 %v3235_v63 }
 0x57b   :  { %v3226_v22 = vmul.f32 %v4484_v61, %v4484_v61 }
 0x57c   :  { %v3225_v24 = vmul.f32 %v4487_v20, %v4487_v20 }
 0x57d   :  { %v3244_v26 = vsel %vm99_vm0, %v3226_v22, 0.0 }
 0x57e   :  { %3245 = vadd.xlane.f32.xlu1 %v3244_v26  ;;  %v3241_v0 = vsel %vm99_vm0, %v3225_v24, 0.0 }
 0x57f   :  { %3242 = vadd.xlane.f32.xlu0 %v3241_v0 }
 0x582   :  { %v3203_v28 = vpop.xlane.xlu1 %3202 }
 0x583   :  { %v3212_v29 = vmul.f32 0.125, %v3203_v28  ;;  %v3200_v25 = vpop.xlane.xlu0 %3199 }
 0x584   :  { %v3211_v9 = vmul.f32 0.125, %v3200_v25 }
 0x585   :  { %v4495_v35 = vsub.f32 %v3177_v55, %v3212_v29 }
 0x586   :  { %v4497_v17 = vsub.f32 %v3176_v60, %v3211_v9 }
 0x587   :  { %v3228_v2 = vmul.f32 %v4495_v35, %v4495_v35 }
 0x588   :  { %v3227_v31 = vmul.f32 %v4497_v17, %v4497_v17 }
 0x589   :  { %v3250_v39 = vsel %vm99_vm0, %v3228_v2, 0.0 }
 0x58a   :  { %3251 = vadd.xlane.f32.xlu1 %v3250_v39  ;;  %v3247_v33 = vsel %vm99_vm0, %v3227_v31, 0.0 }
 0x58b   :  { %3248 = vadd.xlane.f32.xlu0 %v3247_v33 }
 0x5cf   :  { %v3234_v45 = vpop.xlane.xlu1 %3233 }
 0x5d0   :  { %v3254_v23 = vmul.f32 0.125, %v3234_v45  ;;  %v3231_v21 = vpop.xlane.xlu0 %3230 }
 0x5d1   :  { %v3253_v27 = vmul.f32 0.125, %v3231_v21 }
 0x5d2   :  { %v3262_v38 = vadd.f32 1e-05, %v3254_v23 }
 0x5d3   :  { %v3261_v50 = vadd.f32 1e-05, %v3253_v27 }
 0x5d4   :  { %3829 = vrsqrt.f32 %v3262_v38 }
 0x5d5   :  { %3831 = vrsqrt.f32 %v3261_v50 }
 0x5de   :  { %v3830_v32 = vpop.eup %3829 }
 0x5df   :  { %v3832_v41 = vpop.eup %3831  ;;  %v3278_v37 = vmul.f32 %v3830_v32, %v3214_v12 }
 0x5e0   :  { %v3277_v18 = vmul.f32 %v3832_v41, %v3213_v15 }
 0x5e1   :  { %v3292_v44 = vmul.f32 %v4508_v40, %v3278_v37 }
 0x5e2   :  { %v3291_v46 = vmul.f32 %v4508_v40, %v3277_v18 }
 0x5e3   :  { %v3306_v58 = vadd.f32 %v4513_v56, %v3292_v44 }
 0x5e4   :  { %v3305_v51 = vadd.f32 %v4513_v56, %v3291_v46 }
 0x5e5   :  { %v3322_v48 = vcombine.high %v3306_v58, %v3306_v58  ;;  %3340 = vst.msk [vmem:[%s4611_s10 + $0x8] sm:$0xf] %vm3337_vm5, %v3306_v58 }
 0x5e6   :  { %v3321_v42 = vcombine.high %v3305_v51, %v3305_v51  ;;  %3338 = vst.msk [vmem:[%s4611_s10] sm:$0xf] %vm3337_vm5, %v3305_v51 }
 0x5e7   :  { %3341 = vst.msk [vmem:[%s4611_s10 + $0xc] sm:$0xf] %vm3337_vm5, %v3322_v48 }
 0x5e8   :  { %3339 = vst.msk [vmem:[%s4611_s10 + $0x4] sm:$0xf] %vm3337_vm5, %v3321_v42 }
 0x603   :  { %v3240_v53 = vpop.xlane.xlu1 %3239 }
 0x604   :  { %v3256_v55 = vmul.f32 0.125, %v3240_v53 }
 0x606   :  { %v3264_v59 = vadd.f32 1e-05, %v3256_v55 }
 0x607   :  { %v3237_v60 = vpop.xlane.xlu0 %3236 }
 0x608   :  { %3833 = vrsqrt.f32 %v3264_v59  ;;  %v3255_v54 = vmul.f32 0.125, %v3237_v60 }
 0x60a   :  { %v3263_v52 = vadd.f32 1e-05, %v3255_v54 }
 0x60b   :  { %v3246_v1 = vpop.xlane.xlu1 %3245 }
 0x60c   :  { %3835 = vrsqrt.f32 %v3263_v52  ;;  %v3258_v11 = vmul.f32 0.125, %v3246_v1  ;;  %v3243_v3 = vpop.xlane.xlu0 %3242 }
 0x60d   :  { %v3257_v8 = vmul.f32 0.125, %v3243_v3 }
 0x60e   :  { %v3266_v12 = vadd.f32 1e-05, %v3258_v11 }
 0x60f   :  { %v3265_v15 = vadd.f32 1e-05, %v3257_v8 }
 0x610   :  { %3837 = vrsqrt.f32 %v3266_v12 }
 0x611   :  { %3839 = vrsqrt.f32 %v3265_v15 }
 0x612   :  { %v3834_v4 = vpop.eup %3833 }
 0x613   :  { %v3280_v16 = vmul.f32 %v3834_v4, %v4475_v14 }
 0x615   :  { %v3294_v13 = vmul.f32 %v4508_v40, %v3280_v16 }
 0x616   :  { %v3836_v30 = vpop.eup %3835 }
 0x617   :  { %v3308_v34 = vadd.f32 %v4513_v56, %v3294_v13  ;;  %v3279_v5 = vmul.f32 %v3836_v30, %v4479_v19  ;;  %v3252_v36 = vpop.xlane.xlu1 %3251 }
 0x618   :  { %v3260_v43 = vmul.f32 0.125, %v3252_v36  ;;  %v3249_v7 = vpop.xlane.xlu0 %3248 }
 0x619   :  { %v3324_v49 = vcombine.high %v3308_v34, %v3308_v34  ;;  %3344 = vst.msk [vmem:[%s4611_s10 + $0x18] sm:$0xf] %vm3337_vm5, %v3308_v34  ;;  %v3293_v6 = vmul.f32 %v4508_v40, %v3279_v5  ;;  %v3259_v57 = vmul.f32 0.125, %v3249_v7 }
 0x61a   :  { %v3838_v14 = vpop.eup %3837  ;;  %v3268_v62 = vadd.f32 1e-05, %v3260_v43 }
 0x61b   :  { %v3840_v10 = vpop.eup %3839  ;;  %3345 = vst.msk [vmem:[%s4611_s10 + $0x1c] sm:$0xf] %vm3337_vm5, %v3324_v49  ;;  %v3307_v19 = vadd.f32 %v4513_v56, %v3293_v6  ;;  %v3282_v47 = vmul.f32 %v3838_v14, %v4484_v61  ;;  %v3267_v63 = vadd.f32 1e-05, %v3259_v57 }
 0x61c   :  { %v3281_v22 = vmul.f32 %v3840_v10, %v4487_v20  ;;  %3841 = vrsqrt.f32 %v3268_v62 }
 0x61d   :  { %v3323_v24 = vcombine.high %v3307_v19, %v3307_v19  ;;  %3342 = vst.msk [vmem:[%s4611_s10 + $0x10] sm:$0xf] %vm3337_vm5, %v3307_v19  ;;  %v3296_v26 = vmul.f32 %v4508_v40, %v3282_v47  ;;  %3843 = vrsqrt.f32 %v3267_v63 }
 0x61e   :  { %v3295_v0 = vmul.f32 %v4508_v40, %v3281_v22 }
 0x61f   :  { %3343 = vst.msk [vmem:[%s4611_s10 + $0x14] sm:$0xf] %vm3337_vm5, %v3323_v24  ;;  %v3310_v61 = vadd.f32 %v4513_v56, %v3296_v26 }
 0x620   :  { %v3309_v20 = vadd.f32 %v4513_v56, %v3295_v0 }
 0x621   :  { %v3326_v28 = vcombine.high %v3310_v61, %v3310_v61  ;;  %3348 = vst.msk [vmem:[%s4611_s10 + $0x28] sm:$0xf] %vm3337_vm5, %v3310_v61 }
 0x622   :  { %v3325_v29 = vcombine.high %v3309_v20, %v3309_v20  ;;  %3346 = vst.msk [vmem:[%s4611_s10 + $0x20] sm:$0xf] %vm3337_vm5, %v3309_v20 }
 0x623   :  { %3349 = vst.msk [vmem:[%s4611_s10 + $0x2c] sm:$0xf] %vm3337_vm5, %v3326_v28 }
 0x624   :  { %3347 = vst.msk [vmem:[%s4611_s10 + $0x24] sm:$0xf] %vm3337_vm5, %v3325_v29 }
 0x626   :  { %v3842_v25 = vpop.eup %3841 }
 0x627   :  { %v3844_v9 = vpop.eup %3843  ;;  %v3284_v2 = vmul.f32 %v3842_v25, %v4495_v35 }
 0x628   :  { %v3283_v31 = vmul.f32 %v3844_v9, %v4497_v17 }
 0x629   :  { %v3298_v39 = vmul.f32 %v4508_v40, %v3284_v2 }
 0x62a   :  { %v3297_v33 = vmul.f32 %v4508_v40, %v3283_v31 }
 0x62b   :  { %v3312_v45 = vadd.f32 %v4513_v56, %v3298_v39 }
 0x62c   :  { %v3311_v23 = vadd.f32 %v4513_v56, %v3297_v33 }
 0x62d   :  { %v3328_v21 = vcombine.high %v3312_v45, %v3312_v45  ;;  %3352 = vst.msk [vmem:[%s4611_s10 + $0x38] sm:$0xf] %vm3337_vm5, %v3312_v45 }
 0x62e   :  { %v3327_v27 = vcombine.high %v3311_v23, %v3311_v23  ;;  %3350 = vst.msk [vmem:[%s4611_s10 + $0x30] sm:$0xf] %vm3337_vm5, %v3311_v23 }
 0x62f   :  { %3353 = vst.msk [vmem:[%s4611_s10 + $0x3c] sm:$0xf] %vm3337_vm5, %v3328_v21 }
 0x630   :  { %3351 = vst.msk [vmem:[%s4611_s10 + $0x34] sm:$0xf] %vm3337_vm5, %v3327_v27 }

</bundles_post_ra>
